<compile_context>
chip_gen: v7x
topology: tpu7x:2x2x1
jax: 0.10.0
libtpu: 0.0.40
codegen_flags: <defaults>
</compile_context>

<pallas_src>
import functools

import jax
import jax.numpy as jnp
from jax import lax
from jax.experimental import pallas as pl
from jax.experimental.pallas import tpu as pltpu


T_CHUNK = 16  # LSTM time steps processed (fully unrolled) per grid step


def _round_up(x, m):
    return (x + m - 1) // m * m


# --------------------------------------------------------------------------- #
# Tiled matmul with fused bias epilogue (LSTM input projections)
# --------------------------------------------------------------------------- #
def _matmul_bias_kernel(a_ref, b_ref, bias_ref, o_ref, acc_ref):
    @pl.when(pl.program_id(2) == 0)
    def _():
        acc_ref[...] = jnp.zeros_like(acc_ref)

    acc_ref[...] += jnp.dot(a_ref[...], b_ref[...],
                            preferred_element_type=jnp.float32)

    @pl.when(pl.program_id(2) == pl.num_programs(2) - 1)
    def _():
        o_ref[...] = acc_ref[...] + bias_ref[...]


def matmul_bias(a, b, bias, *, tm=256, tn=256, tk=512):
    """C = A @ B + bias[None, :]; f32 accumulation; zero-pads to the tile grid."""
    M, K = a.shape
    K2, N = b.shape
    assert K == K2 and bias.shape == (N,)

    def tile(dim, max_tile, align):
        if dim <= max_tile:
            return dim, dim                       # full-dim block (always legal)
        t = max(align, max_tile - max_tile % align)
        return t, _round_up(dim, t)

    tm_, Mp = tile(M, tm, 8)
    tk_, Kp = tile(K, tk, 128)
    tn_, Np = tile(N, tn, 128)

    a_p = a if (Mp, Kp) == (M, K) else jnp.pad(a, ((0, Mp - M), (0, Kp - K)))
    b_p = b if (Kp, Np) == (K, N) else jnp.pad(b, ((0, Kp - K), (0, Np - N)))
    bias_p = (bias if Np == N else jnp.pad(bias, (0, Np - N))).reshape(1, Np)

    out = pl.pallas_call(
        _matmul_bias_kernel,
        out_shape=jax.ShapeDtypeStruct((Mp, Np), jnp.float32),
        grid=(Mp // tm_, Np // tn_, Kp // tk_),
        in_specs=[
            pl.BlockSpec((tm_, tk_), lambda i, j, k: (i, k)),
            pl.BlockSpec((tk_, tn_), lambda i, j, k: (k, j)),
            pl.BlockSpec((1, tn_), lambda i, j, k: (0, j)),
        ],
        out_specs=pl.BlockSpec((tm_, tn_), lambda i, j, k: (i, j)),
        scratch_shapes=[pltpu.VMEM((tm_, tn_), jnp.float32)],
        compiler_params=pltpu.CompilerParams(
            dimension_semantics=("parallel", "parallel", "arbitrary")),
    )(a_p, b_p, bias_p)
    if (Mp, Np) != (M, N):
        out = out[:M, :N]
    return out


# --------------------------------------------------------------------------- #
# Fused bidirectional LSTM recurrence.
#   grid = (num_time_chunks,); per grid step a chunk of T_CHUNK steps is
#   unrolled; fwd walks its chunk front-to-back, bwd walks its (time-reversed)
#   chunk back-to-front; h/c state lives in VMEM scratch.  Length gating
#   (state frozen, output zeroed at padded steps) emulates
#   pack_padded_sequence / pad_packed_sequence.
# --------------------------------------------------------------------------- #
def _bilstm_kernel(xpf_ref, xpb_ref, whhf_ref, whhb_ref, lens_ref,
                   of_ref, ob_ref, hf, cf, hb, cb, *, hidden, t_chunk):
    chunk = pl.program_id(0)
    n_chunks = pl.num_programs(0)

    @pl.when(chunk == 0)
    def _():
        hf[...] = jnp.zeros_like(hf)
        cf[...] = jnp.zeros_like(cf)
        hb[...] = jnp.zeros_like(hb)
        cb[...] = jnp.zeros_like(cb)

    H = hidden
    lens = lens_ref[...]           # (Bc, 1) int32 — per-row sequence length
    whh_f = whhf_ref[...]          # (H, 4H) hoisted out of the time loop
    whh_b = whhb_ref[...]

    def cell(xp_row, h_prev, c_prev, whh):
        # PyTorch gate order: i, f, g, o
        gates = xp_row + jnp.dot(h_prev, whh, preferred_element_type=jnp.float32)
        i = jax.nn.sigmoid(gates[:, 0 * H:1 * H])
        f = jax.nn.sigmoid(gates[:, 1 * H:2 * H])
        g = jnp.tanh(gates[:, 2 * H:3 * H])
        o = jax.nn.sigmoid(gates[:, 3 * H:4 * H])
        c_new = f * c_prev + i * g
        h_new = o * jnp.tanh(c_new)
        return h_new, c_new

    # Fully unrolled time loop; fwd and bwd are interleaved so their small MXU
    # ops overlap in the scheduler.
    for j in range(t_chunk):
        # ---- forward: absolute time = chunk * t_chunk + j ----
        t_f = chunk * t_chunk + j
        valid = lens > t_f                                   # (Bc, 1) bool
        h_new, c_new = cell(xpf_ref[j], hf[...], cf[...], whh_f)
        hf[...] = jnp.where(valid, h_new, hf[...])
        cf[...] = jnp.where(valid, c_new, cf[...])
        of_ref[j] = jnp.where(valid, h_new, 0.0)             # padded steps -> 0

        # ---- backward: this block holds times
        #      [(n_chunks-1-chunk)*t_chunk, +t_chunk); iterate it in reverse ----
        jr = t_chunk - 1 - j
        t_b = (n_chunks - 1 - chunk) * t_chunk + jr
        valid = lens > t_b
        h_new, c_new = cell(xpb_ref[jr], hb[...], cb[...], whh_b)
        hb[...] = jnp.where(valid, h_new, hb[...])
        cb[...] = jnp.where(valid, c_new, cb[...])
        ob_ref[jr] = jnp.where(valid, h_new, 0.0)


def bilstm(xp_f, xp_b, whh_f_t, whh_b_t, lens, *, hidden, t_chunk):
    """xp_*: (Lp, Bc, 4H) time-major projected inputs, whh_*_t: (H, 4H),
    lens: (Bc, 1) int32.  Returns fwd/bwd hidden streams, each (Lp, Bc, H)."""
    Lp, Bc, G = xp_f.shape
    H = hidden
    assert Lp % t_chunk == 0
    nc = Lp // t_chunk

    return pl.pallas_call(
        functools.partial(_bilstm_kernel, hidden=H, t_chunk=t_chunk),
        out_shape=(jax.ShapeDtypeStruct((Lp, Bc, H), jnp.float32),
                   jax.ShapeDtypeStruct((Lp, Bc, H), jnp.float32)),
        grid=(nc,),
        in_specs=[
            pl.BlockSpec((t_chunk, Bc, G), lambda c: (c, 0, 0)),
            # bwd direction reads reversed time via its index_map (no host flip)
            pl.BlockSpec((t_chunk, Bc, G), lambda c: (nc - 1 - c, 0, 0)),
            pl.BlockSpec((H, G), lambda c: (0, 0)),
            pl.BlockSpec((H, G), lambda c: (0, 0)),
            pl.BlockSpec((Bc, 1), lambda c: (0, 0)),
        ],
        out_specs=(
            pl.BlockSpec((t_chunk, Bc, H), lambda c: (c, 0, 0)),
            pl.BlockSpec((t_chunk, Bc, H), lambda c: (nc - 1 - c, 0, 0)),
        ),
        scratch_shapes=[pltpu.VMEM((Bc, H), jnp.float32) for _ in range(4)],
        compiler_params=pltpu.CompilerParams(dimension_semantics=("arbitrary",)),
    )(xp_f, xp_b, whh_f_t, whh_b_t, lens)


def lstm_encoder_packed(c_emb, q_emb, c_len, q_len, lstm_params, hidden,
                        t_chunk=T_CHUNK):
    """Shared-weight BiLSTM over the stacked {context, question} batch.
    Returns (c_enc (B, Lc, 2H), q_enc (B, Lq, 2H))."""
    B, Lc, E = c_emb.shape
    _, Lq, _ = q_emb.shape
    H = hidden
    Lmax = max(Lc, Lq)
    Lp = _round_up(Lmax, t_chunk)
    Bc = 2 * B

    c_pad = jnp.pad(c_emb, ((0, 0), (0, Lp - Lc), (0, 0)))
    q_pad = jnp.pad(q_emb, ((0, 0), (0, Lp - Lq), (0, 0)))
    x_all = jnp.concatenate([c_pad, q_pad], axis=0)            # (Bc, Lp, E)
    lens = jnp.concatenate([c_len, q_len]).astype(jnp.int32).reshape(Bc, 1)

    x_tm = x_all.transpose(1, 0, 2).reshape(Lp * Bc, E)        # time-major rows

    w_ih_f, w_hh_f, b_ih_f, b_hh_f = lstm_params["fwd"]
    w_ih_b, w_hh_b, b_ih_b, b_hh_b = lstm_params["bwd"]

    # input projections: tiled matmul with the bias fused into the epilogue
    xp_f = matmul_bias(x_tm, w_ih_f.T, b_ih_f + b_hh_f).reshape(Lp, Bc, 4 * H)
    xp_b = matmul_bias(x_tm, w_ih_b.T, b_ih_b + b_hh_b).reshape(Lp, Bc, 4 * H)

    out_f, out_b = bilstm(xp_f, xp_b, w_hh_f.T, w_hh_b.T, lens,
                          hidden=H, t_chunk=t_chunk)           # (Lp, Bc, H) x 2

    enc = jnp.concatenate([out_f, out_b], axis=-1).transpose(1, 0, 2)  # (Bc, Lp, 2H)
    return enc[:B, :Lc], enc[B:, :Lq]


# --------------------------------------------------------------------------- #
# Fused BiDAF attention + SoftmaxOutputLayer (per batch element)
# --------------------------------------------------------------------------- #
def _att_out_kernel(c_ref, q_ref, clen_ref, qlen_ref, cw_ref, qw_ref, cqw_ref,
                    ab_ref, wout_ref, bout_ref, out_ref, *, d2):
    bidx = pl.program_id(0)
    c = c_ref[0]                          # (Lc, 2H)
    q = q_ref[0]                          # (Lq, 2H)
    Lc, Lq = c.shape[0], q.shape[0]
    c_len = clen_ref[bidx]                # scalar (SMEM)
    q_len = qlen_ref[bidx]
    att_bias = ab_ref[0, 0]               # scalar (SMEM)
    neg = jnp.float32(-1e30)

    cq = c * cqw_ref[...]                 # (Lc, 2H), shared operand

    # similarity S = c@wc + (q@wq)^T + (c*w_cq)@q^T + bias, shape (Lc, Lq)
    s0_col = jnp.sum(c * cw_ref[...], axis=-1, keepdims=True)              # (Lc, 1)
    s1_row = lax.dot_general(qw_ref[...], q, (((1,), (1,)), ((), ())),
                             preferred_element_type=jnp.float32)           # (1, Lq)
    s_cq = lax.dot_general(cq, q, (((1,), (1,)), ((), ())),
                           preferred_element_type=jnp.float32)             # (Lc, Lq)
    s = s0_col + s1_row + s_cq + att_bias

    # S^T (Lq, Lc), built directly in transposed orientation so the
    # context-axis softmax becomes a lane-axis softmax and every matmul stays
    # in MXU-native A@B^T form (no (Lc, Lc) intermediate anywhere).
    s0_row = lax.dot_general(cw_ref[...], c, (((1,), (1,)), ((), ())),
                             preferred_element_type=jnp.float32)           # (1, Lc)
    s1_col = jnp.sum(q * qw_ref[...], axis=-1, keepdims=True)              # (Lq, 1)
    s_cq_t = lax.dot_general(q, cq, (((1,), (1,)), ((), ())),
                             preferred_element_type=jnp.float32)           # (Lq, Lc)
    s_t = s0_row + s1_col + s_cq_t + att_bias

    # masks rebuilt in-kernel from the SMEM lengths
    q_valid = lax.broadcasted_iota(jnp.int32, (Lc, Lq), 1) < q_len
    c_valid_t = lax.broadcasted_iota(jnp.int32, (Lq, Lc), 1) < c_len

    # softmax over the question axis (masked by q mask) -> s1m (Lc, Lq)
    l1 = jnp.where(q_valid, s, neg)
    l1 = l1 - jnp.max(l1, axis=-1, keepdims=True)
    e1 = jnp.exp(l1)
    s1m = e1 / jnp.sum(e1, axis=-1, keepdims=True)

    # softmax over the context axis (masked by c mask), transposed -> (Lq, Lc)
    l2 = jnp.where(c_valid_t, s_t, neg)
    l2 = l2 - jnp.max(l2, axis=-1, keepdims=True)
    e2 = jnp.exp(l2)
    s2m_t = e2 / jnp.sum(e2, axis=-1, keepdims=True)

    a = jnp.dot(s1m, q, preferred_element_type=jnp.float32)        # (Lc, 2H)
    # re-associated q2c attention: b = s1m @ (softmax_c(S)^T @ c)
    qc = jnp.dot(s2m_t, c, preferred_element_type=jnp.float32)     # (Lq, 2H)
    b2 = jnp.dot(s1m, qc, preferred_element_type=jnp.float32)      # (Lc, 2H)

    # fused SoftmaxOutputLayer: logits = [c, a, c*a, c*b] @ W + b_out,
    # computed slab-by-slab (the 8H-wide concat is never materialised).
    w = wout_ref[...]                                              # (4*2H, 2)
    logits = (jnp.dot(c, w[0 * d2:1 * d2], preferred_element_type=jnp.float32)
              + jnp.dot(a, w[1 * d2:2 * d2], preferred_element_type=jnp.float32)
              + jnp.dot(c * a, w[2 * d2:3 * d2], preferred_element_type=jnp.float32)
              + jnp.dot(c * b2, w[3 * d2:4 * d2], preferred_element_type=jnp.float32)
              + bout_ref[...])                                     # (Lc, 2)

    # masked log-softmax over the context axis (start = col 0, end = col 1)
    valid2 = lax.broadcasted_iota(jnp.int32, (Lc, 2), 0) < c_len
    masked = jnp.where(valid2, logits, neg)
    z = masked - jnp.max(masked, axis=0, keepdims=True)
    logp = z - jnp.log(jnp.sum(jnp.exp(z), axis=0, keepdims=True))
    out_ref[0] = logp                                              # (Lc, 2)


def bidaf_attention_output(c_enc, q_enc, c_len, q_len, att_params, out_params):
    B, Lc, D2 = c_enc.shape
    _, Lq, _ = q_enc.shape
    c_w, q_w, cq_w, att_bias = att_params       # (1,D2) x3, (1,1)
    w_out, b_out = out_params                   # (4*D2, 2), (1, 2)

    out = pl.pallas_call(
        functools.partial(_att_out_kernel, d2=D2),
        out_shape=jax.ShapeDtypeStruct((B, Lc, 2), jnp.float32),
        grid=(B,),
        in_specs=[
            pl.BlockSpec((1, Lc, D2), lambda b: (b, 0, 0)),
            pl.BlockSpec((1, Lq, D2), lambda b: (b, 0, 0)),
            pl.BlockSpec(memory_space=pltpu.MemorySpace.SMEM),   # c_len (B,)
            pl.BlockSpec(memory_space=pltpu.MemorySpace.SMEM),   # q_len (B,)
            pl.BlockSpec((1, D2), lambda b: (0, 0)),             # c_weight
            pl.BlockSpec((1, D2), lambda b: (0, 0)),             # q_weight
            pl.BlockSpec((1, D2), lambda b: (0, 0)),             # cq_weight
            pl.BlockSpec(memory_space=pltpu.MemorySpace.SMEM),   # att bias (1,1)
            pl.BlockSpec((4 * D2, 2), lambda b: (0, 0)),         # output projection
            pl.BlockSpec((1, 2), lambda b: (0, 0)),              # output bias
        ],
        out_specs=pl.BlockSpec((1, Lc, 2), lambda b: (b, 0, 0)),
        compiler_params=pltpu.CompilerParams(dimension_semantics=("parallel",)),
    )(c_enc, q_enc, c_len.astype(jnp.int32), q_len.astype(jnp.int32),
      c_w, q_w, cq_w, att_bias, w_out, b_out)
    return out[..., 0], out[..., 1]             # (B, Lc) each


# --------------------------------------------------------------------------- #
# Full QA_Model forward
# --------------------------------------------------------------------------- #
def qa_forward(params, context_idxs, question_idxs, *, hidden, t_chunk=T_CHUNK):
    emb = params["embedding"]

    # Reference masks are (idx != 0); with trailing padding (SQuAD convention,
    # and what pack_padded_sequence assumes) mask == (position < length).
    c_len = jnp.sum((context_idxs != 0).astype(jnp.int32), axis=-1)   # (B,)
    q_len = jnp.sum((question_idxs != 0).astype(jnp.int32), axis=-1)  # (B,)

    # Embedding lookup stays in XLA (gather).
    c_emb = jnp.take(emb, context_idxs, axis=0)    # (B, Lc, E)
    q_emb = jnp.take(emb, question_idxs, axis=0)   # (B, Lq, E)

    c_enc, q_enc = lstm_encoder_packed(c_emb, q_emb, c_len, q_len,
                                       params["lstm"], hidden, t_chunk)

    return bidaf_attention_output(c_enc, q_enc, c_len, q_len,
                                  params["att"], params["out"])


# --------------------------------------------------------------------------- #
# Deterministic parameter / input construction
# --------------------------------------------------------------------------- #
def make_params(key, vocab, emb_dim, hidden):
    ks = jax.random.split(key, 16)
    scale = 0.1
    word_vectors = scale * jax.random.normal(ks[0], (vocab, emb_dim), jnp.float32)
    word_vectors = word_vectors.at[0].set(0.0)      # PAD row

    def lstm_dir(k):
        k1, k2, k3, k4 = jax.random.split(k, 4)
        return (
            scale * jax.random.normal(k1, (4 * hidden, emb_dim), jnp.float32),  # w_ih
            scale * jax.random.normal(k2, (4 * hidden, hidden), jnp.float32),   # w_hh
            scale * jax.random.normal(k3, (4 * hidden,), jnp.float32),          # b_ih
            scale * jax.random.normal(k4, (4 * hidden,), jnp.float32),          # b_hh
        )

    d2 = 2 * hidden
    return {
        "embedding": word_vectors,
        "lstm": {"fwd": lstm_dir(ks[1]), "bwd": lstm_dir(ks[2])},
        "att": (
            scale * jax.random.normal(ks[3], (1, d2), jnp.float32),   # c_weight
            scale * jax.random.normal(ks[4], (1, d2), jnp.float32),   # q_weight
            scale * jax.random.normal(ks[5], (1, d2), jnp.float32),   # cq_weight
            scale * jax.random.normal(ks[6], (1, 1), jnp.float32),    # bias
        ),
        "out": (
            scale * jax.random.normal(ks[7], (4 * d2, 2), jnp.float32),  # start/end
            scale * jax.random.normal(ks[8], (1, 2), jnp.float32),
        ),
    }


if __name__ == "__main__":
    B, Lc, Lq = 2, 16, 8
    vocab, emb_dim, hidden = 40, 32, 32

    key = jax.random.PRNGKey(0)
    kp, kc, kq = jax.random.split(key, 3)
    params = make_params(kp, vocab, emb_dim, hidden)

    context_idxs = jax.random.randint(kc, (B, Lc), 1, vocab, dtype=jnp.int32)
    question_idxs = jax.random.randint(kq, (B, Lq), 1, vocab, dtype=jnp.int32)
    # trailing padding (index 0) so masks / packed-LSTM emulation are exercised
    context_idxs = context_idxs.at[0, 13:].set(0)
    context_idxs = context_idxs.at[1, 10:].set(0)
    question_idxs = question_idxs.at[0, 6:].set(0)
    question_idxs = question_idxs.at[1, 5:].set(0)

    # `hidden` is a static Python int (bound via partial), NOT a jit-traced leaf.
    fwd = jax.jit(functools.partial(qa_forward, hidden=hidden))
    log_p_start, log_p_end = fwd(params, context_idxs, question_idxs)
    jax.block_until_ready((log_p_start, log_p_end))

    assert log_p_start.shape == (B, Lc) and log_p_end.shape == (B, Lc)
    assert bool(jnp.all(jnp.isfinite(log_p_start)))
    assert bool(jnp.all(jnp.isfinite(log_p_end)))
    print("KERNEL_OK")
</pallas_src>

<mosaic_0001>
module attributes {stable_mosaic.version = 11 : i64} {
  func.func @_matmul_bias_kernel(%arg0: i32, %arg1: i32, %arg2: i32, %arg3: memref<64x32xf32, #tpu.memory_space<vmem>>, %arg4: memref<32x128xf32, #tpu.memory_space<vmem>>, %arg5: memref<1x128xf32, #tpu.memory_space<vmem>>, %arg6: memref<64x128xf32, #tpu.memory_space<vmem>>, %arg7: memref<64x128xf32, #tpu.memory_space<vmem>>) attributes {dimension_semantics = [#tpu.dimension_semantics<parallel>, #tpu.dimension_semantics<parallel>, #tpu.dimension_semantics<arbitrary>], iteration_bounds = array<i64: 1, 1, 1>, scalar_prefetch = 0 : i64, scratch_operands = 1 : i64, tpu.core_type = #tpu.core_type<tc>, window_params = [{transform_indices = @transform_0, window_bounds = array<i64: 64, 32>}, {transform_indices = @transform_1, window_bounds = array<i64: 32, 128>}, {transform_indices = @transform_2, window_bounds = array<i64: 1, 128>}, {transform_indices = @transform_3, window_bounds = array<i64: 64, 128>}]} {
    %c0_i32 = arith.constant 0 : i32
    %0 = arith.cmpi eq, %arg2, %c0_i32 : i32
    %1 = arith.extui %0 : i1 to i32
    %c0_i32_0 = arith.constant 0 : i32
    %2 = arith.cmpi ne, %1, %c0_i32_0 : i32
    scf.if %2 {
      %cst_10 = arith.constant 0.000000e+00 : f32
      %12 = vector.broadcast %cst_10 : f32 to vector<64x128xf32>
      %c0_11 = arith.constant 0 : index
      %c0_12 = arith.constant 0 : index
      %13 = vector.load %arg7[%c0_11, %c0_12] : memref<64x128xf32, #tpu.memory_space<vmem>>, vector<64x128xf32>
      tpu.vector_store %arg7[%c0_11, %c0_12], %12 {strides = array<i32>} : memref<64x128xf32, #tpu.memory_space<vmem>>, vector<64x128xf32>,
    } else {
    }
    %c0 = arith.constant 0 : index
    %c0_1 = arith.constant 0 : index
    %3 = vector.load %arg7[%c0, %c0_1] : memref<64x128xf32, #tpu.memory_space<vmem>>, vector<64x128xf32>
    %c0_2 = arith.constant 0 : index
    %c0_3 = arith.constant 0 : index
    %4 = vector.load %arg3[%c0_2, %c0_3] : memref<64x32xf32, #tpu.memory_space<vmem>>, vector<64x32xf32>
    %c0_4 = arith.constant 0 : index
    %c0_5 = arith.constant 0 : index
    %5 = vector.load %arg4[%c0_4, %c0_5] : memref<32x128xf32, #tpu.memory_space<vmem>>, vector<32x128xf32>
    %cst = arith.constant dense<0.000000e+00> : vector<64x128xf32>
    %6 = tpu.matmul %4, %5, %cst {dimension_numbers = #tpu.dot_dimension_numbers<[1], [0], [0], [1], [0, 0, 1, 1], [], []>} : vector<64x32xf32>, vector<32x128xf32>, vector<64x128xf32> -> vector<64x128xf32>
    %7 = arith.addf %3, %6 : vector<64x128xf32>
    %c0_6 = arith.constant 0 : index
    %c0_7 = arith.constant 0 : index
    %8 = vector.load %arg7[%c0_6, %c0_7] : memref<64x128xf32, #tpu.memory_space<vmem>>, vector<64x128xf32>
    tpu.vector_store %arg7[%c0_6, %c0_7], %7 {strides = array<i32>} : memref<64x128xf32, #tpu.memory_space<vmem>>, vector<64x128xf32>,
    %c0_i32_8 = arith.constant 0 : i32
    %9 = arith.cmpi eq, %arg2, %c0_i32_8 : i32
    %10 = arith.extui %9 : i1 to i32
    %c0_i32_9 = arith.constant 0 : i32
    %11 = arith.cmpi ne, %10, %c0_i32_9 : i32
    scf.if %11 {
      %c0_10 = arith.constant 0 : index
      %c0_11 = arith.constant 0 : index
      %12 = vector.load %arg7[%c0_10, %c0_11] : memref<64x128xf32, #tpu.memory_space<vmem>>, vector<64x128xf32>
      %c0_12 = arith.constant 0 : index
      %c0_13 = arith.constant 0 : index
      %13 = vector.load %arg5[%c0_12, %c0_13] : memref<1x128xf32, #tpu.memory_space<vmem>>, vector<1x128xf32>
      %14 = vector.broadcast %13 : vector<1x128xf32> to vector<64x128xf32>
      %15 = arith.addf %12, %14 : vector<64x128xf32>
      %c0_14 = arith.constant 0 : index
      %c0_15 = arith.constant 0 : index
      %16 = vector.load %arg6[%c0_14, %c0_15] : memref<64x128xf32, #tpu.memory_space<vmem>>, vector<64x128xf32>
      tpu.vector_store %arg6[%c0_14, %c0_15], %15 {strides = array<i32>} : memref<64x128xf32, #tpu.memory_space<vmem>>, vector<64x128xf32>,
    } else {
    }
    return
  }
  func.func @transform_0(%arg0: i32, %arg1: i32, %arg2: i32) -> (i32, i32) {
    %c0_i32 = arith.constant 0 : i32
    return %arg0, %arg2 : i32, i32
  }
  func.func @transform_1(%arg0: i32, %arg1: i32, %arg2: i32) -> (i32, i32) {
    %c0_i32 = arith.constant 0 : i32
    return %arg2, %arg1 : i32, i32
  }
  func.func @transform_2(%arg0: i32, %arg1: i32, %arg2: i32) -> (i32, i32) {
    %c0_i32 = arith.constant 0 : i32
    %c0_i32_0 = arith.constant 0 : i32
    return %c0_i32, %arg1 : i32, i32
  }
  func.func @transform_3(%arg0: i32, %arg1: i32, %arg2: i32) -> (i32, i32) {
    %c0_i32 = arith.constant 0 : i32
    return %arg0, %arg1 : i32, i32
  }
}

module attributes {stable_mosaic.version = 11 : i64} {
  func.func @_att_out_kernel(%arg0: i32, %arg1: memref<1x16x64xf32, #tpu.memory_space<vmem>>, %arg2: memref<1x8x64xf32, #tpu.memory_space<vmem>>, %arg3: memref<2xi32, #tpu.memory_space<smem>>, %arg4: memref<2xi32, #tpu.memory_space<smem>>, %arg5: memref<1x64xf32, #tpu.memory_space<vmem>>, %arg6: memref<1x64xf32, #tpu.memory_space<vmem>>, %arg7: memref<1x64xf32, #tpu.memory_space<vmem>>, %arg8: memref<1x1xf32, #tpu.memory_space<smem>>, %arg9: memref<256x2xf32, #tpu.memory_space<vmem>>, %arg10: memref<1x2xf32, #tpu.memory_space<vmem>>, %arg11: memref<1x16x2xf32, #tpu.memory_space<vmem>>) attributes {dimension_semantics = [#tpu.dimension_semantics<parallel>], iteration_bounds = array<i64: 2>, scalar_prefetch = 0 : i64, scratch_operands = 0 : i64, tpu.core_type = #tpu.core_type<tc>, window_params = [{transform_indices = @transform_0, window_bounds = array<i64: 1, 16, 64>}, {transform_indices = @transform_1, window_bounds = array<i64: 1, 8, 64>}, {transform_indices = @transform_2, window_bounds = array<i64: 2>}, {transform_indices = @transform_3, window_bounds = array<i64: 2>}, {pipeline_mode = #tpu.pipeline_mode<synchronous>, transform_indices = @transform_4, window_bounds = array<i64: 1, 64>}, {pipeline_mode = #tpu.pipeline_mode<synchronous>, transform_indices = @transform_5, window_bounds = array<i64: 1, 64>}, {pipeline_mode = #tpu.pipeline_mode<synchronous>, transform_indices = @transform_6, window_bounds = array<i64: 1, 64>}, {transform_indices = @transform_7, window_bounds = array<i64: 1, 1>}, {pipeline_mode = #tpu.pipeline_mode<synchronous>, transform_indices = @transform_8, window_bounds = array<i64: 256, 2>}, {pipeline_mode = #tpu.pipeline_mode<synchronous>, transform_indices = @transform_9, window_bounds = array<i64: 1, 2>}, {transform_indices = @transform_10, window_bounds = array<i64: 1, 16, 2>}]} {
    %c0 = arith.constant 0 : index
    %c0_0 = arith.constant 0 : index
    %c0_1 = arith.constant 0 : index
    %0 = vector.load %arg1[%c0, %c0_0, %c0_1] : memref<1x16x64xf32, #tpu.memory_space<vmem>>, vector<1x16x64xf32>
    %1 = vector.shape_cast %0 : vector<1x16x64xf32> to vector<16x64xf32>
    %c0_2 = arith.constant 0 : index
    %c0_3 = arith.constant 0 : index
    %c0_4 = arith.constant 0 : index
    %2 = vector.load %arg2[%c0_2, %c0_3, %c0_4] : memref<1x8x64xf32, #tpu.memory_space<vmem>>, vector<1x8x64xf32>
    %3 = vector.shape_cast %2 : vector<1x8x64xf32> to vector<8x64xf32>
    %4 = arith.index_cast %arg0 : i32 to index
    %5 = memref.load %arg3[%4] : memref<2xi32, #tpu.memory_space<smem>>
    %6 = arith.index_cast %arg0 : i32 to index
    %7 = memref.load %arg4[%6] : memref<2xi32, #tpu.memory_space<smem>>
    %c0_5 = arith.constant 0 : index
    %c0_6 = arith.constant 0 : index
    %8 = memref.load %arg8[%c0_5, %c0_6] : memref<1x1xf32, #tpu.memory_space<smem>>
    %c0_7 = arith.constant 0 : index
    %c0_8 = arith.constant 0 : index
    %9 = vector.load %arg7[%c0_7, %c0_8] : memref<1x64xf32, #tpu.memory_space<vmem>>, vector<1x64xf32>
    %10 = vector.broadcast %9 : vector<1x64xf32> to vector<16x64xf32>
    %11 = arith.mulf %1, %10 : vector<16x64xf32>
    %c0_9 = arith.constant 0 : index
    %c0_10 = arith.constant 0 : index
    %12 = vector.load %arg5[%c0_9, %c0_10] : memref<1x64xf32, #tpu.memory_space<vmem>>, vector<1x64xf32>
    %13 = vector.broadcast %12 : vector<1x64xf32> to vector<16x64xf32>
    %14 = arith.mulf %1, %13 : vector<16x64xf32>
    %cst = arith.constant dense<0.000000e+00> : vector<16xf32>
    %15 = vector.multi_reduction <add>, %14, %cst [1] : vector<16x64xf32> to vector<16xf32>
    %16 = vector.shape_cast %15 : vector<16xf32> to vector<16x1xf32>
    %c0_11 = arith.constant 0 : index
    %c0_12 = arith.constant 0 : index
    %17 = vector.load %arg6[%c0_11, %c0_12] : memref<1x64xf32, #tpu.memory_space<vmem>>, vector<1x64xf32>
    %cst_13 = arith.constant dense<0.000000e+00> : vector<1x8xf32>
    %18 = tpu.matmul %17, %3, %cst_13 {dimension_numbers = #tpu.dot_dimension_numbers<[1], [1], [0], [0], [0, 0, 1, 0], [], []>} : vector<1x64xf32>, vector<8x64xf32>, vector<1x8xf32> -> vector<1x8xf32>
    %cst_14 = arith.constant dense<0.000000e+00> : vector<16x8xf32>
    %19 = tpu.matmul %11, %3, %cst_14 {dimension_numbers = #tpu.dot_dimension_numbers<[1], [1], [0], [0], [0, 0, 1, 0], [], []>} : vector<16x64xf32>, vector<8x64xf32>, vector<16x8xf32> -> vector<16x8xf32>
    %20 = vector.broadcast %16 : vector<16x1xf32> to vector<16x8xf32>
    %21 = vector.broadcast %18 : vector<1x8xf32> to vector<16x8xf32>
    %22 = arith.addf %20, %21 : vector<16x8xf32>
    %23 = arith.addf %22, %19 : vector<16x8xf32>
    %24 = vector.broadcast %8 : f32 to vector<16x8xf32>
    %25 = arith.addf %23, %24 : vector<16x8xf32>
    %c0_15 = arith.constant 0 : index
    %c0_16 = arith.constant 0 : index
    %26 = vector.load %arg5[%c0_15, %c0_16] : memref<1x64xf32, #tpu.memory_space<vmem>>, vector<1x64xf32>
    %cst_17 = arith.constant dense<0.000000e+00> : vector<1x16xf32>
    %27 = tpu.matmul %26, %1, %cst_17 {dimension_numbers = #tpu.dot_dimension_numbers<[1], [1], [0], [0], [0, 0, 1, 0], [], []>} : vector<1x64xf32>, vector<16x64xf32>, vector<1x16xf32> -> vector<1x16xf32>
    %c0_18 = arith.constant 0 : index
    %c0_19 = arith.constant 0 : index
    %28 = vector.load %arg6[%c0_18, %c0_19] : memref<1x64xf32, #tpu.memory_space<vmem>>, vector<1x64xf32>
    %29 = vector.broadcast %28 : vector<1x64xf32> to vector<8x64xf32>
    %30 = arith.mulf %3, %29 : vector<8x64xf32>
    %cst_20 = arith.constant dense<0.000000e+00> : vector<8xf32>
    %31 = vector.multi_reduction <add>, %30, %cst_20 [1] : vector<8x64xf32> to vector<8xf32>
    %32 = vector.shape_cast %31 : vector<8xf32> to vector<8x1xf32>
    %cst_21 = arith.constant dense<0.000000e+00> : vector<8x16xf32>
    %33 = tpu.matmul %3, %11, %cst_21 {dimension_numbers = #tpu.dot_dimension_numbers<[1], [1], [0], [0], [0, 0, 1, 0], [], []>} : vector<8x64xf32>, vector<16x64xf32>, vector<8x16xf32> -> vector<8x16xf32>
    %34 = vector.broadcast %27 : vector<1x16xf32> to vector<8x16xf32>
    %35 = vector.broadcast %32 : vector<8x1xf32> to vector<8x16xf32>
    %36 = arith.addf %34, %35 : vector<8x16xf32>
    %37 = arith.addf %36, %33 : vector<8x16xf32>
    %38 = vector.broadcast %8 : f32 to vector<8x16xf32>
    %39 = arith.addf %37, %38 : vector<8x16xf32>
    %40 = tpu.iota {dimensions = array<i32: 1>} : vector<16x8xi32>
    %41 = vector.broadcast %7 : i32 to vector<16x8xi32>
    %42 = arith.cmpi slt, %40, %41 : vector<16x8xi32>
    %43 = tpu.iota {dimensions = array<i32: 1>} : vector<8x16xi32>
    %44 = vector.broadcast %5 : i32 to vector<8x16xi32>
    %45 = arith.cmpi slt, %43, %44 : vector<8x16xi32>
    %cst_22 = arith.constant -1.000000e+30 : f32
    %46 = vector.broadcast %cst_22 : f32 to vector<16x8xf32>
    %47 = arith.select %42, %25, %46 : vector<16x8xi1>, vector<16x8xf32>
    %cst_23 = arith.constant dense<0xFF800000> : vector<16xf32>
    %48 = vector.multi_reduction <maximumf>, %47, %cst_23 [1] : vector<16x8xf32> to vector<16xf32>
    %49 = vector.shape_cast %48 : vector<16xf32> to vector<16x1xf32>
    %50 = vector.broadcast %49 : vector<16x1xf32> to vector<16x8xf32>
    %51 = arith.subf %47, %50 : vector<16x8xf32>
    %52 = math.exp %51 : vector<16x8xf32>
    %cst_24 = arith.constant dense<0.000000e+00> : vector<16xf32>
    %53 = vector.multi_reduction <add>, %52, %cst_24 [1] : vector<16x8xf32> to vector<16xf32>
    %54 = vector.shape_cast %53 : vector<16xf32> to vector<16x1xf32>
    %55 = vector.broadcast %54 : vector<16x1xf32> to vector<16x8xf32>
    %56 = arith.divf %52, %55 : vector<16x8xf32>
    %cst_25 = arith.constant -1.000000e+30 : f32
    %57 = vector.broadcast %cst_25 : f32 to vector<8x16xf32>
    %58 = arith.select %45, %39, %57 : vector<8x16xi1>, vector<8x16xf32>
    %cst_26 = arith.constant dense<0xFF800000> : vector<8xf32>
    %59 = vector.multi_reduction <maximumf>, %58, %cst_26 [1] : vector<8x16xf32> to vector<8xf32>
    %60 = vector.shape_cast %59 : vector<8xf32> to vector<8x1xf32>
    %61 = vector.broadcast %60 : vector<8x1xf32> to vector<8x16xf32>
    %62 = arith.subf %58, %61 : vector<8x16xf32>
    %63 = math.exp %62 : vector<8x16xf32>
    %cst_27 = arith.constant dense<0.000000e+00> : vector<8xf32>
    %64 = vector.multi_reduction <add>, %63, %cst_27 [1] : vector<8x16xf32> to vector<8xf32>
    %65 = vector.shape_cast %64 : vector<8xf32> to vector<8x1xf32>
    %66 = vector.broadcast %65 : vector<8x1xf32> to vector<8x16xf32>
    %67 = arith.divf %63, %66 : vector<8x16xf32>
    %cst_28 = arith.constant dense<0.000000e+00> : vector<16x64xf32>
    %68 = tpu.matmul %56, %3, %cst_28 {dimension_numbers = #tpu.dot_dimension_numbers<[1], [0], [0], [1], [0, 0, 1, 1], [], []>} : vector<16x8xf32>, vector<8x64xf32>, vector<16x64xf32> -> vector<16x64xf32>
    %cst_29 = arith.constant dense<0.000000e+00> : vector<8x64xf32>
    %69 = tpu.matmul %67, %1, %cst_29 {dimension_numbers = #tpu.dot_dimension_numbers<[1], [0], [0], [1], [0, 0, 1, 1], [], []>} : vector<8x16xf32>, vector<16x64xf32>, vector<8x64xf32> -> vector<8x64xf32>
    %cst_30 = arith.constant dense<0.000000e+00> : vector<16x64xf32>
    %70 = tpu.matmul %56, %69, %cst_30 {dimension_numbers = #tpu.dot_dimension_numbers<[1], [0], [0], [1], [0, 0, 1, 1], [], []>} : vector<16x8xf32>, vector<8x64xf32>, vector<16x64xf32> -> vector<16x64xf32>
    %c0_31 = arith.constant 0 : index
    %c0_32 = arith.constant 0 : index
    %71 = vector.load %arg9[%c0_31, %c0_32] : memref<256x2xf32, #tpu.memory_space<vmem>>, vector<256x2xf32>
    %72 = vector.extract_strided_slice %71 {offsets = [0, 0], sizes = [64, 2], strides = [1, 1]} : vector<256x2xf32> to vector<64x2xf32>
    %cst_33 = arith.constant dense<0.000000e+00> : vector<16x2xf32>
    %73 = tpu.matmul %1, %72, %cst_33 {dimension_numbers = #tpu.dot_dimension_numbers<[1], [0], [0], [1], [0, 0, 1, 1], [], []>} : vector<16x64xf32>, vector<64x2xf32>, vector<16x2xf32> -> vector<16x2xf32>
    %74 = vector.extract_strided_slice %71 {offsets = [64, 0], sizes = [64, 2], strides = [1, 1]} : vector<256x2xf32> to vector<64x2xf32>
    %cst_34 = arith.constant dense<0.000000e+00> : vector<16x2xf32>
    %75 = tpu.matmul %68, %74, %cst_34 {dimension_numbers = #tpu.dot_dimension_numbers<[1], [0], [0], [1], [0, 0, 1, 1], [], []>} : vector<16x64xf32>, vector<64x2xf32>, vector<16x2xf32> -> vector<16x2xf32>
    %76 = arith.addf %73, %75 : vector<16x2xf32>
    %77 = arith.mulf %1, %68 : vector<16x64xf32>
    %78 = vector.extract_strided_slice %71 {offsets = [128, 0], sizes = [64, 2], strides = [1, 1]} : vector<256x2xf32> to vector<64x2xf32>
    %cst_35 = arith.constant dense<0.000000e+00> : vector<16x2xf32>
    %79 = tpu.matmul %77, %78, %cst_35 {dimension_numbers = #tpu.dot_dimension_numbers<[1], [0], [0], [1], [0, 0, 1, 1], [], []>} : vector<16x64xf32>, vector<64x2xf32>, vector<16x2xf32> -> vector<16x2xf32>
    %80 = arith.addf %76, %79 : vector<16x2xf32>
    %81 = arith.mulf %1, %70 : vector<16x64xf32>
    %82 = vector.extract_strided_slice %71 {offsets = [192, 0], sizes = [64, 2], strides = [1, 1]} : vector<256x2xf32> to vector<64x2xf32>
    %cst_36 = arith.constant dense<0.000000e+00> : vector<16x2xf32>
    %83 = tpu.matmul %81, %82, %cst_36 {dimension_numbers = #tpu.dot_dimension_numbers<[1], [0], [0], [1], [0, 0, 1, 1], [], []>} : vector<16x64xf32>, vector<64x2xf32>, vector<16x2xf32> -> vector<16x2xf32>
    %84 = arith.addf %80, %83 : vector<16x2xf32>
    %c0_37 = arith.constant 0 : index
    %c0_38 = arith.constant 0 : index
    %85 = vector.load %arg10[%c0_37, %c0_38] : memref<1x2xf32, #tpu.memory_space<vmem>>, vector<1x2xf32>
    %86 = vector.broadcast %85 : vector<1x2xf32> to vector<16x2xf32>
    %87 = arith.addf %84, %86 : vector<16x2xf32>
    %88 = tpu.iota {dimensions = array<i32: 0>} : vector<16x2xi32>
    %89 = vector.broadcast %5 : i32 to vector<16x2xi32>
    %90 = arith.cmpi slt, %88, %89 : vector<16x2xi32>
    %cst_39 = arith.constant -1.000000e+30 : f32
    %91 = vector.broadcast %cst_39 : f32 to vector<16x2xf32>
    %92 = arith.select %90, %87, %91 : vector<16x2xi1>, vector<16x2xf32>
    %cst_40 = arith.constant dense<0xFF800000> : vector<2xf32>
    %93 = vector.multi_reduction <maximumf>, %92, %cst_40 [0] : vector<16x2xf32> to vector<2xf32>
    %94 = vector.shape_cast %93 : vector<2xf32> to vector<1x2xf32>
    %95 = vector.broadcast %94 : vector<1x2xf32> to vector<16x2xf32>
    %96 = arith.subf %92, %95 : vector<16x2xf32>
    %97 = math.exp %96 : vector<16x2xf32>
    %cst_41 = arith.constant dense<0.000000e+00> : vector<2xf32>
    %98 = vector.multi_reduction <add>, %97, %cst_41 [0] : vector<16x2xf32> to vector<2xf32>
    %99 = vector.shape_cast %98 : vector<2xf32> to vector<1x2xf32>
    %100 = math.log %99 : vector<1x2xf32>
    %101 = vector.broadcast %100 : vector<1x2xf32> to vector<16x2xf32>
    %102 = arith.subf %96, %101 : vector<16x2xf32>
    %c0_42 = arith.constant 0 : index
    %c0_43 = arith.constant 0 : index
    %c0_44 = arith.constant 0 : index
    %103 = vector.load %arg11[%c0_42, %c0_43, %c0_44] : memref<1x16x2xf32, #tpu.memory_space<vmem>>, vector<1x16x2xf32>
    %104 = vector.shape_cast %103 : vector<1x16x2xf32> to vector<16x2xf32>
    %105 = vector.shape_cast %102 : vector<16x2xf32> to vector<1x16x2xf32>
    tpu.vector_store %arg11[%c0_42, %c0_43, %c0_44], %105 {strides = array<i32>} : memref<1x16x2xf32, #tpu.memory_space<vmem>>, vector<1x16x2xf32>,
    return
  }
  func.func @transform_0(%arg0: i32) -> (i32, i32, i32) {
    %c0_i32 = arith.constant 0 : i32
    %c0_i32_0 = arith.constant 0 : i32
    %c0_i32_1 = arith.constant 0 : i32
    return %arg0, %c0_i32, %c0_i32_0 : i32, i32, i32
  }
  func.func @transform_1(%arg0: i32) -> (i32, i32, i32) {
    %c0_i32 = arith.constant 0 : i32
    %c0_i32_0 = arith.constant 0 : i32
    %c0_i32_1 = arith.constant 0 : i32
    return %arg0, %c0_i32, %c0_i32_0 : i32, i32, i32
  }
  func.func @transform_2(%arg0: i32) -> i32 {
    %c0_i32 = arith.constant 0 : i32
    %c0_i32_0 = arith.constant 0 : i32
    return %c0_i32 : i32
  }
  func.func @transform_3(%arg0: i32) -> i32 {
    %c0_i32 = arith.constant 0 : i32
    %c0_i32_0 = arith.constant 0 : i32
    return %c0_i32 : i32
  }
  func.func @transform_4(%arg0: i32) -> (i32, i32) {
    %c0_i32 = arith.constant 0 : i32
    %c0_i32_0 = arith.constant 0 : i32
    %c0_i32_1 = arith.constant 0 : i32
    return %c0_i32, %c0_i32_0 : i32, i32
  }
  func.func @transform_5(%arg0: i32) -> (i32, i32) {
    %c0_i32 = arith.constant 0 : i32
    %c0_i32_0 = arith.constant 0 : i32
    %c0_i32_1 = arith.constant 0 : i32
    return %c0_i32, %c0_i32_0 : i32, i32
  }
  func.func @transform_6(%arg0: i32) -> (i32, i32) {
    %c0_i32 = arith.constant 0 : i32
    %c0_i32_0 = arith.constant 0 : i32
    %c0_i32_1 = arith.constant 0 : i32
    return %c0_i32, %c0_i32_0 : i32, i32
  }
  func.func @transform_7(%arg0: i32) -> (i32, i32) {
    %c0_i32 = arith.constant 0 : i32
    %c0_i32_0 = arith.constant 0 : i32
    %c0_i32_1 = arith.constant 0 : i32
    return %c0_i32, %c0_i32_0 : i32, i32
  }
  func.func @transform_8(%arg0: i32) -> (i32, i32) {
    %c0_i32 = arith.constant 0 : i32
    %c0_i32_0 = arith.constant 0 : i32
    %c0_i32_1 = arith.constant 0 : i32
    return %c0_i32, %c0_i32_0 : i32, i32
  }
  func.func @transform_9(%arg0: i32) -> (i32, i32) {
    %c0_i32 = arith.constant 0 : i32
    %c0_i32_0 = arith.constant 0 : i32
    %c0_i32_1 = arith.constant 0 : i32
    return %c0_i32, %c0_i32_0 : i32, i32
  }
  func.func @transform_10(%arg0: i32) -> (i32, i32, i32) {
    %c0_i32 = arith.constant 0 : i32
    %c0_i32_0 = arith.constant 0 : i32
    %c0_i32_1 = arith.constant 0 : i32
    return %arg0, %c0_i32, %c0_i32_0 : i32, i32, i32
  }
}

module attributes {stable_mosaic.version = 11 : i64} {
  func.func @_bilstm_kernel(%arg0: i32, %arg1: memref<16x4x128xf32, #tpu.memory_space<vmem>>, %arg2: memref<16x4x128xf32, #tpu.memory_space<vmem>>, %arg3: memref<32x128xf32, #tpu.memory_space<vmem>>, %arg4: memref<32x128xf32, #tpu.memory_space<vmem>>, %arg5: memref<4x1xi32, #tpu.memory_space<vmem>>, %arg6: memref<16x4x32xf32, #tpu.memory_space<vmem>>, %arg7: memref<16x4x32xf32, #tpu.memory_space<vmem>>, %arg8: memref<4x32xf32, #tpu.memory_space<vmem>>, %arg9: memref<4x32xf32, #tpu.memory_space<vmem>>, %arg10: memref<4x32xf32, #tpu.memory_space<vmem>>, %arg11: memref<4x32xf32, #tpu.memory_space<vmem>>) attributes {dimension_semantics = [#tpu.dimension_semantics<arbitrary>], iteration_bounds = array<i64: 1>, scalar_prefetch = 0 : i64, scratch_operands = 4 : i64, tpu.core_type = #tpu.core_type<tc>, window_params = [{transform_indices = @transform_0, window_bounds = array<i64: 16, 4, 128>}, {transform_indices = @transform_1, window_bounds = array<i64: 16, 4, 128>}, {pipeline_mode = #tpu.pipeline_mode<synchronous>, transform_indices = @transform_2, window_bounds = array<i64: 32, 128>}, {pipeline_mode = #tpu.pipeline_mode<synchronous>, transform_indices = @transform_3, window_bounds = array<i64: 32, 128>}, {pipeline_mode = #tpu.pipeline_mode<synchronous>, transform_indices = @transform_4, window_bounds = array<i64: 4, 1>}, {transform_indices = @transform_5, window_bounds = array<i64: 16, 4, 32>}, {transform_indices = @transform_6, window_bounds = array<i64: 16, 4, 32>}]} {
    %c0_i32 = arith.constant 0 : i32
    %0 = arith.cmpi eq, %arg0, %c0_i32 : i32
    %1 = arith.extui %0 : i1 to i32
    %c0_i32_0 = arith.constant 0 : i32
    %2 = arith.cmpi ne, %1, %c0_i32_0 : i32
    scf.if %2 {
      %cst_790 = arith.constant 0.000000e+00 : f32
      %1686 = vector.broadcast %cst_790 : f32 to vector<4x32xf32>
      %c0_791 = arith.constant 0 : index
      %c0_792 = arith.constant 0 : index
      %1687 = vector.load %arg8[%c0_791, %c0_792] : memref<4x32xf32, #tpu.memory_space<vmem>>, vector<4x32xf32>
      tpu.vector_store %arg8[%c0_791, %c0_792], %1686 {strides = array<i32>} : memref<4x32xf32, #tpu.memory_space<vmem>>, vector<4x32xf32>,
      %cst_793 = arith.constant 0.000000e+00 : f32
      %1688 = vector.broadcast %cst_793 : f32 to vector<4x32xf32>
      %c0_794 = arith.constant 0 : index
      %c0_795 = arith.constant 0 : index
      %1689 = vector.load %arg9[%c0_794, %c0_795] : memref<4x32xf32, #tpu.memory_space<vmem>>, vector<4x32xf32>
      tpu.vector_store %arg9[%c0_794, %c0_795], %1688 {strides = array<i32>} : memref<4x32xf32, #tpu.memory_space<vmem>>, vector<4x32xf32>,
      %cst_796 = arith.constant 0.000000e+00 : f32
      %1690 = vector.broadcast %cst_796 : f32 to vector<4x32xf32>
      %c0_797 = arith.constant 0 : index
      %c0_798 = arith.constant 0 : index
      %1691 = vector.load %arg10[%c0_797, %c0_798] : memref<4x32xf32, #tpu.memory_space<vmem>>, vector<4x32xf32>
      tpu.vector_store %arg10[%c0_797, %c0_798], %1690 {strides = array<i32>} : memref<4x32xf32, #tpu.memory_space<vmem>>, vector<4x32xf32>,
      %cst_799 = arith.constant 0.000000e+00 : f32
      %1692 = vector.broadcast %cst_799 : f32 to vector<4x32xf32>
      %c0_800 = arith.constant 0 : index
      %c0_801 = arith.constant 0 : index
      %1693 = vector.load %arg11[%c0_800, %c0_801] : memref<4x32xf32, #tpu.memory_space<vmem>>, vector<4x32xf32>
      tpu.vector_store %arg11[%c0_800, %c0_801], %1692 {strides = array<i32>} : memref<4x32xf32, #tpu.memory_space<vmem>>, vector<4x32xf32>,
    } else {
    }
    %c0 = arith.constant 0 : index
    %c0_1 = arith.constant 0 : index
    %3 = vector.load %arg5[%c0, %c0_1] : memref<4x1xi32, #tpu.memory_space<vmem>>, vector<4x1xi32>
    %c0_2 = arith.constant 0 : index
    %c0_3 = arith.constant 0 : index
    %4 = vector.load %arg3[%c0_2, %c0_3] : memref<32x128xf32, #tpu.memory_space<vmem>>, vector<32x128xf32>
    %c0_4 = arith.constant 0 : index
    %c0_5 = arith.constant 0 : index
    %5 = vector.load %arg4[%c0_4, %c0_5] : memref<32x128xf32, #tpu.memory_space<vmem>>, vector<32x128xf32>
    %c16_i32 = arith.constant 16 : i32
    %6 = arith.muli %arg0, %c16_i32 : i32
    %c0_i32_6 = arith.constant 0 : i32
    %7 = arith.addi %6, %c0_i32_6 : i32
    %8 = vector.broadcast %7 : i32 to vector<4x1xi32>
    %9 = arith.cmpi sgt, %3, %8 : vector<4x1xi32>
    %c0_7 = arith.constant 0 : index
    %c0_8 = arith.constant 0 : index
    %c0_9 = arith.constant 0 : index
    %10 = vector.load %arg1[%c0_7, %c0_8, %c0_9] : memref<16x4x128xf32, #tpu.memory_space<vmem>>, vector<1x4x128xf32>
    %11 = vector.shape_cast %10 : vector<1x4x128xf32> to vector<4x128xf32>
    %c0_10 = arith.constant 0 : index
    %c0_11 = arith.constant 0 : index
    %12 = vector.load %arg8[%c0_10, %c0_11] : memref<4x32xf32, #tpu.memory_space<vmem>>, vector<4x32xf32>
    %c0_12 = arith.constant 0 : index
    %c0_13 = arith.constant 0 : index
    %13 = vector.load %arg9[%c0_12, %c0_13] : memref<4x32xf32, #tpu.memory_space<vmem>>, vector<4x32xf32>
    %cst = arith.constant dense<0.000000e+00> : vector<4x128xf32>
    %14 = tpu.matmul %12, %4, %cst {dimension_numbers = #tpu.dot_dimension_numbers<[1], [0], [0], [1], [0, 0, 1, 1], [], []>} : vector<4x32xf32>, vector<32x128xf32>, vector<4x128xf32> -> vector<4x128xf32>
    %15 = arith.addf %11, %14 : vector<4x128xf32>
    %16 = vector.extract_strided_slice %15 {offsets = [0, 0], sizes = [4, 32], strides = [1, 1]} : vector<4x128xf32> to vector<4x32xf32>
    %17 = arith.negf %16 : vector<4x32xf32>
    %18 = math.exp %17 : vector<4x32xf32>
    %cst_14 = arith.constant 1.000000e+00 : f32
    %19 = vector.broadcast %cst_14 : f32 to vector<4x32xf32>
    %20 = arith.addf %19, %18 : vector<4x32xf32>
    %21 = arith.divf %19, %20 : vector<4x32xf32>
    %22 = vector.extract_strided_slice %15 {offsets = [0, 32], sizes = [4, 32], strides = [1, 1]} : vector<4x128xf32> to vector<4x32xf32>
    %23 = arith.negf %22 : vector<4x32xf32>
    %24 = math.exp %23 : vector<4x32xf32>
    %cst_15 = arith.constant 1.000000e+00 : f32
    %25 = vector.broadcast %cst_15 : f32 to vector<4x32xf32>
    %26 = arith.addf %25, %24 : vector<4x32xf32>
    %27 = arith.divf %25, %26 : vector<4x32xf32>
    %28 = vector.extract_strided_slice %15 {offsets = [0, 64], sizes = [4, 32], strides = [1, 1]} : vector<4x128xf32> to vector<4x32xf32>
    %29 = math.tanh %28 : vector<4x32xf32>
    %30 = vector.extract_strided_slice %15 {offsets = [0, 96], sizes = [4, 32], strides = [1, 1]} : vector<4x128xf32> to vector<4x32xf32>
    %31 = arith.negf %30 : vector<4x32xf32>
    %32 = math.exp %31 : vector<4x32xf32>
    %cst_16 = arith.constant 1.000000e+00 : f32
    %33 = vector.broadcast %cst_16 : f32 to vector<4x32xf32>
    %34 = arith.addf %33, %32 : vector<4x32xf32>
    %35 = arith.divf %33, %34 : vector<4x32xf32>
    %36 = arith.mulf %27, %13 : vector<4x32xf32>
    %37 = arith.mulf %21, %29 : vector<4x32xf32>
    %38 = arith.addf %36, %37 : vector<4x32xf32>
    %39 = math.tanh %38 : vector<4x32xf32>
    %40 = arith.mulf %35, %39 : vector<4x32xf32>
    %c0_17 = arith.constant 0 : index
    %c0_18 = arith.constant 0 : index
    %41 = vector.load %arg8[%c0_17, %c0_18] : memref<4x32xf32, #tpu.memory_space<vmem>>, vector<4x32xf32>
    %42 = vector.shape_cast %9 : vector<4x1xi1> to vector<4x1xi1>
    %43 = vector.broadcast %42 : vector<4x1xi1> to vector<4x32xi1>
    %44 = arith.select %43, %40, %41 : vector<4x32xi1>, vector<4x32xf32>
    %c0_19 = arith.constant 0 : index
    %c0_20 = arith.constant 0 : index
    %45 = vector.load %arg8[%c0_19, %c0_20] : memref<4x32xf32, #tpu.memory_space<vmem>>, vector<4x32xf32>
    tpu.vector_store %arg8[%c0_19, %c0_20], %44 {strides = array<i32>} : memref<4x32xf32, #tpu.memory_space<vmem>>, vector<4x32xf32>,
    %c0_21 = arith.constant 0 : index
    %c0_22 = arith.constant 0 : index
    %46 = vector.load %arg9[%c0_21, %c0_22] : memref<4x32xf32, #tpu.memory_space<vmem>>, vector<4x32xf32>
    %47 = vector.shape_cast %9 : vector<4x1xi1> to vector<4x1xi1>
    %48 = vector.broadcast %47 : vector<4x1xi1> to vector<4x32xi1>
    %49 = arith.select %48, %38, %46 : vector<4x32xi1>, vector<4x32xf32>
    %c0_23 = arith.constant 0 : index
    %c0_24 = arith.constant 0 : index
    %50 = vector.load %arg9[%c0_23, %c0_24] : memref<4x32xf32, #tpu.memory_space<vmem>>, vector<4x32xf32>
    tpu.vector_store %arg9[%c0_23, %c0_24], %49 {strides = array<i32>} : memref<4x32xf32, #tpu.memory_space<vmem>>, vector<4x32xf32>,
    %cst_25 = arith.constant 0.000000e+00 : f32
    %51 = vector.shape_cast %9 : vector<4x1xi1> to vector<4x1xi1>
    %52 = vector.broadcast %51 : vector<4x1xi1> to vector<4x32xi1>
    %53 = vector.broadcast %cst_25 : f32 to vector<4x32xf32>
    %54 = arith.select %52, %40, %53 : vector<4x32xi1>, vector<4x32xf32>
    %c0_26 = arith.constant 0 : index
    %c0_27 = arith.constant 0 : index
    %c0_28 = arith.constant 0 : index
    %55 = vector.load %arg6[%c0_26, %c0_27, %c0_28] : memref<16x4x32xf32, #tpu.memory_space<vmem>>, vector<1x4x32xf32>
    %56 = vector.shape_cast %55 : vector<1x4x32xf32> to vector<4x32xf32>
    %57 = vector.shape_cast %54 : vector<4x32xf32> to vector<1x4x32xf32>
    tpu.vector_store %arg6[%c0_26, %c0_27, %c0_28], %57 {strides = array<i32>} : memref<16x4x32xf32, #tpu.memory_space<vmem>>, vector<1x4x32xf32>,
    %c0_i32_29 = arith.constant 0 : i32
    %58 = arith.subi %c0_i32_29, %arg0 : i32
    %c16_i32_30 = arith.constant 16 : i32
    %59 = arith.muli %58, %c16_i32_30 : i32
    %c15_i32 = arith.constant 15 : i32
    %60 = arith.addi %59, %c15_i32 : i32
    %61 = vector.broadcast %60 : i32 to vector<4x1xi32>
    %62 = arith.cmpi sgt, %3, %61 : vector<4x1xi32>
    %c15 = arith.constant 15 : index
    %c0_31 = arith.constant 0 : index
    %c0_32 = arith.constant 0 : index
    %63 = vector.load %arg2[%c15, %c0_31, %c0_32] : memref<16x4x128xf32, #tpu.memory_space<vmem>>, vector<1x4x128xf32>
    %64 = vector.shape_cast %63 : vector<1x4x128xf32> to vector<4x128xf32>
    %c0_33 = arith.constant 0 : index
    %c0_34 = arith.constant 0 : index
    %65 = vector.load %arg10[%c0_33, %c0_34] : memref<4x32xf32, #tpu.memory_space<vmem>>, vector<4x32xf32>
    %c0_35 = arith.constant 0 : index
    %c0_36 = arith.constant 0 : index
    %66 = vector.load %arg11[%c0_35, %c0_36] : memref<4x32xf32, #tpu.memory_space<vmem>>, vector<4x32xf32>
    %cst_37 = arith.constant dense<0.000000e+00> : vector<4x128xf32>
    %67 = tpu.matmul %65, %5, %cst_37 {dimension_numbers = #tpu.dot_dimension_numbers<[1], [0], [0], [1], [0, 0, 1, 1], [], []>} : vector<4x32xf32>, vector<32x128xf32>, vector<4x128xf32> -> vector<4x128xf32>
    %68 = arith.addf %64, %67 : vector<4x128xf32>
    %69 = vector.extract_strided_slice %68 {offsets = [0, 0], sizes = [4, 32], strides = [1, 1]} : vector<4x128xf32> to vector<4x32xf32>
    %70 = arith.negf %69 : vector<4x32xf32>
    %71 = math.exp %70 : vector<4x32xf32>
    %cst_38 = arith.constant 1.000000e+00 : f32
    %72 = vector.broadcast %cst_38 : f32 to vector<4x32xf32>
    %73 = arith.addf %72, %71 : vector<4x32xf32>
    %74 = arith.divf %72, %73 : vector<4x32xf32>
    %75 = vector.extract_strided_slice %68 {offsets = [0, 32], sizes = [4, 32], strides = [1, 1]} : vector<4x128xf32> to vector<4x32xf32>
    %76 = arith.negf %75 : vector<4x32xf32>
    %77 = math.exp %76 : vector<4x32xf32>
    %cst_39 = arith.constant 1.000000e+00 : f32
    %78 = vector.broadcast %cst_39 : f32 to vector<4x32xf32>
    %79 = arith.addf %78, %77 : vector<4x32xf32>
    %80 = arith.divf %78, %79 : vector<4x32xf32>
    %81 = vector.extract_strided_slice %68 {offsets = [0, 64], sizes = [4, 32], strides = [1, 1]} : vector<4x128xf32> to vector<4x32xf32>
    %82 = math.tanh %81 : vector<4x32xf32>
    %83 = vector.extract_strided_slice %68 {offsets = [0, 96], sizes = [4, 32], strides = [1, 1]} : vector<4x128xf32> to vector<4x32xf32>
    %84 = arith.negf %83 : vector<4x32xf32>
    %85 = math.exp %84 : vector<4x32xf32>
    %cst_40 = arith.constant 1.000000e+00 : f32
    %86 = vector.broadcast %cst_40 : f32 to vector<4x32xf32>
    %87 = arith.addf %86, %85 : vector<4x32xf32>
    %88 = arith.divf %86, %87 : vector<4x32xf32>
    %89 = arith.mulf %80, %66 : vector<4x32xf32>
    %90 = arith.mulf %74, %82 : vector<4x32xf32>
    %91 = arith.addf %89, %90 : vector<4x32xf32>
    %92 = math.tanh %91 : vector<4x32xf32>
    %93 = arith.mulf %88, %92 : vector<4x32xf32>
    %c0_41 = arith.constant 0 : index
    %c0_42 = arith.constant 0 : index
    %94 = vector.load %arg10[%c0_41, %c0_42] : memref<4x32xf32, #tpu.memory_space<vmem>>, vector<4x32xf32>
    %95 = vector.shape_cast %62 : vector<4x1xi1> to vector<4x1xi1>
    %96 = vector.broadcast %95 : vector<4x1xi1> to vector<4x32xi1>
    %97 = arith.select %96, %93, %94 : vector<4x32xi1>, vector<4x32xf32>
    %c0_43 = arith.constant 0 : index
    %c0_44 = arith.constant 0 : index
    %98 = vector.load %arg10[%c0_43, %c0_44] : memref<4x32xf32, #tpu.memory_space<vmem>>, vector<4x32xf32>
    tpu.vector_store %arg10[%c0_43, %c0_44], %97 {strides = array<i32>} : memref<4x32xf32, #tpu.memory_space<vmem>>, vector<4x32xf32>,
    %c0_45 = arith.constant 0 : index
    %c0_46 = arith.constant 0 : index
    %99 = vector.load %arg11[%c0_45, %c0_46] : memref<4x32xf32, #tpu.memory_space<vmem>>, vector<4x32xf32>
    %100 = vector.shape_cast %62 : vector<4x1xi1> to vector<4x1xi1>
    %101 = vector.broadcast %100 : vector<4x1xi1> to vector<4x32xi1>
    %102 = arith.select %101, %91, %99 : vector<4x32xi1>, vector<4x32xf32>
    %c0_47 = arith.constant 0 : index
    %c0_48 = arith.constant 0 : index
    %103 = vector.load %arg11[%c0_47, %c0_48] : memref<4x32xf32, #tpu.memory_space<vmem>>, vector<4x32xf32>
    tpu.vector_store %arg11[%c0_47, %c0_48], %102 {strides = array<i32>} : memref<4x32xf32, #tpu.memory_space<vmem>>, vector<4x32xf32>,
    %cst_49 = arith.constant 0.000000e+00 : f32
    %104 = vector.shape_cast %62 : vector<4x1xi1> to vector<4x1xi1>
    %105 = vector.broadcast %104 : vector<4x1xi1> to vector<4x32xi1>
    %106 = vector.broadcast %cst_49 : f32 to vector<4x32xf32>
    %107 = arith.select %105, %93, %106 : vector<4x32xi1>, vector<4x32xf32>
    %c15_50 = arith.constant 15 : index
    %c0_51 = arith.constant 0 : index
    %c0_52 = arith.constant 0 : index
    %108 = vector.load %arg7[%c15_50, %c0_51, %c0_52] : memref<16x4x32xf32, #tpu.memory_space<vmem>>, vector<1x4x32xf32>
    %109 = vector.shape_cast %108 : vector<1x4x32xf32> to vector<4x32xf32>
    %110 = vector.shape_cast %107 : vector<4x32xf32> to vector<1x4x32xf32>
    tpu.vector_store %arg7[%c15_50, %c0_51, %c0_52], %110 {strides = array<i32>} : memref<16x4x32xf32, #tpu.memory_space<vmem>>, vector<1x4x32xf32>,
    %c16_i32_53 = arith.constant 16 : i32
    %111 = arith.muli %arg0, %c16_i32_53 : i32
    %c1_i32 = arith.constant 1 : i32
    %112 = arith.addi %111, %c1_i32 : i32
    %113 = vector.broadcast %112 : i32 to vector<4x1xi32>
    %114 = arith.cmpi sgt, %3, %113 : vector<4x1xi32>
    %c1 = arith.constant 1 : index
    %c0_54 = arith.constant 0 : index
    %c0_55 = arith.constant 0 : index
    %115 = vector.load %arg1[%c1, %c0_54, %c0_55] : memref<16x4x128xf32, #tpu.memory_space<vmem>>, vector<1x4x128xf32>
    %116 = vector.shape_cast %115 : vector<1x4x128xf32> to vector<4x128xf32>
    %c0_56 = arith.constant 0 : index
    %c0_57 = arith.constant 0 : index
    %117 = vector.load %arg8[%c0_56, %c0_57] : memref<4x32xf32, #tpu.memory_space<vmem>>, vector<4x32xf32>
    %c0_58 = arith.constant 0 : index
    %c0_59 = arith.constant 0 : index
    %118 = vector.load %arg9[%c0_58, %c0_59] : memref<4x32xf32, #tpu.memory_space<vmem>>, vector<4x32xf32>
    %cst_60 = arith.constant dense<0.000000e+00> : vector<4x128xf32>
    %119 = tpu.matmul %117, %4, %cst_60 {dimension_numbers = #tpu.dot_dimension_numbers<[1], [0], [0], [1], [0, 0, 1, 1], [], []>} : vector<4x32xf32>, vector<32x128xf32>, vector<4x128xf32> -> vector<4x128xf32>
    %120 = arith.addf %116, %119 : vector<4x128xf32>
    %121 = vector.extract_strided_slice %120 {offsets = [0, 0], sizes = [4, 32], strides = [1, 1]} : vector<4x128xf32> to vector<4x32xf32>
    %122 = arith.negf %121 : vector<4x32xf32>
    %123 = math.exp %122 : vector<4x32xf32>
    %cst_61 = arith.constant 1.000000e+00 : f32
    %124 = vector.broadcast %cst_61 : f32 to vector<4x32xf32>
    %125 = arith.addf %124, %123 : vector<4x32xf32>
    %126 = arith.divf %124, %125 : vector<4x32xf32>
    %127 = vector.extract_strided_slice %120 {offsets = [0, 32], sizes = [4, 32], strides = [1, 1]} : vector<4x128xf32> to vector<4x32xf32>
    %128 = arith.negf %127 : vector<4x32xf32>
    %129 = math.exp %128 : vector<4x32xf32>
    %cst_62 = arith.constant 1.000000e+00 : f32
    %130 = vector.broadcast %cst_62 : f32 to vector<4x32xf32>
    %131 = arith.addf %130, %129 : vector<4x32xf32>
    %132 = arith.divf %130, %131 : vector<4x32xf32>
    %133 = vector.extract_strided_slice %120 {offsets = [0, 64], sizes = [4, 32], strides = [1, 1]} : vector<4x128xf32> to vector<4x32xf32>
    %134 = math.tanh %133 : vector<4x32xf32>
    %135 = vector.extract_strided_slice %120 {offsets = [0, 96], sizes = [4, 32], strides = [1, 1]} : vector<4x128xf32> to vector<4x32xf32>
    %136 = arith.negf %135 : vector<4x32xf32>
    %137 = math.exp %136 : vector<4x32xf32>
    %cst_63 = arith.constant 1.000000e+00 : f32
    %138 = vector.broadcast %cst_63 : f32 to vector<4x32xf32>
    %139 = arith.addf %138, %137 : vector<4x32xf32>
    %140 = arith.divf %138, %139 : vector<4x32xf32>
    %141 = arith.mulf %132, %118 : vector<4x32xf32>
    %142 = arith.mulf %126, %134 : vector<4x32xf32>
    %143 = arith.addf %141, %142 : vector<4x32xf32>
    %144 = math.tanh %143 : vector<4x32xf32>
    %145 = arith.mulf %140, %144 : vector<4x32xf32>
    %c0_64 = arith.constant 0 : index
    %c0_65 = arith.constant 0 : index
    %146 = vector.load %arg8[%c0_64, %c0_65] : memref<4x32xf32, #tpu.memory_space<vmem>>, vector<4x32xf32>
    %147 = vector.shape_cast %114 : vector<4x1xi1> to vector<4x1xi1>
    %148 = vector.broadcast %147 : vector<4x1xi1> to vector<4x32xi1>
    %149 = arith.select %148, %145, %146 : vector<4x32xi1>, vector<4x32xf32>
    %c0_66 = arith.constant 0 : index
    %c0_67 = arith.constant 0 : index
    %150 = vector.load %arg8[%c0_66, %c0_67] : memref<4x32xf32, #tpu.memory_space<vmem>>, vector<4x32xf32>
    tpu.vector_store %arg8[%c0_66, %c0_67], %149 {strides = array<i32>} : memref<4x32xf32, #tpu.memory_space<vmem>>, vector<4x32xf32>,
    %c0_68 = arith.constant 0 : index
    %c0_69 = arith.constant 0 : index
    %151 = vector.load %arg9[%c0_68, %c0_69] : memref<4x32xf32, #tpu.memory_space<vmem>>, vector<4x32xf32>
    %152 = vector.shape_cast %114 : vector<4x1xi1> to vector<4x1xi1>
    %153 = vector.broadcast %152 : vector<4x1xi1> to vector<4x32xi1>
    %154 = arith.select %153, %143, %151 : vector<4x32xi1>, vector<4x32xf32>
    %c0_70 = arith.constant 0 : index
    %c0_71 = arith.constant 0 : index
    %155 = vector.load %arg9[%c0_70, %c0_71] : memref<4x32xf32, #tpu.memory_space<vmem>>, vector<4x32xf32>
    tpu.vector_store %arg9[%c0_70, %c0_71], %154 {strides = array<i32>} : memref<4x32xf32, #tpu.memory_space<vmem>>, vector<4x32xf32>,
    %cst_72 = arith.constant 0.000000e+00 : f32
    %156 = vector.shape_cast %114 : vector<4x1xi1> to vector<4x1xi1>
    %157 = vector.broadcast %156 : vector<4x1xi1> to vector<4x32xi1>
    %158 = vector.broadcast %cst_72 : f32 to vector<4x32xf32>
    %159 = arith.select %157, %145, %158 : vector<4x32xi1>, vector<4x32xf32>
    %c1_73 = arith.constant 1 : index
    %c0_74 = arith.constant 0 : index
    %c0_75 = arith.constant 0 : index
    %160 = vector.load %arg6[%c1_73, %c0_74, %c0_75] : memref<16x4x32xf32, #tpu.memory_space<vmem>>, vector<1x4x32xf32>
    %161 = vector.shape_cast %160 : vector<1x4x32xf32> to vector<4x32xf32>
    %162 = vector.shape_cast %159 : vector<4x32xf32> to vector<1x4x32xf32>
    tpu.vector_store %arg6[%c1_73, %c0_74, %c0_75], %162 {strides = array<i32>} : memref<16x4x32xf32, #tpu.memory_space<vmem>>, vector<1x4x32xf32>,
    %c0_i32_76 = arith.constant 0 : i32
    %163 = arith.subi %c0_i32_76, %arg0 : i32
    %c16_i32_77 = arith.constant 16 : i32
    %164 = arith.muli %163, %c16_i32_77 : i32
    %c14_i32 = arith.constant 14 : i32
    %165 = arith.addi %164, %c14_i32 : i32
    %166 = vector.broadcast %165 : i32 to vector<4x1xi32>
    %167 = arith.cmpi sgt, %3, %166 : vector<4x1xi32>
    %c14 = arith.constant 14 : index
    %c0_78 = arith.constant 0 : index
    %c0_79 = arith.constant 0 : index
    %168 = vector.load %arg2[%c14, %c0_78, %c0_79] : memref<16x4x128xf32, #tpu.memory_space<vmem>>, vector<1x4x128xf32>
    %169 = vector.shape_cast %168 : vector<1x4x128xf32> to vector<4x128xf32>
    %c0_80 = arith.constant 0 : index
    %c0_81 = arith.constant 0 : index
    %170 = vector.load %arg10[%c0_80, %c0_81] : memref<4x32xf32, #tpu.memory_space<vmem>>, vector<4x32xf32>
    %c0_82 = arith.constant 0 : index
    %c0_83 = arith.constant 0 : index
    %171 = vector.load %arg11[%c0_82, %c0_83] : memref<4x32xf32, #tpu.memory_space<vmem>>, vector<4x32xf32>
    %cst_84 = arith.constant dense<0.000000e+00> : vector<4x128xf32>
    %172 = tpu.matmul %170, %5, %cst_84 {dimension_numbers = #tpu.dot_dimension_numbers<[1], [0], [0], [1], [0, 0, 1, 1], [], []>} : vector<4x32xf32>, vector<32x128xf32>, vector<4x128xf32> -> vector<4x128xf32>
    %173 = arith.addf %169, %172 : vector<4x128xf32>
    %174 = vector.extract_strided_slice %173 {offsets = [0, 0], sizes = [4, 32], strides = [1, 1]} : vector<4x128xf32> to vector<4x32xf32>
    %175 = arith.negf %174 : vector<4x32xf32>
    %176 = math.exp %175 : vector<4x32xf32>
    %cst_85 = arith.constant 1.000000e+00 : f32
    %177 = vector.broadcast %cst_85 : f32 to vector<4x32xf32>
    %178 = arith.addf %177, %176 : vector<4x32xf32>
    %179 = arith.divf %177, %178 : vector<4x32xf32>
    %180 = vector.extract_strided_slice %173 {offsets = [0, 32], sizes = [4, 32], strides = [1, 1]} : vector<4x128xf32> to vector<4x32xf32>
    %181 = arith.negf %180 : vector<4x32xf32>
    %182 = math.exp %181 : vector<4x32xf32>
    %cst_86 = arith.constant 1.000000e+00 : f32
    %183 = vector.broadcast %cst_86 : f32 to vector<4x32xf32>
    %184 = arith.addf %183, %182 : vector<4x32xf32>
    %185 = arith.divf %183, %184 : vector<4x32xf32>
    %186 = vector.extract_strided_slice %173 {offsets = [0, 64], sizes = [4, 32], strides = [1, 1]} : vector<4x128xf32> to vector<4x32xf32>
    %187 = math.tanh %186 : vector<4x32xf32>
    %188 = vector.extract_strided_slice %173 {offsets = [0, 96], sizes = [4, 32], strides = [1, 1]} : vector<4x128xf32> to vector<4x32xf32>
    %189 = arith.negf %188 : vector<4x32xf32>
    %190 = math.exp %189 : vector<4x32xf32>
    %cst_87 = arith.constant 1.000000e+00 : f32
    %191 = vector.broadcast %cst_87 : f32 to vector<4x32xf32>
    %192 = arith.addf %191, %190 : vector<4x32xf32>
    %193 = arith.divf %191, %192 : vector<4x32xf32>
    %194 = arith.mulf %185, %171 : vector<4x32xf32>
    %195 = arith.mulf %179, %187 : vector<4x32xf32>
    %196 = arith.addf %194, %195 : vector<4x32xf32>
    %197 = math.tanh %196 : vector<4x32xf32>
    %198 = arith.mulf %193, %197 : vector<4x32xf32>
    %c0_88 = arith.constant 0 : index
    %c0_89 = arith.constant 0 : index
    %199 = vector.load %arg10[%c0_88, %c0_89] : memref<4x32xf32, #tpu.memory_space<vmem>>, vector<4x32xf32>
    %200 = vector.shape_cast %167 : vector<4x1xi1> to vector<4x1xi1>
    %201 = vector.broadcast %200 : vector<4x1xi1> to vector<4x32xi1>
    %202 = arith.select %201, %198, %199 : vector<4x32xi1>, vector<4x32xf32>
    %c0_90 = arith.constant 0 : index
    %c0_91 = arith.constant 0 : index
    %203 = vector.load %arg10[%c0_90, %c0_91] : memref<4x32xf32, #tpu.memory_space<vmem>>, vector<4x32xf32>
    tpu.vector_store %arg10[%c0_90, %c0_91], %202 {strides = array<i32>} : memref<4x32xf32, #tpu.memory_space<vmem>>, vector<4x32xf32>,
    %c0_92 = arith.constant 0 : index
    %c0_93 = arith.constant 0 : index
    %204 = vector.load %arg11[%c0_92, %c0_93] : memref<4x32xf32, #tpu.memory_space<vmem>>, vector<4x32xf32>
    %205 = vector.shape_cast %167 : vector<4x1xi1> to vector<4x1xi1>
    %206 = vector.broadcast %205 : vector<4x1xi1> to vector<4x32xi1>
    %207 = arith.select %206, %196, %204 : vector<4x32xi1>, vector<4x32xf32>
    %c0_94 = arith.constant 0 : index
    %c0_95 = arith.constant 0 : index
    %208 = vector.load %arg11[%c0_94, %c0_95] : memref<4x32xf32, #tpu.memory_space<vmem>>, vector<4x32xf32>
    tpu.vector_store %arg11[%c0_94, %c0_95], %207 {strides = array<i32>} : memref<4x32xf32, #tpu.memory_space<vmem>>, vector<4x32xf32>,
    %cst_96 = arith.constant 0.000000e+00 : f32
    %209 = vector.shape_cast %167 : vector<4x1xi1> to vector<4x1xi1>
    %210 = vector.broadcast %209 : vector<4x1xi1> to vector<4x32xi1>
    %211 = vector.broadcast %cst_96 : f32 to vector<4x32xf32>
    %212 = arith.select %210, %198, %211 : vector<4x32xi1>, vector<4x32xf32>
    %c14_97 = arith.constant 14 : index
    %c0_98 = arith.constant 0 : index
    %c0_99 = arith.constant 0 : index
    %213 = vector.load %arg7[%c14_97, %c0_98, %c0_99] : memref<16x4x32xf32, #tpu.memory_space<vmem>>, vector<1x4x32xf32>
    %214 = vector.shape_cast %213 : vector<1x4x32xf32> to vector<4x32xf32>
    %215 = vector.shape_cast %212 : vector<4x32xf32> to vector<1x4x32xf32>
    tpu.vector_store %arg7[%c14_97, %c0_98, %c0_99], %215 {strides = array<i32>} : memref<16x4x32xf32, #tpu.memory_space<vmem>>, vector<1x4x32xf32>,
    %c16_i32_100 = arith.constant 16 : i32
    %216 = arith.muli %arg0, %c16_i32_100 : i32
    %c2_i32 = arith.constant 2 : i32
    %217 = arith.addi %216, %c2_i32 : i32
    %218 = vector.broadcast %217 : i32 to vector<4x1xi32>
    %219 = arith.cmpi sgt, %3, %218 : vector<4x1xi32>
    %c2 = arith.constant 2 : index
    %c0_101 = arith.constant 0 : index
    %c0_102 = arith.constant 0 : index
    %220 = vector.load %arg1[%c2, %c0_101, %c0_102] : memref<16x4x128xf32, #tpu.memory_space<vmem>>, vector<1x4x128xf32>
    %221 = vector.shape_cast %220 : vector<1x4x128xf32> to vector<4x128xf32>
    %c0_103 = arith.constant 0 : index
    %c0_104 = arith.constant 0 : index
    %222 = vector.load %arg8[%c0_103, %c0_104] : memref<4x32xf32, #tpu.memory_space<vmem>>, vector<4x32xf32>
    %c0_105 = arith.constant 0 : index
    %c0_106 = arith.constant 0 : index
    %223 = vector.load %arg9[%c0_105, %c0_106] : memref<4x32xf32, #tpu.memory_space<vmem>>, vector<4x32xf32>
    %cst_107 = arith.constant dense<0.000000e+00> : vector<4x128xf32>
    %224 = tpu.matmul %222, %4, %cst_107 {dimension_numbers = #tpu.dot_dimension_numbers<[1], [0], [0], [1], [0, 0, 1, 1], [], []>} : vector<4x32xf32>, vector<32x128xf32>, vector<4x128xf32> -> vector<4x128xf32>
    %225 = arith.addf %221, %224 : vector<4x128xf32>
    %226 = vector.extract_strided_slice %225 {offsets = [0, 0], sizes = [4, 32], strides = [1, 1]} : vector<4x128xf32> to vector<4x32xf32>
    %227 = arith.negf %226 : vector<4x32xf32>
    %228 = math.exp %227 : vector<4x32xf32>
    %cst_108 = arith.constant 1.000000e+00 : f32
    %229 = vector.broadcast %cst_108 : f32 to vector<4x32xf32>
    %230 = arith.addf %229, %228 : vector<4x32xf32>
    %231 = arith.divf %229, %230 : vector<4x32xf32>
    %232 = vector.extract_strided_slice %225 {offsets = [0, 32], sizes = [4, 32], strides = [1, 1]} : vector<4x128xf32> to vector<4x32xf32>
    %233 = arith.negf %232 : vector<4x32xf32>
    %234 = math.exp %233 : vector<4x32xf32>
    %cst_109 = arith.constant 1.000000e+00 : f32
    %235 = vector.broadcast %cst_109 : f32 to vector<4x32xf32>
    %236 = arith.addf %235, %234 : vector<4x32xf32>
    %237 = arith.divf %235, %236 : vector<4x32xf32>
    %238 = vector.extract_strided_slice %225 {offsets = [0, 64], sizes = [4, 32], strides = [1, 1]} : vector<4x128xf32> to vector<4x32xf32>
    %239 = math.tanh %238 : vector<4x32xf32>
    %240 = vector.extract_strided_slice %225 {offsets = [0, 96], sizes = [4, 32], strides = [1, 1]} : vector<4x128xf32> to vector<4x32xf32>
    %241 = arith.negf %240 : vector<4x32xf32>
    %242 = math.exp %241 : vector<4x32xf32>
    %cst_110 = arith.constant 1.000000e+00 : f32
    %243 = vector.broadcast %cst_110 : f32 to vector<4x32xf32>
    %244 = arith.addf %243, %242 : vector<4x32xf32>
    %245 = arith.divf %243, %244 : vector<4x32xf32>
    %246 = arith.mulf %237, %223 : vector<4x32xf32>
    %247 = arith.mulf %231, %239 : vector<4x32xf32>
    %248 = arith.addf %246, %247 : vector<4x32xf32>
    %249 = math.tanh %248 : vector<4x32xf32>
    %250 = arith.mulf %245, %249 : vector<4x32xf32>
    %c0_111 = arith.constant 0 : index
    %c0_112 = arith.constant 0 : index
    %251 = vector.load %arg8[%c0_111, %c0_112] : memref<4x32xf32, #tpu.memory_space<vmem>>, vector<4x32xf32>
    %252 = vector.shape_cast %219 : vector<4x1xi1> to vector<4x1xi1>
    %253 = vector.broadcast %252 : vector<4x1xi1> to vector<4x32xi1>
    %254 = arith.select %253, %250, %251 : vector<4x32xi1>, vector<4x32xf32>
    %c0_113 = arith.constant 0 : index
    %c0_114 = arith.constant 0 : index
    %255 = vector.load %arg8[%c0_113, %c0_114] : memref<4x32xf32, #tpu.memory_space<vmem>>, vector<4x32xf32>
    tpu.vector_store %arg8[%c0_113, %c0_114], %254 {strides = array<i32>} : memref<4x32xf32, #tpu.memory_space<vmem>>, vector<4x32xf32>,
    %c0_115 = arith.constant 0 : index
    %c0_116 = arith.constant 0 : index
    %256 = vector.load %arg9[%c0_115, %c0_116] : memref<4x32xf32, #tpu.memory_space<vmem>>, vector<4x32xf32>
    %257 = vector.shape_cast %219 : vector<4x1xi1> to vector<4x1xi1>
    %258 = vector.broadcast %257 : vector<4x1xi1> to vector<4x32xi1>
    %259 = arith.select %258, %248, %256 : vector<4x32xi1>, vector<4x32xf32>
    %c0_117 = arith.constant 0 : index
    %c0_118 = arith.constant 0 : index
    %260 = vector.load %arg9[%c0_117, %c0_118] : memref<4x32xf32, #tpu.memory_space<vmem>>, vector<4x32xf32>
    tpu.vector_store %arg9[%c0_117, %c0_118], %259 {strides = array<i32>} : memref<4x32xf32, #tpu.memory_space<vmem>>, vector<4x32xf32>,
    %cst_119 = arith.constant 0.000000e+00 : f32
    %261 = vector.shape_cast %219 : vector<4x1xi1> to vector<4x1xi1>
    %262 = vector.broadcast %261 : vector<4x1xi1> to vector<4x32xi1>
    %263 = vector.broadcast %cst_119 : f32 to vector<4x32xf32>
    %264 = arith.select %262, %250, %263 : vector<4x32xi1>, vector<4x32xf32>
    %c2_120 = arith.constant 2 : index
    %c0_121 = arith.constant 0 : index
    %c0_122 = arith.constant 0 : index
    %265 = vector.load %arg6[%c2_120, %c0_121, %c0_122] : memref<16x4x32xf32, #tpu.memory_space<vmem>>, vector<1x4x32xf32>
    %266 = vector.shape_cast %265 : vector<1x4x32xf32> to vector<4x32xf32>
    %267 = vector.shape_cast %264 : vector<4x32xf32> to vector<1x4x32xf32>
    tpu.vector_store %arg6[%c2_120, %c0_121, %c0_122], %267 {strides = array<i32>} : memref<16x4x32xf32, #tpu.memory_space<vmem>>, vector<1x4x32xf32>,
    %c0_i32_123 = arith.constant 0 : i32
    %268 = arith.subi %c0_i32_123, %arg0 : i32
    %c16_i32_124 = arith.constant 16 : i32
    %269 = arith.muli %268, %c16_i32_124 : i32
    %c13_i32 = arith.constant 13 : i32
    %270 = arith.addi %269, %c13_i32 : i32
    %271 = vector.broadcast %270 : i32 to vector<4x1xi32>
    %272 = arith.cmpi sgt, %3, %271 : vector<4x1xi32>
    %c13 = arith.constant 13 : index
    %c0_125 = arith.constant 0 : index
    %c0_126 = arith.constant 0 : index
    %273 = vector.load %arg2[%c13, %c0_125, %c0_126] : memref<16x4x128xf32, #tpu.memory_space<vmem>>, vector<1x4x128xf32>
    %274 = vector.shape_cast %273 : vector<1x4x128xf32> to vector<4x128xf32>
    %c0_127 = arith.constant 0 : index
    %c0_128 = arith.constant 0 : index
    %275 = vector.load %arg10[%c0_127, %c0_128] : memref<4x32xf32, #tpu.memory_space<vmem>>, vector<4x32xf32>
    %c0_129 = arith.constant 0 : index
    %c0_130 = arith.constant 0 : index
    %276 = vector.load %arg11[%c0_129, %c0_130] : memref<4x32xf32, #tpu.memory_space<vmem>>, vector<4x32xf32>
    %cst_131 = arith.constant dense<0.000000e+00> : vector<4x128xf32>
    %277 = tpu.matmul %275, %5, %cst_131 {dimension_numbers = #tpu.dot_dimension_numbers<[1], [0], [0], [1], [0, 0, 1, 1], [], []>} : vector<4x32xf32>, vector<32x128xf32>, vector<4x128xf32> -> vector<4x128xf32>
    %278 = arith.addf %274, %277 : vector<4x128xf32>
    %279 = vector.extract_strided_slice %278 {offsets = [0, 0], sizes = [4, 32], strides = [1, 1]} : vector<4x128xf32> to vector<4x32xf32>
    %280 = arith.negf %279 : vector<4x32xf32>
    %281 = math.exp %280 : vector<4x32xf32>
    %cst_132 = arith.constant 1.000000e+00 : f32
    %282 = vector.broadcast %cst_132 : f32 to vector<4x32xf32>
    %283 = arith.addf %282, %281 : vector<4x32xf32>
    %284 = arith.divf %282, %283 : vector<4x32xf32>
    %285 = vector.extract_strided_slice %278 {offsets = [0, 32], sizes = [4, 32], strides = [1, 1]} : vector<4x128xf32> to vector<4x32xf32>
    %286 = arith.negf %285 : vector<4x32xf32>
    %287 = math.exp %286 : vector<4x32xf32>
    %cst_133 = arith.constant 1.000000e+00 : f32
    %288 = vector.broadcast %cst_133 : f32 to vector<4x32xf32>
    %289 = arith.addf %288, %287 : vector<4x32xf32>
    %290 = arith.divf %288, %289 : vector<4x32xf32>
    %291 = vector.extract_strided_slice %278 {offsets = [0, 64], sizes = [4, 32], strides = [1, 1]} : vector<4x128xf32> to vector<4x32xf32>
    %292 = math.tanh %291 : vector<4x32xf32>
    %293 = vector.extract_strided_slice %278 {offsets = [0, 96], sizes = [4, 32], strides = [1, 1]} : vector<4x128xf32> to vector<4x32xf32>
    %294 = arith.negf %293 : vector<4x32xf32>
    %295 = math.exp %294 : vector<4x32xf32>
    %cst_134 = arith.constant 1.000000e+00 : f32
    %296 = vector.broadcast %cst_134 : f32 to vector<4x32xf32>
    %297 = arith.addf %296, %295 : vector<4x32xf32>
    %298 = arith.divf %296, %297 : vector<4x32xf32>
    %299 = arith.mulf %290, %276 : vector<4x32xf32>
    %300 = arith.mulf %284, %292 : vector<4x32xf32>
    %301 = arith.addf %299, %300 : vector<4x32xf32>
    %302 = math.tanh %301 : vector<4x32xf32>
    %303 = arith.mulf %298, %302 : vector<4x32xf32>
    %c0_135 = arith.constant 0 : index
    %c0_136 = arith.constant 0 : index
    %304 = vector.load %arg10[%c0_135, %c0_136] : memref<4x32xf32, #tpu.memory_space<vmem>>, vector<4x32xf32>
    %305 = vector.shape_cast %272 : vector<4x1xi1> to vector<4x1xi1>
    %306 = vector.broadcast %305 : vector<4x1xi1> to vector<4x32xi1>
    %307 = arith.select %306, %303, %304 : vector<4x32xi1>, vector<4x32xf32>
    %c0_137 = arith.constant 0 : index
    %c0_138 = arith.constant 0 : index
    %308 = vector.load %arg10[%c0_137, %c0_138] : memref<4x32xf32, #tpu.memory_space<vmem>>, vector<4x32xf32>
    tpu.vector_store %arg10[%c0_137, %c0_138], %307 {strides = array<i32>} : memref<4x32xf32, #tpu.memory_space<vmem>>, vector<4x32xf32>,
    %c0_139 = arith.constant 0 : index
    %c0_140 = arith.constant 0 : index
    %309 = vector.load %arg11[%c0_139, %c0_140] : memref<4x32xf32, #tpu.memory_space<vmem>>, vector<4x32xf32>
    %310 = vector.shape_cast %272 : vector<4x1xi1> to vector<4x1xi1>
    %311 = vector.broadcast %310 : vector<4x1xi1> to vector<4x32xi1>
    %312 = arith.select %311, %301, %309 : vector<4x32xi1>, vector<4x32xf32>
    %c0_141 = arith.constant 0 : index
    %c0_142 = arith.constant 0 : index
    %313 = vector.load %arg11[%c0_141, %c0_142] : memref<4x32xf32, #tpu.memory_space<vmem>>, vector<4x32xf32>
    tpu.vector_store %arg11[%c0_141, %c0_142], %312 {strides = array<i32>} : memref<4x32xf32, #tpu.memory_space<vmem>>, vector<4x32xf32>,
    %cst_143 = arith.constant 0.000000e+00 : f32
    %314 = vector.shape_cast %272 : vector<4x1xi1> to vector<4x1xi1>
    %315 = vector.broadcast %314 : vector<4x1xi1> to vector<4x32xi1>
    %316 = vector.broadcast %cst_143 : f32 to vector<4x32xf32>
    %317 = arith.select %315, %303, %316 : vector<4x32xi1>, vector<4x32xf32>
    %c13_144 = arith.constant 13 : index
    %c0_145 = arith.constant 0 : index
    %c0_146 = arith.constant 0 : index
    %318 = vector.load %arg7[%c13_144, %c0_145, %c0_146] : memref<16x4x32xf32, #tpu.memory_space<vmem>>, vector<1x4x32xf32>
    %319 = vector.shape_cast %318 : vector<1x4x32xf32> to vector<4x32xf32>
    %320 = vector.shape_cast %317 : vector<4x32xf32> to vector<1x4x32xf32>
    tpu.vector_store %arg7[%c13_144, %c0_145, %c0_146], %320 {strides = array<i32>} : memref<16x4x32xf32, #tpu.memory_space<vmem>>, vector<1x4x32xf32>,
    %c16_i32_147 = arith.constant 16 : i32
    %321 = arith.muli %arg0, %c16_i32_147 : i32
    %c3_i32 = arith.constant 3 : i32
    %322 = arith.addi %321, %c3_i32 : i32
    %323 = vector.broadcast %322 : i32 to vector<4x1xi32>
    %324 = arith.cmpi sgt, %3, %323 : vector<4x1xi32>
    %c3 = arith.constant 3 : index
    %c0_148 = arith.constant 0 : index
    %c0_149 = arith.constant 0 : index
    %325 = vector.load %arg1[%c3, %c0_148, %c0_149] : memref<16x4x128xf32, #tpu.memory_space<vmem>>, vector<1x4x128xf32>
    %326 = vector.shape_cast %325 : vector<1x4x128xf32> to vector<4x128xf32>
    %c0_150 = arith.constant 0 : index
    %c0_151 = arith.constant 0 : index
    %327 = vector.load %arg8[%c0_150, %c0_151] : memref<4x32xf32, #tpu.memory_space<vmem>>, vector<4x32xf32>
    %c0_152 = arith.constant 0 : index
    %c0_153 = arith.constant 0 : index
    %328 = vector.load %arg9[%c0_152, %c0_153] : memref<4x32xf32, #tpu.memory_space<vmem>>, vector<4x32xf32>
    %cst_154 = arith.constant dense<0.000000e+00> : vector<4x128xf32>
    %329 = tpu.matmul %327, %4, %cst_154 {dimension_numbers = #tpu.dot_dimension_numbers<[1], [0], [0], [1], [0, 0, 1, 1], [], []>} : vector<4x32xf32>, vector<32x128xf32>, vector<4x128xf32> -> vector<4x128xf32>
    %330 = arith.addf %326, %329 : vector<4x128xf32>
    %331 = vector.extract_strided_slice %330 {offsets = [0, 0], sizes = [4, 32], strides = [1, 1]} : vector<4x128xf32> to vector<4x32xf32>
    %332 = arith.negf %331 : vector<4x32xf32>
    %333 = math.exp %332 : vector<4x32xf32>
    %cst_155 = arith.constant 1.000000e+00 : f32
    %334 = vector.broadcast %cst_155 : f32 to vector<4x32xf32>
    %335 = arith.addf %334, %333 : vector<4x32xf32>
    %336 = arith.divf %334, %335 : vector<4x32xf32>
    %337 = vector.extract_strided_slice %330 {offsets = [0, 32], sizes = [4, 32], strides = [1, 1]} : vector<4x128xf32> to vector<4x32xf32>
    %338 = arith.negf %337 : vector<4x32xf32>
    %339 = math.exp %338 : vector<4x32xf32>
    %cst_156 = arith.constant 1.000000e+00 : f32
    %340 = vector.broadcast %cst_156 : f32 to vector<4x32xf32>
    %341 = arith.addf %340, %339 : vector<4x32xf32>
    %342 = arith.divf %340, %341 : vector<4x32xf32>
    %343 = vector.extract_strided_slice %330 {offsets = [0, 64], sizes = [4, 32], strides = [1, 1]} : vector<4x128xf32> to vector<4x32xf32>
    %344 = math.tanh %343 : vector<4x32xf32>
    %345 = vector.extract_strided_slice %330 {offsets = [0, 96], sizes = [4, 32], strides = [1, 1]} : vector<4x128xf32> to vector<4x32xf32>
    %346 = arith.negf %345 : vector<4x32xf32>
    %347 = math.exp %346 : vector<4x32xf32>
    %cst_157 = arith.constant 1.000000e+00 : f32
    %348 = vector.broadcast %cst_157 : f32 to vector<4x32xf32>
    %349 = arith.addf %348, %347 : vector<4x32xf32>
    %350 = arith.divf %348, %349 : vector<4x32xf32>
    %351 = arith.mulf %342, %328 : vector<4x32xf32>
    %352 = arith.mulf %336, %344 : vector<4x32xf32>
    %353 = arith.addf %351, %352 : vector<4x32xf32>
    %354 = math.tanh %353 : vector<4x32xf32>
    %355 = arith.mulf %350, %354 : vector<4x32xf32>
    %c0_158 = arith.constant 0 : index
    %c0_159 = arith.constant 0 : index
    %356 = vector.load %arg8[%c0_158, %c0_159] : memref<4x32xf32, #tpu.memory_space<vmem>>, vector<4x32xf32>
    %357 = vector.shape_cast %324 : vector<4x1xi1> to vector<4x1xi1>
    %358 = vector.broadcast %357 : vector<4x1xi1> to vector<4x32xi1>
    %359 = arith.select %358, %355, %356 : vector<4x32xi1>, vector<4x32xf32>
    %c0_160 = arith.constant 0 : index
    %c0_161 = arith.constant 0 : index
    %360 = vector.load %arg8[%c0_160, %c0_161] : memref<4x32xf32, #tpu.memory_space<vmem>>, vector<4x32xf32>
    tpu.vector_store %arg8[%c0_160, %c0_161], %359 {strides = array<i32>} : memref<4x32xf32, #tpu.memory_space<vmem>>, vector<4x32xf32>,
    %c0_162 = arith.constant 0 : index
    %c0_163 = arith.constant 0 : index
    %361 = vector.load %arg9[%c0_162, %c0_163] : memref<4x32xf32, #tpu.memory_space<vmem>>, vector<4x32xf32>
    %362 = vector.shape_cast %324 : vector<4x1xi1> to vector<4x1xi1>
    %363 = vector.broadcast %362 : vector<4x1xi1> to vector<4x32xi1>
    %364 = arith.select %363, %353, %361 : vector<4x32xi1>, vector<4x32xf32>
    %c0_164 = arith.constant 0 : index
    %c0_165 = arith.constant 0 : index
    %365 = vector.load %arg9[%c0_164, %c0_165] : memref<4x32xf32, #tpu.memory_space<vmem>>, vector<4x32xf32>
    tpu.vector_store %arg9[%c0_164, %c0_165], %364 {strides = array<i32>} : memref<4x32xf32, #tpu.memory_space<vmem>>, vector<4x32xf32>,
    %cst_166 = arith.constant 0.000000e+00 : f32
    %366 = vector.shape_cast %324 : vector<4x1xi1> to vector<4x1xi1>
    %367 = vector.broadcast %366 : vector<4x1xi1> to vector<4x32xi1>
    %368 = vector.broadcast %cst_166 : f32 to vector<4x32xf32>
    %369 = arith.select %367, %355, %368 : vector<4x32xi1>, vector<4x32xf32>
    %c3_167 = arith.constant 3 : index
    %c0_168 = arith.constant 0 : index
    %c0_169 = arith.constant 0 : index
    %370 = vector.load %arg6[%c3_167, %c0_168, %c0_169] : memref<16x4x32xf32, #tpu.memory_space<vmem>>, vector<1x4x32xf32>
    %371 = vector.shape_cast %370 : vector<1x4x32xf32> to vector<4x32xf32>
    %372 = vector.shape_cast %369 : vector<4x32xf32> to vector<1x4x32xf32>
    tpu.vector_store %arg6[%c3_167, %c0_168, %c0_169], %372 {strides = array<i32>} : memref<16x4x32xf32, #tpu.memory_space<vmem>>, vector<1x4x32xf32>,
    %c0_i32_170 = arith.constant 0 : i32
    %373 = arith.subi %c0_i32_170, %arg0 : i32
    %c16_i32_171 = arith.constant 16 : i32
    %374 = arith.muli %373, %c16_i32_171 : i32
    %c12_i32 = arith.constant 12 : i32
    %375 = arith.addi %374, %c12_i32 : i32
    %376 = vector.broadcast %375 : i32 to vector<4x1xi32>
    %377 = arith.cmpi sgt, %3, %376 : vector<4x1xi32>
    %c12 = arith.constant 12 : index
    %c0_172 = arith.constant 0 : index
    %c0_173 = arith.constant 0 : index
    %378 = vector.load %arg2[%c12, %c0_172, %c0_173] : memref<16x4x128xf32, #tpu.memory_space<vmem>>, vector<1x4x128xf32>
    %379 = vector.shape_cast %378 : vector<1x4x128xf32> to vector<4x128xf32>
    %c0_174 = arith.constant 0 : index
    %c0_175 = arith.constant 0 : index
    %380 = vector.load %arg10[%c0_174, %c0_175] : memref<4x32xf32, #tpu.memory_space<vmem>>, vector<4x32xf32>
    %c0_176 = arith.constant 0 : index
    %c0_177 = arith.constant 0 : index
    %381 = vector.load %arg11[%c0_176, %c0_177] : memref<4x32xf32, #tpu.memory_space<vmem>>, vector<4x32xf32>
    %cst_178 = arith.constant dense<0.000000e+00> : vector<4x128xf32>
    %382 = tpu.matmul %380, %5, %cst_178 {dimension_numbers = #tpu.dot_dimension_numbers<[1], [0], [0], [1], [0, 0, 1, 1], [], []>} : vector<4x32xf32>, vector<32x128xf32>, vector<4x128xf32> -> vector<4x128xf32>
    %383 = arith.addf %379, %382 : vector<4x128xf32>
    %384 = vector.extract_strided_slice %383 {offsets = [0, 0], sizes = [4, 32], strides = [1, 1]} : vector<4x128xf32> to vector<4x32xf32>
    %385 = arith.negf %384 : vector<4x32xf32>
    %386 = math.exp %385 : vector<4x32xf32>
    %cst_179 = arith.constant 1.000000e+00 : f32
    %387 = vector.broadcast %cst_179 : f32 to vector<4x32xf32>
    %388 = arith.addf %387, %386 : vector<4x32xf32>
    %389 = arith.divf %387, %388 : vector<4x32xf32>
    %390 = vector.extract_strided_slice %383 {offsets = [0, 32], sizes = [4, 32], strides = [1, 1]} : vector<4x128xf32> to vector<4x32xf32>
    %391 = arith.negf %390 : vector<4x32xf32>
    %392 = math.exp %391 : vector<4x32xf32>
    %cst_180 = arith.constant 1.000000e+00 : f32
    %393 = vector.broadcast %cst_180 : f32 to vector<4x32xf32>
    %394 = arith.addf %393, %392 : vector<4x32xf32>
    %395 = arith.divf %393, %394 : vector<4x32xf32>
    %396 = vector.extract_strided_slice %383 {offsets = [0, 64], sizes = [4, 32], strides = [1, 1]} : vector<4x128xf32> to vector<4x32xf32>
    %397 = math.tanh %396 : vector<4x32xf32>
    %398 = vector.extract_strided_slice %383 {offsets = [0, 96], sizes = [4, 32], strides = [1, 1]} : vector<4x128xf32> to vector<4x32xf32>
    %399 = arith.negf %398 : vector<4x32xf32>
    %400 = math.exp %399 : vector<4x32xf32>
    %cst_181 = arith.constant 1.000000e+00 : f32
    %401 = vector.broadcast %cst_181 : f32 to vector<4x32xf32>
    %402 = arith.addf %401, %400 : vector<4x32xf32>
    %403 = arith.divf %401, %402 : vector<4x32xf32>
    %404 = arith.mulf %395, %381 : vector<4x32xf32>
    %405 = arith.mulf %389, %397 : vector<4x32xf32>
    %406 = arith.addf %404, %405 : vector<4x32xf32>
    %407 = math.tanh %406 : vector<4x32xf32>
    %408 = arith.mulf %403, %407 : vector<4x32xf32>
    %c0_182 = arith.constant 0 : index
    %c0_183 = arith.constant 0 : index
    %409 = vector.load %arg10[%c0_182, %c0_183] : memref<4x32xf32, #tpu.memory_space<vmem>>, vector<4x32xf32>
    %410 = vector.shape_cast %377 : vector<4x1xi1> to vector<4x1xi1>
    %411 = vector.broadcast %410 : vector<4x1xi1> to vector<4x32xi1>
    %412 = arith.select %411, %408, %409 : vector<4x32xi1>, vector<4x32xf32>
    %c0_184 = arith.constant 0 : index
    %c0_185 = arith.constant 0 : index
    %413 = vector.load %arg10[%c0_184, %c0_185] : memref<4x32xf32, #tpu.memory_space<vmem>>, vector<4x32xf32>
    tpu.vector_store %arg10[%c0_184, %c0_185], %412 {strides = array<i32>} : memref<4x32xf32, #tpu.memory_space<vmem>>, vector<4x32xf32>,
    %c0_186 = arith.constant 0 : index
    %c0_187 = arith.constant 0 : index
    %414 = vector.load %arg11[%c0_186, %c0_187] : memref<4x32xf32, #tpu.memory_space<vmem>>, vector<4x32xf32>
    %415 = vector.shape_cast %377 : vector<4x1xi1> to vector<4x1xi1>
    %416 = vector.broadcast %415 : vector<4x1xi1> to vector<4x32xi1>
    %417 = arith.select %416, %406, %414 : vector<4x32xi1>, vector<4x32xf32>
    %c0_188 = arith.constant 0 : index
    %c0_189 = arith.constant 0 : index
    %418 = vector.load %arg11[%c0_188, %c0_189] : memref<4x32xf32, #tpu.memory_space<vmem>>, vector<4x32xf32>
    tpu.vector_store %arg11[%c0_188, %c0_189], %417 {strides = array<i32>} : memref<4x32xf32, #tpu.memory_space<vmem>>, vector<4x32xf32>,
    %cst_190 = arith.constant 0.000000e+00 : f32
    %419 = vector.shape_cast %377 : vector<4x1xi1> to vector<4x1xi1>
    %420 = vector.broadcast %419 : vector<4x1xi1> to vector<4x32xi1>
    %421 = vector.broadcast %cst_190 : f32 to vector<4x32xf32>
    %422 = arith.select %420, %408, %421 : vector<4x32xi1>, vector<4x32xf32>
    %c12_191 = arith.constant 12 : index
    %c0_192 = arith.constant 0 : index
    %c0_193 = arith.constant 0 : index
    %423 = vector.load %arg7[%c12_191, %c0_192, %c0_193] : memref<16x4x32xf32, #tpu.memory_space<vmem>>, vector<1x4x32xf32>
    %424 = vector.shape_cast %423 : vector<1x4x32xf32> to vector<4x32xf32>
    %425 = vector.shape_cast %422 : vector<4x32xf32> to vector<1x4x32xf32>
    tpu.vector_store %arg7[%c12_191, %c0_192, %c0_193], %425 {strides = array<i32>} : memref<16x4x32xf32, #tpu.memory_space<vmem>>, vector<1x4x32xf32>,
    %c16_i32_194 = arith.constant 16 : i32
    %426 = arith.muli %arg0, %c16_i32_194 : i32
    %c4_i32 = arith.constant 4 : i32
    %427 = arith.addi %426, %c4_i32 : i32
    %428 = vector.broadcast %427 : i32 to vector<4x1xi32>
    %429 = arith.cmpi sgt, %3, %428 : vector<4x1xi32>
    %c4 = arith.constant 4 : index
    %c0_195 = arith.constant 0 : index
    %c0_196 = arith.constant 0 : index
    %430 = vector.load %arg1[%c4, %c0_195, %c0_196] : memref<16x4x128xf32, #tpu.memory_space<vmem>>, vector<1x4x128xf32>
    %431 = vector.shape_cast %430 : vector<1x4x128xf32> to vector<4x128xf32>
    %c0_197 = arith.constant 0 : index
    %c0_198 = arith.constant 0 : index
    %432 = vector.load %arg8[%c0_197, %c0_198] : memref<4x32xf32, #tpu.memory_space<vmem>>, vector<4x32xf32>
    %c0_199 = arith.constant 0 : index
    %c0_200 = arith.constant 0 : index
    %433 = vector.load %arg9[%c0_199, %c0_200] : memref<4x32xf32, #tpu.memory_space<vmem>>, vector<4x32xf32>
    %cst_201 = arith.constant dense<0.000000e+00> : vector<4x128xf32>
    %434 = tpu.matmul %432, %4, %cst_201 {dimension_numbers = #tpu.dot_dimension_numbers<[1], [0], [0], [1], [0, 0, 1, 1], [], []>} : vector<4x32xf32>, vector<32x128xf32>, vector<4x128xf32> -> vector<4x128xf32>
    %435 = arith.addf %431, %434 : vector<4x128xf32>
    %436 = vector.extract_strided_slice %435 {offsets = [0, 0], sizes = [4, 32], strides = [1, 1]} : vector<4x128xf32> to vector<4x32xf32>
    %437 = arith.negf %436 : vector<4x32xf32>
    %438 = math.exp %437 : vector<4x32xf32>
    %cst_202 = arith.constant 1.000000e+00 : f32
    %439 = vector.broadcast %cst_202 : f32 to vector<4x32xf32>
    %440 = arith.addf %439, %438 : vector<4x32xf32>
    %441 = arith.divf %439, %440 : vector<4x32xf32>
    %442 = vector.extract_strided_slice %435 {offsets = [0, 32], sizes = [4, 32], strides = [1, 1]} : vector<4x128xf32> to vector<4x32xf32>
    %443 = arith.negf %442 : vector<4x32xf32>
    %444 = math.exp %443 : vector<4x32xf32>
    %cst_203 = arith.constant 1.000000e+00 : f32
    %445 = vector.broadcast %cst_203 : f32 to vector<4x32xf32>
    %446 = arith.addf %445, %444 : vector<4x32xf32>
    %447 = arith.divf %445, %446 : vector<4x32xf32>
    %448 = vector.extract_strided_slice %435 {offsets = [0, 64], sizes = [4, 32], strides = [1, 1]} : vector<4x128xf32> to vector<4x32xf32>
    %449 = math.tanh %448 : vector<4x32xf32>
    %450 = vector.extract_strided_slice %435 {offsets = [0, 96], sizes = [4, 32], strides = [1, 1]} : vector<4x128xf32> to vector<4x32xf32>
    %451 = arith.negf %450 : vector<4x32xf32>
    %452 = math.exp %451 : vector<4x32xf32>
    %cst_204 = arith.constant 1.000000e+00 : f32
    %453 = vector.broadcast %cst_204 : f32 to vector<4x32xf32>
    %454 = arith.addf %453, %452 : vector<4x32xf32>
    %455 = arith.divf %453, %454 : vector<4x32xf32>
    %456 = arith.mulf %447, %433 : vector<4x32xf32>
    %457 = arith.mulf %441, %449 : vector<4x32xf32>
    %458 = arith.addf %456, %457 : vector<4x32xf32>
    %459 = math.tanh %458 : vector<4x32xf32>
    %460 = arith.mulf %455, %459 : vector<4x32xf32>
    %c0_205 = arith.constant 0 : index
    %c0_206 = arith.constant 0 : index
    %461 = vector.load %arg8[%c0_205, %c0_206] : memref<4x32xf32, #tpu.memory_space<vmem>>, vector<4x32xf32>
    %462 = vector.shape_cast %429 : vector<4x1xi1> to vector<4x1xi1>
    %463 = vector.broadcast %462 : vector<4x1xi1> to vector<4x32xi1>
    %464 = arith.select %463, %460, %461 : vector<4x32xi1>, vector<4x32xf32>
    %c0_207 = arith.constant 0 : index
    %c0_208 = arith.constant 0 : index
    %465 = vector.load %arg8[%c0_207, %c0_208] : memref<4x32xf32, #tpu.memory_space<vmem>>, vector<4x32xf32>
    tpu.vector_store %arg8[%c0_207, %c0_208], %464 {strides = array<i32>} : memref<4x32xf32, #tpu.memory_space<vmem>>, vector<4x32xf32>,
    %c0_209 = arith.constant 0 : index
    %c0_210 = arith.constant 0 : index
    %466 = vector.load %arg9[%c0_209, %c0_210] : memref<4x32xf32, #tpu.memory_space<vmem>>, vector<4x32xf32>
    %467 = vector.shape_cast %429 : vector<4x1xi1> to vector<4x1xi1>
    %468 = vector.broadcast %467 : vector<4x1xi1> to vector<4x32xi1>
    %469 = arith.select %468, %458, %466 : vector<4x32xi1>, vector<4x32xf32>
    %c0_211 = arith.constant 0 : index
    %c0_212 = arith.constant 0 : index
    %470 = vector.load %arg9[%c0_211, %c0_212] : memref<4x32xf32, #tpu.memory_space<vmem>>, vector<4x32xf32>
    tpu.vector_store %arg9[%c0_211, %c0_212], %469 {strides = array<i32>} : memref<4x32xf32, #tpu.memory_space<vmem>>, vector<4x32xf32>,
    %cst_213 = arith.constant 0.000000e+00 : f32
    %471 = vector.shape_cast %429 : vector<4x1xi1> to vector<4x1xi1>
    %472 = vector.broadcast %471 : vector<4x1xi1> to vector<4x32xi1>
    %473 = vector.broadcast %cst_213 : f32 to vector<4x32xf32>
    %474 = arith.select %472, %460, %473 : vector<4x32xi1>, vector<4x32xf32>
    %c4_214 = arith.constant 4 : index
    %c0_215 = arith.constant 0 : index
    %c0_216 = arith.constant 0 : index
    %475 = vector.load %arg6[%c4_214, %c0_215, %c0_216] : memref<16x4x32xf32, #tpu.memory_space<vmem>>, vector<1x4x32xf32>
    %476 = vector.shape_cast %475 : vector<1x4x32xf32> to vector<4x32xf32>
    %477 = vector.shape_cast %474 : vector<4x32xf32> to vector<1x4x32xf32>
    tpu.vector_store %arg6[%c4_214, %c0_215, %c0_216], %477 {strides = array<i32>} : memref<16x4x32xf32, #tpu.memory_space<vmem>>, vector<1x4x32xf32>,
    %c0_i32_217 = arith.constant 0 : i32
    %478 = arith.subi %c0_i32_217, %arg0 : i32
    %c16_i32_218 = arith.constant 16 : i32
    %479 = arith.muli %478, %c16_i32_218 : i32
    %c11_i32 = arith.constant 11 : i32
    %480 = arith.addi %479, %c11_i32 : i32
    %481 = vector.broadcast %480 : i32 to vector<4x1xi32>
    %482 = arith.cmpi sgt, %3, %481 : vector<4x1xi32>
    %c11 = arith.constant 11 : index
    %c0_219 = arith.constant 0 : index
    %c0_220 = arith.constant 0 : index
    %483 = vector.load %arg2[%c11, %c0_219, %c0_220] : memref<16x4x128xf32, #tpu.memory_space<vmem>>, vector<1x4x128xf32>
    %484 = vector.shape_cast %483 : vector<1x4x128xf32> to vector<4x128xf32>
    %c0_221 = arith.constant 0 : index
    %c0_222 = arith.constant 0 : index
    %485 = vector.load %arg10[%c0_221, %c0_222] : memref<4x32xf32, #tpu.memory_space<vmem>>, vector<4x32xf32>
    %c0_223 = arith.constant 0 : index
    %c0_224 = arith.constant 0 : index
    %486 = vector.load %arg11[%c0_223, %c0_224] : memref<4x32xf32, #tpu.memory_space<vmem>>, vector<4x32xf32>
    %cst_225 = arith.constant dense<0.000000e+00> : vector<4x128xf32>
    %487 = tpu.matmul %485, %5, %cst_225 {dimension_numbers = #tpu.dot_dimension_numbers<[1], [0], [0], [1], [0, 0, 1, 1], [], []>} : vector<4x32xf32>, vector<32x128xf32>, vector<4x128xf32> -> vector<4x128xf32>
    %488 = arith.addf %484, %487 : vector<4x128xf32>
    %489 = vector.extract_strided_slice %488 {offsets = [0, 0], sizes = [4, 32], strides = [1, 1]} : vector<4x128xf32> to vector<4x32xf32>
    %490 = arith.negf %489 : vector<4x32xf32>
    %491 = math.exp %490 : vector<4x32xf32>
    %cst_226 = arith.constant 1.000000e+00 : f32
    %492 = vector.broadcast %cst_226 : f32 to vector<4x32xf32>
    %493 = arith.addf %492, %491 : vector<4x32xf32>
    %494 = arith.divf %492, %493 : vector<4x32xf32>
    %495 = vector.extract_strided_slice %488 {offsets = [0, 32], sizes = [4, 32], strides = [1, 1]} : vector<4x128xf32> to vector<4x32xf32>
    %496 = arith.negf %495 : vector<4x32xf32>
    %497 = math.exp %496 : vector<4x32xf32>
    %cst_227 = arith.constant 1.000000e+00 : f32
    %498 = vector.broadcast %cst_227 : f32 to vector<4x32xf32>
    %499 = arith.addf %498, %497 : vector<4x32xf32>
    %500 = arith.divf %498, %499 : vector<4x32xf32>
    %501 = vector.extract_strided_slice %488 {offsets = [0, 64], sizes = [4, 32], strides = [1, 1]} : vector<4x128xf32> to vector<4x32xf32>
    %502 = math.tanh %501 : vector<4x32xf32>
    %503 = vector.extract_strided_slice %488 {offsets = [0, 96], sizes = [4, 32], strides = [1, 1]} : vector<4x128xf32> to vector<4x32xf32>
    %504 = arith.negf %503 : vector<4x32xf32>
    %505 = math.exp %504 : vector<4x32xf32>
    %cst_228 = arith.constant 1.000000e+00 : f32
    %506 = vector.broadcast %cst_228 : f32 to vector<4x32xf32>
    %507 = arith.addf %506, %505 : vector<4x32xf32>
    %508 = arith.divf %506, %507 : vector<4x32xf32>
    %509 = arith.mulf %500, %486 : vector<4x32xf32>
    %510 = arith.mulf %494, %502 : vector<4x32xf32>
    %511 = arith.addf %509, %510 : vector<4x32xf32>
    %512 = math.tanh %511 : vector<4x32xf32>
    %513 = arith.mulf %508, %512 : vector<4x32xf32>
    %c0_229 = arith.constant 0 : index
    %c0_230 = arith.constant 0 : index
    %514 = vector.load %arg10[%c0_229, %c0_230] : memref<4x32xf32, #tpu.memory_space<vmem>>, vector<4x32xf32>
    %515 = vector.shape_cast %482 : vector<4x1xi1> to vector<4x1xi1>
    %516 = vector.broadcast %515 : vector<4x1xi1> to vector<4x32xi1>
    %517 = arith.select %516, %513, %514 : vector<4x32xi1>, vector<4x32xf32>
    %c0_231 = arith.constant 0 : index
    %c0_232 = arith.constant 0 : index
    %518 = vector.load %arg10[%c0_231, %c0_232] : memref<4x32xf32, #tpu.memory_space<vmem>>, vector<4x32xf32>
    tpu.vector_store %arg10[%c0_231, %c0_232], %517 {strides = array<i32>} : memref<4x32xf32, #tpu.memory_space<vmem>>, vector<4x32xf32>,
    %c0_233 = arith.constant 0 : index
    %c0_234 = arith.constant 0 : index
    %519 = vector.load %arg11[%c0_233, %c0_234] : memref<4x32xf32, #tpu.memory_space<vmem>>, vector<4x32xf32>
    %520 = vector.shape_cast %482 : vector<4x1xi1> to vector<4x1xi1>
    %521 = vector.broadcast %520 : vector<4x1xi1> to vector<4x32xi1>
    %522 = arith.select %521, %511, %519 : vector<4x32xi1>, vector<4x32xf32>
    %c0_235 = arith.constant 0 : index
    %c0_236 = arith.constant 0 : index
    %523 = vector.load %arg11[%c0_235, %c0_236] : memref<4x32xf32, #tpu.memory_space<vmem>>, vector<4x32xf32>
    tpu.vector_store %arg11[%c0_235, %c0_236], %522 {strides = array<i32>} : memref<4x32xf32, #tpu.memory_space<vmem>>, vector<4x32xf32>,
    %cst_237 = arith.constant 0.000000e+00 : f32
    %524 = vector.shape_cast %482 : vector<4x1xi1> to vector<4x1xi1>
    %525 = vector.broadcast %524 : vector<4x1xi1> to vector<4x32xi1>
    %526 = vector.broadcast %cst_237 : f32 to vector<4x32xf32>
    %527 = arith.select %525, %513, %526 : vector<4x32xi1>, vector<4x32xf32>
    %c11_238 = arith.constant 11 : index
    %c0_239 = arith.constant 0 : index
    %c0_240 = arith.constant 0 : index
    %528 = vector.load %arg7[%c11_238, %c0_239, %c0_240] : memref<16x4x32xf32, #tpu.memory_space<vmem>>, vector<1x4x32xf32>
    %529 = vector.shape_cast %528 : vector<1x4x32xf32> to vector<4x32xf32>
    %530 = vector.shape_cast %527 : vector<4x32xf32> to vector<1x4x32xf32>
    tpu.vector_store %arg7[%c11_238, %c0_239, %c0_240], %530 {strides = array<i32>} : memref<16x4x32xf32, #tpu.memory_space<vmem>>, vector<1x4x32xf32>,
    %c16_i32_241 = arith.constant 16 : i32
    %531 = arith.muli %arg0, %c16_i32_241 : i32
    %c5_i32 = arith.constant 5 : i32
    %532 = arith.addi %531, %c5_i32 : i32
    %533 = vector.broadcast %532 : i32 to vector<4x1xi32>
    %534 = arith.cmpi sgt, %3, %533 : vector<4x1xi32>
    %c5 = arith.constant 5 : index
    %c0_242 = arith.constant 0 : index
    %c0_243 = arith.constant 0 : index
    %535 = vector.load %arg1[%c5, %c0_242, %c0_243] : memref<16x4x128xf32, #tpu.memory_space<vmem>>, vector<1x4x128xf32>
    %536 = vector.shape_cast %535 : vector<1x4x128xf32> to vector<4x128xf32>
    %c0_244 = arith.constant 0 : index
    %c0_245 = arith.constant 0 : index
    %537 = vector.load %arg8[%c0_244, %c0_245] : memref<4x32xf32, #tpu.memory_space<vmem>>, vector<4x32xf32>
    %c0_246 = arith.constant 0 : index
    %c0_247 = arith.constant 0 : index
    %538 = vector.load %arg9[%c0_246, %c0_247] : memref<4x32xf32, #tpu.memory_space<vmem>>, vector<4x32xf32>
    %cst_248 = arith.constant dense<0.000000e+00> : vector<4x128xf32>
    %539 = tpu.matmul %537, %4, %cst_248 {dimension_numbers = #tpu.dot_dimension_numbers<[1], [0], [0], [1], [0, 0, 1, 1], [], []>} : vector<4x32xf32>, vector<32x128xf32>, vector<4x128xf32> -> vector<4x128xf32>
    %540 = arith.addf %536, %539 : vector<4x128xf32>
    %541 = vector.extract_strided_slice %540 {offsets = [0, 0], sizes = [4, 32], strides = [1, 1]} : vector<4x128xf32> to vector<4x32xf32>
    %542 = arith.negf %541 : vector<4x32xf32>
    %543 = math.exp %542 : vector<4x32xf32>
    %cst_249 = arith.constant 1.000000e+00 : f32
    %544 = vector.broadcast %cst_249 : f32 to vector<4x32xf32>
    %545 = arith.addf %544, %543 : vector<4x32xf32>
    %546 = arith.divf %544, %545 : vector<4x32xf32>
    %547 = vector.extract_strided_slice %540 {offsets = [0, 32], sizes = [4, 32], strides = [1, 1]} : vector<4x128xf32> to vector<4x32xf32>
    %548 = arith.negf %547 : vector<4x32xf32>
    %549 = math.exp %548 : vector<4x32xf32>
    %cst_250 = arith.constant 1.000000e+00 : f32
    %550 = vector.broadcast %cst_250 : f32 to vector<4x32xf32>
    %551 = arith.addf %550, %549 : vector<4x32xf32>
    %552 = arith.divf %550, %551 : vector<4x32xf32>
    %553 = vector.extract_strided_slice %540 {offsets = [0, 64], sizes = [4, 32], strides = [1, 1]} : vector<4x128xf32> to vector<4x32xf32>
    %554 = math.tanh %553 : vector<4x32xf32>
    %555 = vector.extract_strided_slice %540 {offsets = [0, 96], sizes = [4, 32], strides = [1, 1]} : vector<4x128xf32> to vector<4x32xf32>
    %556 = arith.negf %555 : vector<4x32xf32>
    %557 = math.exp %556 : vector<4x32xf32>
    %cst_251 = arith.constant 1.000000e+00 : f32
    %558 = vector.broadcast %cst_251 : f32 to vector<4x32xf32>
    %559 = arith.addf %558, %557 : vector<4x32xf32>
    %560 = arith.divf %558, %559 : vector<4x32xf32>
    %561 = arith.mulf %552, %538 : vector<4x32xf32>
    %562 = arith.mulf %546, %554 : vector<4x32xf32>
    %563 = arith.addf %561, %562 : vector<4x32xf32>
    %564 = math.tanh %563 : vector<4x32xf32>
    %565 = arith.mulf %560, %564 : vector<4x32xf32>
    %c0_252 = arith.constant 0 : index
    %c0_253 = arith.constant 0 : index
    %566 = vector.load %arg8[%c0_252, %c0_253] : memref<4x32xf32, #tpu.memory_space<vmem>>, vector<4x32xf32>
    %567 = vector.shape_cast %534 : vector<4x1xi1> to vector<4x1xi1>
    %568 = vector.broadcast %567 : vector<4x1xi1> to vector<4x32xi1>
    %569 = arith.select %568, %565, %566 : vector<4x32xi1>, vector<4x32xf32>
    %c0_254 = arith.constant 0 : index
    %c0_255 = arith.constant 0 : index
    %570 = vector.load %arg8[%c0_254, %c0_255] : memref<4x32xf32, #tpu.memory_space<vmem>>, vector<4x32xf32>
    tpu.vector_store %arg8[%c0_254, %c0_255], %569 {strides = array<i32>} : memref<4x32xf32, #tpu.memory_space<vmem>>, vector<4x32xf32>,
    %c0_256 = arith.constant 0 : index
    %c0_257 = arith.constant 0 : index
    %571 = vector.load %arg9[%c0_256, %c0_257] : memref<4x32xf32, #tpu.memory_space<vmem>>, vector<4x32xf32>
    %572 = vector.shape_cast %534 : vector<4x1xi1> to vector<4x1xi1>
    %573 = vector.broadcast %572 : vector<4x1xi1> to vector<4x32xi1>
    %574 = arith.select %573, %563, %571 : vector<4x32xi1>, vector<4x32xf32>
    %c0_258 = arith.constant 0 : index
    %c0_259 = arith.constant 0 : index
    %575 = vector.load %arg9[%c0_258, %c0_259] : memref<4x32xf32, #tpu.memory_space<vmem>>, vector<4x32xf32>
    tpu.vector_store %arg9[%c0_258, %c0_259], %574 {strides = array<i32>} : memref<4x32xf32, #tpu.memory_space<vmem>>, vector<4x32xf32>,
    %cst_260 = arith.constant 0.000000e+00 : f32
    %576 = vector.shape_cast %534 : vector<4x1xi1> to vector<4x1xi1>
    %577 = vector.broadcast %576 : vector<4x1xi1> to vector<4x32xi1>
    %578 = vector.broadcast %cst_260 : f32 to vector<4x32xf32>
    %579 = arith.select %577, %565, %578 : vector<4x32xi1>, vector<4x32xf32>
    %c5_261 = arith.constant 5 : index
    %c0_262 = arith.constant 0 : index
    %c0_263 = arith.constant 0 : index
    %580 = vector.load %arg6[%c5_261, %c0_262, %c0_263] : memref<16x4x32xf32, #tpu.memory_space<vmem>>, vector<1x4x32xf32>
    %581 = vector.shape_cast %580 : vector<1x4x32xf32> to vector<4x32xf32>
    %582 = vector.shape_cast %579 : vector<4x32xf32> to vector<1x4x32xf32>
    tpu.vector_store %arg6[%c5_261, %c0_262, %c0_263], %582 {strides = array<i32>} : memref<16x4x32xf32, #tpu.memory_space<vmem>>, vector<1x4x32xf32>,
    %c0_i32_264 = arith.constant 0 : i32
    %583 = arith.subi %c0_i32_264, %arg0 : i32
    %c16_i32_265 = arith.constant 16 : i32
    %584 = arith.muli %583, %c16_i32_265 : i32
    %c10_i32 = arith.constant 10 : i32
    %585 = arith.addi %584, %c10_i32 : i32
    %586 = vector.broadcast %585 : i32 to vector<4x1xi32>
    %587 = arith.cmpi sgt, %3, %586 : vector<4x1xi32>
    %c10 = arith.constant 10 : index
    %c0_266 = arith.constant 0 : index
    %c0_267 = arith.constant 0 : index
    %588 = vector.load %arg2[%c10, %c0_266, %c0_267] : memref<16x4x128xf32, #tpu.memory_space<vmem>>, vector<1x4x128xf32>
    %589 = vector.shape_cast %588 : vector<1x4x128xf32> to vector<4x128xf32>
    %c0_268 = arith.constant 0 : index
    %c0_269 = arith.constant 0 : index
    %590 = vector.load %arg10[%c0_268, %c0_269] : memref<4x32xf32, #tpu.memory_space<vmem>>, vector<4x32xf32>
    %c0_270 = arith.constant 0 : index
    %c0_271 = arith.constant 0 : index
    %591 = vector.load %arg11[%c0_270, %c0_271] : memref<4x32xf32, #tpu.memory_space<vmem>>, vector<4x32xf32>
    %cst_272 = arith.constant dense<0.000000e+00> : vector<4x128xf32>
    %592 = tpu.matmul %590, %5, %cst_272 {dimension_numbers = #tpu.dot_dimension_numbers<[1], [0], [0], [1], [0, 0, 1, 1], [], []>} : vector<4x32xf32>, vector<32x128xf32>, vector<4x128xf32> -> vector<4x128xf32>
    %593 = arith.addf %589, %592 : vector<4x128xf32>
    %594 = vector.extract_strided_slice %593 {offsets = [0, 0], sizes = [4, 32], strides = [1, 1]} : vector<4x128xf32> to vector<4x32xf32>
    %595 = arith.negf %594 : vector<4x32xf32>
    %596 = math.exp %595 : vector<4x32xf32>
    %cst_273 = arith.constant 1.000000e+00 : f32
    %597 = vector.broadcast %cst_273 : f32 to vector<4x32xf32>
    %598 = arith.addf %597, %596 : vector<4x32xf32>
    %599 = arith.divf %597, %598 : vector<4x32xf32>
    %600 = vector.extract_strided_slice %593 {offsets = [0, 32], sizes = [4, 32], strides = [1, 1]} : vector<4x128xf32> to vector<4x32xf32>
    %601 = arith.negf %600 : vector<4x32xf32>
    %602 = math.exp %601 : vector<4x32xf32>
    %cst_274 = arith.constant 1.000000e+00 : f32
    %603 = vector.broadcast %cst_274 : f32 to vector<4x32xf32>
    %604 = arith.addf %603, %602 : vector<4x32xf32>
    %605 = arith.divf %603, %604 : vector<4x32xf32>
    %606 = vector.extract_strided_slice %593 {offsets = [0, 64], sizes = [4, 32], strides = [1, 1]} : vector<4x128xf32> to vector<4x32xf32>
    %607 = math.tanh %606 : vector<4x32xf32>
    %608 = vector.extract_strided_slice %593 {offsets = [0, 96], sizes = [4, 32], strides = [1, 1]} : vector<4x128xf32> to vector<4x32xf32>
    %609 = arith.negf %608 : vector<4x32xf32>
    %610 = math.exp %609 : vector<4x32xf32>
    %cst_275 = arith.constant 1.000000e+00 : f32
    %611 = vector.broadcast %cst_275 : f32 to vector<4x32xf32>
    %612 = arith.addf %611, %610 : vector<4x32xf32>
    %613 = arith.divf %611, %612 : vector<4x32xf32>
    %614 = arith.mulf %605, %591 : vector<4x32xf32>
    %615 = arith.mulf %599, %607 : vector<4x32xf32>
    %616 = arith.addf %614, %615 : vector<4x32xf32>
    %617 = math.tanh %616 : vector<4x32xf32>
    %618 = arith.mulf %613, %617 : vector<4x32xf32>
    %c0_276 = arith.constant 0 : index
    %c0_277 = arith.constant 0 : index
    %619 = vector.load %arg10[%c0_276, %c0_277] : memref<4x32xf32, #tpu.memory_space<vmem>>, vector<4x32xf32>
    %620 = vector.shape_cast %587 : vector<4x1xi1> to vector<4x1xi1>
    %621 = vector.broadcast %620 : vector<4x1xi1> to vector<4x32xi1>
    %622 = arith.select %621, %618, %619 : vector<4x32xi1>, vector<4x32xf32>
    %c0_278 = arith.constant 0 : index
    %c0_279 = arith.constant 0 : index
    %623 = vector.load %arg10[%c0_278, %c0_279] : memref<4x32xf32, #tpu.memory_space<vmem>>, vector<4x32xf32>
    tpu.vector_store %arg10[%c0_278, %c0_279], %622 {strides = array<i32>} : memref<4x32xf32, #tpu.memory_space<vmem>>, vector<4x32xf32>,
    %c0_280 = arith.constant 0 : index
    %c0_281 = arith.constant 0 : index
    %624 = vector.load %arg11[%c0_280, %c0_281] : memref<4x32xf32, #tpu.memory_space<vmem>>, vector<4x32xf32>
    %625 = vector.shape_cast %587 : vector<4x1xi1> to vector<4x1xi1>
    %626 = vector.broadcast %625 : vector<4x1xi1> to vector<4x32xi1>
    %627 = arith.select %626, %616, %624 : vector<4x32xi1>, vector<4x32xf32>
    %c0_282 = arith.constant 0 : index
    %c0_283 = arith.constant 0 : index
    %628 = vector.load %arg11[%c0_282, %c0_283] : memref<4x32xf32, #tpu.memory_space<vmem>>, vector<4x32xf32>
    tpu.vector_store %arg11[%c0_282, %c0_283], %627 {strides = array<i32>} : memref<4x32xf32, #tpu.memory_space<vmem>>, vector<4x32xf32>,
    %cst_284 = arith.constant 0.000000e+00 : f32
    %629 = vector.shape_cast %587 : vector<4x1xi1> to vector<4x1xi1>
    %630 = vector.broadcast %629 : vector<4x1xi1> to vector<4x32xi1>
    %631 = vector.broadcast %cst_284 : f32 to vector<4x32xf32>
    %632 = arith.select %630, %618, %631 : vector<4x32xi1>, vector<4x32xf32>
    %c10_285 = arith.constant 10 : index
    %c0_286 = arith.constant 0 : index
    %c0_287 = arith.constant 0 : index
    %633 = vector.load %arg7[%c10_285, %c0_286, %c0_287] : memref<16x4x32xf32, #tpu.memory_space<vmem>>, vector<1x4x32xf32>
    %634 = vector.shape_cast %633 : vector<1x4x32xf32> to vector<4x32xf32>
    %635 = vector.shape_cast %632 : vector<4x32xf32> to vector<1x4x32xf32>
    tpu.vector_store %arg7[%c10_285, %c0_286, %c0_287], %635 {strides = array<i32>} : memref<16x4x32xf32, #tpu.memory_space<vmem>>, vector<1x4x32xf32>,
    %c16_i32_288 = arith.constant 16 : i32
    %636 = arith.muli %arg0, %c16_i32_288 : i32
    %c6_i32 = arith.constant 6 : i32
    %637 = arith.addi %636, %c6_i32 : i32
    %638 = vector.broadcast %637 : i32 to vector<4x1xi32>
    %639 = arith.cmpi sgt, %3, %638 : vector<4x1xi32>
    %c6 = arith.constant 6 : index
    %c0_289 = arith.constant 0 : index
    %c0_290 = arith.constant 0 : index
    %640 = vector.load %arg1[%c6, %c0_289, %c0_290] : memref<16x4x128xf32, #tpu.memory_space<vmem>>, vector<1x4x128xf32>
    %641 = vector.shape_cast %640 : vector<1x4x128xf32> to vector<4x128xf32>
    %c0_291 = arith.constant 0 : index
    %c0_292 = arith.constant 0 : index
    %642 = vector.load %arg8[%c0_291, %c0_292] : memref<4x32xf32, #tpu.memory_space<vmem>>, vector<4x32xf32>
    %c0_293 = arith.constant 0 : index
    %c0_294 = arith.constant 0 : index
    %643 = vector.load %arg9[%c0_293, %c0_294] : memref<4x32xf32, #tpu.memory_space<vmem>>, vector<4x32xf32>
    %cst_295 = arith.constant dense<0.000000e+00> : vector<4x128xf32>
    %644 = tpu.matmul %642, %4, %cst_295 {dimension_numbers = #tpu.dot_dimension_numbers<[1], [0], [0], [1], [0, 0, 1, 1], [], []>} : vector<4x32xf32>, vector<32x128xf32>, vector<4x128xf32> -> vector<4x128xf32>
    %645 = arith.addf %641, %644 : vector<4x128xf32>
    %646 = vector.extract_strided_slice %645 {offsets = [0, 0], sizes = [4, 32], strides = [1, 1]} : vector<4x128xf32> to vector<4x32xf32>
    %647 = arith.negf %646 : vector<4x32xf32>
    %648 = math.exp %647 : vector<4x32xf32>
    %cst_296 = arith.constant 1.000000e+00 : f32
    %649 = vector.broadcast %cst_296 : f32 to vector<4x32xf32>
    %650 = arith.addf %649, %648 : vector<4x32xf32>
    %651 = arith.divf %649, %650 : vector<4x32xf32>
    %652 = vector.extract_strided_slice %645 {offsets = [0, 32], sizes = [4, 32], strides = [1, 1]} : vector<4x128xf32> to vector<4x32xf32>
    %653 = arith.negf %652 : vector<4x32xf32>
    %654 = math.exp %653 : vector<4x32xf32>
    %cst_297 = arith.constant 1.000000e+00 : f32
    %655 = vector.broadcast %cst_297 : f32 to vector<4x32xf32>
    %656 = arith.addf %655, %654 : vector<4x32xf32>
    %657 = arith.divf %655, %656 : vector<4x32xf32>
    %658 = vector.extract_strided_slice %645 {offsets = [0, 64], sizes = [4, 32], strides = [1, 1]} : vector<4x128xf32> to vector<4x32xf32>
    %659 = math.tanh %658 : vector<4x32xf32>
    %660 = vector.extract_strided_slice %645 {offsets = [0, 96], sizes = [4, 32], strides = [1, 1]} : vector<4x128xf32> to vector<4x32xf32>
    %661 = arith.negf %660 : vector<4x32xf32>
    %662 = math.exp %661 : vector<4x32xf32>
    %cst_298 = arith.constant 1.000000e+00 : f32
    %663 = vector.broadcast %cst_298 : f32 to vector<4x32xf32>
    %664 = arith.addf %663, %662 : vector<4x32xf32>
    %665 = arith.divf %663, %664 : vector<4x32xf32>
    %666 = arith.mulf %657, %643 : vector<4x32xf32>
    %667 = arith.mulf %651, %659 : vector<4x32xf32>
    %668 = arith.addf %666, %667 : vector<4x32xf32>
    %669 = math.tanh %668 : vector<4x32xf32>
    %670 = arith.mulf %665, %669 : vector<4x32xf32>
    %c0_299 = arith.constant 0 : index
    %c0_300 = arith.constant 0 : index
    %671 = vector.load %arg8[%c0_299, %c0_300] : memref<4x32xf32, #tpu.memory_space<vmem>>, vector<4x32xf32>
    %672 = vector.shape_cast %639 : vector<4x1xi1> to vector<4x1xi1>
    %673 = vector.broadcast %672 : vector<4x1xi1> to vector<4x32xi1>
    %674 = arith.select %673, %670, %671 : vector<4x32xi1>, vector<4x32xf32>
    %c0_301 = arith.constant 0 : index
    %c0_302 = arith.constant 0 : index
    %675 = vector.load %arg8[%c0_301, %c0_302] : memref<4x32xf32, #tpu.memory_space<vmem>>, vector<4x32xf32>
    tpu.vector_store %arg8[%c0_301, %c0_302], %674 {strides = array<i32>} : memref<4x32xf32, #tpu.memory_space<vmem>>, vector<4x32xf32>,
    %c0_303 = arith.constant 0 : index
    %c0_304 = arith.constant 0 : index
    %676 = vector.load %arg9[%c0_303, %c0_304] : memref<4x32xf32, #tpu.memory_space<vmem>>, vector<4x32xf32>
    %677 = vector.shape_cast %639 : vector<4x1xi1> to vector<4x1xi1>
    %678 = vector.broadcast %677 : vector<4x1xi1> to vector<4x32xi1>
    %679 = arith.select %678, %668, %676 : vector<4x32xi1>, vector<4x32xf32>
    %c0_305 = arith.constant 0 : index
    %c0_306 = arith.constant 0 : index
    %680 = vector.load %arg9[%c0_305, %c0_306] : memref<4x32xf32, #tpu.memory_space<vmem>>, vector<4x32xf32>
    tpu.vector_store %arg9[%c0_305, %c0_306], %679 {strides = array<i32>} : memref<4x32xf32, #tpu.memory_space<vmem>>, vector<4x32xf32>,
    %cst_307 = arith.constant 0.000000e+00 : f32
    %681 = vector.shape_cast %639 : vector<4x1xi1> to vector<4x1xi1>
    %682 = vector.broadcast %681 : vector<4x1xi1> to vector<4x32xi1>
    %683 = vector.broadcast %cst_307 : f32 to vector<4x32xf32>
    %684 = arith.select %682, %670, %683 : vector<4x32xi1>, vector<4x32xf32>
    %c6_308 = arith.constant 6 : index
    %c0_309 = arith.constant 0 : index
    %c0_310 = arith.constant 0 : index
    %685 = vector.load %arg6[%c6_308, %c0_309, %c0_310] : memref<16x4x32xf32, #tpu.memory_space<vmem>>, vector<1x4x32xf32>
    %686 = vector.shape_cast %685 : vector<1x4x32xf32> to vector<4x32xf32>
    %687 = vector.shape_cast %684 : vector<4x32xf32> to vector<1x4x32xf32>
    tpu.vector_store %arg6[%c6_308, %c0_309, %c0_310], %687 {strides = array<i32>} : memref<16x4x32xf32, #tpu.memory_space<vmem>>, vector<1x4x32xf32>,
    %c0_i32_311 = arith.constant 0 : i32
    %688 = arith.subi %c0_i32_311, %arg0 : i32
    %c16_i32_312 = arith.constant 16 : i32
    %689 = arith.muli %688, %c16_i32_312 : i32
    %c9_i32 = arith.constant 9 : i32
    %690 = arith.addi %689, %c9_i32 : i32
    %691 = vector.broadcast %690 : i32 to vector<4x1xi32>
    %692 = arith.cmpi sgt, %3, %691 : vector<4x1xi32>
    %c9 = arith.constant 9 : index
    %c0_313 = arith.constant 0 : index
    %c0_314 = arith.constant 0 : index
    %693 = vector.load %arg2[%c9, %c0_313, %c0_314] : memref<16x4x128xf32, #tpu.memory_space<vmem>>, vector<1x4x128xf32>
    %694 = vector.shape_cast %693 : vector<1x4x128xf32> to vector<4x128xf32>
    %c0_315 = arith.constant 0 : index
    %c0_316 = arith.constant 0 : index
    %695 = vector.load %arg10[%c0_315, %c0_316] : memref<4x32xf32, #tpu.memory_space<vmem>>, vector<4x32xf32>
    %c0_317 = arith.constant 0 : index
    %c0_318 = arith.constant 0 : index
    %696 = vector.load %arg11[%c0_317, %c0_318] : memref<4x32xf32, #tpu.memory_space<vmem>>, vector<4x32xf32>
    %cst_319 = arith.constant dense<0.000000e+00> : vector<4x128xf32>
    %697 = tpu.matmul %695, %5, %cst_319 {dimension_numbers = #tpu.dot_dimension_numbers<[1], [0], [0], [1], [0, 0, 1, 1], [], []>} : vector<4x32xf32>, vector<32x128xf32>, vector<4x128xf32> -> vector<4x128xf32>
    %698 = arith.addf %694, %697 : vector<4x128xf32>
    %699 = vector.extract_strided_slice %698 {offsets = [0, 0], sizes = [4, 32], strides = [1, 1]} : vector<4x128xf32> to vector<4x32xf32>
    %700 = arith.negf %699 : vector<4x32xf32>
    %701 = math.exp %700 : vector<4x32xf32>
    %cst_320 = arith.constant 1.000000e+00 : f32
    %702 = vector.broadcast %cst_320 : f32 to vector<4x32xf32>
    %703 = arith.addf %702, %701 : vector<4x32xf32>
    %704 = arith.divf %702, %703 : vector<4x32xf32>
    %705 = vector.extract_strided_slice %698 {offsets = [0, 32], sizes = [4, 32], strides = [1, 1]} : vector<4x128xf32> to vector<4x32xf32>
    %706 = arith.negf %705 : vector<4x32xf32>
    %707 = math.exp %706 : vector<4x32xf32>
    %cst_321 = arith.constant 1.000000e+00 : f32
    %708 = vector.broadcast %cst_321 : f32 to vector<4x32xf32>
    %709 = arith.addf %708, %707 : vector<4x32xf32>
    %710 = arith.divf %708, %709 : vector<4x32xf32>
    %711 = vector.extract_strided_slice %698 {offsets = [0, 64], sizes = [4, 32], strides = [1, 1]} : vector<4x128xf32> to vector<4x32xf32>
    %712 = math.tanh %711 : vector<4x32xf32>
    %713 = vector.extract_strided_slice %698 {offsets = [0, 96], sizes = [4, 32], strides = [1, 1]} : vector<4x128xf32> to vector<4x32xf32>
    %714 = arith.negf %713 : vector<4x32xf32>
    %715 = math.exp %714 : vector<4x32xf32>
    %cst_322 = arith.constant 1.000000e+00 : f32
    %716 = vector.broadcast %cst_322 : f32 to vector<4x32xf32>
    %717 = arith.addf %716, %715 : vector<4x32xf32>
    %718 = arith.divf %716, %717 : vector<4x32xf32>
    %719 = arith.mulf %710, %696 : vector<4x32xf32>
    %720 = arith.mulf %704, %712 : vector<4x32xf32>
    %721 = arith.addf %719, %720 : vector<4x32xf32>
    %722 = math.tanh %721 : vector<4x32xf32>
    %723 = arith.mulf %718, %722 : vector<4x32xf32>
    %c0_323 = arith.constant 0 : index
    %c0_324 = arith.constant 0 : index
    %724 = vector.load %arg10[%c0_323, %c0_324] : memref<4x32xf32, #tpu.memory_space<vmem>>, vector<4x32xf32>
    %725 = vector.shape_cast %692 : vector<4x1xi1> to vector<4x1xi1>
    %726 = vector.broadcast %725 : vector<4x1xi1> to vector<4x32xi1>
    %727 = arith.select %726, %723, %724 : vector<4x32xi1>, vector<4x32xf32>
    %c0_325 = arith.constant 0 : index
    %c0_326 = arith.constant 0 : index
    %728 = vector.load %arg10[%c0_325, %c0_326] : memref<4x32xf32, #tpu.memory_space<vmem>>, vector<4x32xf32>
    tpu.vector_store %arg10[%c0_325, %c0_326], %727 {strides = array<i32>} : memref<4x32xf32, #tpu.memory_space<vmem>>, vector<4x32xf32>,
    %c0_327 = arith.constant 0 : index
    %c0_328 = arith.constant 0 : index
    %729 = vector.load %arg11[%c0_327, %c0_328] : memref<4x32xf32, #tpu.memory_space<vmem>>, vector<4x32xf32>
    %730 = vector.shape_cast %692 : vector<4x1xi1> to vector<4x1xi1>
    %731 = vector.broadcast %730 : vector<4x1xi1> to vector<4x32xi1>
    %732 = arith.select %731, %721, %729 : vector<4x32xi1>, vector<4x32xf32>
    %c0_329 = arith.constant 0 : index
    %c0_330 = arith.constant 0 : index
    %733 = vector.load %arg11[%c0_329, %c0_330] : memref<4x32xf32, #tpu.memory_space<vmem>>, vector<4x32xf32>
    tpu.vector_store %arg11[%c0_329, %c0_330], %732 {strides = array<i32>} : memref<4x32xf32, #tpu.memory_space<vmem>>, vector<4x32xf32>,
    %cst_331 = arith.constant 0.000000e+00 : f32
    %734 = vector.shape_cast %692 : vector<4x1xi1> to vector<4x1xi1>
    %735 = vector.broadcast %734 : vector<4x1xi1> to vector<4x32xi1>
    %736 = vector.broadcast %cst_331 : f32 to vector<4x32xf32>
    %737 = arith.select %735, %723, %736 : vector<4x32xi1>, vector<4x32xf32>
    %c9_332 = arith.constant 9 : index
    %c0_333 = arith.constant 0 : index
    %c0_334 = arith.constant 0 : index
    %738 = vector.load %arg7[%c9_332, %c0_333, %c0_334] : memref<16x4x32xf32, #tpu.memory_space<vmem>>, vector<1x4x32xf32>
    %739 = vector.shape_cast %738 : vector<1x4x32xf32> to vector<4x32xf32>
    %740 = vector.shape_cast %737 : vector<4x32xf32> to vector<1x4x32xf32>
    tpu.vector_store %arg7[%c9_332, %c0_333, %c0_334], %740 {strides = array<i32>} : memref<16x4x32xf32, #tpu.memory_space<vmem>>, vector<1x4x32xf32>,
    %c16_i32_335 = arith.constant 16 : i32
    %741 = arith.muli %arg0, %c16_i32_335 : i32
    %c7_i32 = arith.constant 7 : i32
    %742 = arith.addi %741, %c7_i32 : i32
    %743 = vector.broadcast %742 : i32 to vector<4x1xi32>
    %744 = arith.cmpi sgt, %3, %743 : vector<4x1xi32>
    %c7 = arith.constant 7 : index
    %c0_336 = arith.constant 0 : index
    %c0_337 = arith.constant 0 : index
    %745 = vector.load %arg1[%c7, %c0_336, %c0_337] : memref<16x4x128xf32, #tpu.memory_space<vmem>>, vector<1x4x128xf32>
    %746 = vector.shape_cast %745 : vector<1x4x128xf32> to vector<4x128xf32>
    %c0_338 = arith.constant 0 : index
    %c0_339 = arith.constant 0 : index
    %747 = vector.load %arg8[%c0_338, %c0_339] : memref<4x32xf32, #tpu.memory_space<vmem>>, vector<4x32xf32>
    %c0_340 = arith.constant 0 : index
    %c0_341 = arith.constant 0 : index
    %748 = vector.load %arg9[%c0_340, %c0_341] : memref<4x32xf32, #tpu.memory_space<vmem>>, vector<4x32xf32>
    %cst_342 = arith.constant dense<0.000000e+00> : vector<4x128xf32>
    %749 = tpu.matmul %747, %4, %cst_342 {dimension_numbers = #tpu.dot_dimension_numbers<[1], [0], [0], [1], [0, 0, 1, 1], [], []>} : vector<4x32xf32>, vector<32x128xf32>, vector<4x128xf32> -> vector<4x128xf32>
    %750 = arith.addf %746, %749 : vector<4x128xf32>
    %751 = vector.extract_strided_slice %750 {offsets = [0, 0], sizes = [4, 32], strides = [1, 1]} : vector<4x128xf32> to vector<4x32xf32>
    %752 = arith.negf %751 : vector<4x32xf32>
    %753 = math.exp %752 : vector<4x32xf32>
    %cst_343 = arith.constant 1.000000e+00 : f32
    %754 = vector.broadcast %cst_343 : f32 to vector<4x32xf32>
    %755 = arith.addf %754, %753 : vector<4x32xf32>
    %756 = arith.divf %754, %755 : vector<4x32xf32>
    %757 = vector.extract_strided_slice %750 {offsets = [0, 32], sizes = [4, 32], strides = [1, 1]} : vector<4x128xf32> to vector<4x32xf32>
    %758 = arith.negf %757 : vector<4x32xf32>
    %759 = math.exp %758 : vector<4x32xf32>
    %cst_344 = arith.constant 1.000000e+00 : f32
    %760 = vector.broadcast %cst_344 : f32 to vector<4x32xf32>
    %761 = arith.addf %760, %759 : vector<4x32xf32>
    %762 = arith.divf %760, %761 : vector<4x32xf32>
    %763 = vector.extract_strided_slice %750 {offsets = [0, 64], sizes = [4, 32], strides = [1, 1]} : vector<4x128xf32> to vector<4x32xf32>
    %764 = math.tanh %763 : vector<4x32xf32>
    %765 = vector.extract_strided_slice %750 {offsets = [0, 96], sizes = [4, 32], strides = [1, 1]} : vector<4x128xf32> to vector<4x32xf32>
    %766 = arith.negf %765 : vector<4x32xf32>
    %767 = math.exp %766 : vector<4x32xf32>
    %cst_345 = arith.constant 1.000000e+00 : f32
    %768 = vector.broadcast %cst_345 : f32 to vector<4x32xf32>
    %769 = arith.addf %768, %767 : vector<4x32xf32>
    %770 = arith.divf %768, %769 : vector<4x32xf32>
    %771 = arith.mulf %762, %748 : vector<4x32xf32>
    %772 = arith.mulf %756, %764 : vector<4x32xf32>
    %773 = arith.addf %771, %772 : vector<4x32xf32>
    %774 = math.tanh %773 : vector<4x32xf32>
    %775 = arith.mulf %770, %774 : vector<4x32xf32>
    %c0_346 = arith.constant 0 : index
    %c0_347 = arith.constant 0 : index
    %776 = vector.load %arg8[%c0_346, %c0_347] : memref<4x32xf32, #tpu.memory_space<vmem>>, vector<4x32xf32>
    %777 = vector.shape_cast %744 : vector<4x1xi1> to vector<4x1xi1>
    %778 = vector.broadcast %777 : vector<4x1xi1> to vector<4x32xi1>
    %779 = arith.select %778, %775, %776 : vector<4x32xi1>, vector<4x32xf32>
    %c0_348 = arith.constant 0 : index
    %c0_349 = arith.constant 0 : index
    %780 = vector.load %arg8[%c0_348, %c0_349] : memref<4x32xf32, #tpu.memory_space<vmem>>, vector<4x32xf32>
    tpu.vector_store %arg8[%c0_348, %c0_349], %779 {strides = array<i32>} : memref<4x32xf32, #tpu.memory_space<vmem>>, vector<4x32xf32>,
    %c0_350 = arith.constant 0 : index
    %c0_351 = arith.constant 0 : index
    %781 = vector.load %arg9[%c0_350, %c0_351] : memref<4x32xf32, #tpu.memory_space<vmem>>, vector<4x32xf32>
    %782 = vector.shape_cast %744 : vector<4x1xi1> to vector<4x1xi1>
    %783 = vector.broadcast %782 : vector<4x1xi1> to vector<4x32xi1>
    %784 = arith.select %783, %773, %781 : vector<4x32xi1>, vector<4x32xf32>
    %c0_352 = arith.constant 0 : index
    %c0_353 = arith.constant 0 : index
    %785 = vector.load %arg9[%c0_352, %c0_353] : memref<4x32xf32, #tpu.memory_space<vmem>>, vector<4x32xf32>
    tpu.vector_store %arg9[%c0_352, %c0_353], %784 {strides = array<i32>} : memref<4x32xf32, #tpu.memory_space<vmem>>, vector<4x32xf32>,
    %cst_354 = arith.constant 0.000000e+00 : f32
    %786 = vector.shape_cast %744 : vector<4x1xi1> to vector<4x1xi1>
    %787 = vector.broadcast %786 : vector<4x1xi1> to vector<4x32xi1>
    %788 = vector.broadcast %cst_354 : f32 to vector<4x32xf32>
    %789 = arith.select %787, %775, %788 : vector<4x32xi1>, vector<4x32xf32>
    %c7_355 = arith.constant 7 : index
    %c0_356 = arith.constant 0 : index
    %c0_357 = arith.constant 0 : index
    %790 = vector.load %arg6[%c7_355, %c0_356, %c0_357] : memref<16x4x32xf32, #tpu.memory_space<vmem>>, vector<1x4x32xf32>
    %791 = vector.shape_cast %790 : vector<1x4x32xf32> to vector<4x32xf32>
    %792 = vector.shape_cast %789 : vector<4x32xf32> to vector<1x4x32xf32>
    tpu.vector_store %arg6[%c7_355, %c0_356, %c0_357], %792 {strides = array<i32>} : memref<16x4x32xf32, #tpu.memory_space<vmem>>, vector<1x4x32xf32>,
    %c0_i32_358 = arith.constant 0 : i32
    %793 = arith.subi %c0_i32_358, %arg0 : i32
    %c16_i32_359 = arith.constant 16 : i32
    %794 = arith.muli %793, %c16_i32_359 : i32
    %c8_i32 = arith.constant 8 : i32
    %795 = arith.addi %794, %c8_i32 : i32
    %796 = vector.broadcast %795 : i32 to vector<4x1xi32>
    %797 = arith.cmpi sgt, %3, %796 : vector<4x1xi32>
    %c8 = arith.constant 8 : index
    %c0_360 = arith.constant 0 : index
    %c0_361 = arith.constant 0 : index
    %798 = vector.load %arg2[%c8, %c0_360, %c0_361] : memref<16x4x128xf32, #tpu.memory_space<vmem>>, vector<1x4x128xf32>
    %799 = vector.shape_cast %798 : vector<1x4x128xf32> to vector<4x128xf32>
    %c0_362 = arith.constant 0 : index
    %c0_363 = arith.constant 0 : index
    %800 = vector.load %arg10[%c0_362, %c0_363] : memref<4x32xf32, #tpu.memory_space<vmem>>, vector<4x32xf32>
    %c0_364 = arith.constant 0 : index
    %c0_365 = arith.constant 0 : index
    %801 = vector.load %arg11[%c0_364, %c0_365] : memref<4x32xf32, #tpu.memory_space<vmem>>, vector<4x32xf32>
    %cst_366 = arith.constant dense<0.000000e+00> : vector<4x128xf32>
    %802 = tpu.matmul %800, %5, %cst_366 {dimension_numbers = #tpu.dot_dimension_numbers<[1], [0], [0], [1], [0, 0, 1, 1], [], []>} : vector<4x32xf32>, vector<32x128xf32>, vector<4x128xf32> -> vector<4x128xf32>
    %803 = arith.addf %799, %802 : vector<4x128xf32>
    %804 = vector.extract_strided_slice %803 {offsets = [0, 0], sizes = [4, 32], strides = [1, 1]} : vector<4x128xf32> to vector<4x32xf32>
    %805 = arith.negf %804 : vector<4x32xf32>
    %806 = math.exp %805 : vector<4x32xf32>
    %cst_367 = arith.constant 1.000000e+00 : f32
    %807 = vector.broadcast %cst_367 : f32 to vector<4x32xf32>
    %808 = arith.addf %807, %806 : vector<4x32xf32>
    %809 = arith.divf %807, %808 : vector<4x32xf32>
    %810 = vector.extract_strided_slice %803 {offsets = [0, 32], sizes = [4, 32], strides = [1, 1]} : vector<4x128xf32> to vector<4x32xf32>
    %811 = arith.negf %810 : vector<4x32xf32>
    %812 = math.exp %811 : vector<4x32xf32>
    %cst_368 = arith.constant 1.000000e+00 : f32
    %813 = vector.broadcast %cst_368 : f32 to vector<4x32xf32>
    %814 = arith.addf %813, %812 : vector<4x32xf32>
    %815 = arith.divf %813, %814 : vector<4x32xf32>
    %816 = vector.extract_strided_slice %803 {offsets = [0, 64], sizes = [4, 32], strides = [1, 1]} : vector<4x128xf32> to vector<4x32xf32>
    %817 = math.tanh %816 : vector<4x32xf32>
    %818 = vector.extract_strided_slice %803 {offsets = [0, 96], sizes = [4, 32], strides = [1, 1]} : vector<4x128xf32> to vector<4x32xf32>
    %819 = arith.negf %818 : vector<4x32xf32>
    %820 = math.exp %819 : vector<4x32xf32>
    %cst_369 = arith.constant 1.000000e+00 : f32
    %821 = vector.broadcast %cst_369 : f32 to vector<4x32xf32>
    %822 = arith.addf %821, %820 : vector<4x32xf32>
    %823 = arith.divf %821, %822 : vector<4x32xf32>
    %824 = arith.mulf %815, %801 : vector<4x32xf32>
    %825 = arith.mulf %809, %817 : vector<4x32xf32>
    %826 = arith.addf %824, %825 : vector<4x32xf32>
    %827 = math.tanh %826 : vector<4x32xf32>
    %828 = arith.mulf %823, %827 : vector<4x32xf32>
    %c0_370 = arith.constant 0 : index
    %c0_371 = arith.constant 0 : index
    %829 = vector.load %arg10[%c0_370, %c0_371] : memref<4x32xf32, #tpu.memory_space<vmem>>, vector<4x32xf32>
    %830 = vector.shape_cast %797 : vector<4x1xi1> to vector<4x1xi1>
    %831 = vector.broadcast %830 : vector<4x1xi1> to vector<4x32xi1>
    %832 = arith.select %831, %828, %829 : vector<4x32xi1>, vector<4x32xf32>
    %c0_372 = arith.constant 0 : index
    %c0_373 = arith.constant 0 : index
    %833 = vector.load %arg10[%c0_372, %c0_373] : memref<4x32xf32, #tpu.memory_space<vmem>>, vector<4x32xf32>
    tpu.vector_store %arg10[%c0_372, %c0_373], %832 {strides = array<i32>} : memref<4x32xf32, #tpu.memory_space<vmem>>, vector<4x32xf32>,
    %c0_374 = arith.constant 0 : index
    %c0_375 = arith.constant 0 : index
    %834 = vector.load %arg11[%c0_374, %c0_375] : memref<4x32xf32, #tpu.memory_space<vmem>>, vector<4x32xf32>
    %835 = vector.shape_cast %797 : vector<4x1xi1> to vector<4x1xi1>
    %836 = vector.broadcast %835 : vector<4x1xi1> to vector<4x32xi1>
    %837 = arith.select %836, %826, %834 : vector<4x32xi1>, vector<4x32xf32>
    %c0_376 = arith.constant 0 : index
    %c0_377 = arith.constant 0 : index
    %838 = vector.load %arg11[%c0_376, %c0_377] : memref<4x32xf32, #tpu.memory_space<vmem>>, vector<4x32xf32>
    tpu.vector_store %arg11[%c0_376, %c0_377], %837 {strides = array<i32>} : memref<4x32xf32, #tpu.memory_space<vmem>>, vector<4x32xf32>,
    %cst_378 = arith.constant 0.000000e+00 : f32
    %839 = vector.shape_cast %797 : vector<4x1xi1> to vector<4x1xi1>
    %840 = vector.broadcast %839 : vector<4x1xi1> to vector<4x32xi1>
    %841 = vector.broadcast %cst_378 : f32 to vector<4x32xf32>
    %842 = arith.select %840, %828, %841 : vector<4x32xi1>, vector<4x32xf32>
    %c8_379 = arith.constant 8 : index
    %c0_380 = arith.constant 0 : index
    %c0_381 = arith.constant 0 : index
    %843 = vector.load %arg7[%c8_379, %c0_380, %c0_381] : memref<16x4x32xf32, #tpu.memory_space<vmem>>, vector<1x4x32xf32>
    %844 = vector.shape_cast %843 : vector<1x4x32xf32> to vector<4x32xf32>
    %845 = vector.shape_cast %842 : vector<4x32xf32> to vector<1x4x32xf32>
    tpu.vector_store %arg7[%c8_379, %c0_380, %c0_381], %845 {strides = array<i32>} : memref<16x4x32xf32, #tpu.memory_space<vmem>>, vector<1x4x32xf32>,
    %c16_i32_382 = arith.constant 16 : i32
    %846 = arith.muli %arg0, %c16_i32_382 : i32
    %c8_i32_383 = arith.constant 8 : i32
    %847 = arith.addi %846, %c8_i32_383 : i32
    %848 = vector.broadcast %847 : i32 to vector<4x1xi32>
    %849 = arith.cmpi sgt, %3, %848 : vector<4x1xi32>
    %c8_384 = arith.constant 8 : index
    %c0_385 = arith.constant 0 : index
    %c0_386 = arith.constant 0 : index
    %850 = vector.load %arg1[%c8_384, %c0_385, %c0_386] : memref<16x4x128xf32, #tpu.memory_space<vmem>>, vector<1x4x128xf32>
    %851 = vector.shape_cast %850 : vector<1x4x128xf32> to vector<4x128xf32>
    %c0_387 = arith.constant 0 : index
    %c0_388 = arith.constant 0 : index
    %852 = vector.load %arg8[%c0_387, %c0_388] : memref<4x32xf32, #tpu.memory_space<vmem>>, vector<4x32xf32>
    %c0_389 = arith.constant 0 : index
    %c0_390 = arith.constant 0 : index
    %853 = vector.load %arg9[%c0_389, %c0_390] : memref<4x32xf32, #tpu.memory_space<vmem>>, vector<4x32xf32>
    %cst_391 = arith.constant dense<0.000000e+00> : vector<4x128xf32>
    %854 = tpu.matmul %852, %4, %cst_391 {dimension_numbers = #tpu.dot_dimension_numbers<[1], [0], [0], [1], [0, 0, 1, 1], [], []>} : vector<4x32xf32>, vector<32x128xf32>, vector<4x128xf32> -> vector<4x128xf32>
    %855 = arith.addf %851, %854 : vector<4x128xf32>
    %856 = vector.extract_strided_slice %855 {offsets = [0, 0], sizes = [4, 32], strides = [1, 1]} : vector<4x128xf32> to vector<4x32xf32>
    %857 = arith.negf %856 : vector<4x32xf32>
    %858 = math.exp %857 : vector<4x32xf32>
    %cst_392 = arith.constant 1.000000e+00 : f32
    %859 = vector.broadcast %cst_392 : f32 to vector<4x32xf32>
    %860 = arith.addf %859, %858 : vector<4x32xf32>
    %861 = arith.divf %859, %860 : vector<4x32xf32>
    %862 = vector.extract_strided_slice %855 {offsets = [0, 32], sizes = [4, 32], strides = [1, 1]} : vector<4x128xf32> to vector<4x32xf32>
    %863 = arith.negf %862 : vector<4x32xf32>
    %864 = math.exp %863 : vector<4x32xf32>
    %cst_393 = arith.constant 1.000000e+00 : f32
    %865 = vector.broadcast %cst_393 : f32 to vector<4x32xf32>
    %866 = arith.addf %865, %864 : vector<4x32xf32>
    %867 = arith.divf %865, %866 : vector<4x32xf32>
    %868 = vector.extract_strided_slice %855 {offsets = [0, 64], sizes = [4, 32], strides = [1, 1]} : vector<4x128xf32> to vector<4x32xf32>
    %869 = math.tanh %868 : vector<4x32xf32>
    %870 = vector.extract_strided_slice %855 {offsets = [0, 96], sizes = [4, 32], strides = [1, 1]} : vector<4x128xf32> to vector<4x32xf32>
    %871 = arith.negf %870 : vector<4x32xf32>
    %872 = math.exp %871 : vector<4x32xf32>
    %cst_394 = arith.constant 1.000000e+00 : f32
    %873 = vector.broadcast %cst_394 : f32 to vector<4x32xf32>
    %874 = arith.addf %873, %872 : vector<4x32xf32>
    %875 = arith.divf %873, %874 : vector<4x32xf32>
    %876 = arith.mulf %867, %853 : vector<4x32xf32>
    %877 = arith.mulf %861, %869 : vector<4x32xf32>
    %878 = arith.addf %876, %877 : vector<4x32xf32>
    %879 = math.tanh %878 : vector<4x32xf32>
    %880 = arith.mulf %875, %879 : vector<4x32xf32>
    %c0_395 = arith.constant 0 : index
    %c0_396 = arith.constant 0 : index
    %881 = vector.load %arg8[%c0_395, %c0_396] : memref<4x32xf32, #tpu.memory_space<vmem>>, vector<4x32xf32>
    %882 = vector.shape_cast %849 : vector<4x1xi1> to vector<4x1xi1>
    %883 = vector.broadcast %882 : vector<4x1xi1> to vector<4x32xi1>
    %884 = arith.select %883, %880, %881 : vector<4x32xi1>, vector<4x32xf32>
    %c0_397 = arith.constant 0 : index
    %c0_398 = arith.constant 0 : index
    %885 = vector.load %arg8[%c0_397, %c0_398] : memref<4x32xf32, #tpu.memory_space<vmem>>, vector<4x32xf32>
    tpu.vector_store %arg8[%c0_397, %c0_398], %884 {strides = array<i32>} : memref<4x32xf32, #tpu.memory_space<vmem>>, vector<4x32xf32>,
    %c0_399 = arith.constant 0 : index
    %c0_400 = arith.constant 0 : index
    %886 = vector.load %arg9[%c0_399, %c0_400] : memref<4x32xf32, #tpu.memory_space<vmem>>, vector<4x32xf32>
    %887 = vector.shape_cast %849 : vector<4x1xi1> to vector<4x1xi1>
    %888 = vector.broadcast %887 : vector<4x1xi1> to vector<4x32xi1>
    %889 = arith.select %888, %878, %886 : vector<4x32xi1>, vector<4x32xf32>
    %c0_401 = arith.constant 0 : index
    %c0_402 = arith.constant 0 : index
    %890 = vector.load %arg9[%c0_401, %c0_402] : memref<4x32xf32, #tpu.memory_space<vmem>>, vector<4x32xf32>
    tpu.vector_store %arg9[%c0_401, %c0_402], %889 {strides = array<i32>} : memref<4x32xf32, #tpu.memory_space<vmem>>, vector<4x32xf32>,
    %cst_403 = arith.constant 0.000000e+00 : f32
    %891 = vector.shape_cast %849 : vector<4x1xi1> to vector<4x1xi1>
    %892 = vector.broadcast %891 : vector<4x1xi1> to vector<4x32xi1>
    %893 = vector.broadcast %cst_403 : f32 to vector<4x32xf32>
    %894 = arith.select %892, %880, %893 : vector<4x32xi1>, vector<4x32xf32>
    %c8_404 = arith.constant 8 : index
    %c0_405 = arith.constant 0 : index
    %c0_406 = arith.constant 0 : index
    %895 = vector.load %arg6[%c8_404, %c0_405, %c0_406] : memref<16x4x32xf32, #tpu.memory_space<vmem>>, vector<1x4x32xf32>
    %896 = vector.shape_cast %895 : vector<1x4x32xf32> to vector<4x32xf32>
    %897 = vector.shape_cast %894 : vector<4x32xf32> to vector<1x4x32xf32>
    tpu.vector_store %arg6[%c8_404, %c0_405, %c0_406], %897 {strides = array<i32>} : memref<16x4x32xf32, #tpu.memory_space<vmem>>, vector<1x4x32xf32>,
    %c0_i32_407 = arith.constant 0 : i32
    %898 = arith.subi %c0_i32_407, %arg0 : i32
    %c16_i32_408 = arith.constant 16 : i32
    %899 = arith.muli %898, %c16_i32_408 : i32
    %c7_i32_409 = arith.constant 7 : i32
    %900 = arith.addi %899, %c7_i32_409 : i32
    %901 = vector.broadcast %900 : i32 to vector<4x1xi32>
    %902 = arith.cmpi sgt, %3, %901 : vector<4x1xi32>
    %c7_410 = arith.constant 7 : index
    %c0_411 = arith.constant 0 : index
    %c0_412 = arith.constant 0 : index
    %903 = vector.load %arg2[%c7_410, %c0_411, %c0_412] : memref<16x4x128xf32, #tpu.memory_space<vmem>>, vector<1x4x128xf32>
    %904 = vector.shape_cast %903 : vector<1x4x128xf32> to vector<4x128xf32>
    %c0_413 = arith.constant 0 : index
    %c0_414 = arith.constant 0 : index
    %905 = vector.load %arg10[%c0_413, %c0_414] : memref<4x32xf32, #tpu.memory_space<vmem>>, vector<4x32xf32>
    %c0_415 = arith.constant 0 : index
    %c0_416 = arith.constant 0 : index
    %906 = vector.load %arg11[%c0_415, %c0_416] : memref<4x32xf32, #tpu.memory_space<vmem>>, vector<4x32xf32>
    %cst_417 = arith.constant dense<0.000000e+00> : vector<4x128xf32>
    %907 = tpu.matmul %905, %5, %cst_417 {dimension_numbers = #tpu.dot_dimension_numbers<[1], [0], [0], [1], [0, 0, 1, 1], [], []>} : vector<4x32xf32>, vector<32x128xf32>, vector<4x128xf32> -> vector<4x128xf32>
    %908 = arith.addf %904, %907 : vector<4x128xf32>
    %909 = vector.extract_strided_slice %908 {offsets = [0, 0], sizes = [4, 32], strides = [1, 1]} : vector<4x128xf32> to vector<4x32xf32>
    %910 = arith.negf %909 : vector<4x32xf32>
    %911 = math.exp %910 : vector<4x32xf32>
    %cst_418 = arith.constant 1.000000e+00 : f32
    %912 = vector.broadcast %cst_418 : f32 to vector<4x32xf32>
    %913 = arith.addf %912, %911 : vector<4x32xf32>
    %914 = arith.divf %912, %913 : vector<4x32xf32>
    %915 = vector.extract_strided_slice %908 {offsets = [0, 32], sizes = [4, 32], strides = [1, 1]} : vector<4x128xf32> to vector<4x32xf32>
    %916 = arith.negf %915 : vector<4x32xf32>
    %917 = math.exp %916 : vector<4x32xf32>
    %cst_419 = arith.constant 1.000000e+00 : f32
    %918 = vector.broadcast %cst_419 : f32 to vector<4x32xf32>
    %919 = arith.addf %918, %917 : vector<4x32xf32>
    %920 = arith.divf %918, %919 : vector<4x32xf32>
    %921 = vector.extract_strided_slice %908 {offsets = [0, 64], sizes = [4, 32], strides = [1, 1]} : vector<4x128xf32> to vector<4x32xf32>
    %922 = math.tanh %921 : vector<4x32xf32>
    %923 = vector.extract_strided_slice %908 {offsets = [0, 96], sizes = [4, 32], strides = [1, 1]} : vector<4x128xf32> to vector<4x32xf32>
    %924 = arith.negf %923 : vector<4x32xf32>
    %925 = math.exp %924 : vector<4x32xf32>
    %cst_420 = arith.constant 1.000000e+00 : f32
    %926 = vector.broadcast %cst_420 : f32 to vector<4x32xf32>
    %927 = arith.addf %926, %925 : vector<4x32xf32>
    %928 = arith.divf %926, %927 : vector<4x32xf32>
    %929 = arith.mulf %920, %906 : vector<4x32xf32>
    %930 = arith.mulf %914, %922 : vector<4x32xf32>
    %931 = arith.addf %929, %930 : vector<4x32xf32>
    %932 = math.tanh %931 : vector<4x32xf32>
    %933 = arith.mulf %928, %932 : vector<4x32xf32>
    %c0_421 = arith.constant 0 : index
    %c0_422 = arith.constant 0 : index
    %934 = vector.load %arg10[%c0_421, %c0_422] : memref<4x32xf32, #tpu.memory_space<vmem>>, vector<4x32xf32>
    %935 = vector.shape_cast %902 : vector<4x1xi1> to vector<4x1xi1>
    %936 = vector.broadcast %935 : vector<4x1xi1> to vector<4x32xi1>
    %937 = arith.select %936, %933, %934 : vector<4x32xi1>, vector<4x32xf32>
    %c0_423 = arith.constant 0 : index
    %c0_424 = arith.constant 0 : index
    %938 = vector.load %arg10[%c0_423, %c0_424] : memref<4x32xf32, #tpu.memory_space<vmem>>, vector<4x32xf32>
    tpu.vector_store %arg10[%c0_423, %c0_424], %937 {strides = array<i32>} : memref<4x32xf32, #tpu.memory_space<vmem>>, vector<4x32xf32>,
    %c0_425 = arith.constant 0 : index
    %c0_426 = arith.constant 0 : index
    %939 = vector.load %arg11[%c0_425, %c0_426] : memref<4x32xf32, #tpu.memory_space<vmem>>, vector<4x32xf32>
    %940 = vector.shape_cast %902 : vector<4x1xi1> to vector<4x1xi1>
    %941 = vector.broadcast %940 : vector<4x1xi1> to vector<4x32xi1>
    %942 = arith.select %941, %931, %939 : vector<4x32xi1>, vector<4x32xf32>
    %c0_427 = arith.constant 0 : index
    %c0_428 = arith.constant 0 : index
    %943 = vector.load %arg11[%c0_427, %c0_428] : memref<4x32xf32, #tpu.memory_space<vmem>>, vector<4x32xf32>
    tpu.vector_store %arg11[%c0_427, %c0_428], %942 {strides = array<i32>} : memref<4x32xf32, #tpu.memory_space<vmem>>, vector<4x32xf32>,
    %cst_429 = arith.constant 0.000000e+00 : f32
    %944 = vector.shape_cast %902 : vector<4x1xi1> to vector<4x1xi1>
    %945 = vector.broadcast %944 : vector<4x1xi1> to vector<4x32xi1>
    %946 = vector.broadcast %cst_429 : f32 to vector<4x32xf32>
    %947 = arith.select %945, %933, %946 : vector<4x32xi1>, vector<4x32xf32>
    %c7_430 = arith.constant 7 : index
    %c0_431 = arith.constant 0 : index
    %c0_432 = arith.constant 0 : index
    %948 = vector.load %arg7[%c7_430, %c0_431, %c0_432] : memref<16x4x32xf32, #tpu.memory_space<vmem>>, vector<1x4x32xf32>
    %949 = vector.shape_cast %948 : vector<1x4x32xf32> to vector<4x32xf32>
    %950 = vector.shape_cast %947 : vector<4x32xf32> to vector<1x4x32xf32>
    tpu.vector_store %arg7[%c7_430, %c0_431, %c0_432], %950 {strides = array<i32>} : memref<16x4x32xf32, #tpu.memory_space<vmem>>, vector<1x4x32xf32>,
    %c16_i32_433 = arith.constant 16 : i32
    %951 = arith.muli %arg0, %c16_i32_433 : i32
    %c9_i32_434 = arith.constant 9 : i32
    %952 = arith.addi %951, %c9_i32_434 : i32
    %953 = vector.broadcast %952 : i32 to vector<4x1xi32>
    %954 = arith.cmpi sgt, %3, %953 : vector<4x1xi32>
    %c9_435 = arith.constant 9 : index
    %c0_436 = arith.constant 0 : index
    %c0_437 = arith.constant 0 : index
    %955 = vector.load %arg1[%c9_435, %c0_436, %c0_437] : memref<16x4x128xf32, #tpu.memory_space<vmem>>, vector<1x4x128xf32>
    %956 = vector.shape_cast %955 : vector<1x4x128xf32> to vector<4x128xf32>
    %c0_438 = arith.constant 0 : index
    %c0_439 = arith.constant 0 : index
    %957 = vector.load %arg8[%c0_438, %c0_439] : memref<4x32xf32, #tpu.memory_space<vmem>>, vector<4x32xf32>
    %c0_440 = arith.constant 0 : index
    %c0_441 = arith.constant 0 : index
    %958 = vector.load %arg9[%c0_440, %c0_441] : memref<4x32xf32, #tpu.memory_space<vmem>>, vector<4x32xf32>
    %cst_442 = arith.constant dense<0.000000e+00> : vector<4x128xf32>
    %959 = tpu.matmul %957, %4, %cst_442 {dimension_numbers = #tpu.dot_dimension_numbers<[1], [0], [0], [1], [0, 0, 1, 1], [], []>} : vector<4x32xf32>, vector<32x128xf32>, vector<4x128xf32> -> vector<4x128xf32>
    %960 = arith.addf %956, %959 : vector<4x128xf32>
    %961 = vector.extract_strided_slice %960 {offsets = [0, 0], sizes = [4, 32], strides = [1, 1]} : vector<4x128xf32> to vector<4x32xf32>
    %962 = arith.negf %961 : vector<4x32xf32>
    %963 = math.exp %962 : vector<4x32xf32>
    %cst_443 = arith.constant 1.000000e+00 : f32
    %964 = vector.broadcast %cst_443 : f32 to vector<4x32xf32>
    %965 = arith.addf %964, %963 : vector<4x32xf32>
    %966 = arith.divf %964, %965 : vector<4x32xf32>
    %967 = vector.extract_strided_slice %960 {offsets = [0, 32], sizes = [4, 32], strides = [1, 1]} : vector<4x128xf32> to vector<4x32xf32>
    %968 = arith.negf %967 : vector<4x32xf32>
    %969 = math.exp %968 : vector<4x32xf32>
    %cst_444 = arith.constant 1.000000e+00 : f32
    %970 = vector.broadcast %cst_444 : f32 to vector<4x32xf32>
    %971 = arith.addf %970, %969 : vector<4x32xf32>
    %972 = arith.divf %970, %971 : vector<4x32xf32>
    %973 = vector.extract_strided_slice %960 {offsets = [0, 64], sizes = [4, 32], strides = [1, 1]} : vector<4x128xf32> to vector<4x32xf32>
    %974 = math.tanh %973 : vector<4x32xf32>
    %975 = vector.extract_strided_slice %960 {offsets = [0, 96], sizes = [4, 32], strides = [1, 1]} : vector<4x128xf32> to vector<4x32xf32>
    %976 = arith.negf %975 : vector<4x32xf32>
    %977 = math.exp %976 : vector<4x32xf32>
    %cst_445 = arith.constant 1.000000e+00 : f32
    %978 = vector.broadcast %cst_445 : f32 to vector<4x32xf32>
    %979 = arith.addf %978, %977 : vector<4x32xf32>
    %980 = arith.divf %978, %979 : vector<4x32xf32>
    %981 = arith.mulf %972, %958 : vector<4x32xf32>
    %982 = arith.mulf %966, %974 : vector<4x32xf32>
    %983 = arith.addf %981, %982 : vector<4x32xf32>
    %984 = math.tanh %983 : vector<4x32xf32>
    %985 = arith.mulf %980, %984 : vector<4x32xf32>
    %c0_446 = arith.constant 0 : index
    %c0_447 = arith.constant 0 : index
    %986 = vector.load %arg8[%c0_446, %c0_447] : memref<4x32xf32, #tpu.memory_space<vmem>>, vector<4x32xf32>
    %987 = vector.shape_cast %954 : vector<4x1xi1> to vector<4x1xi1>
    %988 = vector.broadcast %987 : vector<4x1xi1> to vector<4x32xi1>
    %989 = arith.select %988, %985, %986 : vector<4x32xi1>, vector<4x32xf32>
    %c0_448 = arith.constant 0 : index
    %c0_449 = arith.constant 0 : index
    %990 = vector.load %arg8[%c0_448, %c0_449] : memref<4x32xf32, #tpu.memory_space<vmem>>, vector<4x32xf32>
    tpu.vector_store %arg8[%c0_448, %c0_449], %989 {strides = array<i32>} : memref<4x32xf32, #tpu.memory_space<vmem>>, vector<4x32xf32>,
    %c0_450 = arith.constant 0 : index
    %c0_451 = arith.constant 0 : index
    %991 = vector.load %arg9[%c0_450, %c0_451] : memref<4x32xf32, #tpu.memory_space<vmem>>, vector<4x32xf32>
    %992 = vector.shape_cast %954 : vector<4x1xi1> to vector<4x1xi1>
    %993 = vector.broadcast %992 : vector<4x1xi1> to vector<4x32xi1>
    %994 = arith.select %993, %983, %991 : vector<4x32xi1>, vector<4x32xf32>
    %c0_452 = arith.constant 0 : index
    %c0_453 = arith.constant 0 : index
    %995 = vector.load %arg9[%c0_452, %c0_453] : memref<4x32xf32, #tpu.memory_space<vmem>>, vector<4x32xf32>
    tpu.vector_store %arg9[%c0_452, %c0_453], %994 {strides = array<i32>} : memref<4x32xf32, #tpu.memory_space<vmem>>, vector<4x32xf32>,
    %cst_454 = arith.constant 0.000000e+00 : f32
    %996 = vector.shape_cast %954 : vector<4x1xi1> to vector<4x1xi1>
    %997 = vector.broadcast %996 : vector<4x1xi1> to vector<4x32xi1>
    %998 = vector.broadcast %cst_454 : f32 to vector<4x32xf32>
    %999 = arith.select %997, %985, %998 : vector<4x32xi1>, vector<4x32xf32>
    %c9_455 = arith.constant 9 : index
    %c0_456 = arith.constant 0 : index
    %c0_457 = arith.constant 0 : index
    %1000 = vector.load %arg6[%c9_455, %c0_456, %c0_457] : memref<16x4x32xf32, #tpu.memory_space<vmem>>, vector<1x4x32xf32>
    %1001 = vector.shape_cast %1000 : vector<1x4x32xf32> to vector<4x32xf32>
    %1002 = vector.shape_cast %999 : vector<4x32xf32> to vector<1x4x32xf32>
    tpu.vector_store %arg6[%c9_455, %c0_456, %c0_457], %1002 {strides = array<i32>} : memref<16x4x32xf32, #tpu.memory_space<vmem>>, vector<1x4x32xf32>,
    %c0_i32_458 = arith.constant 0 : i32
    %1003 = arith.subi %c0_i32_458, %arg0 : i32
    %c16_i32_459 = arith.constant 16 : i32
    %1004 = arith.muli %1003, %c16_i32_459 : i32
    %c6_i32_460 = arith.constant 6 : i32
    %1005 = arith.addi %1004, %c6_i32_460 : i32
    %1006 = vector.broadcast %1005 : i32 to vector<4x1xi32>
    %1007 = arith.cmpi sgt, %3, %1006 : vector<4x1xi32>
    %c6_461 = arith.constant 6 : index
    %c0_462 = arith.constant 0 : index
    %c0_463 = arith.constant 0 : index
    %1008 = vector.load %arg2[%c6_461, %c0_462, %c0_463] : memref<16x4x128xf32, #tpu.memory_space<vmem>>, vector<1x4x128xf32>
    %1009 = vector.shape_cast %1008 : vector<1x4x128xf32> to vector<4x128xf32>
    %c0_464 = arith.constant 0 : index
    %c0_465 = arith.constant 0 : index
    %1010 = vector.load %arg10[%c0_464, %c0_465] : memref<4x32xf32, #tpu.memory_space<vmem>>, vector<4x32xf32>
    %c0_466 = arith.constant 0 : index
    %c0_467 = arith.constant 0 : index
    %1011 = vector.load %arg11[%c0_466, %c0_467] : memref<4x32xf32, #tpu.memory_space<vmem>>, vector<4x32xf32>
    %cst_468 = arith.constant dense<0.000000e+00> : vector<4x128xf32>
    %1012 = tpu.matmul %1010, %5, %cst_468 {dimension_numbers = #tpu.dot_dimension_numbers<[1], [0], [0], [1], [0, 0, 1, 1], [], []>} : vector<4x32xf32>, vector<32x128xf32>, vector<4x128xf32> -> vector<4x128xf32>
    %1013 = arith.addf %1009, %1012 : vector<4x128xf32>
    %1014 = vector.extract_strided_slice %1013 {offsets = [0, 0], sizes = [4, 32], strides = [1, 1]} : vector<4x128xf32> to vector<4x32xf32>
    %1015 = arith.negf %1014 : vector<4x32xf32>
    %1016 = math.exp %1015 : vector<4x32xf32>
    %cst_469 = arith.constant 1.000000e+00 : f32
    %1017 = vector.broadcast %cst_469 : f32 to vector<4x32xf32>
    %1018 = arith.addf %1017, %1016 : vector<4x32xf32>
    %1019 = arith.divf %1017, %1018 : vector<4x32xf32>
    %1020 = vector.extract_strided_slice %1013 {offsets = [0, 32], sizes = [4, 32], strides = [1, 1]} : vector<4x128xf32> to vector<4x32xf32>
    %1021 = arith.negf %1020 : vector<4x32xf32>
    %1022 = math.exp %1021 : vector<4x32xf32>
    %cst_470 = arith.constant 1.000000e+00 : f32
    %1023 = vector.broadcast %cst_470 : f32 to vector<4x32xf32>
    %1024 = arith.addf %1023, %1022 : vector<4x32xf32>
    %1025 = arith.divf %1023, %1024 : vector<4x32xf32>
    %1026 = vector.extract_strided_slice %1013 {offsets = [0, 64], sizes = [4, 32], strides = [1, 1]} : vector<4x128xf32> to vector<4x32xf32>
    %1027 = math.tanh %1026 : vector<4x32xf32>
    %1028 = vector.extract_strided_slice %1013 {offsets = [0, 96], sizes = [4, 32], strides = [1, 1]} : vector<4x128xf32> to vector<4x32xf32>
    %1029 = arith.negf %1028 : vector<4x32xf32>
    %1030 = math.exp %1029 : vector<4x32xf32>
    %cst_471 = arith.constant 1.000000e+00 : f32
    %1031 = vector.broadcast %cst_471 : f32 to vector<4x32xf32>
    %1032 = arith.addf %1031, %1030 : vector<4x32xf32>
    %1033 = arith.divf %1031, %1032 : vector<4x32xf32>
    %1034 = arith.mulf %1025, %1011 : vector<4x32xf32>
    %1035 = arith.mulf %1019, %1027 : vector<4x32xf32>
    %1036 = arith.addf %1034, %1035 : vector<4x32xf32>
    %1037 = math.tanh %1036 : vector<4x32xf32>
    %1038 = arith.mulf %1033, %1037 : vector<4x32xf32>
    %c0_472 = arith.constant 0 : index
    %c0_473 = arith.constant 0 : index
    %1039 = vector.load %arg10[%c0_472, %c0_473] : memref<4x32xf32, #tpu.memory_space<vmem>>, vector<4x32xf32>
    %1040 = vector.shape_cast %1007 : vector<4x1xi1> to vector<4x1xi1>
    %1041 = vector.broadcast %1040 : vector<4x1xi1> to vector<4x32xi1>
    %1042 = arith.select %1041, %1038, %1039 : vector<4x32xi1>, vector<4x32xf32>
    %c0_474 = arith.constant 0 : index
    %c0_475 = arith.constant 0 : index
    %1043 = vector.load %arg10[%c0_474, %c0_475] : memref<4x32xf32, #tpu.memory_space<vmem>>, vector<4x32xf32>
    tpu.vector_store %arg10[%c0_474, %c0_475], %1042 {strides = array<i32>} : memref<4x32xf32, #tpu.memory_space<vmem>>, vector<4x32xf32>,
    %c0_476 = arith.constant 0 : index
    %c0_477 = arith.constant 0 : index
    %1044 = vector.load %arg11[%c0_476, %c0_477] : memref<4x32xf32, #tpu.memory_space<vmem>>, vector<4x32xf32>
    %1045 = vector.shape_cast %1007 : vector<4x1xi1> to vector<4x1xi1>
    %1046 = vector.broadcast %1045 : vector<4x1xi1> to vector<4x32xi1>
    %1047 = arith.select %1046, %1036, %1044 : vector<4x32xi1>, vector<4x32xf32>
    %c0_478 = arith.constant 0 : index
    %c0_479 = arith.constant 0 : index
    %1048 = vector.load %arg11[%c0_478, %c0_479] : memref<4x32xf32, #tpu.memory_space<vmem>>, vector<4x32xf32>
    tpu.vector_store %arg11[%c0_478, %c0_479], %1047 {strides = array<i32>} : memref<4x32xf32, #tpu.memory_space<vmem>>, vector<4x32xf32>,
    %cst_480 = arith.constant 0.000000e+00 : f32
    %1049 = vector.shape_cast %1007 : vector<4x1xi1> to vector<4x1xi1>
    %1050 = vector.broadcast %1049 : vector<4x1xi1> to vector<4x32xi1>
    %1051 = vector.broadcast %cst_480 : f32 to vector<4x32xf32>
    %1052 = arith.select %1050, %1038, %1051 : vector<4x32xi1>, vector<4x32xf32>
    %c6_481 = arith.constant 6 : index
    %c0_482 = arith.constant 0 : index
    %c0_483 = arith.constant 0 : index
    %1053 = vector.load %arg7[%c6_481, %c0_482, %c0_483] : memref<16x4x32xf32, #tpu.memory_space<vmem>>, vector<1x4x32xf32>
    %1054 = vector.shape_cast %1053 : vector<1x4x32xf32> to vector<4x32xf32>
    %1055 = vector.shape_cast %1052 : vector<4x32xf32> to vector<1x4x32xf32>
    tpu.vector_store %arg7[%c6_481, %c0_482, %c0_483], %1055 {strides = array<i32>} : memref<16x4x32xf32, #tpu.memory_space<vmem>>, vector<1x4x32xf32>,
    %c16_i32_484 = arith.constant 16 : i32
    %1056 = arith.muli %arg0, %c16_i32_484 : i32
    %c10_i32_485 = arith.constant 10 : i32
    %1057 = arith.addi %1056, %c10_i32_485 : i32
    %1058 = vector.broadcast %1057 : i32 to vector<4x1xi32>
    %1059 = arith.cmpi sgt, %3, %1058 : vector<4x1xi32>
    %c10_486 = arith.constant 10 : index
    %c0_487 = arith.constant 0 : index
    %c0_488 = arith.constant 0 : index
    %1060 = vector.load %arg1[%c10_486, %c0_487, %c0_488] : memref<16x4x128xf32, #tpu.memory_space<vmem>>, vector<1x4x128xf32>
    %1061 = vector.shape_cast %1060 : vector<1x4x128xf32> to vector<4x128xf32>
    %c0_489 = arith.constant 0 : index
    %c0_490 = arith.constant 0 : index
    %1062 = vector.load %arg8[%c0_489, %c0_490] : memref<4x32xf32, #tpu.memory_space<vmem>>, vector<4x32xf32>
    %c0_491 = arith.constant 0 : index
    %c0_492 = arith.constant 0 : index
    %1063 = vector.load %arg9[%c0_491, %c0_492] : memref<4x32xf32, #tpu.memory_space<vmem>>, vector<4x32xf32>
    %cst_493 = arith.constant dense<0.000000e+00> : vector<4x128xf32>
    %1064 = tpu.matmul %1062, %4, %cst_493 {dimension_numbers = #tpu.dot_dimension_numbers<[1], [0], [0], [1], [0, 0, 1, 1], [], []>} : vector<4x32xf32>, vector<32x128xf32>, vector<4x128xf32> -> vector<4x128xf32>
    %1065 = arith.addf %1061, %1064 : vector<4x128xf32>
    %1066 = vector.extract_strided_slice %1065 {offsets = [0, 0], sizes = [4, 32], strides = [1, 1]} : vector<4x128xf32> to vector<4x32xf32>
    %1067 = arith.negf %1066 : vector<4x32xf32>
    %1068 = math.exp %1067 : vector<4x32xf32>
    %cst_494 = arith.constant 1.000000e+00 : f32
    %1069 = vector.broadcast %cst_494 : f32 to vector<4x32xf32>
    %1070 = arith.addf %1069, %1068 : vector<4x32xf32>
    %1071 = arith.divf %1069, %1070 : vector<4x32xf32>
    %1072 = vector.extract_strided_slice %1065 {offsets = [0, 32], sizes = [4, 32], strides = [1, 1]} : vector<4x128xf32> to vector<4x32xf32>
    %1073 = arith.negf %1072 : vector<4x32xf32>
    %1074 = math.exp %1073 : vector<4x32xf32>
    %cst_495 = arith.constant 1.000000e+00 : f32
    %1075 = vector.broadcast %cst_495 : f32 to vector<4x32xf32>
    %1076 = arith.addf %1075, %1074 : vector<4x32xf32>
    %1077 = arith.divf %1075, %1076 : vector<4x32xf32>
    %1078 = vector.extract_strided_slice %1065 {offsets = [0, 64], sizes = [4, 32], strides = [1, 1]} : vector<4x128xf32> to vector<4x32xf32>
    %1079 = math.tanh %1078 : vector<4x32xf32>
    %1080 = vector.extract_strided_slice %1065 {offsets = [0, 96], sizes = [4, 32], strides = [1, 1]} : vector<4x128xf32> to vector<4x32xf32>
    %1081 = arith.negf %1080 : vector<4x32xf32>
    %1082 = math.exp %1081 : vector<4x32xf32>
    %cst_496 = arith.constant 1.000000e+00 : f32
    %1083 = vector.broadcast %cst_496 : f32 to vector<4x32xf32>
    %1084 = arith.addf %1083, %1082 : vector<4x32xf32>
    %1085 = arith.divf %1083, %1084 : vector<4x32xf32>
    %1086 = arith.mulf %1077, %1063 : vector<4x32xf32>
    %1087 = arith.mulf %1071, %1079 : vector<4x32xf32>
    %1088 = arith.addf %1086, %1087 : vector<4x32xf32>
    %1089 = math.tanh %1088 : vector<4x32xf32>
    %1090 = arith.mulf %1085, %1089 : vector<4x32xf32>
    %c0_497 = arith.constant 0 : index
    %c0_498 = arith.constant 0 : index
    %1091 = vector.load %arg8[%c0_497, %c0_498] : memref<4x32xf32, #tpu.memory_space<vmem>>, vector<4x32xf32>
    %1092 = vector.shape_cast %1059 : vector<4x1xi1> to vector<4x1xi1>
    %1093 = vector.broadcast %1092 : vector<4x1xi1> to vector<4x32xi1>
    %1094 = arith.select %1093, %1090, %1091 : vector<4x32xi1>, vector<4x32xf32>
    %c0_499 = arith.constant 0 : index
    %c0_500 = arith.constant 0 : index
    %1095 = vector.load %arg8[%c0_499, %c0_500] : memref<4x32xf32, #tpu.memory_space<vmem>>, vector<4x32xf32>
    tpu.vector_store %arg8[%c0_499, %c0_500], %1094 {strides = array<i32>} : memref<4x32xf32, #tpu.memory_space<vmem>>, vector<4x32xf32>,
    %c0_501 = arith.constant 0 : index
    %c0_502 = arith.constant 0 : index
    %1096 = vector.load %arg9[%c0_501, %c0_502] : memref<4x32xf32, #tpu.memory_space<vmem>>, vector<4x32xf32>
    %1097 = vector.shape_cast %1059 : vector<4x1xi1> to vector<4x1xi1>
    %1098 = vector.broadcast %1097 : vector<4x1xi1> to vector<4x32xi1>
    %1099 = arith.select %1098, %1088, %1096 : vector<4x32xi1>, vector<4x32xf32>
    %c0_503 = arith.constant 0 : index
    %c0_504 = arith.constant 0 : index
    %1100 = vector.load %arg9[%c0_503, %c0_504] : memref<4x32xf32, #tpu.memory_space<vmem>>, vector<4x32xf32>
    tpu.vector_store %arg9[%c0_503, %c0_504], %1099 {strides = array<i32>} : memref<4x32xf32, #tpu.memory_space<vmem>>, vector<4x32xf32>,
    %cst_505 = arith.constant 0.000000e+00 : f32
    %1101 = vector.shape_cast %1059 : vector<4x1xi1> to vector<4x1xi1>
    %1102 = vector.broadcast %1101 : vector<4x1xi1> to vector<4x32xi1>
    %1103 = vector.broadcast %cst_505 : f32 to vector<4x32xf32>
    %1104 = arith.select %1102, %1090, %1103 : vector<4x32xi1>, vector<4x32xf32>
    %c10_506 = arith.constant 10 : index
    %c0_507 = arith.constant 0 : index
    %c0_508 = arith.constant 0 : index
    %1105 = vector.load %arg6[%c10_506, %c0_507, %c0_508] : memref<16x4x32xf32, #tpu.memory_space<vmem>>, vector<1x4x32xf32>
    %1106 = vector.shape_cast %1105 : vector<1x4x32xf32> to vector<4x32xf32>
    %1107 = vector.shape_cast %1104 : vector<4x32xf32> to vector<1x4x32xf32>
    tpu.vector_store %arg6[%c10_506, %c0_507, %c0_508], %1107 {strides = array<i32>} : memref<16x4x32xf32, #tpu.memory_space<vmem>>, vector<1x4x32xf32>,
    %c0_i32_509 = arith.constant 0 : i32
    %1108 = arith.subi %c0_i32_509, %arg0 : i32
    %c16_i32_510 = arith.constant 16 : i32
    %1109 = arith.muli %1108, %c16_i32_510 : i32
    %c5_i32_511 = arith.constant 5 : i32
    %1110 = arith.addi %1109, %c5_i32_511 : i32
    %1111 = vector.broadcast %1110 : i32 to vector<4x1xi32>
    %1112 = arith.cmpi sgt, %3, %1111 : vector<4x1xi32>
    %c5_512 = arith.constant 5 : index
    %c0_513 = arith.constant 0 : index
    %c0_514 = arith.constant 0 : index
    %1113 = vector.load %arg2[%c5_512, %c0_513, %c0_514] : memref<16x4x128xf32, #tpu.memory_space<vmem>>, vector<1x4x128xf32>
    %1114 = vector.shape_cast %1113 : vector<1x4x128xf32> to vector<4x128xf32>
    %c0_515 = arith.constant 0 : index
    %c0_516 = arith.constant 0 : index
    %1115 = vector.load %arg10[%c0_515, %c0_516] : memref<4x32xf32, #tpu.memory_space<vmem>>, vector<4x32xf32>
    %c0_517 = arith.constant 0 : index
    %c0_518 = arith.constant 0 : index
    %1116 = vector.load %arg11[%c0_517, %c0_518] : memref<4x32xf32, #tpu.memory_space<vmem>>, vector<4x32xf32>
    %cst_519 = arith.constant dense<0.000000e+00> : vector<4x128xf32>
    %1117 = tpu.matmul %1115, %5, %cst_519 {dimension_numbers = #tpu.dot_dimension_numbers<[1], [0], [0], [1], [0, 0, 1, 1], [], []>} : vector<4x32xf32>, vector<32x128xf32>, vector<4x128xf32> -> vector<4x128xf32>
    %1118 = arith.addf %1114, %1117 : vector<4x128xf32>
    %1119 = vector.extract_strided_slice %1118 {offsets = [0, 0], sizes = [4, 32], strides = [1, 1]} : vector<4x128xf32> to vector<4x32xf32>
    %1120 = arith.negf %1119 : vector<4x32xf32>
    %1121 = math.exp %1120 : vector<4x32xf32>
    %cst_520 = arith.constant 1.000000e+00 : f32
    %1122 = vector.broadcast %cst_520 : f32 to vector<4x32xf32>
    %1123 = arith.addf %1122, %1121 : vector<4x32xf32>
    %1124 = arith.divf %1122, %1123 : vector<4x32xf32>
    %1125 = vector.extract_strided_slice %1118 {offsets = [0, 32], sizes = [4, 32], strides = [1, 1]} : vector<4x128xf32> to vector<4x32xf32>
    %1126 = arith.negf %1125 : vector<4x32xf32>
    %1127 = math.exp %1126 : vector<4x32xf32>
    %cst_521 = arith.constant 1.000000e+00 : f32
    %1128 = vector.broadcast %cst_521 : f32 to vector<4x32xf32>
    %1129 = arith.addf %1128, %1127 : vector<4x32xf32>
    %1130 = arith.divf %1128, %1129 : vector<4x32xf32>
    %1131 = vector.extract_strided_slice %1118 {offsets = [0, 64], sizes = [4, 32], strides = [1, 1]} : vector<4x128xf32> to vector<4x32xf32>
    %1132 = math.tanh %1131 : vector<4x32xf32>
    %1133 = vector.extract_strided_slice %1118 {offsets = [0, 96], sizes = [4, 32], strides = [1, 1]} : vector<4x128xf32> to vector<4x32xf32>
    %1134 = arith.negf %1133 : vector<4x32xf32>
    %1135 = math.exp %1134 : vector<4x32xf32>
    %cst_522 = arith.constant 1.000000e+00 : f32
    %1136 = vector.broadcast %cst_522 : f32 to vector<4x32xf32>
    %1137 = arith.addf %1136, %1135 : vector<4x32xf32>
    %1138 = arith.divf %1136, %1137 : vector<4x32xf32>
    %1139 = arith.mulf %1130, %1116 : vector<4x32xf32>
    %1140 = arith.mulf %1124, %1132 : vector<4x32xf32>
    %1141 = arith.addf %1139, %1140 : vector<4x32xf32>
    %1142 = math.tanh %1141 : vector<4x32xf32>
    %1143 = arith.mulf %1138, %1142 : vector<4x32xf32>
    %c0_523 = arith.constant 0 : index
    %c0_524 = arith.constant 0 : index
    %1144 = vector.load %arg10[%c0_523, %c0_524] : memref<4x32xf32, #tpu.memory_space<vmem>>, vector<4x32xf32>
    %1145 = vector.shape_cast %1112 : vector<4x1xi1> to vector<4x1xi1>
    %1146 = vector.broadcast %1145 : vector<4x1xi1> to vector<4x32xi1>
    %1147 = arith.select %1146, %1143, %1144 : vector<4x32xi1>, vector<4x32xf32>
    %c0_525 = arith.constant 0 : index
    %c0_526 = arith.constant 0 : index
    %1148 = vector.load %arg10[%c0_525, %c0_526] : memref<4x32xf32, #tpu.memory_space<vmem>>, vector<4x32xf32>
    tpu.vector_store %arg10[%c0_525, %c0_526], %1147 {strides = array<i32>} : memref<4x32xf32, #tpu.memory_space<vmem>>, vector<4x32xf32>,
    %c0_527 = arith.constant 0 : index
    %c0_528 = arith.constant 0 : index
    %1149 = vector.load %arg11[%c0_527, %c0_528] : memref<4x32xf32, #tpu.memory_space<vmem>>, vector<4x32xf32>
    %1150 = vector.shape_cast %1112 : vector<4x1xi1> to vector<4x1xi1>
    %1151 = vector.broadcast %1150 : vector<4x1xi1> to vector<4x32xi1>
    %1152 = arith.select %1151, %1141, %1149 : vector<4x32xi1>, vector<4x32xf32>
    %c0_529 = arith.constant 0 : index
    %c0_530 = arith.constant 0 : index
    %1153 = vector.load %arg11[%c0_529, %c0_530] : memref<4x32xf32, #tpu.memory_space<vmem>>, vector<4x32xf32>
    tpu.vector_store %arg11[%c0_529, %c0_530], %1152 {strides = array<i32>} : memref<4x32xf32, #tpu.memory_space<vmem>>, vector<4x32xf32>,
    %cst_531 = arith.constant 0.000000e+00 : f32
    %1154 = vector.shape_cast %1112 : vector<4x1xi1> to vector<4x1xi1>
    %1155 = vector.broadcast %1154 : vector<4x1xi1> to vector<4x32xi1>
    %1156 = vector.broadcast %cst_531 : f32 to vector<4x32xf32>
    %1157 = arith.select %1155, %1143, %1156 : vector<4x32xi1>, vector<4x32xf32>
    %c5_532 = arith.constant 5 : index
    %c0_533 = arith.constant 0 : index
    %c0_534 = arith.constant 0 : index
    %1158 = vector.load %arg7[%c5_532, %c0_533, %c0_534] : memref<16x4x32xf32, #tpu.memory_space<vmem>>, vector<1x4x32xf32>
    %1159 = vector.shape_cast %1158 : vector<1x4x32xf32> to vector<4x32xf32>
    %1160 = vector.shape_cast %1157 : vector<4x32xf32> to vector<1x4x32xf32>
    tpu.vector_store %arg7[%c5_532, %c0_533, %c0_534], %1160 {strides = array<i32>} : memref<16x4x32xf32, #tpu.memory_space<vmem>>, vector<1x4x32xf32>,
    %c16_i32_535 = arith.constant 16 : i32
    %1161 = arith.muli %arg0, %c16_i32_535 : i32
    %c11_i32_536 = arith.constant 11 : i32
    %1162 = arith.addi %1161, %c11_i32_536 : i32
    %1163 = vector.broadcast %1162 : i32 to vector<4x1xi32>
    %1164 = arith.cmpi sgt, %3, %1163 : vector<4x1xi32>
    %c11_537 = arith.constant 11 : index
    %c0_538 = arith.constant 0 : index
    %c0_539 = arith.constant 0 : index
    %1165 = vector.load %arg1[%c11_537, %c0_538, %c0_539] : memref<16x4x128xf32, #tpu.memory_space<vmem>>, vector<1x4x128xf32>
    %1166 = vector.shape_cast %1165 : vector<1x4x128xf32> to vector<4x128xf32>
    %c0_540 = arith.constant 0 : index
    %c0_541 = arith.constant 0 : index
    %1167 = vector.load %arg8[%c0_540, %c0_541] : memref<4x32xf32, #tpu.memory_space<vmem>>, vector<4x32xf32>
    %c0_542 = arith.constant 0 : index
    %c0_543 = arith.constant 0 : index
    %1168 = vector.load %arg9[%c0_542, %c0_543] : memref<4x32xf32, #tpu.memory_space<vmem>>, vector<4x32xf32>
    %cst_544 = arith.constant dense<0.000000e+00> : vector<4x128xf32>
    %1169 = tpu.matmul %1167, %4, %cst_544 {dimension_numbers = #tpu.dot_dimension_numbers<[1], [0], [0], [1], [0, 0, 1, 1], [], []>} : vector<4x32xf32>, vector<32x128xf32>, vector<4x128xf32> -> vector<4x128xf32>
    %1170 = arith.addf %1166, %1169 : vector<4x128xf32>
    %1171 = vector.extract_strided_slice %1170 {offsets = [0, 0], sizes = [4, 32], strides = [1, 1]} : vector<4x128xf32> to vector<4x32xf32>
    %1172 = arith.negf %1171 : vector<4x32xf32>
    %1173 = math.exp %1172 : vector<4x32xf32>
    %cst_545 = arith.constant 1.000000e+00 : f32
    %1174 = vector.broadcast %cst_545 : f32 to vector<4x32xf32>
    %1175 = arith.addf %1174, %1173 : vector<4x32xf32>
    %1176 = arith.divf %1174, %1175 : vector<4x32xf32>
    %1177 = vector.extract_strided_slice %1170 {offsets = [0, 32], sizes = [4, 32], strides = [1, 1]} : vector<4x128xf32> to vector<4x32xf32>
    %1178 = arith.negf %1177 : vector<4x32xf32>
    %1179 = math.exp %1178 : vector<4x32xf32>
    %cst_546 = arith.constant 1.000000e+00 : f32
    %1180 = vector.broadcast %cst_546 : f32 to vector<4x32xf32>
    %1181 = arith.addf %1180, %1179 : vector<4x32xf32>
    %1182 = arith.divf %1180, %1181 : vector<4x32xf32>
    %1183 = vector.extract_strided_slice %1170 {offsets = [0, 64], sizes = [4, 32], strides = [1, 1]} : vector<4x128xf32> to vector<4x32xf32>
    %1184 = math.tanh %1183 : vector<4x32xf32>
    %1185 = vector.extract_strided_slice %1170 {offsets = [0, 96], sizes = [4, 32], strides = [1, 1]} : vector<4x128xf32> to vector<4x32xf32>
    %1186 = arith.negf %1185 : vector<4x32xf32>
    %1187 = math.exp %1186 : vector<4x32xf32>
    %cst_547 = arith.constant 1.000000e+00 : f32
    %1188 = vector.broadcast %cst_547 : f32 to vector<4x32xf32>
    %1189 = arith.addf %1188, %1187 : vector<4x32xf32>
    %1190 = arith.divf %1188, %1189 : vector<4x32xf32>
    %1191 = arith.mulf %1182, %1168 : vector<4x32xf32>
    %1192 = arith.mulf %1176, %1184 : vector<4x32xf32>
    %1193 = arith.addf %1191, %1192 : vector<4x32xf32>
    %1194 = math.tanh %1193 : vector<4x32xf32>
    %1195 = arith.mulf %1190, %1194 : vector<4x32xf32>
    %c0_548 = arith.constant 0 : index
    %c0_549 = arith.constant 0 : index
    %1196 = vector.load %arg8[%c0_548, %c0_549] : memref<4x32xf32, #tpu.memory_space<vmem>>, vector<4x32xf32>
    %1197 = vector.shape_cast %1164 : vector<4x1xi1> to vector<4x1xi1>
    %1198 = vector.broadcast %1197 : vector<4x1xi1> to vector<4x32xi1>
    %1199 = arith.select %1198, %1195, %1196 : vector<4x32xi1>, vector<4x32xf32>
    %c0_550 = arith.constant 0 : index
    %c0_551 = arith.constant 0 : index
    %1200 = vector.load %arg8[%c0_550, %c0_551] : memref<4x32xf32, #tpu.memory_space<vmem>>, vector<4x32xf32>
    tpu.vector_store %arg8[%c0_550, %c0_551], %1199 {strides = array<i32>} : memref<4x32xf32, #tpu.memory_space<vmem>>, vector<4x32xf32>,
    %c0_552 = arith.constant 0 : index
    %c0_553 = arith.constant 0 : index
    %1201 = vector.load %arg9[%c0_552, %c0_553] : memref<4x32xf32, #tpu.memory_space<vmem>>, vector<4x32xf32>
    %1202 = vector.shape_cast %1164 : vector<4x1xi1> to vector<4x1xi1>
    %1203 = vector.broadcast %1202 : vector<4x1xi1> to vector<4x32xi1>
    %1204 = arith.select %1203, %1193, %1201 : vector<4x32xi1>, vector<4x32xf32>
    %c0_554 = arith.constant 0 : index
    %c0_555 = arith.constant 0 : index
    %1205 = vector.load %arg9[%c0_554, %c0_555] : memref<4x32xf32, #tpu.memory_space<vmem>>, vector<4x32xf32>
    tpu.vector_store %arg9[%c0_554, %c0_555], %1204 {strides = array<i32>} : memref<4x32xf32, #tpu.memory_space<vmem>>, vector<4x32xf32>,
    %cst_556 = arith.constant 0.000000e+00 : f32
    %1206 = vector.shape_cast %1164 : vector<4x1xi1> to vector<4x1xi1>
    %1207 = vector.broadcast %1206 : vector<4x1xi1> to vector<4x32xi1>
    %1208 = vector.broadcast %cst_556 : f32 to vector<4x32xf32>
    %1209 = arith.select %1207, %1195, %1208 : vector<4x32xi1>, vector<4x32xf32>
    %c11_557 = arith.constant 11 : index
    %c0_558 = arith.constant 0 : index
    %c0_559 = arith.constant 0 : index
    %1210 = vector.load %arg6[%c11_557, %c0_558, %c0_559] : memref<16x4x32xf32, #tpu.memory_space<vmem>>, vector<1x4x32xf32>
    %1211 = vector.shape_cast %1210 : vector<1x4x32xf32> to vector<4x32xf32>
    %1212 = vector.shape_cast %1209 : vector<4x32xf32> to vector<1x4x32xf32>
    tpu.vector_store %arg6[%c11_557, %c0_558, %c0_559], %1212 {strides = array<i32>} : memref<16x4x32xf32, #tpu.memory_space<vmem>>, vector<1x4x32xf32>,
    %c0_i32_560 = arith.constant 0 : i32
    %1213 = arith.subi %c0_i32_560, %arg0 : i32
    %c16_i32_561 = arith.constant 16 : i32
    %1214 = arith.muli %1213, %c16_i32_561 : i32
    %c4_i32_562 = arith.constant 4 : i32
    %1215 = arith.addi %1214, %c4_i32_562 : i32
    %1216 = vector.broadcast %1215 : i32 to vector<4x1xi32>
    %1217 = arith.cmpi sgt, %3, %1216 : vector<4x1xi32>
    %c4_563 = arith.constant 4 : index
    %c0_564 = arith.constant 0 : index
    %c0_565 = arith.constant 0 : index
    %1218 = vector.load %arg2[%c4_563, %c0_564, %c0_565] : memref<16x4x128xf32, #tpu.memory_space<vmem>>, vector<1x4x128xf32>
    %1219 = vector.shape_cast %1218 : vector<1x4x128xf32> to vector<4x128xf32>
    %c0_566 = arith.constant 0 : index
    %c0_567 = arith.constant 0 : index
    %1220 = vector.load %arg10[%c0_566, %c0_567] : memref<4x32xf32, #tpu.memory_space<vmem>>, vector<4x32xf32>
    %c0_568 = arith.constant 0 : index
    %c0_569 = arith.constant 0 : index
    %1221 = vector.load %arg11[%c0_568, %c0_569] : memref<4x32xf32, #tpu.memory_space<vmem>>, vector<4x32xf32>
    %cst_570 = arith.constant dense<0.000000e+00> : vector<4x128xf32>
    %1222 = tpu.matmul %1220, %5, %cst_570 {dimension_numbers = #tpu.dot_dimension_numbers<[1], [0], [0], [1], [0, 0, 1, 1], [], []>} : vector<4x32xf32>, vector<32x128xf32>, vector<4x128xf32> -> vector<4x128xf32>
    %1223 = arith.addf %1219, %1222 : vector<4x128xf32>
    %1224 = vector.extract_strided_slice %1223 {offsets = [0, 0], sizes = [4, 32], strides = [1, 1]} : vector<4x128xf32> to vector<4x32xf32>
    %1225 = arith.negf %1224 : vector<4x32xf32>
    %1226 = math.exp %1225 : vector<4x32xf32>
    %cst_571 = arith.constant 1.000000e+00 : f32
    %1227 = vector.broadcast %cst_571 : f32 to vector<4x32xf32>
    %1228 = arith.addf %1227, %1226 : vector<4x32xf32>
    %1229 = arith.divf %1227, %1228 : vector<4x32xf32>
    %1230 = vector.extract_strided_slice %1223 {offsets = [0, 32], sizes = [4, 32], strides = [1, 1]} : vector<4x128xf32> to vector<4x32xf32>
    %1231 = arith.negf %1230 : vector<4x32xf32>
    %1232 = math.exp %1231 : vector<4x32xf32>
    %cst_572 = arith.constant 1.000000e+00 : f32
    %1233 = vector.broadcast %cst_572 : f32 to vector<4x32xf32>
    %1234 = arith.addf %1233, %1232 : vector<4x32xf32>
    %1235 = arith.divf %1233, %1234 : vector<4x32xf32>
    %1236 = vector.extract_strided_slice %1223 {offsets = [0, 64], sizes = [4, 32], strides = [1, 1]} : vector<4x128xf32> to vector<4x32xf32>
    %1237 = math.tanh %1236 : vector<4x32xf32>
    %1238 = vector.extract_strided_slice %1223 {offsets = [0, 96], sizes = [4, 32], strides = [1, 1]} : vector<4x128xf32> to vector<4x32xf32>
    %1239 = arith.negf %1238 : vector<4x32xf32>
    %1240 = math.exp %1239 : vector<4x32xf32>
    %cst_573 = arith.constant 1.000000e+00 : f32
    %1241 = vector.broadcast %cst_573 : f32 to vector<4x32xf32>
    %1242 = arith.addf %1241, %1240 : vector<4x32xf32>
    %1243 = arith.divf %1241, %1242 : vector<4x32xf32>
    %1244 = arith.mulf %1235, %1221 : vector<4x32xf32>
    %1245 = arith.mulf %1229, %1237 : vector<4x32xf32>
    %1246 = arith.addf %1244, %1245 : vector<4x32xf32>
    %1247 = math.tanh %1246 : vector<4x32xf32>
    %1248 = arith.mulf %1243, %1247 : vector<4x32xf32>
    %c0_574 = arith.constant 0 : index
    %c0_575 = arith.constant 0 : index
    %1249 = vector.load %arg10[%c0_574, %c0_575] : memref<4x32xf32, #tpu.memory_space<vmem>>, vector<4x32xf32>
    %1250 = vector.shape_cast %1217 : vector<4x1xi1> to vector<4x1xi1>
    %1251 = vector.broadcast %1250 : vector<4x1xi1> to vector<4x32xi1>
    %1252 = arith.select %1251, %1248, %1249 : vector<4x32xi1>, vector<4x32xf32>
    %c0_576 = arith.constant 0 : index
    %c0_577 = arith.constant 0 : index
    %1253 = vector.load %arg10[%c0_576, %c0_577] : memref<4x32xf32, #tpu.memory_space<vmem>>, vector<4x32xf32>
    tpu.vector_store %arg10[%c0_576, %c0_577], %1252 {strides = array<i32>} : memref<4x32xf32, #tpu.memory_space<vmem>>, vector<4x32xf32>,
    %c0_578 = arith.constant 0 : index
    %c0_579 = arith.constant 0 : index
    %1254 = vector.load %arg11[%c0_578, %c0_579] : memref<4x32xf32, #tpu.memory_space<vmem>>, vector<4x32xf32>
    %1255 = vector.shape_cast %1217 : vector<4x1xi1> to vector<4x1xi1>
    %1256 = vector.broadcast %1255 : vector<4x1xi1> to vector<4x32xi1>
    %1257 = arith.select %1256, %1246, %1254 : vector<4x32xi1>, vector<4x32xf32>
    %c0_580 = arith.constant 0 : index
    %c0_581 = arith.constant 0 : index
    %1258 = vector.load %arg11[%c0_580, %c0_581] : memref<4x32xf32, #tpu.memory_space<vmem>>, vector<4x32xf32>
    tpu.vector_store %arg11[%c0_580, %c0_581], %1257 {strides = array<i32>} : memref<4x32xf32, #tpu.memory_space<vmem>>, vector<4x32xf32>,
    %cst_582 = arith.constant 0.000000e+00 : f32
    %1259 = vector.shape_cast %1217 : vector<4x1xi1> to vector<4x1xi1>
    %1260 = vector.broadcast %1259 : vector<4x1xi1> to vector<4x32xi1>
    %1261 = vector.broadcast %cst_582 : f32 to vector<4x32xf32>
    %1262 = arith.select %1260, %1248, %1261 : vector<4x32xi1>, vector<4x32xf32>
    %c4_583 = arith.constant 4 : index
    %c0_584 = arith.constant 0 : index
    %c0_585 = arith.constant 0 : index
    %1263 = vector.load %arg7[%c4_583, %c0_584, %c0_585] : memref<16x4x32xf32, #tpu.memory_space<vmem>>, vector<1x4x32xf32>
    %1264 = vector.shape_cast %1263 : vector<1x4x32xf32> to vector<4x32xf32>
    %1265 = vector.shape_cast %1262 : vector<4x32xf32> to vector<1x4x32xf32>
    tpu.vector_store %arg7[%c4_583, %c0_584, %c0_585], %1265 {strides = array<i32>} : memref<16x4x32xf32, #tpu.memory_space<vmem>>, vector<1x4x32xf32>,
    %c16_i32_586 = arith.constant 16 : i32
    %1266 = arith.muli %arg0, %c16_i32_586 : i32
    %c12_i32_587 = arith.constant 12 : i32
    %1267 = arith.addi %1266, %c12_i32_587 : i32
    %1268 = vector.broadcast %1267 : i32 to vector<4x1xi32>
    %1269 = arith.cmpi sgt, %3, %1268 : vector<4x1xi32>
    %c12_588 = arith.constant 12 : index
    %c0_589 = arith.constant 0 : index
    %c0_590 = arith.constant 0 : index
    %1270 = vector.load %arg1[%c12_588, %c0_589, %c0_590] : memref<16x4x128xf32, #tpu.memory_space<vmem>>, vector<1x4x128xf32>
    %1271 = vector.shape_cast %1270 : vector<1x4x128xf32> to vector<4x128xf32>
    %c0_591 = arith.constant 0 : index
    %c0_592 = arith.constant 0 : index
    %1272 = vector.load %arg8[%c0_591, %c0_592] : memref<4x32xf32, #tpu.memory_space<vmem>>, vector<4x32xf32>
    %c0_593 = arith.constant 0 : index
    %c0_594 = arith.constant 0 : index
    %1273 = vector.load %arg9[%c0_593, %c0_594] : memref<4x32xf32, #tpu.memory_space<vmem>>, vector<4x32xf32>
    %cst_595 = arith.constant dense<0.000000e+00> : vector<4x128xf32>
    %1274 = tpu.matmul %1272, %4, %cst_595 {dimension_numbers = #tpu.dot_dimension_numbers<[1], [0], [0], [1], [0, 0, 1, 1], [], []>} : vector<4x32xf32>, vector<32x128xf32>, vector<4x128xf32> -> vector<4x128xf32>
    %1275 = arith.addf %1271, %1274 : vector<4x128xf32>
    %1276 = vector.extract_strided_slice %1275 {offsets = [0, 0], sizes = [4, 32], strides = [1, 1]} : vector<4x128xf32> to vector<4x32xf32>
    %1277 = arith.negf %1276 : vector<4x32xf32>
    %1278 = math.exp %1277 : vector<4x32xf32>
    %cst_596 = arith.constant 1.000000e+00 : f32
    %1279 = vector.broadcast %cst_596 : f32 to vector<4x32xf32>
    %1280 = arith.addf %1279, %1278 : vector<4x32xf32>
    %1281 = arith.divf %1279, %1280 : vector<4x32xf32>
    %1282 = vector.extract_strided_slice %1275 {offsets = [0, 32], sizes = [4, 32], strides = [1, 1]} : vector<4x128xf32> to vector<4x32xf32>
    %1283 = arith.negf %1282 : vector<4x32xf32>
    %1284 = math.exp %1283 : vector<4x32xf32>
    %cst_597 = arith.constant 1.000000e+00 : f32
    %1285 = vector.broadcast %cst_597 : f32 to vector<4x32xf32>
    %1286 = arith.addf %1285, %1284 : vector<4x32xf32>
    %1287 = arith.divf %1285, %1286 : vector<4x32xf32>
    %1288 = vector.extract_strided_slice %1275 {offsets = [0, 64], sizes = [4, 32], strides = [1, 1]} : vector<4x128xf32> to vector<4x32xf32>
    %1289 = math.tanh %1288 : vector<4x32xf32>
    %1290 = vector.extract_strided_slice %1275 {offsets = [0, 96], sizes = [4, 32], strides = [1, 1]} : vector<4x128xf32> to vector<4x32xf32>
    %1291 = arith.negf %1290 : vector<4x32xf32>
    %1292 = math.exp %1291 : vector<4x32xf32>
    %cst_598 = arith.constant 1.000000e+00 : f32
    %1293 = vector.broadcast %cst_598 : f32 to vector<4x32xf32>
    %1294 = arith.addf %1293, %1292 : vector<4x32xf32>
    %1295 = arith.divf %1293, %1294 : vector<4x32xf32>
    %1296 = arith.mulf %1287, %1273 : vector<4x32xf32>
    %1297 = arith.mulf %1281, %1289 : vector<4x32xf32>
    %1298 = arith.addf %1296, %1297 : vector<4x32xf32>
    %1299 = math.tanh %1298 : vector<4x32xf32>
    %1300 = arith.mulf %1295, %1299 : vector<4x32xf32>
    %c0_599 = arith.constant 0 : index
    %c0_600 = arith.constant 0 : index
    %1301 = vector.load %arg8[%c0_599, %c0_600] : memref<4x32xf32, #tpu.memory_space<vmem>>, vector<4x32xf32>
    %1302 = vector.shape_cast %1269 : vector<4x1xi1> to vector<4x1xi1>
    %1303 = vector.broadcast %1302 : vector<4x1xi1> to vector<4x32xi1>
    %1304 = arith.select %1303, %1300, %1301 : vector<4x32xi1>, vector<4x32xf32>
    %c0_601 = arith.constant 0 : index
    %c0_602 = arith.constant 0 : index
    %1305 = vector.load %arg8[%c0_601, %c0_602] : memref<4x32xf32, #tpu.memory_space<vmem>>, vector<4x32xf32>
    tpu.vector_store %arg8[%c0_601, %c0_602], %1304 {strides = array<i32>} : memref<4x32xf32, #tpu.memory_space<vmem>>, vector<4x32xf32>,
    %c0_603 = arith.constant 0 : index
    %c0_604 = arith.constant 0 : index
    %1306 = vector.load %arg9[%c0_603, %c0_604] : memref<4x32xf32, #tpu.memory_space<vmem>>, vector<4x32xf32>
    %1307 = vector.shape_cast %1269 : vector<4x1xi1> to vector<4x1xi1>
    %1308 = vector.broadcast %1307 : vector<4x1xi1> to vector<4x32xi1>
    %1309 = arith.select %1308, %1298, %1306 : vector<4x32xi1>, vector<4x32xf32>
    %c0_605 = arith.constant 0 : index
    %c0_606 = arith.constant 0 : index
    %1310 = vector.load %arg9[%c0_605, %c0_606] : memref<4x32xf32, #tpu.memory_space<vmem>>, vector<4x32xf32>
    tpu.vector_store %arg9[%c0_605, %c0_606], %1309 {strides = array<i32>} : memref<4x32xf32, #tpu.memory_space<vmem>>, vector<4x32xf32>,
    %cst_607 = arith.constant 0.000000e+00 : f32
    %1311 = vector.shape_cast %1269 : vector<4x1xi1> to vector<4x1xi1>
    %1312 = vector.broadcast %1311 : vector<4x1xi1> to vector<4x32xi1>
    %1313 = vector.broadcast %cst_607 : f32 to vector<4x32xf32>
    %1314 = arith.select %1312, %1300, %1313 : vector<4x32xi1>, vector<4x32xf32>
    %c12_608 = arith.constant 12 : index
    %c0_609 = arith.constant 0 : index
    %c0_610 = arith.constant 0 : index
    %1315 = vector.load %arg6[%c12_608, %c0_609, %c0_610] : memref<16x4x32xf32, #tpu.memory_space<vmem>>, vector<1x4x32xf32>
    %1316 = vector.shape_cast %1315 : vector<1x4x32xf32> to vector<4x32xf32>
    %1317 = vector.shape_cast %1314 : vector<4x32xf32> to vector<1x4x32xf32>
    tpu.vector_store %arg6[%c12_608, %c0_609, %c0_610], %1317 {strides = array<i32>} : memref<16x4x32xf32, #tpu.memory_space<vmem>>, vector<1x4x32xf32>,
    %c0_i32_611 = arith.constant 0 : i32
    %1318 = arith.subi %c0_i32_611, %arg0 : i32
    %c16_i32_612 = arith.constant 16 : i32
    %1319 = arith.muli %1318, %c16_i32_612 : i32
    %c3_i32_613 = arith.constant 3 : i32
    %1320 = arith.addi %1319, %c3_i32_613 : i32
    %1321 = vector.broadcast %1320 : i32 to vector<4x1xi32>
    %1322 = arith.cmpi sgt, %3, %1321 : vector<4x1xi32>
    %c3_614 = arith.constant 3 : index
    %c0_615 = arith.constant 0 : index
    %c0_616 = arith.constant 0 : index
    %1323 = vector.load %arg2[%c3_614, %c0_615, %c0_616] : memref<16x4x128xf32, #tpu.memory_space<vmem>>, vector<1x4x128xf32>
    %1324 = vector.shape_cast %1323 : vector<1x4x128xf32> to vector<4x128xf32>
    %c0_617 = arith.constant 0 : index
    %c0_618 = arith.constant 0 : index
    %1325 = vector.load %arg10[%c0_617, %c0_618] : memref<4x32xf32, #tpu.memory_space<vmem>>, vector<4x32xf32>
    %c0_619 = arith.constant 0 : index
    %c0_620 = arith.constant 0 : index
    %1326 = vector.load %arg11[%c0_619, %c0_620] : memref<4x32xf32, #tpu.memory_space<vmem>>, vector<4x32xf32>
    %cst_621 = arith.constant dense<0.000000e+00> : vector<4x128xf32>
    %1327 = tpu.matmul %1325, %5, %cst_621 {dimension_numbers = #tpu.dot_dimension_numbers<[1], [0], [0], [1], [0, 0, 1, 1], [], []>} : vector<4x32xf32>, vector<32x128xf32>, vector<4x128xf32> -> vector<4x128xf32>
    %1328 = arith.addf %1324, %1327 : vector<4x128xf32>
    %1329 = vector.extract_strided_slice %1328 {offsets = [0, 0], sizes = [4, 32], strides = [1, 1]} : vector<4x128xf32> to vector<4x32xf32>
    %1330 = arith.negf %1329 : vector<4x32xf32>
    %1331 = math.exp %1330 : vector<4x32xf32>
    %cst_622 = arith.constant 1.000000e+00 : f32
    %1332 = vector.broadcast %cst_622 : f32 to vector<4x32xf32>
    %1333 = arith.addf %1332, %1331 : vector<4x32xf32>
    %1334 = arith.divf %1332, %1333 : vector<4x32xf32>
    %1335 = vector.extract_strided_slice %1328 {offsets = [0, 32], sizes = [4, 32], strides = [1, 1]} : vector<4x128xf32> to vector<4x32xf32>
    %1336 = arith.negf %1335 : vector<4x32xf32>
    %1337 = math.exp %1336 : vector<4x32xf32>
    %cst_623 = arith.constant 1.000000e+00 : f32
    %1338 = vector.broadcast %cst_623 : f32 to vector<4x32xf32>
    %1339 = arith.addf %1338, %1337 : vector<4x32xf32>
    %1340 = arith.divf %1338, %1339 : vector<4x32xf32>
    %1341 = vector.extract_strided_slice %1328 {offsets = [0, 64], sizes = [4, 32], strides = [1, 1]} : vector<4x128xf32> to vector<4x32xf32>
    %1342 = math.tanh %1341 : vector<4x32xf32>
    %1343 = vector.extract_strided_slice %1328 {offsets = [0, 96], sizes = [4, 32], strides = [1, 1]} : vector<4x128xf32> to vector<4x32xf32>
    %1344 = arith.negf %1343 : vector<4x32xf32>
    %1345 = math.exp %1344 : vector<4x32xf32>
    %cst_624 = arith.constant 1.000000e+00 : f32
    %1346 = vector.broadcast %cst_624 : f32 to vector<4x32xf32>
    %1347 = arith.addf %1346, %1345 : vector<4x32xf32>
    %1348 = arith.divf %1346, %1347 : vector<4x32xf32>
    %1349 = arith.mulf %1340, %1326 : vector<4x32xf32>
    %1350 = arith.mulf %1334, %1342 : vector<4x32xf32>
    %1351 = arith.addf %1349, %1350 : vector<4x32xf32>
    %1352 = math.tanh %1351 : vector<4x32xf32>
    %1353 = arith.mulf %1348, %1352 : vector<4x32xf32>
    %c0_625 = arith.constant 0 : index
    %c0_626 = arith.constant 0 : index
    %1354 = vector.load %arg10[%c0_625, %c0_626] : memref<4x32xf32, #tpu.memory_space<vmem>>, vector<4x32xf32>
    %1355 = vector.shape_cast %1322 : vector<4x1xi1> to vector<4x1xi1>
    %1356 = vector.broadcast %1355 : vector<4x1xi1> to vector<4x32xi1>
    %1357 = arith.select %1356, %1353, %1354 : vector<4x32xi1>, vector<4x32xf32>
    %c0_627 = arith.constant 0 : index
    %c0_628 = arith.constant 0 : index
    %1358 = vector.load %arg10[%c0_627, %c0_628] : memref<4x32xf32, #tpu.memory_space<vmem>>, vector<4x32xf32>
    tpu.vector_store %arg10[%c0_627, %c0_628], %1357 {strides = array<i32>} : memref<4x32xf32, #tpu.memory_space<vmem>>, vector<4x32xf32>,
    %c0_629 = arith.constant 0 : index
    %c0_630 = arith.constant 0 : index
    %1359 = vector.load %arg11[%c0_629, %c0_630] : memref<4x32xf32, #tpu.memory_space<vmem>>, vector<4x32xf32>
    %1360 = vector.shape_cast %1322 : vector<4x1xi1> to vector<4x1xi1>
    %1361 = vector.broadcast %1360 : vector<4x1xi1> to vector<4x32xi1>
    %1362 = arith.select %1361, %1351, %1359 : vector<4x32xi1>, vector<4x32xf32>
    %c0_631 = arith.constant 0 : index
    %c0_632 = arith.constant 0 : index
    %1363 = vector.load %arg11[%c0_631, %c0_632] : memref<4x32xf32, #tpu.memory_space<vmem>>, vector<4x32xf32>
    tpu.vector_store %arg11[%c0_631, %c0_632], %1362 {strides = array<i32>} : memref<4x32xf32, #tpu.memory_space<vmem>>, vector<4x32xf32>,
    %cst_633 = arith.constant 0.000000e+00 : f32
    %1364 = vector.shape_cast %1322 : vector<4x1xi1> to vector<4x1xi1>
    %1365 = vector.broadcast %1364 : vector<4x1xi1> to vector<4x32xi1>
    %1366 = vector.broadcast %cst_633 : f32 to vector<4x32xf32>
    %1367 = arith.select %1365, %1353, %1366 : vector<4x32xi1>, vector<4x32xf32>
    %c3_634 = arith.constant 3 : index
    %c0_635 = arith.constant 0 : index
    %c0_636 = arith.constant 0 : index
    %1368 = vector.load %arg7[%c3_634, %c0_635, %c0_636] : memref<16x4x32xf32, #tpu.memory_space<vmem>>, vector<1x4x32xf32>
    %1369 = vector.shape_cast %1368 : vector<1x4x32xf32> to vector<4x32xf32>
    %1370 = vector.shape_cast %1367 : vector<4x32xf32> to vector<1x4x32xf32>
    tpu.vector_store %arg7[%c3_634, %c0_635, %c0_636], %1370 {strides = array<i32>} : memref<16x4x32xf32, #tpu.memory_space<vmem>>, vector<1x4x32xf32>,
    %c16_i32_637 = arith.constant 16 : i32
    %1371 = arith.muli %arg0, %c16_i32_637 : i32
    %c13_i32_638 = arith.constant 13 : i32
    %1372 = arith.addi %1371, %c13_i32_638 : i32
    %1373 = vector.broadcast %1372 : i32 to vector<4x1xi32>
    %1374 = arith.cmpi sgt, %3, %1373 : vector<4x1xi32>
    %c13_639 = arith.constant 13 : index
    %c0_640 = arith.constant 0 : index
    %c0_641 = arith.constant 0 : index
    %1375 = vector.load %arg1[%c13_639, %c0_640, %c0_641] : memref<16x4x128xf32, #tpu.memory_space<vmem>>, vector<1x4x128xf32>
    %1376 = vector.shape_cast %1375 : vector<1x4x128xf32> to vector<4x128xf32>
    %c0_642 = arith.constant 0 : index
    %c0_643 = arith.constant 0 : index
    %1377 = vector.load %arg8[%c0_642, %c0_643] : memref<4x32xf32, #tpu.memory_space<vmem>>, vector<4x32xf32>
    %c0_644 = arith.constant 0 : index
    %c0_645 = arith.constant 0 : index
    %1378 = vector.load %arg9[%c0_644, %c0_645] : memref<4x32xf32, #tpu.memory_space<vmem>>, vector<4x32xf32>
    %cst_646 = arith.constant dense<0.000000e+00> : vector<4x128xf32>
    %1379 = tpu.matmul %1377, %4, %cst_646 {dimension_numbers = #tpu.dot_dimension_numbers<[1], [0], [0], [1], [0, 0, 1, 1], [], []>} : vector<4x32xf32>, vector<32x128xf32>, vector<4x128xf32> -> vector<4x128xf32>
    %1380 = arith.addf %1376, %1379 : vector<4x128xf32>
    %1381 = vector.extract_strided_slice %1380 {offsets = [0, 0], sizes = [4, 32], strides = [1, 1]} : vector<4x128xf32> to vector<4x32xf32>
    %1382 = arith.negf %1381 : vector<4x32xf32>
    %1383 = math.exp %1382 : vector<4x32xf32>
    %cst_647 = arith.constant 1.000000e+00 : f32
    %1384 = vector.broadcast %cst_647 : f32 to vector<4x32xf32>
    %1385 = arith.addf %1384, %1383 : vector<4x32xf32>
    %1386 = arith.divf %1384, %1385 : vector<4x32xf32>
    %1387 = vector.extract_strided_slice %1380 {offsets = [0, 32], sizes = [4, 32], strides = [1, 1]} : vector<4x128xf32> to vector<4x32xf32>
    %1388 = arith.negf %1387 : vector<4x32xf32>
    %1389 = math.exp %1388 : vector<4x32xf32>
    %cst_648 = arith.constant 1.000000e+00 : f32
    %1390 = vector.broadcast %cst_648 : f32 to vector<4x32xf32>
    %1391 = arith.addf %1390, %1389 : vector<4x32xf32>
    %1392 = arith.divf %1390, %1391 : vector<4x32xf32>
    %1393 = vector.extract_strided_slice %1380 {offsets = [0, 64], sizes = [4, 32], strides = [1, 1]} : vector<4x128xf32> to vector<4x32xf32>
    %1394 = math.tanh %1393 : vector<4x32xf32>
    %1395 = vector.extract_strided_slice %1380 {offsets = [0, 96], sizes = [4, 32], strides = [1, 1]} : vector<4x128xf32> to vector<4x32xf32>
    %1396 = arith.negf %1395 : vector<4x32xf32>
    %1397 = math.exp %1396 : vector<4x32xf32>
    %cst_649 = arith.constant 1.000000e+00 : f32
    %1398 = vector.broadcast %cst_649 : f32 to vector<4x32xf32>
    %1399 = arith.addf %1398, %1397 : vector<4x32xf32>
    %1400 = arith.divf %1398, %1399 : vector<4x32xf32>
    %1401 = arith.mulf %1392, %1378 : vector<4x32xf32>
    %1402 = arith.mulf %1386, %1394 : vector<4x32xf32>
    %1403 = arith.addf %1401, %1402 : vector<4x32xf32>
    %1404 = math.tanh %1403 : vector<4x32xf32>
    %1405 = arith.mulf %1400, %1404 : vector<4x32xf32>
    %c0_650 = arith.constant 0 : index
    %c0_651 = arith.constant 0 : index
    %1406 = vector.load %arg8[%c0_650, %c0_651] : memref<4x32xf32, #tpu.memory_space<vmem>>, vector<4x32xf32>
    %1407 = vector.shape_cast %1374 : vector<4x1xi1> to vector<4x1xi1>
    %1408 = vector.broadcast %1407 : vector<4x1xi1> to vector<4x32xi1>
    %1409 = arith.select %1408, %1405, %1406 : vector<4x32xi1>, vector<4x32xf32>
    %c0_652 = arith.constant 0 : index
    %c0_653 = arith.constant 0 : index
    %1410 = vector.load %arg8[%c0_652, %c0_653] : memref<4x32xf32, #tpu.memory_space<vmem>>, vector<4x32xf32>
    tpu.vector_store %arg8[%c0_652, %c0_653], %1409 {strides = array<i32>} : memref<4x32xf32, #tpu.memory_space<vmem>>, vector<4x32xf32>,
    %c0_654 = arith.constant 0 : index
    %c0_655 = arith.constant 0 : index
    %1411 = vector.load %arg9[%c0_654, %c0_655] : memref<4x32xf32, #tpu.memory_space<vmem>>, vector<4x32xf32>
    %1412 = vector.shape_cast %1374 : vector<4x1xi1> to vector<4x1xi1>
    %1413 = vector.broadcast %1412 : vector<4x1xi1> to vector<4x32xi1>
    %1414 = arith.select %1413, %1403, %1411 : vector<4x32xi1>, vector<4x32xf32>
    %c0_656 = arith.constant 0 : index
    %c0_657 = arith.constant 0 : index
    %1415 = vector.load %arg9[%c0_656, %c0_657] : memref<4x32xf32, #tpu.memory_space<vmem>>, vector<4x32xf32>
    tpu.vector_store %arg9[%c0_656, %c0_657], %1414 {strides = array<i32>} : memref<4x32xf32, #tpu.memory_space<vmem>>, vector<4x32xf32>,
    %cst_658 = arith.constant 0.000000e+00 : f32
    %1416 = vector.shape_cast %1374 : vector<4x1xi1> to vector<4x1xi1>
    %1417 = vector.broadcast %1416 : vector<4x1xi1> to vector<4x32xi1>
    %1418 = vector.broadcast %cst_658 : f32 to vector<4x32xf32>
    %1419 = arith.select %1417, %1405, %1418 : vector<4x32xi1>, vector<4x32xf32>
    %c13_659 = arith.constant 13 : index
    %c0_660 = arith.constant 0 : index
    %c0_661 = arith.constant 0 : index
    %1420 = vector.load %arg6[%c13_659, %c0_660, %c0_661] : memref<16x4x32xf32, #tpu.memory_space<vmem>>, vector<1x4x32xf32>
    %1421 = vector.shape_cast %1420 : vector<1x4x32xf32> to vector<4x32xf32>
    %1422 = vector.shape_cast %1419 : vector<4x32xf32> to vector<1x4x32xf32>
    tpu.vector_store %arg6[%c13_659, %c0_660, %c0_661], %1422 {strides = array<i32>} : memref<16x4x32xf32, #tpu.memory_space<vmem>>, vector<1x4x32xf32>,
    %c0_i32_662 = arith.constant 0 : i32
    %1423 = arith.subi %c0_i32_662, %arg0 : i32
    %c16_i32_663 = arith.constant 16 : i32
    %1424 = arith.muli %1423, %c16_i32_663 : i32
    %c2_i32_664 = arith.constant 2 : i32
    %1425 = arith.addi %1424, %c2_i32_664 : i32
    %1426 = vector.broadcast %1425 : i32 to vector<4x1xi32>
    %1427 = arith.cmpi sgt, %3, %1426 : vector<4x1xi32>
    %c2_665 = arith.constant 2 : index
    %c0_666 = arith.constant 0 : index
    %c0_667 = arith.constant 0 : index
    %1428 = vector.load %arg2[%c2_665, %c0_666, %c0_667] : memref<16x4x128xf32, #tpu.memory_space<vmem>>, vector<1x4x128xf32>
    %1429 = vector.shape_cast %1428 : vector<1x4x128xf32> to vector<4x128xf32>
    %c0_668 = arith.constant 0 : index
    %c0_669 = arith.constant 0 : index
    %1430 = vector.load %arg10[%c0_668, %c0_669] : memref<4x32xf32, #tpu.memory_space<vmem>>, vector<4x32xf32>
    %c0_670 = arith.constant 0 : index
    %c0_671 = arith.constant 0 : index
    %1431 = vector.load %arg11[%c0_670, %c0_671] : memref<4x32xf32, #tpu.memory_space<vmem>>, vector<4x32xf32>
    %cst_672 = arith.constant dense<0.000000e+00> : vector<4x128xf32>
    %1432 = tpu.matmul %1430, %5, %cst_672 {dimension_numbers = #tpu.dot_dimension_numbers<[1], [0], [0], [1], [0, 0, 1, 1], [], []>} : vector<4x32xf32>, vector<32x128xf32>, vector<4x128xf32> -> vector<4x128xf32>
    %1433 = arith.addf %1429, %1432 : vector<4x128xf32>
    %1434 = vector.extract_strided_slice %1433 {offsets = [0, 0], sizes = [4, 32], strides = [1, 1]} : vector<4x128xf32> to vector<4x32xf32>
    %1435 = arith.negf %1434 : vector<4x32xf32>
    %1436 = math.exp %1435 : vector<4x32xf32>
    %cst_673 = arith.constant 1.000000e+00 : f32
    %1437 = vector.broadcast %cst_673 : f32 to vector<4x32xf32>
    %1438 = arith.addf %1437, %1436 : vector<4x32xf32>
    %1439 = arith.divf %1437, %1438 : vector<4x32xf32>
    %1440 = vector.extract_strided_slice %1433 {offsets = [0, 32], sizes = [4, 32], strides = [1, 1]} : vector<4x128xf32> to vector<4x32xf32>
    %1441 = arith.negf %1440 : vector<4x32xf32>
    %1442 = math.exp %1441 : vector<4x32xf32>
    %cst_674 = arith.constant 1.000000e+00 : f32
    %1443 = vector.broadcast %cst_674 : f32 to vector<4x32xf32>
    %1444 = arith.addf %1443, %1442 : vector<4x32xf32>
    %1445 = arith.divf %1443, %1444 : vector<4x32xf32>
    %1446 = vector.extract_strided_slice %1433 {offsets = [0, 64], sizes = [4, 32], strides = [1, 1]} : vector<4x128xf32> to vector<4x32xf32>
    %1447 = math.tanh %1446 : vector<4x32xf32>
    %1448 = vector.extract_strided_slice %1433 {offsets = [0, 96], sizes = [4, 32], strides = [1, 1]} : vector<4x128xf32> to vector<4x32xf32>
    %1449 = arith.negf %1448 : vector<4x32xf32>
    %1450 = math.exp %1449 : vector<4x32xf32>
    %cst_675 = arith.constant 1.000000e+00 : f32
    %1451 = vector.broadcast %cst_675 : f32 to vector<4x32xf32>
    %1452 = arith.addf %1451, %1450 : vector<4x32xf32>
    %1453 = arith.divf %1451, %1452 : vector<4x32xf32>
    %1454 = arith.mulf %1445, %1431 : vector<4x32xf32>
    %1455 = arith.mulf %1439, %1447 : vector<4x32xf32>
    %1456 = arith.addf %1454, %1455 : vector<4x32xf32>
    %1457 = math.tanh %1456 : vector<4x32xf32>
    %1458 = arith.mulf %1453, %1457 : vector<4x32xf32>
    %c0_676 = arith.constant 0 : index
    %c0_677 = arith.constant 0 : index
    %1459 = vector.load %arg10[%c0_676, %c0_677] : memref<4x32xf32, #tpu.memory_space<vmem>>, vector<4x32xf32>
    %1460 = vector.shape_cast %1427 : vector<4x1xi1> to vector<4x1xi1>
    %1461 = vector.broadcast %1460 : vector<4x1xi1> to vector<4x32xi1>
    %1462 = arith.select %1461, %1458, %1459 : vector<4x32xi1>, vector<4x32xf32>
    %c0_678 = arith.constant 0 : index
    %c0_679 = arith.constant 0 : index
    %1463 = vector.load %arg10[%c0_678, %c0_679] : memref<4x32xf32, #tpu.memory_space<vmem>>, vector<4x32xf32>
    tpu.vector_store %arg10[%c0_678, %c0_679], %1462 {strides = array<i32>} : memref<4x32xf32, #tpu.memory_space<vmem>>, vector<4x32xf32>,
    %c0_680 = arith.constant 0 : index
    %c0_681 = arith.constant 0 : index
    %1464 = vector.load %arg11[%c0_680, %c0_681] : memref<4x32xf32, #tpu.memory_space<vmem>>, vector<4x32xf32>
    %1465 = vector.shape_cast %1427 : vector<4x1xi1> to vector<4x1xi1>
    %1466 = vector.broadcast %1465 : vector<4x1xi1> to vector<4x32xi1>
    %1467 = arith.select %1466, %1456, %1464 : vector<4x32xi1>, vector<4x32xf32>
    %c0_682 = arith.constant 0 : index
    %c0_683 = arith.constant 0 : index
    %1468 = vector.load %arg11[%c0_682, %c0_683] : memref<4x32xf32, #tpu.memory_space<vmem>>, vector<4x32xf32>
    tpu.vector_store %arg11[%c0_682, %c0_683], %1467 {strides = array<i32>} : memref<4x32xf32, #tpu.memory_space<vmem>>, vector<4x32xf32>,
    %cst_684 = arith.constant 0.000000e+00 : f32
    %1469 = vector.shape_cast %1427 : vector<4x1xi1> to vector<4x1xi1>
    %1470 = vector.broadcast %1469 : vector<4x1xi1> to vector<4x32xi1>
    %1471 = vector.broadcast %cst_684 : f32 to vector<4x32xf32>
    %1472 = arith.select %1470, %1458, %1471 : vector<4x32xi1>, vector<4x32xf32>
    %c2_685 = arith.constant 2 : index
    %c0_686 = arith.constant 0 : index
    %c0_687 = arith.constant 0 : index
    %1473 = vector.load %arg7[%c2_685, %c0_686, %c0_687] : memref<16x4x32xf32, #tpu.memory_space<vmem>>, vector<1x4x32xf32>
    %1474 = vector.shape_cast %1473 : vector<1x4x32xf32> to vector<4x32xf32>
    %1475 = vector.shape_cast %1472 : vector<4x32xf32> to vector<1x4x32xf32>
    tpu.vector_store %arg7[%c2_685, %c0_686, %c0_687], %1475 {strides = array<i32>} : memref<16x4x32xf32, #tpu.memory_space<vmem>>, vector<1x4x32xf32>,
    %c16_i32_688 = arith.constant 16 : i32
    %1476 = arith.muli %arg0, %c16_i32_688 : i32
    %c14_i32_689 = arith.constant 14 : i32
    %1477 = arith.addi %1476, %c14_i32_689 : i32
    %1478 = vector.broadcast %1477 : i32 to vector<4x1xi32>
    %1479 = arith.cmpi sgt, %3, %1478 : vector<4x1xi32>
    %c14_690 = arith.constant 14 : index
    %c0_691 = arith.constant 0 : index
    %c0_692 = arith.constant 0 : index
    %1480 = vector.load %arg1[%c14_690, %c0_691, %c0_692] : memref<16x4x128xf32, #tpu.memory_space<vmem>>, vector<1x4x128xf32>
    %1481 = vector.shape_cast %1480 : vector<1x4x128xf32> to vector<4x128xf32>
    %c0_693 = arith.constant 0 : index
    %c0_694 = arith.constant 0 : index
    %1482 = vector.load %arg8[%c0_693, %c0_694] : memref<4x32xf32, #tpu.memory_space<vmem>>, vector<4x32xf32>
    %c0_695 = arith.constant 0 : index
    %c0_696 = arith.constant 0 : index
    %1483 = vector.load %arg9[%c0_695, %c0_696] : memref<4x32xf32, #tpu.memory_space<vmem>>, vector<4x32xf32>
    %cst_697 = arith.constant dense<0.000000e+00> : vector<4x128xf32>
    %1484 = tpu.matmul %1482, %4, %cst_697 {dimension_numbers = #tpu.dot_dimension_numbers<[1], [0], [0], [1], [0, 0, 1, 1], [], []>} : vector<4x32xf32>, vector<32x128xf32>, vector<4x128xf32> -> vector<4x128xf32>
    %1485 = arith.addf %1481, %1484 : vector<4x128xf32>
    %1486 = vector.extract_strided_slice %1485 {offsets = [0, 0], sizes = [4, 32], strides = [1, 1]} : vector<4x128xf32> to vector<4x32xf32>
    %1487 = arith.negf %1486 : vector<4x32xf32>
    %1488 = math.exp %1487 : vector<4x32xf32>
    %cst_698 = arith.constant 1.000000e+00 : f32
    %1489 = vector.broadcast %cst_698 : f32 to vector<4x32xf32>
    %1490 = arith.addf %1489, %1488 : vector<4x32xf32>
    %1491 = arith.divf %1489, %1490 : vector<4x32xf32>
    %1492 = vector.extract_strided_slice %1485 {offsets = [0, 32], sizes = [4, 32], strides = [1, 1]} : vector<4x128xf32> to vector<4x32xf32>
    %1493 = arith.negf %1492 : vector<4x32xf32>
    %1494 = math.exp %1493 : vector<4x32xf32>
    %cst_699 = arith.constant 1.000000e+00 : f32
    %1495 = vector.broadcast %cst_699 : f32 to vector<4x32xf32>
    %1496 = arith.addf %1495, %1494 : vector<4x32xf32>
    %1497 = arith.divf %1495, %1496 : vector<4x32xf32>
    %1498 = vector.extract_strided_slice %1485 {offsets = [0, 64], sizes = [4, 32], strides = [1, 1]} : vector<4x128xf32> to vector<4x32xf32>
    %1499 = math.tanh %1498 : vector<4x32xf32>
    %1500 = vector.extract_strided_slice %1485 {offsets = [0, 96], sizes = [4, 32], strides = [1, 1]} : vector<4x128xf32> to vector<4x32xf32>
    %1501 = arith.negf %1500 : vector<4x32xf32>
    %1502 = math.exp %1501 : vector<4x32xf32>
    %cst_700 = arith.constant 1.000000e+00 : f32
    %1503 = vector.broadcast %cst_700 : f32 to vector<4x32xf32>
    %1504 = arith.addf %1503, %1502 : vector<4x32xf32>
    %1505 = arith.divf %1503, %1504 : vector<4x32xf32>
    %1506 = arith.mulf %1497, %1483 : vector<4x32xf32>
    %1507 = arith.mulf %1491, %1499 : vector<4x32xf32>
    %1508 = arith.addf %1506, %1507 : vector<4x32xf32>
    %1509 = math.tanh %1508 : vector<4x32xf32>
    %1510 = arith.mulf %1505, %1509 : vector<4x32xf32>
    %c0_701 = arith.constant 0 : index
    %c0_702 = arith.constant 0 : index
    %1511 = vector.load %arg8[%c0_701, %c0_702] : memref<4x32xf32, #tpu.memory_space<vmem>>, vector<4x32xf32>
    %1512 = vector.shape_cast %1479 : vector<4x1xi1> to vector<4x1xi1>
    %1513 = vector.broadcast %1512 : vector<4x1xi1> to vector<4x32xi1>
    %1514 = arith.select %1513, %1510, %1511 : vector<4x32xi1>, vector<4x32xf32>
    %c0_703 = arith.constant 0 : index
    %c0_704 = arith.constant 0 : index
    %1515 = vector.load %arg8[%c0_703, %c0_704] : memref<4x32xf32, #tpu.memory_space<vmem>>, vector<4x32xf32>
    tpu.vector_store %arg8[%c0_703, %c0_704], %1514 {strides = array<i32>} : memref<4x32xf32, #tpu.memory_space<vmem>>, vector<4x32xf32>,
    %c0_705 = arith.constant 0 : index
    %c0_706 = arith.constant 0 : index
    %1516 = vector.load %arg9[%c0_705, %c0_706] : memref<4x32xf32, #tpu.memory_space<vmem>>, vector<4x32xf32>
    %1517 = vector.shape_cast %1479 : vector<4x1xi1> to vector<4x1xi1>
    %1518 = vector.broadcast %1517 : vector<4x1xi1> to vector<4x32xi1>
    %1519 = arith.select %1518, %1508, %1516 : vector<4x32xi1>, vector<4x32xf32>
    %c0_707 = arith.constant 0 : index
    %c0_708 = arith.constant 0 : index
    %1520 = vector.load %arg9[%c0_707, %c0_708] : memref<4x32xf32, #tpu.memory_space<vmem>>, vector<4x32xf32>
    tpu.vector_store %arg9[%c0_707, %c0_708], %1519 {strides = array<i32>} : memref<4x32xf32, #tpu.memory_space<vmem>>, vector<4x32xf32>,
    %cst_709 = arith.constant 0.000000e+00 : f32
    %1521 = vector.shape_cast %1479 : vector<4x1xi1> to vector<4x1xi1>
    %1522 = vector.broadcast %1521 : vector<4x1xi1> to vector<4x32xi1>
    %1523 = vector.broadcast %cst_709 : f32 to vector<4x32xf32>
    %1524 = arith.select %1522, %1510, %1523 : vector<4x32xi1>, vector<4x32xf32>
    %c14_710 = arith.constant 14 : index
    %c0_711 = arith.constant 0 : index
    %c0_712 = arith.constant 0 : index
    %1525 = vector.load %arg6[%c14_710, %c0_711, %c0_712] : memref<16x4x32xf32, #tpu.memory_space<vmem>>, vector<1x4x32xf32>
    %1526 = vector.shape_cast %1525 : vector<1x4x32xf32> to vector<4x32xf32>
    %1527 = vector.shape_cast %1524 : vector<4x32xf32> to vector<1x4x32xf32>
    tpu.vector_store %arg6[%c14_710, %c0_711, %c0_712], %1527 {strides = array<i32>} : memref<16x4x32xf32, #tpu.memory_space<vmem>>, vector<1x4x32xf32>,
    %c0_i32_713 = arith.constant 0 : i32
    %1528 = arith.subi %c0_i32_713, %arg0 : i32
    %c16_i32_714 = arith.constant 16 : i32
    %1529 = arith.muli %1528, %c16_i32_714 : i32
    %c1_i32_715 = arith.constant 1 : i32
    %1530 = arith.addi %1529, %c1_i32_715 : i32
    %1531 = vector.broadcast %1530 : i32 to vector<4x1xi32>
    %1532 = arith.cmpi sgt, %3, %1531 : vector<4x1xi32>
    %c1_716 = arith.constant 1 : index
    %c0_717 = arith.constant 0 : index
    %c0_718 = arith.constant 0 : index
    %1533 = vector.load %arg2[%c1_716, %c0_717, %c0_718] : memref<16x4x128xf32, #tpu.memory_space<vmem>>, vector<1x4x128xf32>
    %1534 = vector.shape_cast %1533 : vector<1x4x128xf32> to vector<4x128xf32>
    %c0_719 = arith.constant 0 : index
    %c0_720 = arith.constant 0 : index
    %1535 = vector.load %arg10[%c0_719, %c0_720] : memref<4x32xf32, #tpu.memory_space<vmem>>, vector<4x32xf32>
    %c0_721 = arith.constant 0 : index
    %c0_722 = arith.constant 0 : index
    %1536 = vector.load %arg11[%c0_721, %c0_722] : memref<4x32xf32, #tpu.memory_space<vmem>>, vector<4x32xf32>
    %cst_723 = arith.constant dense<0.000000e+00> : vector<4x128xf32>
    %1537 = tpu.matmul %1535, %5, %cst_723 {dimension_numbers = #tpu.dot_dimension_numbers<[1], [0], [0], [1], [0, 0, 1, 1], [], []>} : vector<4x32xf32>, vector<32x128xf32>, vector<4x128xf32> -> vector<4x128xf32>
    %1538 = arith.addf %1534, %1537 : vector<4x128xf32>
    %1539 = vector.extract_strided_slice %1538 {offsets = [0, 0], sizes = [4, 32], strides = [1, 1]} : vector<4x128xf32> to vector<4x32xf32>
    %1540 = arith.negf %1539 : vector<4x32xf32>
    %1541 = math.exp %1540 : vector<4x32xf32>
    %cst_724 = arith.constant 1.000000e+00 : f32
    %1542 = vector.broadcast %cst_724 : f32 to vector<4x32xf32>
    %1543 = arith.addf %1542, %1541 : vector<4x32xf32>
    %1544 = arith.divf %1542, %1543 : vector<4x32xf32>
    %1545 = vector.extract_strided_slice %1538 {offsets = [0, 32], sizes = [4, 32], strides = [1, 1]} : vector<4x128xf32> to vector<4x32xf32>
    %1546 = arith.negf %1545 : vector<4x32xf32>
    %1547 = math.exp %1546 : vector<4x32xf32>
    %cst_725 = arith.constant 1.000000e+00 : f32
    %1548 = vector.broadcast %cst_725 : f32 to vector<4x32xf32>
    %1549 = arith.addf %1548, %1547 : vector<4x32xf32>
    %1550 = arith.divf %1548, %1549 : vector<4x32xf32>
    %1551 = vector.extract_strided_slice %1538 {offsets = [0, 64], sizes = [4, 32], strides = [1, 1]} : vector<4x128xf32> to vector<4x32xf32>
    %1552 = math.tanh %1551 : vector<4x32xf32>
    %1553 = vector.extract_strided_slice %1538 {offsets = [0, 96], sizes = [4, 32], strides = [1, 1]} : vector<4x128xf32> to vector<4x32xf32>
    %1554 = arith.negf %1553 : vector<4x32xf32>
    %1555 = math.exp %1554 : vector<4x32xf32>
    %cst_726 = arith.constant 1.000000e+00 : f32
    %1556 = vector.broadcast %cst_726 : f32 to vector<4x32xf32>
    %1557 = arith.addf %1556, %1555 : vector<4x32xf32>
    %1558 = arith.divf %1556, %1557 : vector<4x32xf32>
    %1559 = arith.mulf %1550, %1536 : vector<4x32xf32>
    %1560 = arith.mulf %1544, %1552 : vector<4x32xf32>
    %1561 = arith.addf %1559, %1560 : vector<4x32xf32>
    %1562 = math.tanh %1561 : vector<4x32xf32>
    %1563 = arith.mulf %1558, %1562 : vector<4x32xf32>
    %c0_727 = arith.constant 0 : index
    %c0_728 = arith.constant 0 : index
    %1564 = vector.load %arg10[%c0_727, %c0_728] : memref<4x32xf32, #tpu.memory_space<vmem>>, vector<4x32xf32>
    %1565 = vector.shape_cast %1532 : vector<4x1xi1> to vector<4x1xi1>
    %1566 = vector.broadcast %1565 : vector<4x1xi1> to vector<4x32xi1>
    %1567 = arith.select %1566, %1563, %1564 : vector<4x32xi1>, vector<4x32xf32>
    %c0_729 = arith.constant 0 : index
    %c0_730 = arith.constant 0 : index
    %1568 = vector.load %arg10[%c0_729, %c0_730] : memref<4x32xf32, #tpu.memory_space<vmem>>, vector<4x32xf32>
    tpu.vector_store %arg10[%c0_729, %c0_730], %1567 {strides = array<i32>} : memref<4x32xf32, #tpu.memory_space<vmem>>, vector<4x32xf32>,
    %c0_731 = arith.constant 0 : index
    %c0_732 = arith.constant 0 : index
    %1569 = vector.load %arg11[%c0_731, %c0_732] : memref<4x32xf32, #tpu.memory_space<vmem>>, vector<4x32xf32>
    %1570 = vector.shape_cast %1532 : vector<4x1xi1> to vector<4x1xi1>
    %1571 = vector.broadcast %1570 : vector<4x1xi1> to vector<4x32xi1>
    %1572 = arith.select %1571, %1561, %1569 : vector<4x32xi1>, vector<4x32xf32>
    %c0_733 = arith.constant 0 : index
    %c0_734 = arith.constant 0 : index
    %1573 = vector.load %arg11[%c0_733, %c0_734] : memref<4x32xf32, #tpu.memory_space<vmem>>, vector<4x32xf32>
    tpu.vector_store %arg11[%c0_733, %c0_734], %1572 {strides = array<i32>} : memref<4x32xf32, #tpu.memory_space<vmem>>, vector<4x32xf32>,
    %cst_735 = arith.constant 0.000000e+00 : f32
    %1574 = vector.shape_cast %1532 : vector<4x1xi1> to vector<4x1xi1>
    %1575 = vector.broadcast %1574 : vector<4x1xi1> to vector<4x32xi1>
    %1576 = vector.broadcast %cst_735 : f32 to vector<4x32xf32>
    %1577 = arith.select %1575, %1563, %1576 : vector<4x32xi1>, vector<4x32xf32>
    %c1_736 = arith.constant 1 : index
    %c0_737 = arith.constant 0 : index
    %c0_738 = arith.constant 0 : index
    %1578 = vector.load %arg7[%c1_736, %c0_737, %c0_738] : memref<16x4x32xf32, #tpu.memory_space<vmem>>, vector<1x4x32xf32>
    %1579 = vector.shape_cast %1578 : vector<1x4x32xf32> to vector<4x32xf32>
    %1580 = vector.shape_cast %1577 : vector<4x32xf32> to vector<1x4x32xf32>
    tpu.vector_store %arg7[%c1_736, %c0_737, %c0_738], %1580 {strides = array<i32>} : memref<16x4x32xf32, #tpu.memory_space<vmem>>, vector<1x4x32xf32>,
    %c16_i32_739 = arith.constant 16 : i32
    %1581 = arith.muli %arg0, %c16_i32_739 : i32
    %c15_i32_740 = arith.constant 15 : i32
    %1582 = arith.addi %1581, %c15_i32_740 : i32
    %1583 = vector.broadcast %1582 : i32 to vector<4x1xi32>
    %1584 = arith.cmpi sgt, %3, %1583 : vector<4x1xi32>
    %c15_741 = arith.constant 15 : index
    %c0_742 = arith.constant 0 : index
    %c0_743 = arith.constant 0 : index
    %1585 = vector.load %arg1[%c15_741, %c0_742, %c0_743] : memref<16x4x128xf32, #tpu.memory_space<vmem>>, vector<1x4x128xf32>
    %1586 = vector.shape_cast %1585 : vector<1x4x128xf32> to vector<4x128xf32>
    %c0_744 = arith.constant 0 : index
    %c0_745 = arith.constant 0 : index
    %1587 = vector.load %arg8[%c0_744, %c0_745] : memref<4x32xf32, #tpu.memory_space<vmem>>, vector<4x32xf32>
    %c0_746 = arith.constant 0 : index
    %c0_747 = arith.constant 0 : index
    %1588 = vector.load %arg9[%c0_746, %c0_747] : memref<4x32xf32, #tpu.memory_space<vmem>>, vector<4x32xf32>
    %cst_748 = arith.constant dense<0.000000e+00> : vector<4x128xf32>
    %1589 = tpu.matmul %1587, %4, %cst_748 {dimension_numbers = #tpu.dot_dimension_numbers<[1], [0], [0], [1], [0, 0, 1, 1], [], []>} : vector<4x32xf32>, vector<32x128xf32>, vector<4x128xf32> -> vector<4x128xf32>
    %1590 = arith.addf %1586, %1589 : vector<4x128xf32>
    %1591 = vector.extract_strided_slice %1590 {offsets = [0, 0], sizes = [4, 32], strides = [1, 1]} : vector<4x128xf32> to vector<4x32xf32>
    %1592 = arith.negf %1591 : vector<4x32xf32>
    %1593 = math.exp %1592 : vector<4x32xf32>
    %cst_749 = arith.constant 1.000000e+00 : f32
    %1594 = vector.broadcast %cst_749 : f32 to vector<4x32xf32>
    %1595 = arith.addf %1594, %1593 : vector<4x32xf32>
    %1596 = arith.divf %1594, %1595 : vector<4x32xf32>
    %1597 = vector.extract_strided_slice %1590 {offsets = [0, 32], sizes = [4, 32], strides = [1, 1]} : vector<4x128xf32> to vector<4x32xf32>
    %1598 = arith.negf %1597 : vector<4x32xf32>
    %1599 = math.exp %1598 : vector<4x32xf32>
    %cst_750 = arith.constant 1.000000e+00 : f32
    %1600 = vector.broadcast %cst_750 : f32 to vector<4x32xf32>
    %1601 = arith.addf %1600, %1599 : vector<4x32xf32>
    %1602 = arith.divf %1600, %1601 : vector<4x32xf32>
    %1603 = vector.extract_strided_slice %1590 {offsets = [0, 64], sizes = [4, 32], strides = [1, 1]} : vector<4x128xf32> to vector<4x32xf32>
    %1604 = math.tanh %1603 : vector<4x32xf32>
    %1605 = vector.extract_strided_slice %1590 {offsets = [0, 96], sizes = [4, 32], strides = [1, 1]} : vector<4x128xf32> to vector<4x32xf32>
    %1606 = arith.negf %1605 : vector<4x32xf32>
    %1607 = math.exp %1606 : vector<4x32xf32>
    %cst_751 = arith.constant 1.000000e+00 : f32
    %1608 = vector.broadcast %cst_751 : f32 to vector<4x32xf32>
    %1609 = arith.addf %1608, %1607 : vector<4x32xf32>
    %1610 = arith.divf %1608, %1609 : vector<4x32xf32>
    %1611 = arith.mulf %1602, %1588 : vector<4x32xf32>
    %1612 = arith.mulf %1596, %1604 : vector<4x32xf32>
    %1613 = arith.addf %1611, %1612 : vector<4x32xf32>
    %1614 = math.tanh %1613 : vector<4x32xf32>
    %1615 = arith.mulf %1610, %1614 : vector<4x32xf32>
    %c0_752 = arith.constant 0 : index
    %c0_753 = arith.constant 0 : index
    %1616 = vector.load %arg8[%c0_752, %c0_753] : memref<4x32xf32, #tpu.memory_space<vmem>>, vector<4x32xf32>
    %1617 = vector.shape_cast %1584 : vector<4x1xi1> to vector<4x1xi1>
    %1618 = vector.broadcast %1617 : vector<4x1xi1> to vector<4x32xi1>
    %1619 = arith.select %1618, %1615, %1616 : vector<4x32xi1>, vector<4x32xf32>
    %c0_754 = arith.constant 0 : index
    %c0_755 = arith.constant 0 : index
    %1620 = vector.load %arg8[%c0_754, %c0_755] : memref<4x32xf32, #tpu.memory_space<vmem>>, vector<4x32xf32>
    tpu.vector_store %arg8[%c0_754, %c0_755], %1619 {strides = array<i32>} : memref<4x32xf32, #tpu.memory_space<vmem>>, vector<4x32xf32>,
    %c0_756 = arith.constant 0 : index
    %c0_757 = arith.constant 0 : index
    %1621 = vector.load %arg9[%c0_756, %c0_757] : memref<4x32xf32, #tpu.memory_space<vmem>>, vector<4x32xf32>
    %1622 = vector.shape_cast %1584 : vector<4x1xi1> to vector<4x1xi1>
    %1623 = vector.broadcast %1622 : vector<4x1xi1> to vector<4x32xi1>
    %1624 = arith.select %1623, %1613, %1621 : vector<4x32xi1>, vector<4x32xf32>
    %c0_758 = arith.constant 0 : index
    %c0_759 = arith.constant 0 : index
    %1625 = vector.load %arg9[%c0_758, %c0_759] : memref<4x32xf32, #tpu.memory_space<vmem>>, vector<4x32xf32>
    tpu.vector_store %arg9[%c0_758, %c0_759], %1624 {strides = array<i32>} : memref<4x32xf32, #tpu.memory_space<vmem>>, vector<4x32xf32>,
    %cst_760 = arith.constant 0.000000e+00 : f32
    %1626 = vector.shape_cast %1584 : vector<4x1xi1> to vector<4x1xi1>
    %1627 = vector.broadcast %1626 : vector<4x1xi1> to vector<4x32xi1>
    %1628 = vector.broadcast %cst_760 : f32 to vector<4x32xf32>
    %1629 = arith.select %1627, %1615, %1628 : vector<4x32xi1>, vector<4x32xf32>
    %c15_761 = arith.constant 15 : index
    %c0_762 = arith.constant 0 : index
    %c0_763 = arith.constant 0 : index
    %1630 = vector.load %arg6[%c15_761, %c0_762, %c0_763] : memref<16x4x32xf32, #tpu.memory_space<vmem>>, vector<1x4x32xf32>
    %1631 = vector.shape_cast %1630 : vector<1x4x32xf32> to vector<4x32xf32>
    %1632 = vector.shape_cast %1629 : vector<4x32xf32> to vector<1x4x32xf32>
    tpu.vector_store %arg6[%c15_761, %c0_762, %c0_763], %1632 {strides = array<i32>} : memref<16x4x32xf32, #tpu.memory_space<vmem>>, vector<1x4x32xf32>,
    %c0_i32_764 = arith.constant 0 : i32
    %1633 = arith.subi %c0_i32_764, %arg0 : i32
    %c16_i32_765 = arith.constant 16 : i32
    %1634 = arith.muli %1633, %c16_i32_765 : i32
    %c0_i32_766 = arith.constant 0 : i32
    %1635 = arith.addi %1634, %c0_i32_766 : i32
    %1636 = vector.broadcast %1635 : i32 to vector<4x1xi32>
    %1637 = arith.cmpi sgt, %3, %1636 : vector<4x1xi32>
    %c0_767 = arith.constant 0 : index
    %c0_768 = arith.constant 0 : index
    %c0_769 = arith.constant 0 : index
    %1638 = vector.load %arg2[%c0_767, %c0_768, %c0_769] : memref<16x4x128xf32, #tpu.memory_space<vmem>>, vector<1x4x128xf32>
    %1639 = vector.shape_cast %1638 : vector<1x4x128xf32> to vector<4x128xf32>
    %c0_770 = arith.constant 0 : index
    %c0_771 = arith.constant 0 : index
    %1640 = vector.load %arg10[%c0_770, %c0_771] : memref<4x32xf32, #tpu.memory_space<vmem>>, vector<4x32xf32>
    %c0_772 = arith.constant 0 : index
    %c0_773 = arith.constant 0 : index
    %1641 = vector.load %arg11[%c0_772, %c0_773] : memref<4x32xf32, #tpu.memory_space<vmem>>, vector<4x32xf32>
    %cst_774 = arith.constant dense<0.000000e+00> : vector<4x128xf32>
    %1642 = tpu.matmul %1640, %5, %cst_774 {dimension_numbers = #tpu.dot_dimension_numbers<[1], [0], [0], [1], [0, 0, 1, 1], [], []>} : vector<4x32xf32>, vector<32x128xf32>, vector<4x128xf32> -> vector<4x128xf32>
    %1643 = arith.addf %1639, %1642 : vector<4x128xf32>
    %1644 = vector.extract_strided_slice %1643 {offsets = [0, 0], sizes = [4, 32], strides = [1, 1]} : vector<4x128xf32> to vector<4x32xf32>
    %1645 = arith.negf %1644 : vector<4x32xf32>
    %1646 = math.exp %1645 : vector<4x32xf32>
    %cst_775 = arith.constant 1.000000e+00 : f32
    %1647 = vector.broadcast %cst_775 : f32 to vector<4x32xf32>
    %1648 = arith.addf %1647, %1646 : vector<4x32xf32>
    %1649 = arith.divf %1647, %1648 : vector<4x32xf32>
    %1650 = vector.extract_strided_slice %1643 {offsets = [0, 32], sizes = [4, 32], strides = [1, 1]} : vector<4x128xf32> to vector<4x32xf32>
    %1651 = arith.negf %1650 : vector<4x32xf32>
    %1652 = math.exp %1651 : vector<4x32xf32>
    %cst_776 = arith.constant 1.000000e+00 : f32
    %1653 = vector.broadcast %cst_776 : f32 to vector<4x32xf32>
    %1654 = arith.addf %1653, %1652 : vector<4x32xf32>
    %1655 = arith.divf %1653, %1654 : vector<4x32xf32>
    %1656 = vector.extract_strided_slice %1643 {offsets = [0, 64], sizes = [4, 32], strides = [1, 1]} : vector<4x128xf32> to vector<4x32xf32>
    %1657 = math.tanh %1656 : vector<4x32xf32>
    %1658 = vector.extract_strided_slice %1643 {offsets = [0, 96], sizes = [4, 32], strides = [1, 1]} : vector<4x128xf32> to vector<4x32xf32>
    %1659 = arith.negf %1658 : vector<4x32xf32>
    %1660 = math.exp %1659 : vector<4x32xf32>
    %cst_777 = arith.constant 1.000000e+00 : f32
    %1661 = vector.broadcast %cst_777 : f32 to vector<4x32xf32>
    %1662 = arith.addf %1661, %1660 : vector<4x32xf32>
    %1663 = arith.divf %1661, %1662 : vector<4x32xf32>
    %1664 = arith.mulf %1655, %1641 : vector<4x32xf32>
    %1665 = arith.mulf %1649, %1657 : vector<4x32xf32>
    %1666 = arith.addf %1664, %1665 : vector<4x32xf32>
    %1667 = math.tanh %1666 : vector<4x32xf32>
    %1668 = arith.mulf %1663, %1667 : vector<4x32xf32>
    %c0_778 = arith.constant 0 : index
    %c0_779 = arith.constant 0 : index
    %1669 = vector.load %arg10[%c0_778, %c0_779] : memref<4x32xf32, #tpu.memory_space<vmem>>, vector<4x32xf32>
    %1670 = vector.shape_cast %1637 : vector<4x1xi1> to vector<4x1xi1>
    %1671 = vector.broadcast %1670 : vector<4x1xi1> to vector<4x32xi1>
    %1672 = arith.select %1671, %1668, %1669 : vector<4x32xi1>, vector<4x32xf32>
    %c0_780 = arith.constant 0 : index
    %c0_781 = arith.constant 0 : index
    %1673 = vector.load %arg10[%c0_780, %c0_781] : memref<4x32xf32, #tpu.memory_space<vmem>>, vector<4x32xf32>
    tpu.vector_store %arg10[%c0_780, %c0_781], %1672 {strides = array<i32>} : memref<4x32xf32, #tpu.memory_space<vmem>>, vector<4x32xf32>,
    %c0_782 = arith.constant 0 : index
    %c0_783 = arith.constant 0 : index
    %1674 = vector.load %arg11[%c0_782, %c0_783] : memref<4x32xf32, #tpu.memory_space<vmem>>, vector<4x32xf32>
    %1675 = vector.shape_cast %1637 : vector<4x1xi1> to vector<4x1xi1>
    %1676 = vector.broadcast %1675 : vector<4x1xi1> to vector<4x32xi1>
    %1677 = arith.select %1676, %1666, %1674 : vector<4x32xi1>, vector<4x32xf32>
    %c0_784 = arith.constant 0 : index
    %c0_785 = arith.constant 0 : index
    %1678 = vector.load %arg11[%c0_784, %c0_785] : memref<4x32xf32, #tpu.memory_space<vmem>>, vector<4x32xf32>
    tpu.vector_store %arg11[%c0_784, %c0_785], %1677 {strides = array<i32>} : memref<4x32xf32, #tpu.memory_space<vmem>>, vector<4x32xf32>,
    %cst_786 = arith.constant 0.000000e+00 : f32
    %1679 = vector.shape_cast %1637 : vector<4x1xi1> to vector<4x1xi1>
    %1680 = vector.broadcast %1679 : vector<4x1xi1> to vector<4x32xi1>
    %1681 = vector.broadcast %cst_786 : f32 to vector<4x32xf32>
    %1682 = arith.select %1680, %1668, %1681 : vector<4x32xi1>, vector<4x32xf32>
    %c0_787 = arith.constant 0 : index
    %c0_788 = arith.constant 0 : index
    %c0_789 = arith.constant 0 : index
    %1683 = vector.load %arg7[%c0_787, %c0_788, %c0_789] : memref<16x4x32xf32, #tpu.memory_space<vmem>>, vector<1x4x32xf32>
    %1684 = vector.shape_cast %1683 : vector<1x4x32xf32> to vector<4x32xf32>
    %1685 = vector.shape_cast %1682 : vector<4x32xf32> to vector<1x4x32xf32>
    tpu.vector_store %arg7[%c0_787, %c0_788, %c0_789], %1685 {strides = array<i32>} : memref<16x4x32xf32, #tpu.memory_space<vmem>>, vector<1x4x32xf32>,
    return
  }
  func.func @transform_0(%arg0: i32) -> (i32, i32, i32) {
    %c0_i32 = arith.constant 0 : i32
    %c0_i32_0 = arith.constant 0 : i32
    %c0_i32_1 = arith.constant 0 : i32
    return %arg0, %c0_i32, %c0_i32_0 : i32, i32, i32
  }
  func.func @transform_1(%arg0: i32) -> (i32, i32, i32) {
    %c0_i32 = arith.constant 0 : i32
    %0 = arith.subi %c0_i32, %arg0 : i32
    %c0_i32_0 = arith.constant 0 : i32
    %c0_i32_1 = arith.constant 0 : i32
    %c0_i32_2 = arith.constant 0 : i32
    return %0, %c0_i32_0, %c0_i32_1 : i32, i32, i32
  }
  func.func @transform_2(%arg0: i32) -> (i32, i32) {
    %c0_i32 = arith.constant 0 : i32
    %c0_i32_0 = arith.constant 0 : i32
    %c0_i32_1 = arith.constant 0 : i32
    return %c0_i32, %c0_i32_0 : i32, i32
  }
  func.func @transform_3(%arg0: i32) -> (i32, i32) {
    %c0_i32 = arith.constant 0 : i32
    %c0_i32_0 = arith.constant 0 : i32
    %c0_i32_1 = arith.constant 0 : i32
    return %c0_i32, %c0_i32_0 : i32, i32
  }
  func.func @transform_4(%arg0: i32) -> (i32, i32) {
    %c0_i32 = arith.constant 0 : i32
    %c0_i32_0 = arith.constant 0 : i32
    %c0_i32_1 = arith.constant 0 : i32
    return %c0_i32, %c0_i32_0 : i32, i32
  }
  func.func @transform_5(%arg0: i32) -> (i32, i32, i32) {
    %c0_i32 = arith.constant 0 : i32
    %c0_i32_0 = arith.constant 0 : i32
    %c0_i32_1 = arith.constant 0 : i32
    return %arg0, %c0_i32, %c0_i32_0 : i32, i32, i32
  }
  func.func @transform_6(%arg0: i32) -> (i32, i32, i32) {
    %c0_i32 = arith.constant 0 : i32
    %0 = arith.subi %c0_i32, %arg0 : i32
    %c0_i32_0 = arith.constant 0 : i32
    %c0_i32_1 = arith.constant 0 : i32
    %c0_i32_2 = arith.constant 0 : i32
    return %0, %c0_i32_0, %c0_i32_1 : i32, i32, i32
  }
}

</mosaic_0001>

<bundles_post_ra>
// kernel: qa_forward.5
= control target key start
LH: loop header
LB: loop body
LE: loop exit
PB: predicated region body
PF: predicated region fallthrough
CT: control target
= control target key end

     0   :  { %vm46_vm0 = vcmask 261120   ;;  %s374_s1 = inlined_call_operand.vmem [shape: f32[32,128], index: 1, kind: input, shape index: {}]   ;;  %s375_s0 = inlined_call_operand.vmem [shape: f32[64,32], index: 0, kind: input, shape index: {}]   ;;  %s376_s2 = inlined_call_operand.vmem [shape: f32[1,128], index: 2, kind: input, shape index: {}]   ;;  %s377_s3 = inlined_call_operand.vmem [shape: f32[64,128], index: 3, kind: output, shape index: {}]  }
   0x1   :  { %v42_v0 = vld [vmem:[%s374_s1] sm:$0xff]  ;;  %v43_v1 = vld [vmem:[%s374_s1 + $0x8] sm:$0xff]  ;;  %v44_v2 = vld [vmem:[%s374_s1 + $0x10] sm:$0xff] }
   0x2   :  { %v271_v3 = vpack.c.bf16 %v43_v1, %v42_v0  ;;  %v45_v4 = vld [vmem:[%s374_s1 + $0x18] sm:$0xff]  ;;  %v34_v5 = vld [vmem:[%s375_s0] sm:$0xff]  ;;  %v35_v8 = vld [vmem:[%s375_s0 + $0x8] sm:$0xff] }
   0x3   :  { %v38_v6 = vld [vmem:[%s375_s0 + $0x20] sm:$0xff]  ;;  %v275_v7 = vpack.c.bf16 %v45_v4, %v44_v2  ;;  %259 = vmatprep.mubr.msk.f32.mxu0 %vm46_vm0, %v34_v5  ;;  %v39_v9 = vld [vmem:[%s375_s0 + $0x28] sm:$0xff]  ;;  %v36_v10 = vld [vmem:[%s375_s0 + $0x10] sm:$0xff] }
   0x4   :  { %265 = vmatprep.mubr.msk.f32.mxu1 %vm46_vm0, %v38_v6  ;;  %272 = vmatprep.subr.bf16.mxu0 %v271_v3  ;;  %v40_v11 = vld [vmem:[%s375_s0 + $0x30] sm:$0xff]  ;;  %v37_v12 = vld [vmem:[%s375_s0 + $0x18] sm:$0xff]  ;;  %v238_v14 = vld [vmem:[%s376_s2] ss:$0 sm:$0xff] }
   0x5   :  { %279 = vmatprep.subr.bf16.mxu1 %v271_v3  ;;  %274 = vmatpush3.bf16.msra.mxu0 %v271_v3  ;;  %v41_v13 = vld [vmem:[%s375_s0 + $0x38] sm:$0xff] }
   0x6   :  { %281 = vmatpush3.bf16.msra.mxu1 %v271_v3  ;;  %276 = vmatprep.subr.bf16.mxu0 %v275_v7 }
   0x7   :  { %280 = vmatprep.subr.bf16.mxu1 %v275_v7 }
   0x9   :  { %278 = vmatpush3.bf16.msra.mxu0 %v275_v7 }
   0xa   :  { %282 = vmatpush3.bf16.msra.mxu1 %v275_v7 }
   0xc   :  { %260 = vmatmul.mubr.msk.f32.vlgmr.msra.gmra.mrb[0].mxu0 %vm46_vm0, %v35_v8 }
   0xd   :  { %266 = vmatmul.mubr.msk.f32.vlgmr.msra.gmra.mrb[0].mxu1 %vm46_vm0, %v39_v9  ;;  %262 = vmatprep.mubr.msk.f32.mxu0 %vm46_vm0, %v36_v10 }
   0xe   :  { %268 = vmatprep.mubr.msk.f32.mxu1 %vm46_vm0, %v40_v11 }
  0x10   :  { %263 = vmatmul.mubr.msk.f32.gmra.mrb[2].mxu0 %vm46_vm0, %v37_v12 }
  0x11   :  { %269 = vmatmul.mubr.msk.f32.gmra.mrb[2].mxu1 %vm46_vm0, %v41_v13 }
  0xdf   :  { %v261_v15 = vpop.f32.mrb[0].mxu0 }
  0xe0   :  { %v267_v16 = vpop.f32.mrb[0].mxu1  ;;  %v211_v17 = vadd.f32 %v261_v15, %v238_v14  ;;  %v137_v19 = vpop.f32.mrb[1].mxu0 }
  0xe1   :  { %v215_v18 = vadd.f32 %v267_v16, %v238_v14  ;;  %v157_v20 = vpop.f32.mrb[1].mxu1  ;;  %v210_v21 = vadd.f32 %v238_v14, %v137_v19 }
  0xe2   :  { %v214_v22 = vadd.f32 %v238_v14, %v157_v20  ;;  %219 = vst [vmem:[%s377_s3 + $0x8] sm:$0xff] %v211_v17 }
  0xe3   :  { %223 = vst [vmem:[%s377_s3 + $0x28] sm:$0xff] %v215_v18  ;;  %218 = vst [vmem:[%s377_s3] sm:$0xff] %v210_v21  ;;  %v264_v23 = vpop.f32.mrb[2].mxu0 }
  0xe4   :  { %222 = vst [vmem:[%s377_s3 + $0x20] sm:$0xff] %v214_v22  ;;  %v270_v24 = vpop.f32.mrb[2].mxu1  ;;  %v213_v25 = vadd.f32 %v264_v23, %v238_v14  ;;  %v147_v27 = vpop.f32.mrb[3].mxu0 }
  0xe5   :  { %v217_v26 = vadd.f32 %v270_v24, %v238_v14  ;;  %v167_v28 = vpop.f32.mrb[3].mxu1  ;;  %v212_v29 = vadd.f32 %v238_v14, %v147_v27 }
  0xe6   :  { %v216_v30 = vadd.f32 %v238_v14, %v167_v28  ;;  %221 = vst [vmem:[%s377_s3 + $0x18] sm:$0xff] %v213_v25 }
  0xe7   :  { %225 = vst [vmem:[%s377_s3 + $0x38] sm:$0xff] %v217_v26  ;;  %220 = vst [vmem:[%s377_s3 + $0x10] sm:$0xff] %v212_v29 }
  0xe8   :  { %224 = vst [vmem:[%s377_s3 + $0x30] sm:$0xff] %v216_v30 }

// kernel: qa_forward.7
= control target key start
LH: loop header
LB: loop body
LE: loop exit
PB: predicated region body
PF: predicated region fallthrough
CT: control target
= control target key end

     0   :  { %s2256_s0 = inlined_call_operand.vmem [shape: f32[2,16,64], index: 0, kind: input, shape index: {}]   ;;  %s2257_s1 = inlined_call_operand.vmem [shape: f32[2,8,64], index: 1, kind: input, shape index: {}]   ;;  %s2258_s2 = inlined_call_operand.vmem [shape: s32[2], index: 2, kind: input, shape index: {}]   ;;  %s2259_s3 = inlined_call_operand.vmem [shape: s32[2], index: 3, kind: input, shape index: {}]   ;;  %s2260_s4 = inlined_call_operand.vmem [shape: f32[1,64], index: 4, kind: input, shape index: {}]   ;;  %s2261_s5 = inlined_call_operand.vmem [shape: f32[1,64], index: 5, kind: input, shape index: {}]   ;;  %s2262_s6 = inlined_call_operand.vmem [shape: f32[1,64], index: 6, kind: input, shape index: {}]   ;;  %s2263_s7 = inlined_call_operand.<no memory space> [shape: f32[1,1], index: 7, kind: input, shape index: {}]   ;;  %s2264_s8 = inlined_call_operand.vmem [shape: f32[256,2], index: 8, kind: input, shape index: {}]   ;;  %s2265_s9 = inlined_call_operand.vmem [shape: f32[1,2], index: 9, kind: input, shape index: {}]   ;;  %s2266_s10 = inlined_call_operand.vmem [shape: f32[2,16,2], index: 10, kind: output, shape index: {}]  }
   0x1   :  { %15 = sst [smem:[#allocation2]] %s2263_s7 }
   0x2   :  { %16 = vsyncpa [#allocation4], 0 }
   0x3   :  { %17 = vsyncpa [#allocation6], 0  ;;  %s1997_s15 = smov 0  }
   0x4 LB: > { %s2003_s16 = sadd.s32 4294967295, %s1932_s15   ;;  %p1538_p0 = scmp.ge.s32.totalorder %s1932_s15, 1  ;;  %s1932_s15 = sphi %s1997_s15, %s23_s15  }
   0x5   : > { %p274_p1 = scmp.lt.s32.totalorder %s1932_s15, 3  ;;  %s287_s18 = sshll.u32 %s2258_s2, 4  ;;  %s288_s18 = int_to_ptr.vmem [resolvable:$true] %s287_s18 }
   0x6   : > { %p2267_p3 = scmp.eq.s32.totalorder %s2003_s16, 0  ;;  %s298_s22 = sshll.u32 %s2259_s3, 4  ;;  %s299_s22 = int_to_ptr.vmem [resolvable:$true] %s298_s22 }
   0x7   : > { %p2010_p2 = pnand %p1538_p0, %p274_p1  ;;  %s1888_s24 = scalar_lea.vmem %s288_s18, 16 }
   0x8   : > { %p1889_p6 = scmp.ne.s32.totalorder %s288_s18, %s1888_s24  ;;  %p1896_p10 = scmp.lt.s32.totalorder %s288_s18, %s288_s18 }
   0x9   : > { %s2269_s19 = scalar_select %p2010_p2, 1, 0 }
   0xa   : > { %p1846_p4 = pneg %p2010_p2  ;;  %p1897_p11 = scmp.lt.s32.totalorder %s1888_s24, %s1888_s24 }
   0xc   : > { %p2022_p5 = pnand %p2267_p3, %p1846_p4  ;;  %p1898_p12 = por %p1897_p11, %p1896_p10 }
   0xe   : > { %p1890_p7 = pneg %p2022_p5 }
  0x10   : > { %p1891_p8 = pnand %p1890_p7, %p1889_p6 }
  0x12   : > { %p1892_p9 = pneg %p1891_p8 }
  0x14   : > { %p1899_p13 = pnand %p1898_p12, %p1892_p9 }
  0x16   : > { %1902 = shalt.err (!%p1899_p13)
}
  0x17   : > { %s1934_s25 = smov [#allocation3]   ;;  %s1903_s26 = scalar_lea.vmem %s299_s22, 16 }
  0x18   : > { %1849 = dma.vmem_to_smem (!%p2022_p5), %s288_s18, 16, %s1934_s25, [#allocation4]  }
  0x19   : > { %p1904_p0 = scmp.ne.s32.totalorder %s299_s22, %s1903_s26  ;;  %p1911_p3 = scmp.lt.s32.totalorder %s299_s22, %s299_s22 }
  0x1a   : > { %p1912_p2 = scmp.lt.s32.totalorder %s1903_s26, %s1903_s26 }
  0x1b   : > { %p1906_p1 = pnand %p1904_p0, %p1890_p7 }
  0x1c   : > { %p1913_p6 = por %p1912_p2, %p1911_p3 }
  0x1d   : > { %p1907_p4 = pneg %p1906_p1 }
  0x1f   : > { %p1914_p8 = pnand %p1913_p6, %p1907_p4 }
  0x21   : > { %1917 = shalt.err (!%p1914_p8)
}
  0x22   : > { %s1935_s27 = smov [#allocation5]   ;;  %p2271_p9 = scmp.ne.s32.totalorder %s2269_s19, 0 }
  0x23   : > { %1852 = dma.vmem_to_smem (!%p2022_p5), %s299_s22, 16, %s1935_s27, [#allocation6]  }
  0x24   : > { %344 = sbr.rel (%p2271_p9) target bundleno = 1429 (0x595), region = 60  ;;  %p2272_p10 = scmp.eq.s32.totalorder (!%p2271_p9), %s2003_s16, 0 }
  0x2b   : > { %1923 = dma.done.wait (%p2272_p10), [#allocation4], 16   ;;  %p2273_p11 = pmov %p2272_p10 }
  0x2c   : > { %p2274_p7 = pmov %p2272_p10 }
  0x2d   : > { %1925 = vsyncadd (%p2273_p11), [#allocation4], 4294967280 }
  0x2e   : > { %1927 = dma.done.wait (%p2274_p7), [#allocation6], 16   ;;  %p2275_p2 = pmov %p2274_p7 }
  0x30   : > { %1929 = vsyncadd (%p2275_p2), [#allocation6], 4294967280 }
  0x31   : > { %354 = sfence }
  0x32   : > { %p391_p3 = scmp.lt.s32.totalorder %s2003_s16, 1  ;;  %v422_v0 = vlaneseq  ;;  %v1936_v1 = vmov 0.0   ;;  %vm1937_vm0 = vmmov 0   ;;  %vm429_vm1 = vcmask 523264   ;;  %v1550_v3 = vld [vmem:[%s2262_s6] ss:$0 sm:$0xff] }
  0x33   : > { %1640 = vmatprep.subr.mxu0 %v1936_v1  ;;  %1642 = vmatprep.mubr.msk.f32.mxu0 %vm1937_vm0, %v1936_v1  ;;  %v436_v5 = vld [vmem:[%s2261_s5] sm:$0x1]  ;;  %v1938_v13 = vmov 0.0|0.0   ;;  %vm1759_vm2 = vmpackc.low %vm429_vm1, %vm429_vm1  ;;  %s408_s24 = sld [smem:[#allocation3 + %s2003_s16]]  ;;  %vm801_vm4 = vcmask 130048   ;;  %vm777_vm6 = vcmask 64512  }
  0x34   : > { %s2045_s28 = scalar_select %p391_p3, %s2003_s16, 1  ;;  %v2047_v2 = vshrl.u32 %v422_v0, 7  ;;  %v420_v17 = vld [vmem:[%s2260_s4] sm:$0x1]  ;;  %v770_v28 = vand.u32 127, %v422_v0  ;;  %v1043_v47 = vld [vmem:[%s2264_s8 + $0x8] sm:$0xff] }
  0x35   : > { %s410_s25 = sld [smem:[#allocation2]]  ;;  %vm1416_vm8 = vcmask 15360  }
  0x36   : > { %s1578_s29 = sshll.u32 %s2045_s28, 4  ;;  %s1547_s30 = sshll.u32 %s2045_s28, 3  ;;  %v2055_v4 = vsub.s32 0, %v2047_v2 }
  0x37   : > { %s395_s17 = scalar_lea.vmem %s2256_s0, %s1578_s29  ;;  %s399_s19 = scalar_lea.vmem %s2257_s1, %s1547_s30 }
  0x38   : > { %v2068_v6 = vld [vmem:[%s395_s17] sm:$0xff]  ;;  %v2070_v7 = vld [vmem:[%s395_s17 + $0x8] sm:$0xff]  ;;  %v686_v9 = vrot.slane %v436_v5, %v2055_v4  ;;  %v425_v32 = vrot.slane %v420_v17, %v2055_v4  ;;  %s409_s26 = sld [smem:[#allocation5 + %s2003_s16]]  ;;  %s404_s23 = scalar_lea.vmem %s2266_s10, %s1578_s29 }
  0x39   : > { %v407_v8 = vld [vmem:[%s399_s19] sm:$0xff]  ;;  %v1758_v10 = vpack.c.bf16 %v2070_v7, %v2068_v6  ;;  %v418_v11 = vmul.f32 %v1550_v3, %v2068_v6  ;;  %v419_v12 = vmul.f32 %v1550_v3, %v2070_v7  ;;  %v2096_v30 = vstv %s408_s24 }
  0x3a   : > { %1641 = vmatpush3.xpose.msk.msra.mxu0 %vm429_vm1, %v407_v8  ;;  %1645 = vmatprep.subr.msk.mxu1 %vm429_vm1, %v407_v8  ;;  %v688_v14 = vmul.f32 %v686_v9, %v407_v8  ;;  %vm774_vm3 = vcmp.lt.s32.totalorder %v770_v28, %v2096_v30  ;;  %v428_v35 = vmul.f32 %v425_v32, %v2070_v7 }
  0x3b   : > { %1646 = vmatpush3.xpose.msk.msra.mxu1 %vm429_vm1, %v407_v8  ;;  %1757 = vmatprep.subr.bf16.mxu0 %v1938_v13  ;;  %v1762_v15 = vpack.c.bf16 %v419_v12, %v418_v11  ;;  %v602_v31 = vstv %s410_s25  ;;  %v427_v51 = vmul.f32 %v425_v32, %v2068_v6  ;;  %vm1412_vm9 = vcmp.lt.s32.totalorder %v2047_v2, %v2096_v30 }
  0x3c   : > { %1647 = vmatprep.mubr.msk.f32.mxu1 %vm429_vm1, %v418_v11  ;;  %1761 = vmatprep.subr.bf16.mxu1 %v1938_v13  ;;  %v689_v16 = vsel %vm429_vm1, %v688_v14, 0.0  ;;  %v433_v38 = vsel %vm429_vm1, %v428_v35, 0.0  ;;  %v1059_v14 = vld [vmem:[%s2264_s8 + $0x88] sm:$0xff]  ;;  %v1053_v35 = vld [vmem:[%s2264_s8 + $0x58] sm:$0xff] }
  0x3d   : > { %1643 = vmatmul.mubr.msk.f32.vlgmr.msra.gmra.mrb[0].mxu0 %vm429_vm1, %v436_v5  ;;  %690 = vadd.xlane.f32.xlu0 %v689_v16  ;;  %v430_v54 = vsel %vm429_vm1, %v427_v51, 0.0  ;;  %v1060_v16 = vld [vmem:[%s2264_s8 + $0x90] sm:$0xff] }
  0x3e   : > { %1760 = vmatpush3.bf16.xpose.msk.msra.mxu0 %vm1759_vm2, %v1758_v10  ;;  %1648 = vmatmul.mubr.msk.f32.vlgmr.msra.gmra.mrb[0].mxu1 %vm429_vm1, %v419_v12  ;;  %v771_v45 = vstv %s409_s26 }
  0x3f   : > { %1764 = vmatpush3.bf16.xpose.msk.msra.mxu1 %vm1759_vm2, %v1762_v15  ;;  %1654 = vmatprep.mubr.msk.f32.mxu0 %vm1937_vm0, %v1936_v1  ;;  %vm2105_vm5 = vcmp.lt.s32.totalorder %v770_v28, %v771_v45  ;;  %v1051_v28 = vld [vmem:[%s2264_s8 + $0x48] sm:$0xff] }
  0x40   : > { %1661 = vmatprep.mubr.msk.f32.mxu1 %vm1937_vm0, %v1936_v1  ;;  %1765 = vmatprep.subr.bf16.mxu1 %v1938_v13  ;;  %v1058_v13 = vld [vmem:[%s2264_s8 + $0x80] sm:$0xff] }
  0x41   : > { %1664 = vmatprep.subr.mxu0 %v407_v8  ;;  %v1800_v15 = vpack.c.bf16 %v1059_v14, %v1058_v13  ;;  %v1073_v13 = vld [vmem:[%s2264_s8 + $0xf8] sm:$0xff] }
  0x45   : > { %1655 = vmatmul.mubr.msk.f32.vlgmr.msra.gmra.mrb[2].mxu0 %vm429_vm1, %v420_v17  ;;  %v1061_v17 = vld [vmem:[%s2264_s8 + $0x98] sm:$0xff] }
  0x46   : > { %1662 = vmatmul.mubr.msk.f32.vlgmr.msra.gmra.mrb[2].mxu1 %vm429_vm1, %v407_v8  ;;  %1665 = vmatpush3.msra.mxu0 %v407_v8 }
  0x47   : > { %1767 = vmatpush3.bf16.msra.mxu1 %v1758_v10  ;;  %1673 = vmatprep.mubr.msk.f32.mxu1 %vm1937_vm0, %v1936_v1 }
  0x48   : > { %1801 = vmatprep.subr.bf16.mxu1 %v1800_v15 }
  0xca   : > { %v691_v23 = vpop.xlane.xlu0 %690 }
 0x110   : > { %v509_v18 = vpop.f32.mrb[0].mxu0 }
 0x111   : > { %v1644_v19 = vpop.f32.mrb[1].mxu0  ;;  %v1649_v20 = vpop.f32.mrb[0].mxu1  ;;  %v597_v41 = vrot.slane %v509_v18, %v2055_v4  ;;  %v1804_v18 = vpack.c.bf16 %v1061_v17, %v1060_v16  ;;  %v1411_v17 = vadd.s32 8, %v2047_v2 }
 0x112   : > { %v585_v21 = vpop.f32.mrb[1].mxu1  ;;  %v1062_v19 = vld [vmem:[%s2264_s8 + $0xa0] sm:$0xff] }
 0x113   : > { %vm1413_vm7 = vcmp.lt.s32.totalorder %v1411_v17, %v2096_v30 }
 0x118   : > { %v679_v22 = vpop.f32.mrb[2].mxu0 }
 0x119   : > { %v765_v24 = vrot.slane %v679_v22, %v2055_v4  ;;  %v1656_v25 = vpop.f32.mrb[3].mxu0  ;;  %v758_v26 = vpop.f32.mrb[2].mxu1 }
 0x11a   : > { %v1663_v27 = vpop.f32.mrb[3].mxu1 }
 0x11b   : > { %v766_v29 = vadd.f32 %v765_v24, %v691_v23  ;;  %v1050_v27 = vld [vmem:[%s2264_s8 + $0x40] sm:$0xff] }
 0x11d   : > { %v767_v33 = vadd.f32 %v766_v29, %v758_v26 }
 0x11f   : > { %v768_v34 = vadd.f32 %v767_v33, %v602_v31  ;;  %v1768_v33 = vpack.c.bf16 %v1051_v28, %v1050_v27 }
 0x121   : > { %v800_v36 = vsel %vm774_vm3, %v768_v34, -1e+30  ;;  %v1052_v34 = vld [vmem:[%s2264_s8 + $0x50] sm:$0xff] }
 0x122   : > { %v802_v37 = vsel %vm801_vm4, %v800_v36, -inf }
 0x123   : > { %803 = vmax.xlane.f32.xlu0 %v802_v37  ;;  %v1054_v37 = vld [vmem:[%s2264_s8 + $0x60] sm:$0xff] }
 0x127   : > { %434 = vadd.xlane.f32.xlu0 %v433_v38  ;;  %v1055_v38 = vld [vmem:[%s2264_s8 + $0x68] sm:$0xff] }
 0x1b0   : > { %v804_v39 = vpop.xlane.xlu0 %803 }
 0x1b1   : > { %v805_v40 = vsub.f32 %v800_v36, %v804_v39  ;;  %v1772_v36 = vpack.c.bf16 %v1053_v35, %v1052_v34  ;;  %v1776_v39 = vpack.c.bf16 %v1055_v38, %v1054_v37 }
 0x1b3   : > { %v806_v42 = vmul.f32 1.442695, %v805_v40  ;;  %v1056_v40 = vld [vmem:[%s2264_s8 + $0x70] sm:$0xff] }
 0x1b4   : > { %v435_v43 = vpop.xlane.xlu0 %434 }
 0x1b5   : > { %1870 = vpow2.f32 %v806_v42  ;;  %v599_v44 = vadd.f32 %v597_v41, %v435_v43  ;;  %v1064_v43 = vld [vmem:[%s2264_s8 + $0xb0] sm:$0xff] }
 0x1b7   : > { %v601_v46 = vadd.f32 %v1649_v20, %v599_v44  ;;  %v1063_v20 = vld [vmem:[%s2264_s8 + $0xa8] sm:$0xff]  ;;  %v1065_v44 = vld [vmem:[%s2264_s8 + $0xb8] sm:$0xff] }
 0x1b8   : > { %v1812_v45 = vpack.c.bf16 %v1065_v44, %v1064_v43 }
 0x1b9   : > { %v604_v48 = vadd.f32 %v602_v31, %v601_v46  ;;  %v1042_v46 = vld [vmem:[%s2264_s8] sm:$0xff] }
 0x1bb   : > { %v776_v49 = vsel %vm2105_vm5, %v604_v48, -1e+30  ;;  %v1784_v48 = vpack.c.bf16 %v1043_v47, %v1042_v46 }
 0x1bc   : > { %v781_v50 = vsel %vm777_vm6, %v776_v49, -inf }
 0x1bd   : > { %782 = vmax.xlane.f32.xlu0 %v781_v50  ;;  %v1067_v50 = vld [vmem:[%s2264_s8 + $0xc8] sm:$0xff] }
 0x1bf   : > { %v1871_v52 = vpop.eup %1870 }
 0x1c0   : > { %v808_v53 = vsel %vm801_vm4, %v1871_v52, 0.0 }
 0x1c1   : > { %809 = vadd.xlane.f32.xlu1 %v808_v53  ;;  %v1045_v53 = vld [vmem:[%s2264_s8 + $0x18] sm:$0xff] }
 0x1c5   : > { %431 = vadd.xlane.f32.xlu1 %v430_v54 }
 0x24a   : > { %v783_v55 = vpop.xlane.xlu0 %782 }
 0x24b   : > { %v785_v56 = vsub.f32 %v776_v49, %v783_v55  ;;  %v1066_v49 = vld [vmem:[%s2264_s8 + $0xc0] sm:$0xff]  ;;  %v1068_v55 = vld [vmem:[%s2264_s8 + $0xd0] sm:$0xff] }
 0x24c   : > { %v1816_v51 = vpack.c.bf16 %v1067_v50, %v1066_v49 }
 0x24d   : > { %v788_v57 = vmul.f32 1.442695, %v785_v56  ;;  %v1069_v56 = vld [vmem:[%s2264_s8 + $0xd8] sm:$0xff] }
 0x24e   : > { %v810_v58 = vpop.xlane.xlu1 %809 }
 0x24f   : > { %1872 = vpow2.f32 %v788_v57 }
 0x250   : > { %1874 = vrcp.f32 %v810_v58 }
 0x252   : > { %v432_v59 = vpop.xlane.xlu1 %431 }
 0x253   : > { %v598_v60 = vadd.f32 %v597_v41, %v432_v59  ;;  %v1057_v41 = vld [vmem:[%s2264_s8 + $0x78] sm:$0xff] }
 0x254   : > { %v1780_v42 = vpack.c.bf16 %v1057_v41, %v1056_v40 }
 0x255   : > { %v600_v61 = vadd.f32 %v598_v60, %v585_v21  ;;  %v1808_v21 = vpack.c.bf16 %v1063_v20, %v1062_v19  ;;  %v1046_v60 = vld [vmem:[%s2264_s8 + $0x20] sm:$0xff] }
 0x256   : > { %v1575_v20 = vld [vmem:[%s2265_s9] ss:$0 sm:$0xff] }
 0x257   : > { %v603_v62 = vadd.f32 %v602_v31, %v600_v61  ;;  %v1047_v61 = vld [vmem:[%s2264_s8 + $0x28] sm:$0xff] }
 0x259   : > { %v1873_v63 = vpop.eup %1872  ;;  %v775_v0 = vsel %vm2105_vm5, %v603_v62, -1e+30 }
 0x25a   : > { %v1875_v1 = vpop.eup %1874  ;;  %v778_v3 = vsel %vm777_vm6, %v775_v0, -inf  ;;  %v793_v4 = vsel %vm777_vm6, %v1873_v63, 0.0 }
 0x25b   : > { %v812_v5 = vmul.f32 %v1875_v1, %v1871_v52  ;;  %779 = vmax.xlane.f32.xlu1 %v778_v3  ;;  %794 = vadd.xlane.f32.xlu0 %v793_v4  ;;  %v1044_v52 = vld [vmem:[%s2264_s8 + $0x10] sm:$0xff]  ;;  %v1070_v1 = vld [vmem:[%s2264_s8 + $0xe0] sm:$0xff]  ;;  %v1071_v3 = vld [vmem:[%s2264_s8 + $0xe8] sm:$0xff] }
 0x25c   : > { %v1788_v58 = vpack.c.bf16 %v1045_v53, %v1044_v52 }
 0x25d   : > { %1674 = vmatmul.mubr.msk.f32.vlgmr.msra.gmra.mrb[4].mxu1 %vm801_vm4, %v812_v5  ;;  %v1792_v5 = vpack.c.bf16 %v1047_v61, %v1046_v60 }
 0x25e   : > { %1803 = vmatpush3.bf16.msra.mxu1 %v1800_v15 }
 0x25f   : > { %1805 = vmatprep.subr.bf16.mxu1 %v1804_v18 }
 0x262   : > { %1807 = vmatpush3.bf16.msra.mxu1 %v1804_v18 }
 0x263   : > { %1809 = vmatprep.subr.bf16.mxu1 %v1808_v21 }
 0x266   : > { %1811 = vmatpush3.bf16.msra.mxu1 %v1808_v21 }
 0x267   : > { %1813 = vmatprep.subr.bf16.mxu1 %v1812_v45 }
 0x26a   : > { %1815 = vmatpush3.bf16.msra.mxu1 %v1812_v45 }
 0x26b   : > { %1817 = vmatprep.subr.bf16.mxu1 %v1816_v51 }
 0x2e8   : > { %v780_v8 = vpop.xlane.xlu1 %779  ;;  %v795_v24 = vpop.xlane.xlu0 %794 }
 0x2e9   : > { %v784_v9 = vsub.f32 %v775_v0, %v780_v8 }
 0x2eb   : > { %v786_v10 = vmul.f32 1.442695, %v784_v9  ;;  %v1048_v9 = vld [vmem:[%s2264_s8 + $0x30] sm:$0xff] }
 0x2ed   : > { %1876 = vpow2.f32 %v786_v10  ;;  %v1049_v10 = vld [vmem:[%s2264_s8 + $0x38] sm:$0xff] }
 0x2ee   : > { %1878 = vrcp.f32 %v795_v24  ;;  %v1796_v14 = vpack.c.bf16 %v1049_v10, %v1048_v9 }
 0x2f7   : > { %v1877_v11 = vpop.eup %1876 }
 0x2f8   : > { %v790_v12 = vsel %vm777_vm6, %v1877_v11, 0.0  ;;  %v1879_v26 = vpop.eup %1878 }
 0x2f9   : > { %791 = vadd.xlane.f32.xlu1 %v790_v12  ;;  %v799_v32 = vmul.f32 %v1879_v26, %v1873_v63  ;;  %v1820_v63 = vpack.c.bf16 %v1069_v56, %v1068_v55  ;;  %v1072_v12 = vld [vmem:[%s2264_s8 + $0xf0] sm:$0xff] }
 0x2fa   : > { %v1828_v15 = vpack.c.bf16 %v1073_v13, %v1072_v12 }
 0x330   : > { %v963_v22 = vpop.f32.mrb[4].mxu1 }
 0x331   : > { %v1675_v23 = vpop.f32.mrb[5].mxu1  ;;  %1676 = vmatprep.subr.mxu0 %v963_v22 }
 0x386   : > { %v792_v25 = vpop.xlane.xlu1 %791 }
 0x387   : > { %1880 = vrcp.f32 %v792_v25 }
 0x391   : > { %v1881_v29 = vpop.eup %1880 }
 0x392   : > { %v797_v31 = vmul.f32 %v1881_v29, %v1877_v11  ;;  %v1824_v11 = vpack.c.bf16 %v1071_v3, %v1070_v1 }
 0x394   : > { %1666 = vmatprep.mubr.msk.f32.mxu0 %vm777_vm6, %v797_v31 }
 0x395   : > { %1667 = vmatmul.mubr.msk.f32.vlgmr.msra.gmra.mrb[4].mxu0 %vm777_vm6, %v799_v32 }
 0x396   : > { %1677 = vmatpush3.msra.mxu0 %v963_v22  ;;  %1678 = vmatprep.mubr.msk.f32.mxu0 %vm777_vm6, %v797_v31 }
 0x397   : > { %1769 = vmatprep.subr.bf16.mxu0 %v1768_v33 }
 0x399   : > { %1679 = vmatmul.mubr.msk.f32.vlgmr.msra.gmra.mrb[6].mxu0 %vm777_vm6, %v799_v32 }
 0x39a   : > { %1771 = vmatpush3.bf16.msra.mxu0 %v1768_v33 }
 0x39b   : > { %1773 = vmatprep.subr.bf16.mxu0 %v1772_v36 }
 0x39e   : > { %1775 = vmatpush3.bf16.msra.mxu0 %v1772_v36 }
 0x39f   : > { %1777 = vmatprep.subr.bf16.mxu0 %v1776_v39 }
 0x3a2   : > { %1779 = vmatpush3.bf16.msra.mxu0 %v1776_v39 }
 0x3a3   : > { %1781 = vmatprep.subr.bf16.mxu0 %v1780_v42 }
 0x3a6   : > { %1783 = vmatpush3.bf16.msra.mxu0 %v1780_v42 }
 0x3a7   : > { %1785 = vmatprep.subr.bf16.mxu0 %v1784_v48 }
 0x468   : > { %v1668_v54 = vpop.f32.mrb[4].mxu0 }
 0x469   : > { %v885_v57 = vpop.f32.mrb[5].mxu0  ;;  %v1231_v62 = vmul.f32 %v1668_v54, %v2070_v7 }
 0x46a   : > { %v1230_v59 = vmul.f32 %v885_v57, %v2068_v6  ;;  %1697 = vmatprep.mubr.msk.f32.mxu0 %vm429_vm1, %v885_v57 }
 0x46b   : > { %1698 = vmatmul.mubr.msk.f32.vlgmr.msra.gmra.mrb[8].mxu0 %vm429_vm1, %v1668_v54 }
 0x46c   : > { %1787 = vmatpush3.bf16.msra.mxu0 %v1784_v48  ;;  %v1680_v0 = vpop.f32.mrb[6].mxu0  ;;  %1735 = vmatprep.mubr.msk.f32.mxu1 %vm429_vm1, %v1230_v59 }
 0x46d   : > { %v1033_v4 = vpop.f32.mrb[7].mxu0  ;;  %1736 = vmatmul.mubr.msk.f32.vlgmr.msra.gmra.mrb[6].mxu1 %vm429_vm1, %v1231_v62  ;;  %1789 = vmatprep.subr.bf16.mxu0 %v1788_v58 }
 0x46e   : > { %v1315_v8 = vmul.f32 %v1033_v4, %v2068_v6  ;;  %1819 = vmatpush3.bf16.msra.mxu1 %v1816_v51  ;;  %1716 = vmatprep.mubr.msk.f32.mxu0 %vm429_vm1, %v2068_v6  ;;  %v1316_v6 = vmul.f32 %v1680_v0, %v2070_v7 }
 0x46f   : > { %1821 = vmatprep.subr.bf16.mxu1 %v1820_v63 }
 0x470   : > { %1791 = vmatpush3.bf16.msra.mxu0 %v1788_v58  ;;  %1754 = vmatprep.mubr.msk.f32.mxu1 %vm429_vm1, %v1315_v8 }
 0x471   : > { %1793 = vmatprep.subr.bf16.mxu0 %v1792_v5 }
 0x472   : > { %1823 = vmatpush3.bf16.msra.mxu1 %v1820_v63 }
 0x473   : > { %1825 = vmatprep.subr.bf16.mxu1 %v1824_v11 }
 0x474   : > { %1795 = vmatpush3.bf16.msra.mxu0 %v1792_v5 }
 0x475   : > { %1797 = vmatprep.subr.bf16.mxu0 %v1796_v14 }
 0x476   : > { %1827 = vmatpush3.bf16.msra.mxu1 %v1824_v11 }
 0x477   : > { %1829 = vmatprep.subr.bf16.mxu1 %v1828_v15 }
 0x478   : > { %1799 = vmatpush3.bf16.msra.mxu0 %v1796_v14 }
 0x47a   : > { %1831 = vmatpush3.bf16.msra.mxu1 %v1828_v15 }
 0x47b   : > { %1717 = vmatmul.mubr.msk.f32.vlgmr.msra.gmra.mrb[8].mxu0 %vm429_vm1, %v2070_v7 }
 0x47d   : > { %1755 = vmatmul.mubr.msk.f32.vlgmr.msra.gmra.mrb[6].mxu1 %vm429_vm1, %v1316_v6 }
 0x54e   : > { %v1718_v16 = vpop.f32.mrb[8].mxu0 }
 0x54f   : > { %v1221_v18 = vpop.f32.mrb[9].mxu0 }
 0x550   : > { %v1756_v19 = vpop.f32.mrb[6].mxu1 }
 0x551   : > { %v1832_v21 = vadd.f32 %v1756_v19, %v1718_v16  ;;  %v1389_v22 = vpop.f32.mrb[7].mxu1 }
 0x552   : > { %v1833_v23 = vadd.f32 %v1389_v22, %v1221_v18 }
 0x553   : > { %v1408_v24 = vadd.f32 %v1832_v21, %v1575_v20 }
 0x554   : > { %v1407_v7 = vadd.f32 %v1833_v23, %v1575_v20 }
 0x555   : > { %v1415_v25 = vsel %vm1413_vm7, %v1408_v24, -1e+30 }
 0x556   : > { %v1418_v26 = vsel %vm1416_vm8, %v1415_v25, -inf  ;;  %v1414_v27 = vsel %vm1412_vm9, %v1407_v7, -1e+30 }
 0x557   : > { %v1417_v28 = vsel %vm1416_vm8, %v1414_v27, -inf }
 0x558   : > { %v1419_v29 = vmax.f32 %v1417_v28, %v1418_v26 }
 0x55a   : > { %v1420_v31 = vrot.slane %v1419_v29, 4 }
 0x55c   : > { %v1421_v32 = vmax.f32 %v1419_v29, %v1420_v31 }
 0x55e   : > { %v1422_v33 = vrot.slane %v1421_v32, 2 }
 0x560   : > { %v1423_v34 = vmax.f32 %v1421_v32, %v1422_v33 }
 0x562   : > { %v1424_v35 = vrot.slane %v1423_v34, 1 }
 0x564   : > { %v1425_v36 = vmax.f32 %v1423_v34, %v1424_v35 }
 0x566   : > { %v1426_v37 = vsub.f32 %v1414_v27, %v1425_v36  ;;  %v1427_v38 = vsub.f32 %v1415_v25, %v1425_v36 }
 0x568   : > { %v1428_v39 = vmul.f32 1.442695, %v1426_v37  ;;  %v1430_v40 = vmul.f32 1.442695, %v1427_v38 }
 0x56a   : > { %1882 = vpow2.f32 %v1428_v39 }
 0x56b   : > { %1884 = vpow2.f32 %v1430_v40 }
 0x574   : > { %v1883_v2 = vpop.eup %1882 }
 0x575   : > { %v1885_v30 = vpop.eup %1884  ;;  %v1432_v41 = vsel %vm1416_vm8, %v1883_v2, 0.0 }
 0x576   : > { %v1433_v42 = vsel %vm1416_vm8, %v1885_v30, 0.0 }
 0x577   : > { %v1434_v43 = vadd.f32 %v1433_v42, %v1432_v41 }
 0x579   : > { %v1435_v44 = vrot.slane %v1434_v43, 4 }
 0x57b   : > { %v1436_v45 = vadd.f32 %v1435_v44, %v1434_v43 }
 0x57d   : > { %v1437_v46 = vrot.slane %v1436_v45, 2 }
 0x57f   : > { %v1438_v47 = vadd.f32 %v1437_v46, %v1436_v45 }
 0x581   : > { %v1439_v48 = vrot.slane %v1438_v47, 1 }
 0x583   : > { %v1440_v49 = vadd.f32 %v1439_v48, %v1438_v47 }
 0x585   : > { %1886 = vlog2.f32 %v1440_v49 }
 0x58f   : > { %v1887_v50 = vpop.eup %1886 }
 0x590   : > { %v1442_v51 = vmul.f32 0.6931472, %v1887_v50 }
 0x592   : > { %v1443_v52 = vsub.f32 %v1426_v37, %v1442_v51  ;;  %v1444_v53 = vsub.f32 %v1427_v38, %v1442_v51 }
 0x594   : > { %1445 = vst.msk [vmem:[%s404_s23] sm:$0xff] %vm1416_vm8, %v1443_v52  ;;  %1446 = vst.msk [vmem:[%s404_s23 + $0x8] sm:$0xff] %vm1416_vm8, %v1444_v53 }
 0x595 PF: > { %s23_s15 = sadd.s32 1, %s1932_s15  }
 0x596   : > { %p20_p5 = scmp.ge.s32.totalorder %s23_s15, 4  }
 0x598   :  { %22 = sbr.rel (!%p20_p5) target bundleno = 4 (0x4), region = 102 }
 0x59f   :  { %1468 = vsyncpa [#allocation4], 1 }
 0x5a0   :  { %1470 = vsyncpa [#allocation4 + $0x1], 1 }
 0x5a1   :  { %1471 = vsyncpa [#allocation6], 1 }

// kernel: qa_forward.6
= control target key start
LH: loop header
LB: loop body
LE: loop exit
PB: predicated region body
PF: predicated region fallthrough
CT: control target
= control target key end

     0   :  { %vm62_vm0 = vcmask 257024   ;;  %v7265_v0 = vmov 0.0|0.0   ;;  %v7263_v4 = vmov 0.0   ;;  %vm5719_vm1 = vmmov 0   ;;  %s5722_s16 = smov 64   ;;  %s5723_s19 = smov 96   ;;  %s7255_s2 = inlined_call_operand.vmem [shape: f32[32,128], index: 2, kind: input, shape index: {}]   ;;  %s7256_s3 = inlined_call_operand.vmem [shape: f32[32,128], index: 3, kind: input, shape index: {}]   ;;  %s7257_s0 = inlined_call_operand.vmem [shape: f32[16,4,128], index: 0, kind: input, shape index: {}]   ;;  %s7258_s1 = inlined_call_operand.vmem [shape: f32[16,4,128], index: 1, kind: input, shape index: {}]   ;;  %s7259_s4 = inlined_call_operand.vmem [shape: s32[4,1], index: 4, kind: input, shape index: {}]   ;;  %s7260_s5 = inlined_call_operand.vmem [shape: f32[16,4,32], index: 5, kind: output, shape index: {0}]   ;;  %s7261_s6 = inlined_call_operand.vmem [shape: f32[16,4,32], index: 6, kind: output, shape index: {1}]  }
   0x1   :  { %5259 = vmatprep.subr.bf16.mxu0 %v7265_v0  ;;  %v68_v1 = vld [vmem:[%s7255_s2] sm:$0xff]  ;;  %v69_v2 = vld [vmem:[%s7255_s2 + $0x8] sm:$0xff]  ;;  %5265 = vmatprep.subr.bf16.mxu1 %v7265_v0  ;;  %63 = vst.msk [vmem:[#allocation2] sm:$0xf] %vm62_vm0, %v7263_v4  ;;  %64 = vst.msk [vmem:[#allocation3] sm:$0xf] %vm62_vm0, %v7263_v4 }
   0x2   :  { %v72_v3 = vld [vmem:[%s7256_s3] sm:$0xff]  ;;  %65 = vst.msk [vmem:[#allocation4] sm:$0xf] %vm62_vm0, %v7263_v4  ;;  %66 = vst.msk [vmem:[#allocation5] sm:$0xf] %vm62_vm0, %v7263_v4  ;;  %v5778_v5 = vpack.c.bf16 %v69_v2, %v68_v1  ;;  %v73_v6 = vld [vmem:[%s7256_s3 + $0x8] sm:$0xff]  ;;  %4915 = vmatprep.mubr.msk.f32.mxu0 %vm5719_vm1, %v7263_v4  ;;  %4926 = vmatprep.mubr.msk.f32.mxu1 %vm5719_vm1, %v7263_v4 }
   0x3   :  { %v70_v7 = vld [vmem:[%s7255_s2 + $0x10] sm:$0xff]  ;;  %v71_v8 = vld [vmem:[%s7255_s2 + $0x18] sm:$0xff]  ;;  %v5793_v9 = vpack.c.bf16 %v73_v6, %v72_v3  ;;  %vm82_vm2 = vcmask 261120   ;;  %s5720_s2 = smov 32   ;;  %v79_v18 = vld [vmem:[%s7257_s0] sm:$0xf] }
   0x4   :  { %v74_v10 = vld [vmem:[%s7256_s3 + $0x10] sm:$0xff]  ;;  %v75_v11 = vld [vmem:[%s7256_s3 + $0x18] sm:$0xff]  ;;  %5261 = vmatpush3.bf16.msra.mxu0 %v5778_v5  ;;  %v5802_v12 = vpack.c.bf16 %v71_v8, %v70_v7  ;;  %v5721_v26 = vmov 0   ;;  %v5848_v37 = vld [vmem:[%s7259_s4] sm:$0xf] }
   0x5   :  { %5262 = vmatprep.subr.bf16.mxu0 %v7265_v0  ;;  %5267 = vmatpush3.bf16.msra.mxu1 %v5793_v9  ;;  %v5806_v13 = vpack.c.bf16 %v75_v11, %v74_v10  ;;  %v4625_v19 = vld [vmem:[%s7258_s1 + $0x3c] sm:$0xf]  ;;  %vm78_vm3 = vcmp.gt.s32.totalorder %v5848_v37, 0  ;;  %vm221_vm4 = vcmp.gt.s32.totalorder %v5848_v37, 15  ;;  %vm362_vm7 = vcmp.gt.s32.totalorder %v5848_v37, 1 }
   0x6   :  { %5268 = vmatprep.subr.bf16.mxu1 %v7265_v0  ;;  %5459 = vset.pattern.permute.xlu1 %v5721_v26  ;;  %v5853_v41 = vsel %vm78_vm3, 1, %v5721_v26  ;;  %v5859_v43 = vsel %vm221_vm4, 1, %v5721_v26  ;;  %vm503_vm8 = vcmp.gt.s32.totalorder %v5848_v37, 14  ;;  %vm644_vm11 = vcmp.gt.s32.totalorder %v5848_v37, 2 }
   0x7   :  { %5458 = vset.pattern.permute.xlu0 %v5721_v26  ;;  %vm785_vm12 = vcmp.gt.s32.totalorder %v5848_v37, 13  ;;  %vm926_vm15 = vcmp.gt.s32.totalorder %v5848_v37, 3  ;;  %vm1067_vm3 = vcmp.gt.s32.totalorder %v5848_v37, 12 }
   0x8   :  { %5264 = vmatpush3.bf16.msra.mxu0 %v5802_v12  ;;  %v5810_v14 = vld [vmem:[#allocation2] sm:$0xf]  ;;  %v81_v15 = vld [vmem:[#allocation3] sm:$0xf] }
   0x9   :  { %5270 = vmatpush3.bf16.msra.mxu1 %v5806_v13  ;;  %v5813_v16 = vld [vmem:[#allocation4] sm:$0xf]  ;;  %165 = vrot.lane.b32.xlu1 %v81_v15, %s5720_s2  ;;  %v225_v17 = vld [vmem:[#allocation5] sm:$0xf]  ;;  %v200_v62 = vld [vmem:[#allocation3] sm:$0xf] }
   0xa   :  { %5271 = vmatprep.subr.bf16.mxu0 %v7265_v0  ;;  %5277 = vmatprep.subr.bf16.mxu1 %v7265_v0  ;;  %v342_v2 = vld [vmem:[#allocation5] sm:$0xf] }
   0xb   :  { %4916 = vmatmul.mubr.msk.f32.vlgmr.msra.gmra.mrb[0].mxu0 %vm82_vm2, %v5810_v14 }
   0xc   :  { %4927 = vmatmul.mubr.msk.f32.vlgmr.msra.gmra.mrb[0].mxu1 %vm82_vm2, %v5813_v16  ;;  %5273 = vmatpush3.bf16.msra.mxu0 %v5778_v5 }
   0xd   :  { %308 = vrot.lane.b32.xlu1 %v225_v17, %s5720_s2  ;;  %5274 = vmatprep.subr.bf16.mxu0 %v7265_v0 }
   0xe   :  { %5279 = vmatpush3.bf16.msra.mxu1 %v5793_v9  ;;  %4937 = vmatprep.mubr.msk.f32.mxu0 %vm5719_vm1, %v7263_v4 }
   0xf   :  { %5280 = vmatprep.subr.bf16.mxu1 %v7265_v0  ;;  %4948 = vmatprep.mubr.msk.f32.mxu1 %vm5719_vm1, %v7263_v4 }
  0x10   :  { %5276 = vmatpush3.bf16.msra.mxu0 %v5802_v12 }
  0x11   :  { %5283 = vmatprep.subr.bf16.mxu0 %v7265_v0 }
  0x12   :  { %5282 = vmatpush3.bf16.msra.mxu1 %v5806_v13 }
  0x13   :  { %5289 = vmatprep.subr.bf16.mxu1 %v7265_v0 }
  0x7b   :  { %v166_v44 = vpop.permute.xlu1 %165 }
  0x7f   :  { %v309_v46 = vpop.permute.xlu1 %308 }
  0xde   :  { %v152_v20 = vpop.f32.mrb[0].mxu0 }
  0xdf   :  { %v156_v21 = vadd.f32 %v152_v20, %v79_v18  ;;  %v4917_v22 = vpop.f32.mrb[1].mxu0  ;;  %v295_v23 = vpop.f32.mrb[0].mxu1  ;;  %v4629_v18 = vld [vmem:[%s7257_s0 + $0x4] sm:$0xf] }
  0xe0   :  { %v299_v24 = vadd.f32 %v4625_v19, %v295_v23  ;;  %v4928_v25 = vpop.f32.mrb[1].mxu1  ;;  %v4633_v22 = vld [vmem:[%s7258_s1 + $0x38] sm:$0xf] }
  0xe1   :  { %5460 = vtanh.f32 %v156_v21  ;;  %v4624_v29 = vmul.f32 -1.442695, %v156_v21 }
  0xe2   :  { %5462 = vtanh.f32 %v299_v24  ;;  %v4627_v30 = vmul.f32 -1.442695, %v299_v24 }
  0xe3   :  { %5464 = vpow2.f32 %v4624_v29 }
  0xe4   :  { %5466 = vpow2.f32 %v4627_v30 }
  0xeb   :  { %v5461_v27 = vpop.eup %5460 }
  0xec   :  { %170 = vrot.lane.b32.xlu0 %v5461_v27, %s5722_s16  ;;  %v5463_v28 = vpop.eup %5462 }
  0xed   :  { %v5465_v31 = vpop.eup %5464 }
  0xee   :  { %v160_v32 = vadd.f32 1.0, %v5465_v31  ;;  %v5467_v33 = vpop.eup %5466 }
  0xef   :  { %v303_v34 = vadd.f32 1.0, %v5467_v33 }
  0xf0   :  { %313 = vrot.lane.b32.xlu0 %v5463_v28, %s5722_s16  ;;  %5468 = vrcp.f32 %v160_v32 }
  0xf1   :  { %5470 = vrcp.f32 %v303_v34 }
  0xfa   :  { %v5469_v35 = vpop.eup %5468 }
  0xfb   :  { %v5471_v39 = vpop.eup %5470  ;;  %v168_v45 = vmul.f32 %v5469_v35, %v166_v44 }
  0xfc   :  { %v311_v49 = vmul.f32 %v5471_v39, %v309_v46 }
 0x15e   :  { %v171_v36 = vpop.permute.xlu0 %170 }
 0x15f   :  { %v173_v38 = vmul.f32 %v5469_v35, %v171_v36 }
 0x161   :  { %175 = vrot.lane.b32.xlu0 %v173_v38, %s5720_s2 }
 0x162   :  { %v314_v40 = vpop.permute.xlu0 %313 }
 0x163   :  { %v316_v42 = vmul.f32 %v5471_v39, %v314_v40 }
 0x165   :  { %318 = vrot.lane.b32.xlu1 %v316_v42, %s5720_s2  ;;  %187 = vperm.xlu0 %5458, %v5853_v41  }
 0x169   :  { %330 = vperm.xlu1 %5459, %v5859_v43  }
 0x1d3   :  { %v176_v47 = vpop.permute.xlu0 %175 }
 0x1d4   :  { %v178_v48 = vadd.f32 %v176_v47, %v168_v45  ;;  %v5931_v45 = vsel %vm362_vm7, 1, %v5721_v26  ;;  %v5937_v47 = vsel %vm503_vm8, 1, %v5721_v26  ;;  %vm1208_vm8 = vcmp.gt.s32.totalorder %v5848_v37, 4 }
 0x1d6   :  { %5472 = vtanh.f32 %v178_v48 }
 0x1d7   :  { %v319_v50 = vpop.permute.xlu1 %318 }
 0x1d8   :  { %v321_v51 = vadd.f32 %v319_v50, %v311_v49 }
 0x1da   :  { %5474 = vtanh.f32 %v321_v51 }
 0x1e0   :  { %v5473_v52 = vpop.eup %5472 }
 0x1e1   :  { %181 = vrot.lane.b32.xlu1 %v5473_v52, %s5722_s16 }
 0x1e4   :  { %v5475_v53 = vpop.eup %5474  ;;  %v5870_v55 = vpop.permute.xlu0 %187 }
 0x1e5   :  { %324 = vrot.lane.b32.xlu0 %v5475_v53, %s5722_s16  ;;  %190 = vrot.lane.b32.xlu1 %v5810_v14, %s5723_s19  ;;  %vm189_vm5 = vcmp.eq.s32.totalorder %v5870_v55, 1 }
 0x1e8   :  { %v5868_v54 = vpop.permute.xlu1 %330 }
 0x1e9   :  { %333 = vrot.lane.b32.xlu0 %v5813_v16, %s5723_s19  ;;  %vm332_vm6 = vcmp.eq.s32.totalorder %v5868_v54, 1 }
 0x253   :  { %v182_v56 = vpop.permute.xlu1 %181 }
 0x254   :  { %v5872_v57 = vmul.f32 %v5469_v35, %v182_v56 }
 0x257   :  { %v325_v58 = vpop.permute.xlu0 %324  ;;  %v191_v59 = vpop.permute.xlu1 %190 }
 0x258   :  { %v193_v60 = vsel %vm189_vm5, %v5872_v57, %v191_v59  ;;  %v5879_v61 = vmul.f32 %v5471_v39, %v325_v58 }
 0x259   :  { %195 = vrot.lane.b32.xlu1 %v193_v60, %s5720_s2 }
 0x25b   :  { %v334_v63 = vpop.permute.xlu0 %333 }
 0x25c   :  { %v336_v1 = vsel %vm332_vm6, %v5879_v61, %v334_v63 }
 0x25d   :  { %338 = vrot.lane.b32.xlu0 %v336_v1, %s5720_s2  ;;  %202 = vrot.lane.b32.xlu1 %v200_v62, %s5720_s2 }
 0x261   :  { %344 = vrot.lane.b32.xlu0 %v342_v2, %s5720_s2 }
 0x2cb   :  { %v196_v3 = vpop.permute.xlu1 %195 }
 0x2cc   :  { %199 = vst.msk [vmem:[#allocation2] sm:$0xf] %vm62_vm0, %v196_v3 }
 0x2cf   :  { %v339_v6 = vpop.permute.xlu0 %338  ;;  %v203_v7 = vpop.permute.xlu1 %202 }
 0x2d0   :  { %341 = vst.msk [vmem:[#allocation4] sm:$0xf] %vm62_vm0, %v339_v6  ;;  %v205_v8 = vsel %vm189_vm5, %v178_v48, %v203_v7 }
 0x2d1   :  { %207 = vrot.lane.b32.xlu1 %v205_v8, %s5723_s19 }
 0x2d3   :  { %v5893_v10 = vld [vmem:[#allocation2] sm:$0xf]  ;;  %v345_v11 = vpop.permute.xlu0 %344 }
 0x2d4   :  { %4938 = vmatmul.mubr.msk.f32.vlgmr.msra.gmra.mrb[2].mxu0 %vm82_vm2, %v5893_v10  ;;  %v347_v14 = vsel %vm332_vm6, %v321_v51, %v345_v11 }
 0x2d5   :  { %349 = vrot.lane.b32.xlu0 %v347_v14, %s5723_s19  ;;  %5285 = vmatpush3.bf16.msra.mxu0 %v5778_v5 }
 0x2d6   :  { %5286 = vmatprep.subr.bf16.mxu0 %v7265_v0  ;;  %4959 = vmatprep.mubr.msk.f32.mxu0 %vm5719_vm1, %v7263_v4 }
 0x2d7   :  { %v5904_v15 = vld [vmem:[#allocation4] sm:$0xf] }
 0x2d8   :  { %4949 = vmatmul.mubr.msk.f32.vlgmr.msra.gmra.mrb[2].mxu1 %vm82_vm2, %v5904_v15 }
 0x2d9   :  { %5288 = vmatpush3.bf16.msra.mxu0 %v5802_v12  ;;  %5291 = vmatpush3.bf16.msra.mxu1 %v5793_v9 }
 0x2da   :  { %5292 = vmatprep.subr.bf16.mxu1 %v7265_v0  ;;  %4970 = vmatprep.mubr.msk.f32.mxu1 %vm5719_vm1, %v7263_v4 }
 0x2db   :  { %5295 = vmatprep.subr.bf16.mxu0 %v7265_v0 }
 0x2dd   :  { %5294 = vmatpush3.bf16.msra.mxu1 %v5806_v13 }
 0x2de   :  { %5301 = vmatprep.subr.bf16.mxu1 %v7265_v0 }
 0x343   :  { %v208_v16 = vpop.permute.xlu1 %207 }
 0x344   :  { %210 = vst.msk [vmem:[#allocation3] sm:$0xf] %vm62_vm0, %v208_v16 }
 0x347   :  { %v350_v17 = vpop.permute.xlu0 %349 }
 0x348   :  { %352 = vst.msk [vmem:[#allocation5] sm:$0xf] %vm62_vm0, %v350_v17 }
 0x34b   :  { %v366_v29 = vld [vmem:[#allocation3] sm:$0xf] }
 0x34c   :  { %v483_v11 = vld [vmem:[#allocation3] sm:$0xf] }
 0x34f   :  { %v507_v30 = vld [vmem:[#allocation5] sm:$0xf] }
 0x3a7   :  { %v436_v19 = vpop.f32.mrb[2].mxu0 }
 0x3a8   :  { %v440_v20 = vadd.f32 %v4629_v18, %v436_v19  ;;  %v4939_v21 = vpop.f32.mrb[3].mxu0 }
 0x3aa   :  { %5476 = vtanh.f32 %v440_v20  ;;  %v4631_v31 = vmul.f32 -1.442695, %v440_v20 }
 0x3ab   :  { %v577_v23 = vpop.f32.mrb[2].mxu1 }
 0x3ac   :  { %v581_v24 = vadd.f32 %v4633_v22, %v577_v23  ;;  %v4950_v25 = vpop.f32.mrb[3].mxu1 }
 0x3ae   :  { %5478 = vtanh.f32 %v581_v24  ;;  %v4635_v32 = vmul.f32 -1.442695, %v581_v24 }
 0x3af   :  { %5480 = vpow2.f32 %v4631_v31  ;;  %v4641_v31 = vld [vmem:[%s7258_s1 + $0x34] sm:$0xf] }
 0x3b0   :  { %5482 = vpow2.f32 %v4635_v32 }
 0x3b4   :  { %v5477_v27 = vpop.eup %5476 }
 0x3b5   :  { %454 = vrot.lane.b32.xlu1 %v5477_v27, %s5722_s16  ;;  %v4637_v27 = vld [vmem:[%s7257_s0 + $0x8] sm:$0xf] }
 0x3b8   :  { %v5479_v28 = vpop.eup %5478 }
 0x3b9   :  { %595 = vrot.lane.b32.xlu0 %v5479_v28, %s5722_s16  ;;  %449 = vrot.lane.b32.xlu1 %v366_v29, %s5720_s2  ;;  %v5481_v33 = vpop.eup %5480 }
 0x3ba   :  { %v444_v34 = vadd.f32 1.0, %v5481_v33  ;;  %v5483_v35 = vpop.eup %5482 }
 0x3bb   :  { %v585_v36 = vadd.f32 1.0, %v5483_v35 }
 0x3bc   :  { %5484 = vrcp.f32 %v444_v34 }
 0x3bd   :  { %590 = vrot.lane.b32.xlu0 %v507_v30, %s5720_s2  ;;  %5486 = vrcp.f32 %v585_v36 }
 0x3c6   :  { %v5485_v38 = vpop.eup %5484 }
 0x3c7   :  { %v5487_v42 = vpop.eup %5486 }
 0x427   :  { %v455_v39 = vpop.permute.xlu1 %454 }
 0x428   :  { %v457_v40 = vmul.f32 %v5485_v38, %v455_v39 }
 0x42a   :  { %459 = vrot.lane.b32.xlu1 %v457_v40, %s5720_s2 }
 0x42b   :  { %v596_v44 = vpop.permute.xlu0 %595  ;;  %v450_v48 = vpop.permute.xlu1 %449 }
 0x42c   :  { %v598_v46 = vmul.f32 %v5487_v42, %v596_v44  ;;  %v452_v49 = vmul.f32 %v5485_v38, %v450_v48 }
 0x42e   :  { %600 = vrot.lane.b32.xlu0 %v598_v46, %s5720_s2  ;;  %471 = vperm.xlu1 %5459, %v5931_v45  }
 0x42f   :  { %v591_v50 = vpop.permute.xlu0 %590 }
 0x430   :  { %v593_v53 = vmul.f32 %v5487_v42, %v591_v50 }
 0x432   :  { %612 = vperm.xlu0 %5458, %v5937_v47  }
 0x49c   :  { %v460_v51 = vpop.permute.xlu1 %459 }
 0x49d   :  { %v462_v52 = vadd.f32 %v460_v51, %v452_v49 }
 0x49f   :  { %5488 = vtanh.f32 %v462_v52 }
 0x4a0   :  { %v601_v56 = vpop.permute.xlu0 %600 }
 0x4a1   :  { %v603_v58 = vadd.f32 %v601_v56, %v593_v53 }
 0x4a3   :  { %5490 = vtanh.f32 %v603_v58 }
 0x4a9   :  { %v5489_v59 = vpop.eup %5488 }
 0x4aa   :  { %465 = vrot.lane.b32.xlu1 %v5489_v59, %s5722_s16 }
 0x4ad   :  { %v5491_v60 = vpop.eup %5490  ;;  %v5946_v62 = vpop.permute.xlu1 %471 }
 0x4ae   :  { %606 = vrot.lane.b32.xlu0 %v5491_v60, %s5722_s16  ;;  %474 = vrot.lane.b32.xlu1 %v5893_v10, %s5723_s19  ;;  %vm473_vm9 = vcmp.eq.s32.totalorder %v5946_v62, 1  ;;  %v6015_v60 = vsel %vm785_vm12, 1, %v5721_v26 }
 0x4b1   :  { %v5948_v63 = vpop.permute.xlu0 %612 }
 0x4b2   :  { %615 = vrot.lane.b32.xlu0 %v5904_v15, %s5723_s19  ;;  %vm614_vm10 = vcmp.eq.s32.totalorder %v5948_v63, 1  ;;  %v624_v15 = vld [vmem:[#allocation5] sm:$0xf] }
 0x51c   :  { %v466_v1 = vpop.permute.xlu1 %465 }
 0x51d   :  { %v5950_v2 = vmul.f32 %v5485_v38, %v466_v1 }
 0x520   :  { %v607_v3 = vpop.permute.xlu0 %606  ;;  %v475_v6 = vpop.permute.xlu1 %474 }
 0x521   :  { %v477_v7 = vsel %vm473_vm9, %v5950_v2, %v475_v6  ;;  %v5957_v8 = vmul.f32 %v5487_v42, %v607_v3 }
 0x522   :  { %479 = vrot.lane.b32.xlu1 %v477_v7, %s5720_s2 }
 0x523   :  { %v635_v55 = vsel %vm614_vm10, %v5957_v8, 0.0 }
 0x524   :  { %v616_v10 = vpop.permute.xlu0 %615 }
 0x525   :  { %v618_v14 = vsel %vm614_vm10, %v5957_v8, %v616_v10 }
 0x526   :  { %620 = vrot.lane.b32.xlu0 %v618_v14, %s5720_s2  ;;  %485 = vrot.lane.b32.xlu1 %v483_v11, %s5720_s2 }
 0x52a   :  { %626 = vrot.lane.b32.xlu0 %v624_v15, %s5720_s2 }
 0x594   :  { %v480_v16 = vpop.permute.xlu1 %479 }
 0x595   :  { %482 = vst.msk [vmem:[#allocation2] sm:$0xf] %vm62_vm0, %v480_v16 }
 0x598   :  { %v621_v17 = vpop.permute.xlu0 %620  ;;  %v486_v18 = vpop.permute.xlu1 %485 }
 0x599   :  { %623 = vst.msk [vmem:[#allocation4] sm:$0xf] %vm62_vm0, %v621_v17  ;;  %v488_v19 = vsel %vm473_vm9, %v462_v52, %v486_v18 }
 0x59a   :  { %490 = vrot.lane.b32.xlu1 %v488_v19, %s5723_s19 }
 0x59c   :  { %v5971_v20 = vld [vmem:[#allocation2] sm:$0xf]  ;;  %v627_v21 = vpop.permute.xlu0 %626 }
 0x59d   :  { %4960 = vmatmul.mubr.msk.f32.vlgmr.msra.gmra.mrb[4].mxu0 %vm82_vm2, %v5971_v20  ;;  %v629_v22 = vsel %vm614_vm10, %v603_v58, %v627_v21  ;;  %v6009_v58 = vsel %vm644_vm11, 1, %v5721_v26  ;;  %vm1349_vm11 = vcmp.gt.s32.totalorder %v5848_v37, 11 }
 0x59e   :  { %631 = vrot.lane.b32.xlu0 %v629_v22, %s5723_s19  ;;  %5297 = vmatpush3.bf16.msra.mxu0 %v5778_v5 }
 0x59f   :  { %5298 = vmatprep.subr.bf16.mxu0 %v7265_v0  ;;  %4981 = vmatprep.mubr.msk.f32.mxu0 %vm5719_vm1, %v7263_v4 }
 0x5a0   :  { %v5982_v23 = vld [vmem:[#allocation4] sm:$0xf] }
 0x5a1   :  { %4971 = vmatmul.mubr.msk.f32.vlgmr.msra.gmra.mrb[4].mxu1 %vm82_vm2, %v5982_v23 }
 0x5a2   :  { %5300 = vmatpush3.bf16.msra.mxu0 %v5802_v12  ;;  %5303 = vmatpush3.bf16.msra.mxu1 %v5793_v9 }
 0x5a3   :  { %5304 = vmatprep.subr.bf16.mxu1 %v7265_v0  ;;  %4992 = vmatprep.mubr.msk.f32.mxu1 %vm5719_vm1, %v7263_v4 }
 0x5a4   :  { %5307 = vmatprep.subr.bf16.mxu0 %v7265_v0 }
 0x5a6   :  { %5306 = vmatpush3.bf16.msra.mxu1 %v5806_v13 }
 0x5a7   :  { %5313 = vmatprep.subr.bf16.mxu1 %v7265_v0 }
 0x60c   :  { %v491_v24 = vpop.permute.xlu1 %490 }
 0x60d   :  { %493 = vst.msk [vmem:[#allocation3] sm:$0xf] %vm62_vm0, %v491_v24 }
 0x610   :  { %v632_v25 = vpop.permute.xlu0 %631 }
 0x611   :  { %634 = vst.msk [vmem:[#allocation5] sm:$0xf] %vm62_vm0, %v632_v25 }
 0x614   :  { %v648_v38 = vld [vmem:[#allocation3] sm:$0xf] }
 0x618   :  { %v789_v39 = vld [vmem:[#allocation5] sm:$0xf] }
 0x670   :  { %v718_v28 = vpop.f32.mrb[4].mxu0 }
 0x671   :  { %v722_v29 = vadd.f32 %v4637_v27, %v718_v28  ;;  %v4961_v30 = vpop.f32.mrb[5].mxu0  ;;  %v765_v28 = vld [vmem:[#allocation3] sm:$0xf] }
 0x672   :  { %v906_v30 = vld [vmem:[#allocation5] sm:$0xf] }
 0x673   :  { %5492 = vtanh.f32 %v722_v29  ;;  %v4639_v40 = vmul.f32 -1.442695, %v722_v29 }
 0x674   :  { %v859_v32 = vpop.f32.mrb[4].mxu1 }
 0x675   :  { %v863_v33 = vadd.f32 %v4641_v31, %v859_v32  ;;  %v4972_v34 = vpop.f32.mrb[5].mxu1 }
 0x677   :  { %5494 = vtanh.f32 %v863_v33  ;;  %v4643_v42 = vmul.f32 -1.442695, %v863_v33 }
 0x678   :  { %5496 = vpow2.f32 %v4639_v40 }
 0x679   :  { %5498 = vpow2.f32 %v4643_v42 }
 0x67d   :  { %v5493_v35 = vpop.eup %5492 }
 0x67e   :  { %736 = vrot.lane.b32.xlu1 %v5493_v35, %s5722_s16 }
 0x681   :  { %v5495_v36 = vpop.eup %5494 }
 0x682   :  { %877 = vrot.lane.b32.xlu0 %v5495_v36, %s5722_s16  ;;  %731 = vrot.lane.b32.xlu1 %v648_v38, %s5720_s2  ;;  %v5497_v44 = vpop.eup %5496 }
 0x683   :  { %v726_v46 = vadd.f32 1.0, %v5497_v44  ;;  %v5499_v48 = vpop.eup %5498  ;;  %v4645_v44 = vld [vmem:[%s7257_s0 + $0xc] sm:$0xf] }
 0x684   :  { %v867_v49 = vadd.f32 1.0, %v5499_v48 }
 0x685   :  { %5500 = vrcp.f32 %v726_v46 }
 0x686   :  { %872 = vrot.lane.b32.xlu0 %v789_v39, %s5720_s2  ;;  %5502 = vrcp.f32 %v867_v49 }
 0x68f   :  { %v5501_v50 = vpop.eup %5500 }
 0x690   :  { %v5503_v53 = vpop.eup %5502 }
 0x6f0   :  { %v737_v51 = vpop.permute.xlu1 %736 }
 0x6f1   :  { %v739_v52 = vmul.f32 %v5501_v50, %v737_v51 }
 0x6f3   :  { %741 = vrot.lane.b32.xlu1 %v739_v52, %s5720_s2 }
 0x6f4   :  { %v878_v56 = vpop.permute.xlu0 %877  ;;  %v732_v1 = vpop.permute.xlu1 %731 }
 0x6f5   :  { %v880_v59 = vmul.f32 %v5503_v53, %v878_v56  ;;  %v734_v3 = vmul.f32 %v5501_v50, %v732_v1 }
 0x6f7   :  { %882 = vrot.lane.b32.xlu0 %v880_v59, %s5720_s2  ;;  %753 = vperm.xlu1 %5459, %v6009_v58  }
 0x6f8   :  { %v873_v6 = vpop.permute.xlu0 %872 }
 0x6f9   :  { %v875_v11 = vmul.f32 %v5503_v53, %v873_v6 }
 0x6fb   :  { %894 = vperm.xlu0 %5458, %v6015_v60  }
 0x765   :  { %v742_v7 = vpop.permute.xlu1 %741 }
 0x766   :  { %v744_v10 = vadd.f32 %v742_v7, %v734_v3 }
 0x768   :  { %5504 = vtanh.f32 %v744_v10 }
 0x769   :  { %v883_v14 = vpop.permute.xlu0 %882 }
 0x76a   :  { %v885_v15 = vadd.f32 %v883_v14, %v875_v11 }
 0x76c   :  { %5506 = vtanh.f32 %v885_v15 }
 0x772   :  { %v5505_v16 = vpop.eup %5504 }
 0x773   :  { %747 = vrot.lane.b32.xlu1 %v5505_v16, %s5722_s16 }
 0x776   :  { %v5507_v17 = vpop.eup %5506  ;;  %v6024_v18 = vpop.permute.xlu1 %753 }
 0x777   :  { %888 = vrot.lane.b32.xlu0 %v5507_v17, %s5722_s16  ;;  %756 = vrot.lane.b32.xlu1 %v5971_v20, %s5723_s19  ;;  %vm755_vm13 = vcmp.eq.s32.totalorder %v6024_v18, 1 }
 0x77a   :  { %v6026_v19 = vpop.permute.xlu0 %894 }
 0x77b   :  { %897 = vrot.lane.b32.xlu0 %v5982_v23, %s5723_s19  ;;  %vm896_vm14 = vcmp.eq.s32.totalorder %v6026_v19, 1 }
 0x7e5   :  { %v748_v21 = vpop.permute.xlu1 %747 }
 0x7e6   :  { %v6028_v22 = vmul.f32 %v5501_v50, %v748_v21  ;;  %v4649_v50 = vld [vmem:[%s7258_s1 + $0x30] sm:$0xf] }
 0x7e9   :  { %v889_v24 = vpop.permute.xlu0 %888  ;;  %v757_v25 = vpop.permute.xlu1 %756 }
 0x7ea   :  { %v759_v27 = vsel %vm755_vm13, %v6028_v22, %v757_v25  ;;  %v6035_v20 = vmul.f32 %v5503_v53, %v889_v24 }
 0x7eb   :  { %761 = vrot.lane.b32.xlu1 %v759_v27, %s5720_s2  ;;  %v6087_v27 = vsel %vm926_vm15, 1, %v5721_v26 }
 0x7ed   :  { %v898_v23 = vpop.permute.xlu0 %897 }
 0x7ee   :  { %v900_v29 = vsel %vm896_vm14, %v6035_v20, %v898_v23 }
 0x7ef   :  { %902 = vrot.lane.b32.xlu0 %v900_v29, %s5720_s2  ;;  %767 = vrot.lane.b32.xlu1 %v765_v28, %s5720_s2  ;;  %v6093_v28 = vsel %vm1067_vm3, 1, %v5721_v26 }
 0x7f3   :  { %908 = vrot.lane.b32.xlu0 %v906_v30, %s5720_s2 }
 0x85d   :  { %v762_v31 = vpop.permute.xlu1 %761 }
 0x85e   :  { %764 = vst.msk [vmem:[#allocation2] sm:$0xf] %vm62_vm0, %v762_v31 }
 0x861   :  { %v903_v32 = vpop.permute.xlu0 %902  ;;  %v768_v33 = vpop.permute.xlu1 %767 }
 0x862   :  { %905 = vst.msk [vmem:[#allocation4] sm:$0xf] %vm62_vm0, %v903_v32  ;;  %v770_v34 = vsel %vm755_vm13, %v744_v10, %v768_v33 }
 0x863   :  { %772 = vrot.lane.b32.xlu1 %v770_v34, %s5723_s19 }
 0x865   :  { %v6049_v35 = vld [vmem:[#allocation2] sm:$0xf]  ;;  %v909_v36 = vpop.permute.xlu0 %908 }
 0x866   :  { %4982 = vmatmul.mubr.msk.f32.vlgmr.msra.gmra.mrb[6].mxu0 %vm82_vm2, %v6049_v35  ;;  %v911_v38 = vsel %vm896_vm14, %v885_v15, %v909_v36 }
 0x867   :  { %913 = vrot.lane.b32.xlu0 %v911_v38, %s5723_s19  ;;  %5309 = vmatpush3.bf16.msra.mxu0 %v5778_v5 }
 0x868   :  { %5310 = vmatprep.subr.bf16.mxu0 %v7265_v0  ;;  %5003 = vmatprep.mubr.msk.f32.mxu0 %vm5719_vm1, %v7263_v4 }
 0x869   :  { %v6060_v39 = vld [vmem:[#allocation4] sm:$0xf] }
 0x86a   :  { %4993 = vmatmul.mubr.msk.f32.vlgmr.msra.gmra.mrb[6].mxu1 %vm82_vm2, %v6060_v39 }
 0x86b   :  { %5312 = vmatpush3.bf16.msra.mxu0 %v5802_v12  ;;  %5315 = vmatpush3.bf16.msra.mxu1 %v5793_v9 }
 0x86c   :  { %5316 = vmatprep.subr.bf16.mxu1 %v7265_v0  ;;  %5014 = vmatprep.mubr.msk.f32.mxu1 %vm5719_vm1, %v7263_v4 }
 0x86d   :  { %5319 = vmatprep.subr.bf16.mxu0 %v7265_v0 }
 0x86f   :  { %5318 = vmatpush3.bf16.msra.mxu1 %v5806_v13 }
 0x870   :  { %5325 = vmatprep.subr.bf16.mxu1 %v7265_v0 }
 0x8d5   :  { %v773_v40 = vpop.permute.xlu1 %772 }
 0x8d6   :  { %775 = vst.msk [vmem:[#allocation3] sm:$0xf] %vm62_vm0, %v773_v40 }
 0x8d9   :  { %v914_v42 = vpop.permute.xlu0 %913 }
 0x8da   :  { %916 = vst.msk [vmem:[#allocation5] sm:$0xf] %vm62_vm0, %v914_v42 }
 0x8dd   :  { %v930_v1 = vld [vmem:[#allocation3] sm:$0xf] }
 0x8e1   :  { %v1071_v3 = vld [vmem:[#allocation5] sm:$0xf] }
 0x939   :  { %v1000_v46 = vpop.f32.mrb[6].mxu0 }
 0x93a   :  { %v1004_v48 = vadd.f32 %v4645_v44, %v1000_v46  ;;  %v4983_v49 = vpop.f32.mrb[7].mxu0 }
 0x93c   :  { %5508 = vtanh.f32 %v1004_v48  ;;  %v4647_v6 = vmul.f32 -1.442695, %v1004_v48 }
 0x93d   :  { %v1141_v51 = vpop.f32.mrb[6].mxu1 }
 0x93e   :  { %v1145_v52 = vadd.f32 %v4649_v50, %v1141_v51  ;;  %v4994_v53 = vpop.f32.mrb[7].mxu1 }
 0x940   :  { %5510 = vtanh.f32 %v1145_v52  ;;  %v4651_v7 = vmul.f32 -1.442695, %v1145_v52 }
 0x941   :  { %5512 = vpow2.f32 %v4647_v6 }
 0x942   :  { %5514 = vpow2.f32 %v4651_v7 }
 0x946   :  { %v5509_v56 = vpop.eup %5508 }
 0x947   :  { %1018 = vrot.lane.b32.xlu1 %v5509_v56, %s5722_s16  ;;  %v1047_v56 = vld [vmem:[#allocation3] sm:$0xf] }
 0x94a   :  { %v5511_v59 = vpop.eup %5510 }
 0x94b   :  { %1159 = vrot.lane.b32.xlu0 %v5511_v59, %s5722_s16  ;;  %1013 = vrot.lane.b32.xlu1 %v930_v1, %s5720_s2  ;;  %v5513_v10 = vpop.eup %5512  ;;  %v1188_v59 = vld [vmem:[#allocation5] sm:$0xf] }
 0x94c   :  { %v1008_v11 = vadd.f32 1.0, %v5513_v10  ;;  %v5515_v14 = vpop.eup %5514 }
 0x94d   :  { %v1149_v15 = vadd.f32 1.0, %v5515_v14 }
 0x94e   :  { %5516 = vrcp.f32 %v1008_v11 }
 0x94f   :  { %1154 = vrot.lane.b32.xlu0 %v1071_v3, %s5720_s2  ;;  %5518 = vrcp.f32 %v1149_v15 }
 0x958   :  { %v5517_v16 = vpop.eup %5516 }
 0x959   :  { %v5519_v24 = vpop.eup %5518 }
 0x9b9   :  { %v1019_v17 = vpop.permute.xlu1 %1018 }
 0x9ba   :  { %v1021_v21 = vmul.f32 %v5517_v16, %v1019_v17 }
 0x9bc   :  { %1023 = vrot.lane.b32.xlu1 %v1021_v21, %s5720_s2  ;;  %v4653_v21 = vld [vmem:[%s7257_s0 + $0x10] sm:$0xf] }
 0x9bd   :  { %v1160_v25 = vpop.permute.xlu0 %1159  ;;  %v1014_v29 = vpop.permute.xlu1 %1013 }
 0x9be   :  { %v1162_v23 = vmul.f32 %v5519_v24, %v1160_v25  ;;  %v1016_v30 = vmul.f32 %v5517_v16, %v1014_v29  ;;  %v4657_v29 = vld [vmem:[%s7258_s1 + $0x2c] sm:$0xf] }
 0x9c0   :  { %1164 = vrot.lane.b32.xlu0 %v1162_v23, %s5720_s2  ;;  %1035 = vperm.xlu1 %5459, %v6087_v27  }
 0x9c1   :  { %v1155_v31 = vpop.permute.xlu0 %1154 }
 0x9c2   :  { %v1157_v34 = vmul.f32 %v5519_v24, %v1155_v31 }
 0x9c4   :  { %1176 = vperm.xlu0 %5458, %v6093_v28  }
 0xa2e   :  { %v1024_v32 = vpop.permute.xlu1 %1023 }
 0xa2f   :  { %v1026_v33 = vadd.f32 %v1024_v32, %v1016_v30 }
 0xa31   :  { %5520 = vtanh.f32 %v1026_v33 }
 0xa32   :  { %v1165_v36 = vpop.permute.xlu0 %1164 }
 0xa33   :  { %v1167_v38 = vadd.f32 %v1165_v36, %v1157_v34 }
 0xa35   :  { %5522 = vtanh.f32 %v1167_v38 }
 0xa3b   :  { %v5521_v40 = vpop.eup %5520 }
 0xa3c   :  { %1029 = vrot.lane.b32.xlu1 %v5521_v40, %s5722_s16 }
 0xa3f   :  { %v5523_v42 = vpop.eup %5522  ;;  %v6102_v44 = vpop.permute.xlu1 %1035 }
 0xa40   :  { %1170 = vrot.lane.b32.xlu0 %v5523_v42, %s5722_s16  ;;  %1038 = vrot.lane.b32.xlu1 %v6049_v35, %s5723_s19  ;;  %vm1037_vm4 = vcmp.eq.s32.totalorder %v6102_v44, 1 }
 0xa43   :  { %v6104_v46 = vpop.permute.xlu0 %1176 }
 0xa44   :  { %1179 = vrot.lane.b32.xlu0 %v6060_v39, %s5723_s19  ;;  %vm1178_vm7 = vcmp.eq.s32.totalorder %v6104_v46, 1 }
 0xaae   :  { %v1030_v48 = vpop.permute.xlu1 %1029 }
 0xaaf   :  { %v6106_v49 = vmul.f32 %v5517_v16, %v1030_v48 }
 0xab2   :  { %v1171_v50 = vpop.permute.xlu0 %1170  ;;  %v1039_v51 = vpop.permute.xlu1 %1038 }
 0xab3   :  { %v1041_v52 = vsel %vm1037_vm4, %v6106_v49, %v1039_v51  ;;  %v6113_v35 = vmul.f32 %v5519_v24, %v1171_v50 }
 0xab4   :  { %1043 = vrot.lane.b32.xlu1 %v1041_v52, %s5720_s2 }
 0xab6   :  { %v1180_v39 = vpop.permute.xlu0 %1179 }
 0xab7   :  { %v1182_v53 = vsel %vm1178_vm7, %v6113_v35, %v1180_v39 }
 0xab8   :  { %1184 = vrot.lane.b32.xlu0 %v1182_v53, %s5720_s2  ;;  %1049 = vrot.lane.b32.xlu1 %v1047_v56, %s5720_s2 }
 0xabc   :  { %1190 = vrot.lane.b32.xlu0 %v1188_v59, %s5720_s2 }
 0xb26   :  { %v1044_v1 = vpop.permute.xlu1 %1043 }
 0xb27   :  { %1046 = vst.msk [vmem:[#allocation2] sm:$0xf] %vm62_vm0, %v1044_v1 }
 0xb2a   :  { %v1185_v3 = vpop.permute.xlu0 %1184  ;;  %v1050_v6 = vpop.permute.xlu1 %1049 }
 0xb2b   :  { %1187 = vst.msk [vmem:[#allocation4] sm:$0xf] %vm62_vm0, %v1185_v3  ;;  %v1052_v7 = vsel %vm1037_vm4, %v1026_v33, %v1050_v6  ;;  %v6165_v3 = vsel %vm1208_vm8, 1, %v5721_v26 }
 0xb2c   :  { %1054 = vrot.lane.b32.xlu1 %v1052_v7, %s5723_s19  ;;  %v6171_v7 = vsel %vm1349_vm11, 1, %v5721_v26 }
 0xb2e   :  { %v6127_v10 = vld [vmem:[#allocation2] sm:$0xf]  ;;  %v1191_v11 = vpop.permute.xlu0 %1190 }
 0xb2f   :  { %5004 = vmatmul.mubr.msk.f32.vlgmr.msra.gmra.mrb[8].mxu0 %vm82_vm2, %v6127_v10  ;;  %v1193_v14 = vsel %vm1178_vm7, %v1167_v38, %v1191_v11 }
 0xb30   :  { %1195 = vrot.lane.b32.xlu0 %v1193_v14, %s5723_s19  ;;  %5321 = vmatpush3.bf16.msra.mxu0 %v5778_v5 }
 0xb31   :  { %5322 = vmatprep.subr.bf16.mxu0 %v7265_v0  ;;  %5025 = vmatprep.mubr.msk.f32.mxu0 %vm5719_vm1, %v7263_v4 }
 0xb32   :  { %v6138_v15 = vld [vmem:[#allocation4] sm:$0xf] }
 0xb33   :  { %5015 = vmatmul.mubr.msk.f32.vlgmr.msra.gmra.mrb[8].mxu1 %vm82_vm2, %v6138_v15 }
 0xb34   :  { %5324 = vmatpush3.bf16.msra.mxu0 %v5802_v12  ;;  %5327 = vmatpush3.bf16.msra.mxu1 %v5793_v9 }
 0xb35   :  { %5328 = vmatprep.subr.bf16.mxu1 %v7265_v0  ;;  %5036 = vmatprep.mubr.msk.f32.mxu1 %vm5719_vm1, %v7263_v4 }
 0xb36   :  { %5331 = vmatprep.subr.bf16.mxu0 %v7265_v0 }
 0xb38   :  { %5330 = vmatpush3.bf16.msra.mxu1 %v5806_v13 }
 0xb39   :  { %5337 = vmatprep.subr.bf16.mxu1 %v7265_v0 }
 0xb9e   :  { %v1055_v16 = vpop.permute.xlu1 %1054 }
 0xb9f   :  { %1057 = vst.msk [vmem:[#allocation3] sm:$0xf] %vm62_vm0, %v1055_v16 }
 0xba2   :  { %v1196_v17 = vpop.permute.xlu0 %1195 }
 0xba3   :  { %1198 = vst.msk [vmem:[#allocation5] sm:$0xf] %vm62_vm0, %v1196_v17 }
 0xba6   :  { %v1212_v36 = vld [vmem:[#allocation3] sm:$0xf] }
 0xbaa   :  { %v1353_v38 = vld [vmem:[#allocation5] sm:$0xf] }
 0xc02   :  { %v1282_v24 = vpop.f32.mrb[8].mxu0 }
 0xc03   :  { %v1286_v25 = vadd.f32 %v4653_v21, %v1282_v24  ;;  %v5005_v23 = vpop.f32.mrb[9].mxu0 }
 0xc05   :  { %5524 = vtanh.f32 %v1286_v25  ;;  %v4655_v40 = vmul.f32 -1.442695, %v1286_v25 }
 0xc06   :  { %v1423_v30 = vpop.f32.mrb[8].mxu1 }
 0xc07   :  { %v1427_v31 = vadd.f32 %v4657_v29, %v1423_v30  ;;  %v5016_v32 = vpop.f32.mrb[9].mxu1 }
 0xc09   :  { %5526 = vtanh.f32 %v1427_v31  ;;  %v4659_v42 = vmul.f32 -1.442695, %v1427_v31 }
 0xc0a   :  { %5528 = vpow2.f32 %v4655_v40 }
 0xc0b   :  { %5530 = vpow2.f32 %v4659_v42  ;;  %v1329_v42 = vld [vmem:[#allocation3] sm:$0xf] }
 0xc0f   :  { %v5525_v33 = vpop.eup %5524 }
 0xc10   :  { %1300 = vrot.lane.b32.xlu1 %v5525_v33, %s5722_s16 }
 0xc13   :  { %v5527_v34 = vpop.eup %5526 }
 0xc14   :  { %1441 = vrot.lane.b32.xlu0 %v5527_v34, %s5722_s16  ;;  %1295 = vrot.lane.b32.xlu1 %v1212_v36, %s5720_s2  ;;  %v5529_v48 = vpop.eup %5528 }
 0xc15   :  { %v1290_v50 = vadd.f32 1.0, %v5529_v48  ;;  %v5531_v51 = vpop.eup %5530  ;;  %v1470_v48 = vld [vmem:[#allocation5] sm:$0xf] }
 0xc16   :  { %v1431_v52 = vadd.f32 1.0, %v5531_v51 }
 0xc17   :  { %5532 = vrcp.f32 %v1290_v50 }
 0xc18   :  { %1436 = vrot.lane.b32.xlu0 %v1353_v38, %s5720_s2  ;;  %5534 = vrcp.f32 %v1431_v52 }
 0xc21   :  { %v5533_v39 = vpop.eup %5532 }
 0xc22   :  { %v5535_v59 = vpop.eup %5534 }
 0xc82   :  { %v1301_v53 = vpop.permute.xlu1 %1300 }
 0xc83   :  { %v1303_v56 = vmul.f32 %v5533_v39, %v1301_v53 }
 0xc85   :  { %1305 = vrot.lane.b32.xlu1 %v1303_v56, %s5720_s2 }
 0xc86   :  { %v1442_v1 = vpop.permute.xlu0 %1441  ;;  %v1296_v11 = vpop.permute.xlu1 %1295 }
 0xc87   :  { %v1444_v6 = vmul.f32 %v5535_v59, %v1442_v1  ;;  %v1298_v14 = vmul.f32 %v5533_v39, %v1296_v11 }
 0xc89   :  { %1446 = vrot.lane.b32.xlu0 %v1444_v6, %s5720_s2  ;;  %1317 = vperm.xlu1 %5459, %v6165_v3  }
 0xc8a   :  { %v1437_v16 = vpop.permute.xlu0 %1436 }
 0xc8b   :  { %v1439_v24 = vmul.f32 %v5535_v59, %v1437_v16 }
 0xc8d   :  { %1458 = vperm.xlu0 %5458, %v6171_v7  }
 0xcf7   :  { %v1306_v17 = vpop.permute.xlu1 %1305 }
 0xcf8   :  { %v1308_v21 = vadd.f32 %v1306_v17, %v1298_v14  ;;  %v4661_v14 = vld [vmem:[%s7257_s0 + $0x14] sm:$0xf] }
 0xcfa   :  { %5536 = vtanh.f32 %v1308_v21 }
 0xcfb   :  { %v1447_v25 = vpop.permute.xlu0 %1446 }
 0xcfc   :  { %v1449_v23 = vadd.f32 %v1447_v25, %v1439_v24  ;;  %v4665_v24 = vld [vmem:[%s7258_s1 + $0x28] sm:$0xf] }
 0xcfe   :  { %5538 = vtanh.f32 %v1449_v23 }
 0xd04   :  { %v5537_v37 = vpop.eup %5536 }
 0xd05   :  { %1311 = vrot.lane.b32.xlu1 %v5537_v37, %s5722_s16 }
 0xd08   :  { %v5539_v29 = vpop.eup %5538  ;;  %v6180_v30 = vpop.permute.xlu1 %1317 }
 0xd09   :  { %1452 = vrot.lane.b32.xlu0 %v5539_v29, %s5722_s16  ;;  %1320 = vrot.lane.b32.xlu1 %v6127_v10, %s5723_s19  ;;  %vm1319_vm12 = vcmp.eq.s32.totalorder %v6180_v30, 1 }
 0xd0c   :  { %v6182_v31 = vpop.permute.xlu0 %1458 }
 0xd0d   :  { %1461 = vrot.lane.b32.xlu0 %v6138_v15, %s5723_s19  ;;  %vm1460_vm15 = vcmp.eq.s32.totalorder %v6182_v31, 1 }
 0xd77   :  { %v1312_v32 = vpop.permute.xlu1 %1311 }
 0xd78   :  { %v6184_v33 = vmul.f32 %v5533_v39, %v1312_v32 }
 0xd7a   :  { %v1340_v19 = vsel %vm1319_vm12, %v6184_v33, 0.0 }
 0xd7b   :  { %v1453_v34 = vpop.permute.xlu0 %1452  ;;  %v1321_v36 = vpop.permute.xlu1 %1320 }
 0xd7c   :  { %v1323_v38 = vsel %vm1319_vm12, %v6184_v33, %v1321_v36  ;;  %v6191_v10 = vmul.f32 %v5535_v59, %v1453_v34 }
 0xd7d   :  { %1325 = vrot.lane.b32.xlu1 %v1323_v38, %s5720_s2 }
 0xd7f   :  { %v1462_v15 = vpop.permute.xlu0 %1461 }
 0xd80   :  { %v1464_v40 = vsel %vm1460_vm15, %v6191_v10, %v1462_v15 }
 0xd81   :  { %1466 = vrot.lane.b32.xlu0 %v1464_v40, %s5720_s2  ;;  %1331 = vrot.lane.b32.xlu1 %v1329_v42, %s5720_s2 }
 0xd85   :  { %1472 = vrot.lane.b32.xlu0 %v1470_v48, %s5720_s2 }
 0xdef   :  { %v1326_v50 = vpop.permute.xlu1 %1325 }
 0xdf0   :  { %1328 = vst.msk [vmem:[#allocation2] sm:$0xf] %vm62_vm0, %v1326_v50 }
 0xdf3   :  { %v1467_v51 = vpop.permute.xlu0 %1466  ;;  %v1332_v52 = vpop.permute.xlu1 %1331 }
 0xdf4   :  { %1469 = vst.msk [vmem:[#allocation4] sm:$0xf] %vm62_vm0, %v1467_v51  ;;  %v1334_v39 = vsel %vm1319_vm12, %v1308_v21, %v1332_v52 }
 0xdf5   :  { %1336 = vrot.lane.b32.xlu1 %v1334_v39, %s5723_s19 }
 0xdf7   :  { %v1473_v53 = vpop.permute.xlu0 %1472  ;;  %v6205_v56 = vld [vmem:[#allocation2] sm:$0xf] }
 0xdf8   :  { %5026 = vmatmul.mubr.msk.f32.vlgmr.msra.gmra.mrb[10].mxu0 %vm82_vm2, %v6205_v56  ;;  %v1475_v59 = vsel %vm1460_vm15, %v1449_v23, %v1473_v53  ;;  %v6243_v53 = vld [vmem:[%s7259_s4] sm:$0xf] }
 0xdf9   :  { %1477 = vrot.lane.b32.xlu0 %v1475_v59, %s5723_s19  ;;  %5333 = vmatpush3.bf16.msra.mxu0 %v5778_v5  ;;  %vm1490_vm3 = vcmp.gt.s32.totalorder %v6243_v53, 5  ;;  %vm1631_vm8 = vcmp.gt.s32.totalorder %v6243_v53, 10 }
 0xdfa   :  { %5334 = vmatprep.subr.bf16.mxu0 %v7265_v0  ;;  %5047 = vmatprep.mubr.msk.f32.mxu0 %vm5719_vm1, %v7263_v4 }
 0xdfb   :  { %v6216_v1 = vld [vmem:[#allocation4] sm:$0xf] }
 0xdfc   :  { %5037 = vmatmul.mubr.msk.f32.vlgmr.msra.gmra.mrb[10].mxu1 %vm82_vm2, %v6216_v1 }
 0xdfd   :  { %5336 = vmatpush3.bf16.msra.mxu0 %v5802_v12  ;;  %5339 = vmatpush3.bf16.msra.mxu1 %v5793_v9 }
 0xdfe   :  { %5340 = vmatprep.subr.bf16.mxu1 %v7265_v0  ;;  %5058 = vmatprep.mubr.msk.f32.mxu1 %vm5719_vm1, %v7263_v4 }
 0xdff   :  { %5343 = vmatprep.subr.bf16.mxu0 %v7265_v0 }
 0xe01   :  { %5342 = vmatpush3.bf16.msra.mxu1 %v5806_v13 }
 0xe02   :  { %5349 = vmatprep.subr.bf16.mxu1 %v7265_v0 }
 0xe67   :  { %v1337_v6 = vpop.permute.xlu1 %1336 }
 0xe68   :  { %1339 = vst.msk [vmem:[#allocation3] sm:$0xf] %vm62_vm0, %v1337_v6 }
 0xe6b   :  { %v1478_v11 = vpop.permute.xlu0 %1477 }
 0xe6c   :  { %1480 = vst.msk [vmem:[#allocation5] sm:$0xf] %vm62_vm0, %v1478_v11  ;;  %v6248_v11 = vsel %vm1490_vm3, 1, %v5721_v26 }
 0xe6f   :  { %v1494_v34 = vld [vmem:[#allocation3] sm:$0xf] }
 0xe73   :  { %v1635_v36 = vld [vmem:[#allocation5] sm:$0xf] }
 0xecb   :  { %v1564_v16 = vpop.f32.mrb[10].mxu0 }
 0xecc   :  { %v1568_v17 = vadd.f32 %v4661_v14, %v1564_v16  ;;  %v5027_v21 = vpop.f32.mrb[11].mxu0  ;;  %v6254_v16 = vsel %vm1631_vm8, 1, %v5721_v26  ;;  %vm1772_vm8 = vcmp.gt.s32.totalorder %v6243_v53, 6 }
 0xece   :  { %5540 = vtanh.f32 %v1568_v17  ;;  %v4663_v38 = vmul.f32 -1.442695, %v1568_v17 }
 0xecf   :  { %v1705_v25 = vpop.f32.mrb[10].mxu1 }
 0xed0   :  { %v1709_v23 = vadd.f32 %v4665_v24, %v1705_v25  ;;  %v5038_v37 = vpop.f32.mrb[11].mxu1 }
 0xed2   :  { %5542 = vtanh.f32 %v1709_v23  ;;  %v4667_v15 = vmul.f32 -1.442695, %v1709_v23 }
 0xed3   :  { %5544 = vpow2.f32 %v4663_v38 }
 0xed4   :  { %5546 = vpow2.f32 %v4667_v15 }
 0xed8   :  { %v5541_v29 = vpop.eup %5540 }
 0xed9   :  { %1582 = vrot.lane.b32.xlu1 %v5541_v29, %s5722_s16 }
 0xedc   :  { %v5543_v32 = vpop.eup %5542 }
 0xedd   :  { %1723 = vrot.lane.b32.xlu0 %v5543_v32, %s5722_s16  ;;  %1577 = vrot.lane.b32.xlu1 %v1494_v34, %s5720_s2  ;;  %v5545_v40 = vpop.eup %5544 }
 0xede   :  { %v1572_v42 = vadd.f32 1.0, %v5545_v40  ;;  %v5547_v48 = vpop.eup %5546 }
 0xedf   :  { %v1713_v50 = vadd.f32 1.0, %v5547_v48 }
 0xee0   :  { %5548 = vrcp.f32 %v1572_v42 }
 0xee1   :  { %1718 = vrot.lane.b32.xlu0 %v1635_v36, %s5720_s2  ;;  %5550 = vrcp.f32 %v1713_v50 }
 0xeea   :  { %v5549_v51 = vpop.eup %5548 }
 0xeeb   :  { %v5551_v59 = vpop.eup %5550 }
 0xf4b   :  { %v1583_v52 = vpop.permute.xlu1 %1582 }
 0xf4c   :  { %v1585_v39 = vmul.f32 %v5549_v51, %v1583_v52 }
 0xf4e   :  { %1587 = vrot.lane.b32.xlu1 %v1585_v39, %s5720_s2  ;;  %v1611_v39 = vld [vmem:[#allocation3] sm:$0xf] }
 0xf4f   :  { %v1724_v6 = vpop.permute.xlu0 %1723  ;;  %v1578_v17 = vpop.permute.xlu1 %1577 }
 0xf50   :  { %v1726_v14 = vmul.f32 %v5551_v59, %v1724_v6  ;;  %v1580_v21 = vmul.f32 %v5549_v51, %v1578_v17  ;;  %v1752_v6 = vld [vmem:[#allocation5] sm:$0xf] }
 0xf52   :  { %1728 = vrot.lane.b32.xlu0 %v1726_v14, %s5720_s2  ;;  %1599 = vperm.xlu1 %5459, %v6248_v11  }
 0xf53   :  { %v1719_v24 = vpop.permute.xlu0 %1718 }
 0xf54   :  { %v1721_v37 = vmul.f32 %v5551_v59, %v1719_v24 }
 0xf56   :  { %1740 = vperm.xlu0 %5458, %v6254_v16  }
 0xfc0   :  { %v1588_v25 = vpop.permute.xlu1 %1587 }
 0xfc1   :  { %v1590_v23 = vadd.f32 %v1588_v25, %v1580_v21 }
 0xfc3   :  { %5552 = vtanh.f32 %v1590_v23 }
 0xfc4   :  { %v1729_v29 = vpop.permute.xlu0 %1728 }
 0xfc5   :  { %v1731_v32 = vadd.f32 %v1729_v29, %v1721_v37 }
 0xfc7   :  { %5554 = vtanh.f32 %v1731_v32 }
 0xfcd   :  { %v5553_v34 = vpop.eup %5552 }
 0xfce   :  { %1593 = vrot.lane.b32.xlu1 %v5553_v34, %s5722_s16  ;;  %v4669_v34 = vld [vmem:[%s7257_s0 + $0x18] sm:$0xf] }
 0xfd1   :  { %v5555_v36 = vpop.eup %5554  ;;  %v6263_v38 = vpop.permute.xlu1 %1599 }
 0xfd2   :  { %1734 = vrot.lane.b32.xlu0 %v5555_v36, %s5722_s16  ;;  %1602 = vrot.lane.b32.xlu1 %v6205_v56, %s5723_s19  ;;  %vm1601_vm11 = vcmp.eq.s32.totalorder %v6263_v38, 1 }
 0xfd5   :  { %v6265_v15 = vpop.permute.xlu0 %1740 }
 0xfd6   :  { %1743 = vrot.lane.b32.xlu0 %v6216_v1, %s5723_s19  ;;  %vm7262_vm3 = vcmp.eq.s32.totalorder %v6265_v15, 1 }
0x1040   :  { %v1594_v40 = vpop.permute.xlu1 %1593 }
0x1041   :  { %v6267_v42 = vmul.f32 %v5549_v51, %v1594_v40 }
0x1043   :  { %v1622_v46 = vsel %vm1601_vm11, %v6267_v42, 0.0 }
0x1044   :  { %v1735_v48 = vpop.permute.xlu0 %1734  ;;  %v1603_v50 = vpop.permute.xlu1 %1602 }
0x1045   :  { %v1605_v52 = vsel %vm1601_vm11, %v6267_v42, %v1603_v50  ;;  %v6274_v56 = vmul.f32 %v5551_v59, %v1735_v48  ;;  %v4673_v50 = vld [vmem:[%s7258_s1 + $0x24] sm:$0xf] }
0x1046   :  { %1607 = vrot.lane.b32.xlu1 %v1605_v52, %s5720_s2 }
0x1048   :  { %v1744_v1 = vpop.permute.xlu0 %1743 }
0x1049   :  { %v1746_v51 = vsel %vm7262_vm3, %v6274_v56, %v1744_v1 }
0x104a   :  { %1748 = vrot.lane.b32.xlu0 %v1746_v51, %s5720_s2  ;;  %1613 = vrot.lane.b32.xlu1 %v1611_v39, %s5720_s2 }
0x104e   :  { %1754 = vrot.lane.b32.xlu0 %v1752_v6, %s5720_s2 }
0x10b8   :  { %v1608_v14 = vpop.permute.xlu1 %1607 }
0x10b9   :  { %1610 = vst.msk [vmem:[#allocation2] sm:$0xf] %vm62_vm0, %v1608_v14 }
0x10bc   :  { %v1749_v59 = vpop.permute.xlu0 %1748  ;;  %v1614_v17 = vpop.permute.xlu1 %1613 }
0x10bd   :  { %1751 = vst.msk [vmem:[#allocation4] sm:$0xf] %vm62_vm0, %v1749_v59  ;;  %v1616_v21 = vsel %vm1601_vm11, %v1590_v23, %v1614_v17 }
0x10be   :  { %1618 = vrot.lane.b32.xlu1 %v1616_v21, %s5723_s19 }
0x10c0   :  { %v1755_v24 = vpop.permute.xlu0 %1754  ;;  %v6288_v25 = vld [vmem:[#allocation2] sm:$0xf] }
0x10c1   :  { %v1757_v37 = vsel %vm7262_vm3, %v1731_v32, %v1755_v24  ;;  %5048 = vmatmul.mubr.msk.f32.vlgmr.msra.gmra.mrb[12].mxu0 %vm82_vm2, %v6288_v25  ;;  %vm1913_vm3 = vcmp.gt.s32.totalorder %v6243_v53, 9 }
0x10c2   :  { %1759 = vrot.lane.b32.xlu0 %v1757_v37, %s5723_s19  ;;  %5345 = vmatpush3.bf16.msra.mxu0 %v5778_v5 }
0x10c3   :  { %5346 = vmatprep.subr.bf16.mxu0 %v7265_v0  ;;  %5069 = vmatprep.mubr.msk.f32.mxu0 %vm5719_vm1, %v7263_v4 }
0x10c4   :  { %v6299_v23 = vld [vmem:[#allocation4] sm:$0xf] }
0x10c5   :  { %5059 = vmatmul.mubr.msk.f32.vlgmr.msra.gmra.mrb[12].mxu1 %vm82_vm2, %v6299_v23 }
0x10c6   :  { %5348 = vmatpush3.bf16.msra.mxu0 %v5802_v12  ;;  %5351 = vmatpush3.bf16.msra.mxu1 %v5793_v9 }
0x10c7   :  { %5352 = vmatprep.subr.bf16.mxu1 %v7265_v0  ;;  %5080 = vmatprep.mubr.msk.f32.mxu1 %vm5719_vm1, %v7263_v4 }
0x10c8   :  { %5355 = vmatprep.subr.bf16.mxu0 %v7265_v0 }
0x10ca   :  { %5354 = vmatpush3.bf16.msra.mxu1 %v5806_v13 }
0x10cb   :  { %5361 = vmatprep.subr.bf16.mxu1 %v7265_v0 }
0x1130   :  { %v1619_v29 = vpop.permute.xlu1 %1618 }
0x1131   :  { %1621 = vst.msk [vmem:[#allocation3] sm:$0xf] %vm62_vm0, %v1619_v29 }
0x1134   :  { %v1760_v32 = vpop.permute.xlu0 %1759 }
0x1135   :  { %1762 = vst.msk [vmem:[#allocation5] sm:$0xf] %vm62_vm0, %v1760_v32 }
0x1138   :  { %v1776_v14 = vld [vmem:[#allocation3] sm:$0xf] }
0x113c   :  { %v1917_v59 = vld [vmem:[#allocation5] sm:$0xf] }
0x1194   :  { %v1846_v36 = vpop.f32.mrb[12].mxu0 }
0x1195   :  { %v1850_v40 = vadd.f32 %v4669_v34, %v1846_v36  ;;  %v5049_v48 = vpop.f32.mrb[13].mxu0 }
0x1197   :  { %5556 = vtanh.f32 %v1850_v40  ;;  %v4671_v17 = vmul.f32 -1.442695, %v1850_v40  ;;  %v6326_v40 = vsel %vm1772_vm8, 1, %v5721_v26 }
0x1198   :  { %v1987_v52 = vpop.f32.mrb[12].mxu1 }
0x1199   :  { %v1991_v1 = vadd.f32 %v4673_v50, %v1987_v52  ;;  %v5060_v51 = vpop.f32.mrb[13].mxu1 }
0x119a   :  { %v6332_v51 = vsel %vm1913_vm3, 1, %v5721_v26 }
0x119b   :  { %5558 = vtanh.f32 %v1991_v1  ;;  %v4675_v21 = vmul.f32 -1.442695, %v1991_v1 }
0x119c   :  { %5560 = vpow2.f32 %v4671_v17 }
0x119d   :  { %5562 = vpow2.f32 %v4675_v21 }
0x11a1   :  { %v5557_v39 = vpop.eup %5556 }
0x11a2   :  { %1864 = vrot.lane.b32.xlu1 %v5557_v39, %s5722_s16 }
0x11a5   :  { %v5559_v6 = vpop.eup %5558 }
0x11a6   :  { %2005 = vrot.lane.b32.xlu0 %v5559_v6, %s5722_s16  ;;  %1859 = vrot.lane.b32.xlu1 %v1776_v14, %s5720_s2  ;;  %v5561_v24 = vpop.eup %5560 }
0x11a7   :  { %v1854_v37 = vadd.f32 1.0, %v5561_v24  ;;  %v5563_v29 = vpop.eup %5562 }
0x11a8   :  { %v1995_v32 = vadd.f32 1.0, %v5563_v29 }
0x11a9   :  { %5564 = vrcp.f32 %v1854_v37 }
0x11aa   :  { %2000 = vrot.lane.b32.xlu0 %v1917_v59, %s5720_s2  ;;  %5566 = vrcp.f32 %v1995_v32 }
0x11b3   :  { %v5565_v34 = vpop.eup %5564 }
0x11b4   :  { %v5567_v50 = vpop.eup %5566 }
0x1214   :  { %v1865_v36 = vpop.permute.xlu1 %1864 }
0x1215   :  { %v1867_v48 = vmul.f32 %v5565_v34, %v1865_v36 }
0x1217   :  { %1869 = vrot.lane.b32.xlu1 %v1867_v48, %s5720_s2 }
0x1218   :  { %v2006_v52 = vpop.permute.xlu0 %2005  ;;  %v1860_v39 = vpop.permute.xlu1 %1859 }
0x1219   :  { %v2008_v1 = vmul.f32 %v5567_v50, %v2006_v52  ;;  %v1862_v6 = vmul.f32 %v5565_v34, %v1860_v39 }
0x121b   :  { %2010 = vrot.lane.b32.xlu0 %v2008_v1, %s5720_s2  ;;  %1881 = vperm.xlu1 %5459, %v6326_v40  }
0x121c   :  { %v2001_v14 = vpop.permute.xlu0 %2000 }
0x121d   :  { %v2003_v21 = vmul.f32 %v5567_v50, %v2001_v14 }
0x121f   :  { %2022 = vperm.xlu0 %5458, %v6332_v51  }
0x1289   :  { %v1870_v59 = vpop.permute.xlu1 %1869 }
0x128a   :  { %v1872_v17 = vadd.f32 %v1870_v59, %v1862_v6  ;;  %v1893_v59 = vld [vmem:[#allocation3] sm:$0xf] }
0x128c   :  { %5568 = vtanh.f32 %v1872_v17 }
0x128d   :  { %v2011_v24 = vpop.permute.xlu0 %2010 }
0x128e   :  { %v2013_v37 = vadd.f32 %v2011_v24, %v2003_v21  ;;  %v2034_v21 = vld [vmem:[#allocation5] sm:$0xf] }
0x1290   :  { %5570 = vtanh.f32 %v2013_v37 }
0x1296   :  { %v5569_v29 = vpop.eup %5568 }
0x1297   :  { %1875 = vrot.lane.b32.xlu1 %v5569_v29, %s5722_s16 }
0x129a   :  { %v5571_v32 = vpop.eup %5570  ;;  %v6341_v36 = vpop.permute.xlu1 %1881 }
0x129b   :  { %2016 = vrot.lane.b32.xlu0 %v5571_v32, %s5722_s16  ;;  %1884 = vrot.lane.b32.xlu1 %v6288_v25, %s5723_s19  ;;  %7299 = vst [vmem:[#allocation6_spill] sm:$0xff] %v6341_v36  ;;  %vm7268_vm3 = vcmp.eq.s32.totalorder %v6341_v36, 1 }
0x129e   :  { %v6343_v48 = vpop.permute.xlu0 %2022 }
0x129f   :  { %2025 = vrot.lane.b32.xlu0 %v6299_v23, %s5723_s19  ;;  %7300 = vst [vmem:[#allocation7_spill] sm:$0xff] %v6343_v48  ;;  %vm7267_vm8 = vcmp.eq.s32.totalorder %v6343_v48, 1 }
0x1309   :  { %v1876_v52 = vpop.permute.xlu1 %1875 }
0x130a   :  { %v6345_v1 = vmul.f32 %v5565_v34, %v1876_v52 }
0x130d   :  { %v2017_v39 = vpop.permute.xlu0 %2016  ;;  %v1885_v6 = vpop.permute.xlu1 %1884 }
0x130e   :  { %v1887_v14 = vsel %vm7268_vm3, %v6345_v1, %v1885_v6  ;;  %v6352_v25 = vmul.f32 %v5567_v50, %v2017_v39 }
0x130f   :  { %1889 = vrot.lane.b32.xlu1 %v1887_v14, %s5720_s2 }
0x1310   :  { %7301 = vst [vmem:[#allocation8_spill] sm:$0xff] %v6352_v25 }
0x1311   :  { %v2026_v23 = vpop.permute.xlu0 %2025 }
0x1312   :  { %v2028_v34 = vsel %vm7267_vm8, %v6352_v25, %v2026_v23  ;;  %v4677_v23 = vld [vmem:[%s7257_s0 + $0x1c] sm:$0xf] }
0x1313   :  { %2030 = vrot.lane.b32.xlu0 %v2028_v34, %s5720_s2  ;;  %1895 = vrot.lane.b32.xlu1 %v1893_v59, %s5720_s2 }
0x1317   :  { %2036 = vrot.lane.b32.xlu0 %v2034_v21, %s5720_s2  ;;  %v7321_v42 = vld [vmem:[#allocation8_spill] sm:$0xff] }
0x1381   :  { %v1890_v24 = vpop.permute.xlu1 %1889 }
0x1382   :  { %1892 = vst.msk [vmem:[#allocation2] sm:$0xf] %vm62_vm0, %v1890_v24  ;;  %v4681_v24 = vld [vmem:[%s7258_s1 + $0x20] sm:$0xf] }
0x1385   :  { %v2031_v50 = vpop.permute.xlu0 %2030  ;;  %v1896_v29 = vpop.permute.xlu1 %1895 }
0x1386   :  { %2033 = vst.msk [vmem:[#allocation4] sm:$0xf] %vm62_vm0, %v2031_v50  ;;  %v1898_v32 = vsel %vm7268_vm3, %v1872_v17, %v1896_v29  ;;  %vm2195_vm3 = vcmp.gt.s32.totalorder %v6243_v53, 8 }
0x1387   :  { %1900 = vrot.lane.b32.xlu1 %v1898_v32, %s5723_s19 }
0x1389   :  { %v2037_v52 = vpop.permute.xlu0 %2036  ;;  %v6366_v39 = vld [vmem:[#allocation2] sm:$0xf] }
0x138a   :  { %v2039_v6 = vsel %vm7267_vm8, %v2013_v37, %v2037_v52  ;;  %5070 = vmatmul.mubr.msk.f32.vlgmr.msra.gmra.mrb[14].mxu0 %vm82_vm2, %v6366_v39  ;;  %vm2054_vm8 = vcmp.gt.s32.totalorder %v6243_v53, 7 }
0x138b   :  { %2041 = vrot.lane.b32.xlu0 %v2039_v6, %s5723_s19  ;;  %5357 = vmatpush3.bf16.msra.mxu0 %v5778_v5 }
0x138c   :  { %5358 = vmatprep.subr.bf16.mxu0 %v7265_v0  ;;  %5091 = vmatprep.mubr.msk.f32.mxu0 %vm5719_vm1, %v7263_v4 }
0x138d   :  { %v6377_v17 = vld [vmem:[#allocation4] sm:$0xf] }
0x138e   :  { %5081 = vmatmul.mubr.msk.f32.vlgmr.msra.gmra.mrb[14].mxu1 %vm82_vm2, %v6377_v17 }
0x138f   :  { %5360 = vmatpush3.bf16.msra.mxu0 %v5802_v12  ;;  %5363 = vmatpush3.bf16.msra.mxu1 %v5793_v9 }
0x1390   :  { %5364 = vmatprep.subr.bf16.mxu1 %v7265_v0  ;;  %5102 = vmatprep.mubr.msk.f32.mxu1 %vm5719_vm1, %v7263_v4 }
0x1391   :  { %5367 = vmatprep.subr.bf16.mxu0 %v7265_v0 }
0x1393   :  { %5366 = vmatpush3.bf16.msra.mxu1 %v5806_v13 }
0x1394   :  { %5373 = vmatprep.subr.bf16.mxu1 %v7265_v0 }
0x13f9   :  { %v1901_v37 = vpop.permute.xlu1 %1900 }
0x13fa   :  { %1903 = vst.msk [vmem:[#allocation3] sm:$0xf] %vm62_vm0, %v1901_v37 }
0x13fd   :  { %v2042_v14 = vpop.permute.xlu0 %2041 }
0x13fe   :  { %2044 = vst.msk [vmem:[#allocation5] sm:$0xf] %vm62_vm0, %v2042_v14 }
0x1401   :  { %v2058_v37 = vld [vmem:[#allocation3] sm:$0xf] }
0x1405   :  { %v2199_v14 = vld [vmem:[#allocation5] sm:$0xf] }
0x145d   :  { %v2128_v34 = vpop.f32.mrb[14].mxu0 }
0x145e   :  { %v2132_v59 = vadd.f32 %v4677_v23, %v2128_v34  ;;  %v5071_v21 = vpop.f32.mrb[15].mxu0 }
0x1460   :  { %5572 = vtanh.f32 %v2132_v59  ;;  %v4679_v23 = vmul.f32 -1.442695, %v2132_v59  ;;  %v6404_v59 = vsel %vm2054_vm8, 1, %v5721_v26 }
0x1461   :  { %v2269_v50 = vpop.f32.mrb[14].mxu1 }
0x1462   :  { %v2273_v29 = vadd.f32 %v4681_v24, %v2269_v50  ;;  %v5082_v32 = vpop.f32.mrb[15].mxu1 }
0x1464   :  { %5574 = vtanh.f32 %v2273_v29  ;;  %v4683_v34 = vmul.f32 -1.442695, %v2273_v29 }
0x1465   :  { %5576 = vpow2.f32 %v4679_v23 }
0x1466   :  { %5578 = vpow2.f32 %v4683_v34 }
0x146a   :  { %v5573_v52 = vpop.eup %5572 }
0x146b   :  { %2146 = vrot.lane.b32.xlu1 %v5573_v52, %s5722_s16 }
0x146e   :  { %v5575_v6 = vpop.eup %5574 }
0x146f   :  { %2287 = vrot.lane.b32.xlu0 %v5575_v6, %s5722_s16  ;;  %2141 = vrot.lane.b32.xlu1 %v2058_v37, %s5720_s2  ;;  %v5577_v21 = vpop.eup %5576 }
0x1470   :  { %v2136_v24 = vadd.f32 1.0, %v5577_v21  ;;  %v5579_v50 = vpop.eup %5578 }
0x1471   :  { %v2277_v32 = vadd.f32 1.0, %v5579_v50 }
0x1472   :  { %5580 = vrcp.f32 %v2136_v24 }
0x1473   :  { %2282 = vrot.lane.b32.xlu0 %v2199_v14, %s5720_s2  ;;  %5582 = vrcp.f32 %v2277_v32  ;;  %v6410_v14 = vsel %vm2195_vm3, 1, %v5721_v26 }
0x147c   :  { %v5581_v52 = vpop.eup %5580 }
0x147d   :  { %v5583_v6 = vpop.eup %5582 }
0x14dd   :  { %v2147_v4 = vpop.permute.xlu1 %2146 }
0x14de   :  { %v2149_v0 = vmul.f32 %v5581_v52, %v2147_v4 }
0x14e0   :  { %2151 = vrot.lane.b32.xlu1 %v2149_v0, %s5720_s2 }
0x14e1   :  { %v2288_v37 = vpop.permute.xlu0 %2287  ;;  %v2142_v4 = vpop.permute.xlu1 %2141 }
0x14e2   :  { %v2290_v29 = vmul.f32 %v5583_v6, %v2288_v37  ;;  %v2144_v23 = vmul.f32 %v5581_v52, %v2142_v4 }
0x14e4   :  { %2292 = vrot.lane.b32.xlu0 %v2290_v29, %s5720_s2  ;;  %2163 = vperm.xlu1 %5459, %v6404_v59  }
0x14e5   :  { %v2283_v0 = vpop.permute.xlu0 %2282 }
0x14e6   :  { %v2285_v24 = vmul.f32 %v5583_v6, %v2283_v0 }
0x14e8   :  { %2304 = vperm.xlu0 %5458, %v6410_v14  }
0x1552   :  { %v2152_v34 = vpop.permute.xlu1 %2151 }
0x1553   :  { %v2154_v21 = vadd.f32 %v2152_v34, %v2144_v23 }
0x1555   :  { %5584 = vtanh.f32 %v2154_v21 }
0x1556   :  { %v2293_v50 = vpop.permute.xlu0 %2292 }
0x1557   :  { %v2295_v32 = vadd.f32 %v2293_v50, %v2285_v24  ;;  %v2175_v50 = vld [vmem:[#allocation3] sm:$0xf] }
0x1559   :  { %5586 = vtanh.f32 %v2295_v32 }
0x155f   :  { %v5585_v53 = vpop.eup %5584 }
0x1560   :  { %2157 = vrot.lane.b32.xlu1 %v5585_v53, %s5722_s16  ;;  %v2316_v53 = vld [vmem:[#allocation5] sm:$0xf] }
0x1563   :  { %v5587_v37 = vpop.eup %5586  ;;  %v6419_v26 = vpop.permute.xlu1 %2163 }
0x1564   :  { %2298 = vrot.lane.b32.xlu0 %v5587_v37, %s5722_s16  ;;  %2166 = vrot.lane.b32.xlu1 %v6366_v39, %s5723_s19  ;;  %7302 = vst [vmem:[#allocation9_spill] sm:$0xff] %v6419_v26  ;;  %vm7277_vm3 = vcmp.eq.s32.totalorder %v6419_v26, 1 }
0x1567   :  { %v6421_v29 = vpop.permute.xlu0 %2304 }
0x1568   :  { %2307 = vrot.lane.b32.xlu0 %v6377_v17, %s5723_s19  ;;  %7303 = vst [vmem:[#allocation10_spill] sm:$0xff] %v6421_v29  ;;  %vm7276_vm8 = vcmp.eq.s32.totalorder %v6421_v29, 1 }
0x15d2   :  { %v2158_v4 = vpop.permute.xlu1 %2157 }
0x15d3   :  { %v6423_v23 = vmul.f32 %v5581_v52, %v2158_v4 }
0x15d5   :  { %7304 = vst [vmem:[#allocation11_spill] sm:$0xff] %v6423_v23 }
0x15d6   :  { %v2299_v0 = vpop.permute.xlu0 %2298  ;;  %v2167_v34 = vpop.permute.xlu1 %2166 }
0x15d7   :  { %v2169_v24 = vsel %vm7277_vm3, %v6423_v23, %v2167_v34  ;;  %v6430_v39 = vmul.f32 %v5583_v6, %v2299_v0 }
0x15d8   :  { %2171 = vrot.lane.b32.xlu1 %v2169_v24, %s5720_s2 }
0x15d9   :  { %7305 = vst [vmem:[#allocation12_spill] sm:$0xff] %v6430_v39 }
0x15da   :  { %v2308_v17 = vpop.permute.xlu0 %2307 }
0x15db   :  { %v2310_v52 = vsel %vm7276_vm8, %v6430_v39, %v2308_v17 }
0x15dc   :  { %2312 = vrot.lane.b32.xlu0 %v2310_v52, %s5720_s2  ;;  %2177 = vrot.lane.b32.xlu1 %v2175_v50, %s5720_s2  ;;  %v7306_v52 = vmov 0.0|0.0   ;;  %v7307_v50 = vmov 0.0  }
0x15e0   :  { %2318 = vrot.lane.b32.xlu0 %v2316_v53, %s5720_s2 }
0x164a   :  { %v2172_v37 = vpop.permute.xlu1 %2171 }
0x164b   :  { %2174 = vst.msk [vmem:[#allocation2] sm:$0xf] %vm62_vm0, %v2172_v37  ;;  %v4685_v37 = vld [vmem:[%s7257_s0 + $0x20] sm:$0xf] }
0x164e   :  { %v2313_v6 = vpop.permute.xlu0 %2312  ;;  %v2178_v4 = vpop.permute.xlu1 %2177 }
0x164f   :  { %2315 = vst.msk [vmem:[#allocation4] sm:$0xf] %vm62_vm0, %v2313_v6  ;;  %v2180_v0 = vsel %vm7277_vm3, %v2154_v21, %v2178_v4 }
0x1650   :  { %2182 = vrot.lane.b32.xlu1 %v2180_v0, %s5723_s19 }
0x1652   :  { %v2319_v34 = vpop.permute.xlu0 %2318  ;;  %v6444_v24 = vld [vmem:[#allocation2] sm:$0xf] }
0x1653   :  { %v2321_v17 = vsel %vm7276_vm8, %v2295_v32, %v2319_v34  ;;  %5092 = vmatmul.mubr.msk.f32.vlgmr.msra.gmra.mrb[16].mxu0 %vm82_vm2, %v6444_v24  ;;  %v4689_v34 = vld [vmem:[%s7258_s1 + $0x1c] sm:$0xf] }
0x1654   :  { %2323 = vrot.lane.b32.xlu0 %v2321_v17, %s5723_s19  ;;  %5369 = vmatpush3.bf16.msra.mxu0 %v5778_v5 }
0x1655   :  { %5370 = vmatprep.subr.bf16.mxu0 %v7306_v52  ;;  %5113 = vmatprep.mubr.msk.f32.mxu0 %vm5719_vm1, %v7307_v50 }
0x1656   :  { %v6455_v21 = vld [vmem:[#allocation4] sm:$0xf] }
0x1657   :  { %5103 = vmatmul.mubr.msk.f32.vlgmr.msra.gmra.mrb[16].mxu1 %vm82_vm2, %v6455_v21 }
0x1658   :  { %5372 = vmatpush3.bf16.msra.mxu0 %v5802_v12  ;;  %5375 = vmatpush3.bf16.msra.mxu1 %v5793_v9 }
0x1659   :  { %5376 = vmatprep.subr.bf16.mxu1 %v7306_v52  ;;  %5124 = vmatprep.mubr.msk.f32.mxu1 %vm5719_vm1, %v7307_v50 }
0x165a   :  { %5379 = vmatprep.subr.bf16.mxu0 %v7306_v52 }
0x165c   :  { %5378 = vmatpush3.bf16.msra.mxu1 %v5806_v13 }
0x165d   :  { %5385 = vmatprep.subr.bf16.mxu1 %v7306_v52 }
0x16c2   :  { %v2183_v32 = vpop.permute.xlu1 %2182 }
0x16c3   :  { %2185 = vst.msk [vmem:[#allocation3] sm:$0xf] %vm62_vm0, %v2183_v32 }
0x16c6   :  { %v2324_v53 = vpop.permute.xlu0 %2323 }
0x16c7   :  { %2326 = vst.msk [vmem:[#allocation5] sm:$0xf] %vm62_vm0, %v2324_v53 }
0x16ca   :  { %v2340_v26 = vld [vmem:[#allocation3] sm:$0xf] }
0x1726   :  { %v2410_v6 = vpop.f32.mrb[16].mxu0 }
0x1727   :  { %v2414_v4 = vadd.f32 %v4685_v37, %v2410_v6  ;;  %v5093_v0 = vpop.f32.mrb[17].mxu0  ;;  %v2481_v37 = vld [vmem:[#allocation5] sm:$0xf] }
0x1729   :  { %5588 = vtanh.f32 %v2414_v4  ;;  %v4687_v6 = vmul.f32 -1.442695, %v2414_v4 }
0x172a   :  { %v2551_v17 = vpop.f32.mrb[16].mxu1 }
0x172b   :  { %v2555_v29 = vadd.f32 %v4689_v34, %v2551_v17  ;;  %v5104_v39 = vpop.f32.mrb[17].mxu1 }
0x172d   :  { %5590 = vtanh.f32 %v2555_v29  ;;  %v4691_v0 = vmul.f32 -1.442695, %v2555_v29 }
0x172e   :  { %5592 = vpow2.f32 %v4687_v6 }
0x172f   :  { %5594 = vpow2.f32 %v4691_v0 }
0x1733   :  { %v5589_v32 = vpop.eup %5588 }
0x1734   :  { %2428 = vrot.lane.b32.xlu1 %v5589_v32, %s5722_s16 }
0x1737   :  { %v5591_v53 = vpop.eup %5590 }
0x1738   :  { %2569 = vrot.lane.b32.xlu0 %v5591_v53, %s5722_s16  ;;  %2423 = vrot.lane.b32.xlu1 %v2340_v26, %s5720_s2  ;;  %v5593_v23 = vpop.eup %5592 }
0x1739   :  { %v2418_v34 = vadd.f32 1.0, %v5593_v23  ;;  %v5595_v39 = vpop.eup %5594 }
0x173a   :  { %v2559_v17 = vadd.f32 1.0, %v5595_v39 }
0x173b   :  { %5596 = vrcp.f32 %v2418_v34 }
0x173c   :  { %2564 = vrot.lane.b32.xlu0 %v2481_v37, %s5720_s2  ;;  %5598 = vrcp.f32 %v2559_v17 }
0x1745   :  { %v5597_v32 = vpop.eup %5596 }
0x1746   :  { %v5599_v53 = vpop.eup %5598 }
0x17a6   :  { %v2429_v48 = vpop.permute.xlu1 %2428 }
0x17a7   :  { %v2431_v25 = vmul.f32 %v5597_v32, %v2429_v48 }
0x17a9   :  { %2433 = vrot.lane.b32.xlu1 %v2431_v25, %s5720_s2 }
0x17aa   :  { %v2570_v26 = vpop.permute.xlu0 %2569  ;;  %v2424_v29 = vpop.permute.xlu1 %2423 }
0x17ab   :  { %v2572_v36 = vmul.f32 %v5599_v53, %v2570_v26  ;;  %v2426_v23 = vmul.f32 %v5597_v32, %v2424_v29 }
0x17ad   :  { %2574 = vrot.lane.b32.xlu0 %v2572_v36, %s5720_s2  ;;  %2445 = vperm.xlu1 %5459, %v6410_v14  }
0x17ae   :  { %v2565_v4 = vpop.permute.xlu0 %2564 }
0x17af   :  { %v2567_v0 = vmul.f32 %v5599_v53, %v2565_v4  ;;  %v2457_v4 = vld [vmem:[#allocation3] sm:$0xf] }
0x17b1   :  { %2586 = vperm.xlu0 %5458, %v6404_v59  }
0x181b   :  { %v2434_v37 = vpop.permute.xlu1 %2433 }
0x181c   :  { %v2436_v6 = vadd.f32 %v2434_v37, %v2426_v23  ;;  %v2598_v37 = vld [vmem:[#allocation5] sm:$0xf] }
0x181e   :  { %5600 = vtanh.f32 %v2436_v6 }
0x181f   :  { %v2575_v34 = vpop.permute.xlu0 %2574 }
0x1820   :  { %v2577_v48 = vadd.f32 %v2575_v34, %v2567_v0 }
0x1822   :  { %5602 = vtanh.f32 %v2577_v48 }
0x1828   :  { %v5601_v25 = vpop.eup %5600 }
0x1829   :  { %2439 = vrot.lane.b32.xlu1 %v5601_v25, %s5722_s16 }
0x182c   :  { %v5603_v39 = vpop.eup %5602  ;;  %v6489_v36 = vpop.permute.xlu1 %2445 }
0x182d   :  { %2580 = vrot.lane.b32.xlu0 %v5603_v39, %s5722_s16  ;;  %2448 = vrot.lane.b32.xlu1 %v6444_v24, %s5723_s19  ;;  %vm7281_vm8 = vcmp.eq.s32.totalorder %v6489_v36, 1 }
0x1830   :  { %v6491_v59 = vpop.permute.xlu0 %2586 }
0x1831   :  { %2589 = vrot.lane.b32.xlu0 %v6455_v21, %s5723_s19  ;;  %7308 = vst [vmem:[#allocation13_spill] sm:$0xff] %v6491_v59  ;;  %vm7280_vm3 = vcmp.eq.s32.totalorder %v6491_v59, 1 }
0x189b   :  { %v2440_v14 = vpop.permute.xlu1 %2439 }
0x189c   :  { %v6493_v17 = vmul.f32 %v5597_v32, %v2440_v14 }
0x189f   :  { %v2581_v26 = vpop.permute.xlu0 %2580  ;;  %v2449_v29 = vpop.permute.xlu1 %2448 }
0x18a0   :  { %v2451_v23 = vsel %vm7281_vm8, %v6493_v17, %v2449_v29  ;;  %v6500_v24 = vmul.f32 %v5599_v53, %v2581_v26 }
0x18a1   :  { %2453 = vrot.lane.b32.xlu1 %v2451_v23, %s5720_s2  ;;  %v4693_v23 = vld [vmem:[%s7257_s0 + $0x24] sm:$0xf] }
0x18a2   :  { %7309 = vst [vmem:[#allocation14_spill] sm:$0xff] %v6500_v24 }
0x18a3   :  { %v2590_v21 = vpop.permute.xlu0 %2589 }
0x18a4   :  { %v2592_v32 = vsel %vm7280_vm3, %v6500_v24, %v2590_v21 }
0x18a5   :  { %2594 = vrot.lane.b32.xlu0 %v2592_v32, %s5720_s2  ;;  %2459 = vrot.lane.b32.xlu1 %v2457_v4, %s5720_s2 }
0x18a9   :  { %2600 = vrot.lane.b32.xlu0 %v2598_v37, %s5720_s2  ;;  %v4697_v37 = vld [vmem:[%s7258_s1 + $0x18] sm:$0xf] }
0x1913   :  { %v2454_v0 = vpop.permute.xlu1 %2453 }
0x1914   :  { %2456 = vst.msk [vmem:[#allocation2] sm:$0xf] %vm62_vm0, %v2454_v0 }
0x1917   :  { %v2595_v53 = vpop.permute.xlu0 %2594  ;;  %v2460_v34 = vpop.permute.xlu1 %2459 }
0x1918   :  { %2597 = vst.msk [vmem:[#allocation4] sm:$0xf] %vm62_vm0, %v2595_v53  ;;  %v2462_v25 = vsel %vm7281_vm8, %v2436_v6, %v2460_v34 }
0x1919   :  { %2464 = vrot.lane.b32.xlu1 %v2462_v25, %s5723_s19 }
0x191b   :  { %v2601_v39 = vpop.permute.xlu0 %2600  ;;  %v6514_v14 = vld [vmem:[#allocation2] sm:$0xf] }
0x191c   :  { %v2603_v26 = vsel %vm7280_vm3, %v2577_v48, %v2601_v39  ;;  %5114 = vmatmul.mubr.msk.f32.vlgmr.msra.gmra.mrb[18].mxu0 %vm82_vm2, %v6514_v14 }
0x191d   :  { %2605 = vrot.lane.b32.xlu0 %v2603_v26, %s5723_s19  ;;  %5381 = vmatpush3.bf16.msra.mxu0 %v5778_v5 }
0x191e   :  { %5382 = vmatprep.subr.bf16.mxu0 %v7306_v52  ;;  %5135 = vmatprep.mubr.msk.f32.mxu0 %vm5719_vm1, %v7307_v50 }
0x191f   :  { %v6525_v6 = vld [vmem:[#allocation4] sm:$0xf] }
0x1920   :  { %5125 = vmatmul.mubr.msk.f32.vlgmr.msra.gmra.mrb[18].mxu1 %vm82_vm2, %v6525_v6 }
0x1921   :  { %5384 = vmatpush3.bf16.msra.mxu0 %v5802_v12  ;;  %5387 = vmatpush3.bf16.msra.mxu1 %v5793_v9 }
0x1922   :  { %5388 = vmatprep.subr.bf16.mxu1 %v7306_v52  ;;  %5146 = vmatprep.mubr.msk.f32.mxu1 %vm5719_vm1, %v7307_v50 }
0x1923   :  { %5391 = vmatprep.subr.bf16.mxu0 %v7306_v52 }
0x1925   :  { %5390 = vmatpush3.bf16.msra.mxu1 %v5806_v13 }
0x1926   :  { %5397 = vmatprep.subr.bf16.mxu1 %v7306_v52 }
0x198b   :  { %v2465_v48 = vpop.permute.xlu1 %2464 }
0x198c   :  { %2467 = vst.msk [vmem:[#allocation3] sm:$0xf] %vm62_vm0, %v2465_v48 }
0x198f   :  { %v2606_v29 = vpop.permute.xlu0 %2605 }
0x1990   :  { %2608 = vst.msk [vmem:[#allocation5] sm:$0xf] %vm62_vm0, %v2606_v29 }
0x1993   :  { %v2622_v26 = vld [vmem:[#allocation3] sm:$0xf] }
0x1997   :  { %v2763_v48 = vld [vmem:[#allocation5] sm:$0xf] }
0x19ef   :  { %v2692_v21 = vpop.f32.mrb[18].mxu0 }
0x19f0   :  { %v2696_v32 = vadd.f32 %v4693_v23, %v2692_v21  ;;  %v5115_v4 = vpop.f32.mrb[19].mxu0 }
0x19f2   :  { %5604 = vtanh.f32 %v2696_v32  ;;  %v4695_v29 = vmul.f32 -1.442695, %v2696_v32 }
0x19f3   :  { %v2833_v0 = vpop.f32.mrb[18].mxu1 }
0x19f4   :  { %v2837_v53 = vadd.f32 %v4697_v37, %v2833_v0  ;;  %v5126_v34 = vpop.f32.mrb[19].mxu1 }
0x19f6   :  { %5606 = vtanh.f32 %v2837_v53  ;;  %v4699_v23 = vmul.f32 -1.442695, %v2837_v53 }
0x19f7   :  { %5608 = vpow2.f32 %v4695_v29 }
0x19f8   :  { %5610 = vpow2.f32 %v4699_v23 }
0x19fc   :  { %v5605_v25 = vpop.eup %5604 }
0x19fd   :  { %2710 = vrot.lane.b32.xlu1 %v5605_v25, %s5722_s16 }
0x1a00   :  { %v5607_v39 = vpop.eup %5606 }
0x1a01   :  { %2851 = vrot.lane.b32.xlu0 %v5607_v39, %s5722_s16  ;;  %2705 = vrot.lane.b32.xlu1 %v2622_v26, %s5720_s2  ;;  %v5609_v21 = vpop.eup %5608 }
0x1a02   :  { %v2700_v4 = vadd.f32 1.0, %v5609_v21  ;;  %v5611_v37 = vpop.eup %5610 }
0x1a03   :  { %v2841_v0 = vadd.f32 1.0, %v5611_v37 }
0x1a04   :  { %5612 = vrcp.f32 %v2700_v4 }
0x1a05   :  { %2846 = vrot.lane.b32.xlu0 %v2763_v48, %s5720_s2  ;;  %5614 = vrcp.f32 %v2841_v0 }
0x1a0e   :  { %v5613_v34 = vpop.eup %5612 }
0x1a0f   :  { %v5615_v39 = vpop.eup %5614 }
0x1a6f   :  { %v2711_v25 = vpop.permute.xlu1 %2710 }
0x1a70   :  { %v2713_v59 = vmul.f32 %v5613_v34, %v2711_v25 }
0x1a72   :  { %2715 = vrot.lane.b32.xlu1 %v2713_v59, %s5720_s2 }
0x1a73   :  { %v2852_v26 = vpop.permute.xlu0 %2851  ;;  %v2706_v32 = vpop.permute.xlu1 %2705 }
0x1a74   :  { %v2854_v24 = vmul.f32 %v5615_v39, %v2852_v26  ;;  %v2708_v53 = vmul.f32 %v5613_v34, %v2706_v32 }
0x1a76   :  { %2856 = vrot.lane.b32.xlu0 %v2854_v24, %s5720_s2  ;;  %2727 = vperm.xlu1 %5459, %v6332_v51  }
0x1a77   :  { %v2847_v48 = vpop.permute.xlu0 %2846 }
0x1a78   :  { %v2849_v21 = vmul.f32 %v5615_v39, %v2847_v48  ;;  %v2739_v48 = vld [vmem:[#allocation3] sm:$0xf] }
0x1a7a   :  { %2868 = vperm.xlu0 %5458, %v6326_v40  }
0x1ae4   :  { %v2716_v29 = vpop.permute.xlu1 %2715 }
0x1ae5   :  { %v2718_v23 = vadd.f32 %v2716_v29, %v2708_v53  ;;  %v2880_v29 = vld [vmem:[#allocation5] sm:$0xf] }
0x1ae7   :  { %5616 = vtanh.f32 %v2718_v23 }
0x1ae8   :  { %v2857_v4 = vpop.permute.xlu0 %2856 }
0x1ae9   :  { %v2859_v37 = vadd.f32 %v2857_v4, %v2849_v21 }
0x1aeb   :  { %5618 = vtanh.f32 %v2859_v37 }
0x1af1   :  { %v5617_v59 = vpop.eup %5616 }
0x1af2   :  { %2721 = vrot.lane.b32.xlu1 %v5617_v59, %s5722_s16 }
0x1af5   :  { %v5619_v0 = vpop.eup %5618  ;;  %v6559_v40 = vpop.permute.xlu1 %2727 }
0x1af6   :  { %2862 = vrot.lane.b32.xlu0 %v5619_v0, %s5722_s16  ;;  %2730 = vrot.lane.b32.xlu1 %v6514_v14, %s5723_s19  ;;  %vm7285_vm3 = vcmp.eq.s32.totalorder %v6559_v40, 1 }
0x1af9   :  { %v6561_v51 = vpop.permute.xlu0 %2868 }
0x1afa   :  { %2871 = vrot.lane.b32.xlu0 %v6525_v6, %s5723_s19  ;;  %7310 = vst [vmem:[#allocation15_spill] sm:$0xff] %v6561_v51  ;;  %vm7284_vm8 = vcmp.eq.s32.totalorder %v6561_v51, 1 }
0x1b64   :  { %v2722_v24 = vpop.permute.xlu1 %2721 }
0x1b65   :  { %v6563_v25 = vmul.f32 %v5613_v34, %v2722_v24 }
0x1b68   :  { %v2863_v26 = vpop.permute.xlu0 %2862  ;;  %v2731_v32 = vpop.permute.xlu1 %2730 }
0x1b69   :  { %v2733_v53 = vsel %vm7285_vm3, %v6563_v25, %v2731_v32  ;;  %v6570_v14 = vmul.f32 %v5615_v39, %v2863_v26 }
0x1b6a   :  { %2735 = vrot.lane.b32.xlu1 %v2733_v53, %s5720_s2  ;;  %v4701_v53 = vld [vmem:[%s7257_s0 + $0x28] sm:$0xf] }
0x1b6b   :  { %7311 = vst [vmem:[#allocation16_spill] sm:$0xff] %v6570_v14 }
0x1b6c   :  { %v2872_v6 = vpop.permute.xlu0 %2871 }
0x1b6d   :  { %v2874_v34 = vsel %vm7284_vm8, %v6570_v14, %v2872_v6 }
0x1b6e   :  { %2876 = vrot.lane.b32.xlu0 %v2874_v34, %s5720_s2  ;;  %2741 = vrot.lane.b32.xlu1 %v2739_v48, %s5720_s2 }
0x1b72   :  { %2882 = vrot.lane.b32.xlu0 %v2880_v29, %s5720_s2  ;;  %v4705_v29 = vld [vmem:[%s7258_s1 + $0x14] sm:$0xf] }
0x1bdc   :  { %v2736_v21 = vpop.permute.xlu1 %2735 }
0x1bdd   :  { %2738 = vst.msk [vmem:[#allocation2] sm:$0xf] %vm62_vm0, %v2736_v21 }
0x1be0   :  { %v2877_v39 = vpop.permute.xlu0 %2876  ;;  %v2742_v4 = vpop.permute.xlu1 %2741 }
0x1be1   :  { %2879 = vst.msk [vmem:[#allocation4] sm:$0xf] %vm62_vm0, %v2877_v39  ;;  %v2744_v59 = vsel %vm7285_vm3, %v2718_v23, %v2742_v4 }
0x1be2   :  { %2746 = vrot.lane.b32.xlu1 %v2744_v59, %s5723_s19 }
0x1be4   :  { %v2883_v0 = vpop.permute.xlu0 %2882  ;;  %v6584_v24 = vld [vmem:[#allocation2] sm:$0xf] }
0x1be5   :  { %v2885_v26 = vsel %vm7284_vm8, %v2859_v37, %v2883_v0  ;;  %5136 = vmatmul.mubr.msk.f32.vlgmr.msra.gmra.mrb[20].mxu0 %vm82_vm2, %v6584_v24 }
0x1be6   :  { %2887 = vrot.lane.b32.xlu0 %v2885_v26, %s5723_s19  ;;  %5393 = vmatpush3.bf16.msra.mxu0 %v5778_v5 }
0x1be7   :  { %5394 = vmatprep.subr.bf16.mxu0 %v7306_v52  ;;  %5157 = vmatprep.mubr.msk.f32.mxu0 %vm5719_vm1, %v7307_v50 }
0x1be8   :  { %v6595_v23 = vld [vmem:[#allocation4] sm:$0xf] }
0x1be9   :  { %5147 = vmatmul.mubr.msk.f32.vlgmr.msra.gmra.mrb[20].mxu1 %vm82_vm2, %v6595_v23 }
0x1bea   :  { %5396 = vmatpush3.bf16.msra.mxu0 %v5802_v12  ;;  %5399 = vmatpush3.bf16.msra.mxu1 %v5793_v9 }
0x1beb   :  { %5400 = vmatprep.subr.bf16.mxu1 %v7306_v52  ;;  %5168 = vmatprep.mubr.msk.f32.mxu1 %vm5719_vm1, %v7307_v50 }
0x1bec   :  { %5403 = vmatprep.subr.bf16.mxu0 %v7306_v52 }
0x1bee   :  { %5402 = vmatpush3.bf16.msra.mxu1 %v5806_v13 }
0x1bef   :  { %5409 = vmatprep.subr.bf16.mxu1 %v7306_v52 }
0x1c54   :  { %v2747_v37 = vpop.permute.xlu1 %2746 }
0x1c55   :  { %2749 = vst.msk [vmem:[#allocation3] sm:$0xf] %vm62_vm0, %v2747_v37 }
0x1c58   :  { %v2888_v32 = vpop.permute.xlu0 %2887 }
0x1c59   :  { %2890 = vst.msk [vmem:[#allocation5] sm:$0xf] %vm62_vm0, %v2888_v32 }
0x1c5c   :  { %v2904_v26 = vld [vmem:[#allocation3] sm:$0xf] }
0x1c60   :  { %v3045_v37 = vld [vmem:[#allocation5] sm:$0xf] }
0x1cb8   :  { %v2974_v6 = vpop.f32.mrb[20].mxu0 }
0x1cb9   :  { %v2978_v34 = vadd.f32 %v4701_v53, %v2974_v6  ;;  %v5137_v48 = vpop.f32.mrb[21].mxu0 }
0x1cbb   :  { %5620 = vtanh.f32 %v2978_v34  ;;  %v4703_v32 = vmul.f32 -1.442695, %v2978_v34 }
0x1cbc   :  { %v3115_v21 = vpop.f32.mrb[20].mxu1 }
0x1cbd   :  { %v3119_v39 = vadd.f32 %v4705_v29, %v3115_v21  ;;  %v5148_v4 = vpop.f32.mrb[21].mxu1 }
0x1cbf   :  { %5622 = vtanh.f32 %v3119_v39  ;;  %v4707_v53 = vmul.f32 -1.442695, %v3119_v39 }
0x1cc0   :  { %5624 = vpow2.f32 %v4703_v32 }
0x1cc1   :  { %5626 = vpow2.f32 %v4707_v53 }
0x1cc5   :  { %v5621_v59 = vpop.eup %5620 }
0x1cc6   :  { %2992 = vrot.lane.b32.xlu1 %v5621_v59, %s5722_s16 }
0x1cc9   :  { %v5623_v0 = vpop.eup %5622 }
0x1cca   :  { %3133 = vrot.lane.b32.xlu0 %v5623_v0, %s5722_s16  ;;  %2987 = vrot.lane.b32.xlu1 %v2904_v26, %s5720_s2  ;;  %v5625_v6 = vpop.eup %5624 }
0x1ccb   :  { %v2982_v48 = vadd.f32 1.0, %v5625_v6  ;;  %v5627_v29 = vpop.eup %5626 }
0x1ccc   :  { %v3123_v21 = vadd.f32 1.0, %v5627_v29 }
0x1ccd   :  { %5628 = vrcp.f32 %v2982_v48 }
0x1cce   :  { %3128 = vrot.lane.b32.xlu0 %v3045_v37, %s5720_s2  ;;  %5630 = vrcp.f32 %v3123_v21 }
0x1cd7   :  { %v5629_v4 = vpop.eup %5628 }
0x1cd8   :  { %v5631_v0 = vpop.eup %5630 }
0x1d38   :  { %v2993_v59 = vpop.permute.xlu1 %2992 }
0x1d39   :  { %v2995_v51 = vmul.f32 %v5629_v4, %v2993_v59 }
0x1d3b   :  { %2997 = vrot.lane.b32.xlu1 %v2995_v51, %s5720_s2 }
0x1d3c   :  { %v3134_v26 = vpop.permute.xlu0 %3133  ;;  %v2988_v34 = vpop.permute.xlu1 %2987 }
0x1d3d   :  { %v3136_v14 = vmul.f32 %v5631_v0, %v3134_v26  ;;  %v2990_v39 = vmul.f32 %v5629_v4, %v2988_v34 }
0x1d3f   :  { %3138 = vrot.lane.b32.xlu0 %v3136_v14, %s5720_s2  ;;  %3009 = vperm.xlu1 %5459, %v6254_v16  }
0x1d40   :  { %v3129_v37 = vpop.permute.xlu0 %3128 }
0x1d41   :  { %v3131_v6 = vmul.f32 %v5631_v0, %v3129_v37  ;;  %v3021_v37 = vld [vmem:[#allocation3] sm:$0xf] }
0x1d43   :  { %3150 = vperm.xlu0 %5458, %v6248_v11  }
0x1dad   :  { %v2998_v32 = vpop.permute.xlu1 %2997 }
0x1dae   :  { %v3000_v53 = vadd.f32 %v2998_v32, %v2990_v39  ;;  %v3162_v32 = vld [vmem:[#allocation5] sm:$0xf] }
0x1db0   :  { %5632 = vtanh.f32 %v3000_v53 }
0x1db1   :  { %v3139_v48 = vpop.permute.xlu0 %3138 }
0x1db2   :  { %v3141_v29 = vadd.f32 %v3139_v48, %v3131_v6 }
0x1db4   :  { %5634 = vtanh.f32 %v3141_v29 }
0x1dba   :  { %v5633_v51 = vpop.eup %5632 }
0x1dbb   :  { %3003 = vrot.lane.b32.xlu1 %v5633_v51, %s5722_s16 }
0x1dbe   :  { %v5635_v21 = vpop.eup %5634  ;;  %v6629_v11 = vpop.permute.xlu1 %3009 }
0x1dbf   :  { %3144 = vrot.lane.b32.xlu0 %v5635_v21, %s5722_s16  ;;  %3012 = vrot.lane.b32.xlu1 %v6584_v24, %s5723_s19  ;;  %vm7289_vm8 = vcmp.eq.s32.totalorder %v6629_v11, 1 }
0x1dc2   :  { %v6631_v16 = vpop.permute.xlu0 %3150 }
0x1dc3   :  { %3153 = vrot.lane.b32.xlu0 %v6595_v23, %s5723_s19  ;;  %7312 = vst [vmem:[#allocation17_spill] sm:$0xff] %v6631_v16  ;;  %vm7288_vm3 = vcmp.eq.s32.totalorder %v6631_v16, 1 }
0x1e2d   :  { %v3004_v14 = vpop.permute.xlu1 %3003 }
0x1e2e   :  { %v6633_v59 = vmul.f32 %v5629_v4, %v3004_v14 }
0x1e31   :  { %v3145_v26 = vpop.permute.xlu0 %3144  ;;  %v3013_v34 = vpop.permute.xlu1 %3012 }
0x1e32   :  { %v3015_v39 = vsel %vm7289_vm8, %v6633_v59, %v3013_v34  ;;  %v6640_v24 = vmul.f32 %v5631_v0, %v3145_v26 }
0x1e33   :  { %3017 = vrot.lane.b32.xlu1 %v3015_v39, %s5720_s2  ;;  %v4709_v39 = vld [vmem:[%s7257_s0 + $0x2c] sm:$0xf] }
0x1e34   :  { %7313 = vst [vmem:[#allocation18_spill] sm:$0xff] %v6640_v24 }
0x1e35   :  { %v3154_v23 = vpop.permute.xlu0 %3153 }
0x1e36   :  { %v3156_v4 = vsel %vm7288_vm3, %v6640_v24, %v3154_v23 }
0x1e37   :  { %3158 = vrot.lane.b32.xlu0 %v3156_v4, %s5720_s2  ;;  %3023 = vrot.lane.b32.xlu1 %v3021_v37, %s5720_s2 }
0x1e3b   :  { %3164 = vrot.lane.b32.xlu0 %v3162_v32, %s5720_s2  ;;  %v4713_v32 = vld [vmem:[%s7258_s1 + $0x10] sm:$0xf] }
0x1ea5   :  { %v3018_v6 = vpop.permute.xlu1 %3017 }
0x1ea6   :  { %3020 = vst.msk [vmem:[#allocation2] sm:$0xf] %vm62_vm0, %v3018_v6 }
0x1ea9   :  { %v3159_v0 = vpop.permute.xlu0 %3158  ;;  %v3024_v48 = vpop.permute.xlu1 %3023 }
0x1eaa   :  { %3161 = vst.msk [vmem:[#allocation4] sm:$0xf] %vm62_vm0, %v3159_v0  ;;  %v3026_v51 = vsel %vm7289_vm8, %v3000_v53, %v3024_v48 }
0x1eab   :  { %3028 = vrot.lane.b32.xlu1 %v3026_v51, %s5723_s19 }
0x1ead   :  { %v3165_v21 = vpop.permute.xlu0 %3164  ;;  %v6654_v14 = vld [vmem:[#allocation2] sm:$0xf] }
0x1eae   :  { %v3167_v26 = vsel %vm7288_vm3, %v3141_v29, %v3165_v21  ;;  %5158 = vmatmul.mubr.msk.f32.vlgmr.msra.gmra.mrb[22].mxu0 %vm82_vm2, %v6654_v14 }
0x1eaf   :  { %3169 = vrot.lane.b32.xlu0 %v3167_v26, %s5723_s19  ;;  %5405 = vmatpush3.bf16.msra.mxu0 %v5778_v5 }
0x1eb0   :  { %5406 = vmatprep.subr.bf16.mxu0 %v7306_v52  ;;  %5179 = vmatprep.mubr.msk.f32.mxu0 %vm5719_vm1, %v7307_v50 }
0x1eb1   :  { %v6665_v53 = vld [vmem:[#allocation4] sm:$0xf] }
0x1eb2   :  { %5169 = vmatmul.mubr.msk.f32.vlgmr.msra.gmra.mrb[22].mxu1 %vm82_vm2, %v6665_v53 }
0x1eb3   :  { %5408 = vmatpush3.bf16.msra.mxu0 %v5802_v12  ;;  %5411 = vmatpush3.bf16.msra.mxu1 %v5793_v9 }
0x1eb4   :  { %5412 = vmatprep.subr.bf16.mxu1 %v7306_v52  ;;  %5190 = vmatprep.mubr.msk.f32.mxu1 %vm5719_vm1, %v7307_v50 }
0x1eb5   :  { %5415 = vmatprep.subr.bf16.mxu0 %v7306_v52 }
0x1eb7   :  { %5414 = vmatpush3.bf16.msra.mxu1 %v5806_v13 }
0x1eb8   :  { %5421 = vmatprep.subr.bf16.mxu1 %v7306_v52 }
0x1f1d   :  { %v3029_v29 = vpop.permute.xlu1 %3028 }
0x1f1e   :  { %3031 = vst.msk [vmem:[#allocation3] sm:$0xf] %vm62_vm0, %v3029_v29 }
0x1f21   :  { %v3170_v34 = vpop.permute.xlu0 %3169 }
0x1f22   :  { %3172 = vst.msk [vmem:[#allocation5] sm:$0xf] %vm62_vm0, %v3170_v34 }
0x1f25   :  { %v3186_v26 = vld [vmem:[#allocation3] sm:$0xf] }
0x1f29   :  { %v3327_v29 = vld [vmem:[#allocation5] sm:$0xf] }
0x1f81   :  { %v3256_v23 = vpop.f32.mrb[22].mxu0 }
0x1f82   :  { %v3260_v4 = vadd.f32 %v4709_v39, %v3256_v23  ;;  %v5159_v37 = vpop.f32.mrb[23].mxu0 }
0x1f84   :  { %5636 = vtanh.f32 %v3260_v4  ;;  %v4711_v34 = vmul.f32 -1.442695, %v3260_v4 }
0x1f85   :  { %v3397_v6 = vpop.f32.mrb[22].mxu1 }
0x1f86   :  { %v3401_v0 = vadd.f32 %v4713_v32, %v3397_v6  ;;  %v5170_v48 = vpop.f32.mrb[23].mxu1 }
0x1f88   :  { %5638 = vtanh.f32 %v3401_v0  ;;  %v4715_v39 = vmul.f32 -1.442695, %v3401_v0 }
0x1f89   :  { %5640 = vpow2.f32 %v4711_v34 }
0x1f8a   :  { %5642 = vpow2.f32 %v4715_v39 }
0x1f8e   :  { %v5637_v51 = vpop.eup %5636 }
0x1f8f   :  { %3274 = vrot.lane.b32.xlu1 %v5637_v51, %s5722_s16 }
0x1f92   :  { %v5639_v21 = vpop.eup %5638 }
0x1f93   :  { %3415 = vrot.lane.b32.xlu0 %v5639_v21, %s5722_s16  ;;  %3269 = vrot.lane.b32.xlu1 %v3186_v26, %s5720_s2  ;;  %v5641_v23 = vpop.eup %5640 }
0x1f94   :  { %v3264_v37 = vadd.f32 1.0, %v5641_v23  ;;  %v5643_v32 = vpop.eup %5642 }
0x1f95   :  { %v3405_v6 = vadd.f32 1.0, %v5643_v32 }
0x1f96   :  { %5644 = vrcp.f32 %v3264_v37 }
0x1f97   :  { %3410 = vrot.lane.b32.xlu0 %v3327_v29, %s5720_s2  ;;  %5646 = vrcp.f32 %v3405_v6 }
0x1fa0   :  { %v5645_v48 = vpop.eup %5644 }
0x1fa1   :  { %v5647_v21 = vpop.eup %5646 }
0x2001   :  { %v3275_v51 = vpop.permute.xlu1 %3274 }
0x2002   :  { %v3277_v16 = vmul.f32 %v5645_v48, %v3275_v51 }
0x2004   :  { %3279 = vrot.lane.b32.xlu1 %v3277_v16, %s5720_s2 }
0x2005   :  { %v3416_v26 = vpop.permute.xlu0 %3415  ;;  %v3270_v4 = vpop.permute.xlu1 %3269 }
0x2006   :  { %v3418_v24 = vmul.f32 %v5647_v21, %v3416_v26  ;;  %v3272_v0 = vmul.f32 %v5645_v48, %v3270_v4 }
0x2008   :  { %3420 = vrot.lane.b32.xlu0 %v3418_v24, %s5720_s2  ;;  %3291 = vperm.xlu1 %5459, %v6171_v7  }
0x2009   :  { %v3411_v29 = vpop.permute.xlu0 %3410 }
0x200a   :  { %v3413_v23 = vmul.f32 %v5647_v21, %v3411_v29  ;;  %v3303_v29 = vld [vmem:[#allocation3] sm:$0xf] }
0x200c   :  { %3432 = vperm.xlu0 %5458, %v6165_v3  }
0x2076   :  { %v3280_v34 = vpop.permute.xlu1 %3279 }
0x2077   :  { %v3282_v39 = vadd.f32 %v3280_v34, %v3272_v0  ;;  %v3444_v34 = vld [vmem:[#allocation5] sm:$0xf] }
0x2079   :  { %5648 = vtanh.f32 %v3282_v39 }
0x207a   :  { %v3421_v37 = vpop.permute.xlu0 %3420 }
0x207b   :  { %v3423_v32 = vadd.f32 %v3421_v37, %v3413_v23 }
0x207d   :  { %5650 = vtanh.f32 %v3423_v32 }
0x2083   :  { %v5649_v16 = vpop.eup %5648 }
0x2084   :  { %3285 = vrot.lane.b32.xlu1 %v5649_v16, %s5722_s16 }
0x2087   :  { %v5651_v6 = vpop.eup %5650  ;;  %v6699_v3 = vpop.permute.xlu1 %3291 }
0x2088   :  { %3426 = vrot.lane.b32.xlu0 %v5651_v6, %s5722_s16  ;;  %3294 = vrot.lane.b32.xlu1 %v6654_v14, %s5723_s19  ;;  %vm7293_vm3 = vcmp.eq.s32.totalorder %v6699_v3, 1 }
0x208b   :  { %v6701_v7 = vpop.permute.xlu0 %3432 }
0x208c   :  { %3435 = vrot.lane.b32.xlu0 %v6665_v53, %s5723_s19  ;;  %7314 = vst [vmem:[#allocation19_spill] sm:$0xff] %v6701_v7  ;;  %vm7292_vm8 = vcmp.eq.s32.totalorder %v6701_v7, 1 }
0x20f6   :  { %v3286_v24 = vpop.permute.xlu1 %3285 }
0x20f7   :  { %v6703_v51 = vmul.f32 %v5645_v48, %v3286_v24 }
0x20fa   :  { %v3427_v26 = vpop.permute.xlu0 %3426  ;;  %v3295_v4 = vpop.permute.xlu1 %3294 }
0x20fb   :  { %v3297_v0 = vsel %vm7293_vm3, %v6703_v51, %v3295_v4  ;;  %v6710_v14 = vmul.f32 %v5647_v21, %v3427_v26 }
0x20fc   :  { %3299 = vrot.lane.b32.xlu1 %v3297_v0, %s5720_s2  ;;  %v4717_v0 = vld [vmem:[%s7257_s0 + $0x30] sm:$0xf] }
0x20fd   :  { %7315 = vst [vmem:[#allocation20_spill] sm:$0xff] %v6710_v14 }
0x20fe   :  { %v3436_v53 = vpop.permute.xlu0 %3435 }
0x20ff   :  { %v3438_v48 = vsel %vm7292_vm8, %v6710_v14, %v3436_v53 }
0x2100   :  { %3440 = vrot.lane.b32.xlu0 %v3438_v48, %s5720_s2  ;;  %3305 = vrot.lane.b32.xlu1 %v3303_v29, %s5720_s2 }
0x2104   :  { %3446 = vrot.lane.b32.xlu0 %v3444_v34, %s5720_s2  ;;  %v4721_v34 = vld [vmem:[%s7258_s1 + $0xc] sm:$0xf] }
0x216e   :  { %v3300_v23 = vpop.permute.xlu1 %3299 }
0x216f   :  { %3302 = vst.msk [vmem:[#allocation2] sm:$0xf] %vm62_vm0, %v3300_v23 }
0x2172   :  { %v3441_v21 = vpop.permute.xlu0 %3440  ;;  %v3306_v37 = vpop.permute.xlu1 %3305 }
0x2173   :  { %3443 = vst.msk [vmem:[#allocation4] sm:$0xf] %vm62_vm0, %v3441_v21  ;;  %v3308_v16 = vsel %vm7293_vm3, %v3282_v39, %v3306_v37 }
0x2174   :  { %3310 = vrot.lane.b32.xlu1 %v3308_v16, %s5723_s19 }
0x2176   :  { %v3447_v6 = vpop.permute.xlu0 %3446  ;;  %v6724_v24 = vld [vmem:[#allocation2] sm:$0xf] }
0x2177   :  { %v3449_v26 = vsel %vm7292_vm8, %v3423_v32, %v3447_v6  ;;  %5180 = vmatmul.mubr.msk.f32.vlgmr.msra.gmra.mrb[24].mxu0 %vm82_vm2, %v6724_v24 }
0x2178   :  { %3451 = vrot.lane.b32.xlu0 %v3449_v26, %s5723_s19  ;;  %5417 = vmatpush3.bf16.msra.mxu0 %v5778_v5 }
0x2179   :  { %5418 = vmatprep.subr.bf16.mxu0 %v7306_v52  ;;  %5201 = vmatprep.mubr.msk.f32.mxu0 %vm5719_vm1, %v7307_v50 }
0x217a   :  { %v6735_v39 = vld [vmem:[#allocation4] sm:$0xf] }
0x217b   :  { %5191 = vmatmul.mubr.msk.f32.vlgmr.msra.gmra.mrb[24].mxu1 %vm82_vm2, %v6735_v39 }
0x217c   :  { %5420 = vmatpush3.bf16.msra.mxu0 %v5802_v12  ;;  %5423 = vmatpush3.bf16.msra.mxu1 %v5793_v9 }
0x217d   :  { %5424 = vmatprep.subr.bf16.mxu1 %v7306_v52  ;;  %5212 = vmatprep.mubr.msk.f32.mxu1 %vm5719_vm1, %v7307_v50 }
0x217e   :  { %5427 = vmatprep.subr.bf16.mxu0 %v7306_v52 }
0x2180   :  { %5426 = vmatpush3.bf16.msra.mxu1 %v5806_v13 }
0x2181   :  { %5433 = vmatprep.subr.bf16.mxu1 %v7306_v52 }
0x21e6   :  { %v3311_v32 = vpop.permute.xlu1 %3310 }
0x21e7   :  { %3313 = vst.msk [vmem:[#allocation3] sm:$0xf] %vm62_vm0, %v3311_v32 }
0x21ea   :  { %v3452_v4 = vpop.permute.xlu0 %3451 }
0x21eb   :  { %3454 = vst.msk [vmem:[#allocation5] sm:$0xf] %vm62_vm0, %v3452_v4 }
0x21ee   :  { %v3468_v26 = vld [vmem:[#allocation3] sm:$0xf] }
0x21f2   :  { %v3609_v32 = vld [vmem:[#allocation5] sm:$0xf] }
0x224a   :  { %v3538_v53 = vpop.f32.mrb[24].mxu0 }
0x224b   :  { %v3542_v48 = vadd.f32 %v4717_v0, %v3538_v53  ;;  %v5181_v29 = vpop.f32.mrb[25].mxu0 }
0x224d   :  { %5652 = vtanh.f32 %v3542_v48  ;;  %v4719_v4 = vmul.f32 -1.442695, %v3542_v48 }
0x224e   :  { %v3679_v23 = vpop.f32.mrb[24].mxu1 }
0x224f   :  { %v3683_v21 = vadd.f32 %v4721_v34, %v3679_v23  ;;  %v5192_v37 = vpop.f32.mrb[25].mxu1 }
0x2251   :  { %5654 = vtanh.f32 %v3683_v21  ;;  %v4723_v0 = vmul.f32 -1.442695, %v3683_v21 }
0x2252   :  { %5656 = vpow2.f32 %v4719_v4 }
0x2253   :  { %5658 = vpow2.f32 %v4723_v0 }
0x2257   :  { %v5653_v16 = vpop.eup %5652 }
0x2258   :  { %3556 = vrot.lane.b32.xlu1 %v5653_v16, %s5722_s16 }
0x225b   :  { %v5655_v6 = vpop.eup %5654 }
0x225c   :  { %3697 = vrot.lane.b32.xlu0 %v5655_v6, %s5722_s16  ;;  %3551 = vrot.lane.b32.xlu1 %v3468_v26, %s5720_s2  ;;  %v5657_v53 = vpop.eup %5656 }
0x225d   :  { %v3546_v29 = vadd.f32 1.0, %v5657_v53  ;;  %v5659_v34 = vpop.eup %5658 }
0x225e   :  { %v3687_v23 = vadd.f32 1.0, %v5659_v34 }
0x225f   :  { %5660 = vrcp.f32 %v3546_v29 }
0x2260   :  { %3692 = vrot.lane.b32.xlu0 %v3609_v32, %s5720_s2  ;;  %5662 = vrcp.f32 %v3687_v23 }
0x2269   :  { %v5661_v37 = vpop.eup %5660 }
0x226a   :  { %v5663_v6 = vpop.eup %5662 }
0x22ca   :  { %v3557_v16 = vpop.permute.xlu1 %3556 }
0x22cb   :  { %v3559_v7 = vmul.f32 %v5661_v37, %v3557_v16 }
0x22cd   :  { %3561 = vrot.lane.b32.xlu1 %v3559_v7, %s5720_s2 }
0x22ce   :  { %v3698_v26 = vpop.permute.xlu0 %3697  ;;  %v3552_v48 = vpop.permute.xlu1 %3551 }
0x22cf   :  { %v3700_v14 = vmul.f32 %v5663_v6, %v3698_v26  ;;  %v3554_v21 = vmul.f32 %v5661_v37, %v3552_v48 }
0x22d1   :  { %3702 = vrot.lane.b32.xlu0 %v3700_v14, %s5720_s2  ;;  %3573 = vperm.xlu1 %5459, %v6093_v28  }
0x22d2   :  { %v3693_v32 = vpop.permute.xlu0 %3692 }
0x22d3   :  { %v3695_v53 = vmul.f32 %v5663_v6, %v3693_v32  ;;  %v3585_v32 = vld [vmem:[#allocation3] sm:$0xf] }
0x22d5   :  { %3714 = vperm.xlu0 %5458, %v6087_v27  }
0x233f   :  { %v3562_v4 = vpop.permute.xlu1 %3561 }
0x2340   :  { %v3564_v0 = vadd.f32 %v3562_v4, %v3554_v21  ;;  %v3726_v4 = vld [vmem:[#allocation5] sm:$0xf] }
0x2342   :  { %5664 = vtanh.f32 %v3564_v0 }
0x2343   :  { %v3703_v29 = vpop.permute.xlu0 %3702 }
0x2344   :  { %v3705_v34 = vadd.f32 %v3703_v29, %v3695_v53 }
0x2346   :  { %5666 = vtanh.f32 %v3705_v34 }
0x234c   :  { %v5665_v7 = vpop.eup %5664 }
0x234d   :  { %3567 = vrot.lane.b32.xlu1 %v5665_v7, %s5722_s16 }
0x2350   :  { %v5667_v23 = vpop.eup %5666  ;;  %v6769_v27 = vpop.permute.xlu1 %3573 }
0x2351   :  { %3708 = vrot.lane.b32.xlu0 %v5667_v23, %s5722_s16  ;;  %3576 = vrot.lane.b32.xlu1 %v6724_v24, %s5723_s19  ;;  %vm7297_vm8 = vcmp.eq.s32.totalorder %v6769_v27, 1 }
0x2354   :  { %v6771_v28 = vpop.permute.xlu0 %3714 }
0x2355   :  { %3717 = vrot.lane.b32.xlu0 %v6735_v39, %s5723_s19  ;;  %7316 = vst [vmem:[#allocation21_spill] sm:$0xff] %v6771_v28  ;;  %vm7296_vm3 = vcmp.eq.s32.totalorder %v6771_v28, 1 }
0x23bf   :  { %v3568_v14 = vpop.permute.xlu1 %3567 }
0x23c0   :  { %v6773_v16 = vmul.f32 %v5661_v37, %v3568_v14 }
0x23c3   :  { %v3709_v26 = vpop.permute.xlu0 %3708  ;;  %v3577_v48 = vpop.permute.xlu1 %3576 }
0x23c4   :  { %v3579_v21 = vsel %vm7297_vm8, %v6773_v16, %v3577_v48  ;;  %v6780_v24 = vmul.f32 %v5663_v6, %v3709_v26 }
0x23c5   :  { %3581 = vrot.lane.b32.xlu1 %v3579_v21, %s5720_s2  ;;  %v4725_v21 = vld [vmem:[%s7257_s0 + $0x34] sm:$0xf] }
0x23c6   :  { %7317 = vst [vmem:[#allocation22_spill] sm:$0xff] %v6780_v24 }
0x23c7   :  { %v3718_v39 = vpop.permute.xlu0 %3717 }
0x23c8   :  { %v3720_v37 = vsel %vm7296_vm3, %v6780_v24, %v3718_v39 }
0x23c9   :  { %3722 = vrot.lane.b32.xlu0 %v3720_v37, %s5720_s2  ;;  %3587 = vrot.lane.b32.xlu1 %v3585_v32, %s5720_s2 }
0x23cd   :  { %3728 = vrot.lane.b32.xlu0 %v3726_v4, %s5720_s2  ;;  %v4729_v4 = vld [vmem:[%s7258_s1 + $0x8] sm:$0xf] }
0x2437   :  { %v3582_v53 = vpop.permute.xlu1 %3581 }
0x2438   :  { %3584 = vst.msk [vmem:[#allocation2] sm:$0xf] %vm62_vm0, %v3582_v53 }
0x243b   :  { %v3723_v6 = vpop.permute.xlu0 %3722  ;;  %v3588_v29 = vpop.permute.xlu1 %3587 }
0x243c   :  { %3725 = vst.msk [vmem:[#allocation4] sm:$0xf] %vm62_vm0, %v3723_v6  ;;  %v3590_v7 = vsel %vm7297_vm8, %v3564_v0, %v3588_v29 }
0x243d   :  { %3592 = vrot.lane.b32.xlu1 %v3590_v7, %s5723_s19 }
0x243f   :  { %v3729_v23 = vpop.permute.xlu0 %3728  ;;  %v6794_v14 = vld [vmem:[#allocation2] sm:$0xf] }
0x2440   :  { %v3731_v26 = vsel %vm7296_vm3, %v3705_v34, %v3729_v23  ;;  %5202 = vmatmul.mubr.msk.f32.vlgmr.msra.gmra.mrb[26].mxu0 %vm82_vm2, %v6794_v14 }
0x2441   :  { %3733 = vrot.lane.b32.xlu0 %v3731_v26, %s5723_s19  ;;  %5429 = vmatpush3.bf16.msra.mxu0 %v5778_v5 }
0x2442   :  { %5430 = vmatprep.subr.bf16.mxu0 %v7306_v52  ;;  %5223 = vmatprep.mubr.msk.f32.mxu0 %vm5719_vm1, %v7307_v50 }
0x2443   :  { %v6805_v0 = vld [vmem:[#allocation4] sm:$0xf] }
0x2444   :  { %5213 = vmatmul.mubr.msk.f32.vlgmr.msra.gmra.mrb[26].mxu1 %vm82_vm2, %v6805_v0 }
0x2445   :  { %5432 = vmatpush3.bf16.msra.mxu0 %v5802_v12  ;;  %5435 = vmatpush3.bf16.msra.mxu1 %v5793_v9 }
0x2446   :  { %5436 = vmatprep.subr.bf16.mxu1 %v7306_v52  ;;  %5234 = vmatprep.mubr.msk.f32.mxu1 %vm5719_vm1, %v7307_v50 }
0x2447   :  { %5439 = vmatprep.subr.bf16.mxu0 %v7306_v52 }
0x2449   :  { %5438 = vmatpush3.bf16.msra.mxu1 %v5806_v13 }
0x244a   :  { %5445 = vmatprep.subr.bf16.mxu1 %v7306_v52 }
0x24af   :  { %v3593_v34 = vpop.permute.xlu1 %3592 }
0x24b0   :  { %3595 = vst.msk [vmem:[#allocation3] sm:$0xf] %vm62_vm0, %v3593_v34 }
0x24b3   :  { %v3734_v48 = vpop.permute.xlu0 %3733 }
0x24b4   :  { %3736 = vst.msk [vmem:[#allocation5] sm:$0xf] %vm62_vm0, %v3734_v48 }
0x24b7   :  { %v3750_v26 = vld [vmem:[#allocation3] sm:$0xf] }
0x24bb   :  { %v3891_v34 = vld [vmem:[#allocation5] sm:$0xf] }
0x2513   :  { %v3820_v39 = vpop.f32.mrb[26].mxu0 }
0x2514   :  { %v3824_v37 = vadd.f32 %v4725_v21, %v3820_v39  ;;  %v5203_v32 = vpop.f32.mrb[27].mxu0 }
0x2516   :  { %5668 = vtanh.f32 %v3824_v37  ;;  %v4727_v48 = vmul.f32 -1.442695, %v3824_v37 }
0x2517   :  { %v3961_v53 = vpop.f32.mrb[26].mxu1 }
0x2518   :  { %v3965_v6 = vadd.f32 %v4729_v4, %v3961_v53  ;;  %v5214_v29 = vpop.f32.mrb[27].mxu1 }
0x251a   :  { %5670 = vtanh.f32 %v3965_v6  ;;  %v4731_v21 = vmul.f32 -1.442695, %v3965_v6 }
0x251b   :  { %5672 = vpow2.f32 %v4727_v48 }
0x251c   :  { %5674 = vpow2.f32 %v4731_v21 }
0x2520   :  { %v5669_v7 = vpop.eup %5668 }
0x2521   :  { %3838 = vrot.lane.b32.xlu1 %v5669_v7, %s5722_s16 }
0x2524   :  { %v5671_v23 = vpop.eup %5670 }
0x2525   :  { %3979 = vrot.lane.b32.xlu0 %v5671_v23, %s5722_s16  ;;  %3833 = vrot.lane.b32.xlu1 %v3750_v26, %s5720_s2  ;;  %v5673_v39 = vpop.eup %5672 }
0x2526   :  { %v3828_v32 = vadd.f32 1.0, %v5673_v39  ;;  %v5675_v4 = vpop.eup %5674 }
0x2527   :  { %v3969_v53 = vadd.f32 1.0, %v5675_v4 }
0x2528   :  { %5676 = vrcp.f32 %v3828_v32 }
0x2529   :  { %3974 = vrot.lane.b32.xlu0 %v3891_v34, %s5720_s2  ;;  %5678 = vrcp.f32 %v3969_v53 }
0x2532   :  { %v5677_v29 = vpop.eup %5676 }
0x2533   :  { %v5679_v23 = vpop.eup %5678 }
0x2593   :  { %v3839_v7 = vpop.permute.xlu1 %3838 }
0x2594   :  { %v3841_v28 = vmul.f32 %v5677_v29, %v3839_v7 }
0x2596   :  { %3843 = vrot.lane.b32.xlu1 %v3841_v28, %s5720_s2 }
0x2597   :  { %v3980_v26 = vpop.permute.xlu0 %3979  ;;  %v3834_v37 = vpop.permute.xlu1 %3833 }
0x2598   :  { %v3982_v24 = vmul.f32 %v5679_v23, %v3980_v26  ;;  %v3836_v6 = vmul.f32 %v5677_v29, %v3834_v37 }
0x259a   :  { %3984 = vrot.lane.b32.xlu0 %v3982_v24, %s5720_s2  ;;  %3855 = vperm.xlu1 %5459, %v6015_v60  }
0x259b   :  { %v3975_v34 = vpop.permute.xlu0 %3974 }
0x259c   :  { %v3977_v39 = vmul.f32 %v5679_v23, %v3975_v34  ;;  %v3867_v34 = vld [vmem:[#allocation3] sm:$0xf] }
0x259e   :  { %3996 = vperm.xlu0 %5458, %v6009_v58  }
0x2608   :  { %v3844_v48 = vpop.permute.xlu1 %3843 }
0x2609   :  { %v3846_v21 = vadd.f32 %v3844_v48, %v3836_v6  ;;  %v4008_v48 = vld [vmem:[#allocation5] sm:$0xf] }
0x260b   :  { %5680 = vtanh.f32 %v3846_v21 }
0x260c   :  { %v3985_v32 = vpop.permute.xlu0 %3984 }
0x260d   :  { %v3987_v4 = vadd.f32 %v3985_v32, %v3977_v39 }
0x260f   :  { %5682 = vtanh.f32 %v3987_v4 }
0x2615   :  { %v5681_v28 = vpop.eup %5680 }
0x2616   :  { %3849 = vrot.lane.b32.xlu1 %v5681_v28, %s5722_s16 }
0x2619   :  { %v5683_v53 = vpop.eup %5682  ;;  %v6839_v58 = vpop.permute.xlu1 %3855 }
0x261a   :  { %3990 = vrot.lane.b32.xlu0 %v5683_v53, %s5722_s16  ;;  %3858 = vrot.lane.b32.xlu1 %v6794_v14, %s5723_s19  ;;  %vm3857_vm3 = vcmp.eq.s32.totalorder %v6839_v58, 1 }
0x261d   :  { %v6841_v60 = vpop.permute.xlu0 %3996 }
0x261e   :  { %3999 = vrot.lane.b32.xlu0 %v6805_v0, %s5723_s19  ;;  %vm7298_vm8 = vcmp.eq.s32.totalorder %v6841_v60, 1 }
0x2688   :  { %v3850_v24 = vpop.permute.xlu1 %3849 }
0x2689   :  { %v6843_v7 = vmul.f32 %v5677_v29, %v3850_v24 }
0x268c   :  { %v3991_v26 = vpop.permute.xlu0 %3990  ;;  %v3859_v37 = vpop.permute.xlu1 %3858 }
0x268d   :  { %v3861_v6 = vsel %vm3857_vm3, %v6843_v7, %v3859_v37  ;;  %v6850_v14 = vmul.f32 %v5679_v23, %v3991_v26  ;;  %v4733_v37 = vld [vmem:[%s7257_s0 + $0x38] sm:$0xf] }
0x268e   :  { %3863 = vrot.lane.b32.xlu1 %v3861_v6, %s5720_s2 }
0x2690   :  { %v4000_v0 = vpop.permute.xlu0 %3999 }
0x2691   :  { %v4002_v29 = vsel %vm7298_vm8, %v6850_v14, %v4000_v0 }
0x2692   :  { %4004 = vrot.lane.b32.xlu0 %v4002_v29, %s5720_s2  ;;  %3869 = vrot.lane.b32.xlu1 %v3867_v34, %s5720_s2 }
0x2696   :  { %4010 = vrot.lane.b32.xlu0 %v4008_v48, %s5720_s2 }
0x2700   :  { %v3864_v39 = vpop.permute.xlu1 %3863 }
0x2701   :  { %3866 = vst.msk [vmem:[#allocation2] sm:$0xf] %vm62_vm0, %v3864_v39 }
0x2704   :  { %v4005_v23 = vpop.permute.xlu0 %4004  ;;  %v3870_v32 = vpop.permute.xlu1 %3869 }
0x2705   :  { %4007 = vst.msk [vmem:[#allocation4] sm:$0xf] %vm62_vm0, %v4005_v23  ;;  %v3872_v28 = vsel %vm3857_vm3, %v3846_v21, %v3870_v32 }
0x2706   :  { %3874 = vrot.lane.b32.xlu1 %v3872_v28, %s5723_s19 }
0x2708   :  { %v4011_v53 = vpop.permute.xlu0 %4010  ;;  %v6864_v24 = vld [vmem:[#allocation2] sm:$0xf] }
0x2709   :  { %v4013_v26 = vsel %vm7298_vm8, %v3987_v4, %v4011_v53  ;;  %5224 = vmatmul.mubr.msk.f32.vlgmr.msra.gmra.mrb[28].mxu0 %vm82_vm2, %v6864_v24 }
0x270a   :  { %4015 = vrot.lane.b32.xlu0 %v4013_v26, %s5723_s19  ;;  %5441 = vmatpush3.bf16.msra.mxu0 %v5778_v5 }
0x270b   :  { %5442 = vmatprep.subr.bf16.mxu0 %v7306_v52  ;;  %5245 = vmatprep.mubr.msk.f32.mxu0 %vm5719_vm1, %v7307_v50 }
0x270c   :  { %v6875_v21 = vld [vmem:[#allocation4] sm:$0xf] }
0x270d   :  { %5235 = vmatmul.mubr.msk.f32.vlgmr.msra.gmra.mrb[28].mxu1 %vm82_vm2, %v6875_v21 }
0x270e   :  { %5444 = vmatpush3.bf16.msra.mxu0 %v5802_v12  ;;  %5447 = vmatpush3.bf16.msra.mxu1 %v5793_v9 }
0x270f   :  { %5448 = vmatprep.subr.bf16.mxu1 %v7306_v52  ;;  %5256 = vmatprep.mubr.msk.f32.mxu1 %vm5719_vm1, %v7307_v50  ;;  %v4737_v52 = vld [vmem:[%s7258_s1 + $0x4] sm:$0xf] }
0x2712   :  { %5450 = vmatpush3.bf16.msra.mxu1 %v5806_v13 }
0x2778   :  { %v3875_v5 = vpop.permute.xlu1 %3874 }
0x2779   :  { %3877 = vst.msk [vmem:[#allocation3] sm:$0xf] %vm62_vm0, %v3875_v5 }
0x277c   :  { %v4016_v4 = vpop.permute.xlu0 %4015 }
0x277d   :  { %4018 = vst.msk [vmem:[#allocation5] sm:$0xf] %vm62_vm0, %v4016_v4 }
0x2780   :  { %v4032_v48 = vld [vmem:[#allocation3] sm:$0xf] }
0x2784   :  { %v4173_v39 = vld [vmem:[#allocation5] sm:$0xf] }
0x27dc   :  { %v4102_v12 = vpop.f32.mrb[28].mxu0 }
0x27dd   :  { %v4106_v6 = vadd.f32 %v4733_v37, %v4102_v12  ;;  %v5225_v9 = vpop.f32.mrb[29].mxu0 }
0x27df   :  { %5684 = vtanh.f32 %v4106_v6  ;;  %v4735_v23 = vmul.f32 -1.442695, %v4106_v6 }
0x27e0   :  { %v4243_v50 = vpop.f32.mrb[28].mxu1 }
0x27e1   :  { %v4247_v13 = vadd.f32 %v4737_v52, %v4243_v50  ;;  %v5236_v0 = vpop.f32.mrb[29].mxu1 }
0x27e3   :  { %5686 = vtanh.f32 %v4247_v13  ;;  %v4739_v32 = vmul.f32 -1.442695, %v4247_v13 }
0x27e4   :  { %5688 = vpow2.f32 %v4735_v23 }
0x27e5   :  { %5690 = vpow2.f32 %v4739_v32 }
0x27e9   :  { %v5685_v29 = vpop.eup %5684 }
0x27ea   :  { %4120 = vrot.lane.b32.xlu1 %v5685_v29, %s5722_s16 }
0x27ed   :  { %v5687_v34 = vpop.eup %5686 }
0x27ee   :  { %4261 = vrot.lane.b32.xlu0 %v5687_v34, %s5722_s16  ;;  %4115 = vrot.lane.b32.xlu1 %v4032_v48, %s5720_s2  ;;  %v5689_v28 = vpop.eup %5688 }
0x27ef   :  { %v4110_v53 = vadd.f32 1.0, %v5689_v28  ;;  %v5691_v26 = vpop.eup %5690 }
0x27f0   :  { %v4251_v5 = vadd.f32 1.0, %v5691_v26 }
0x27f1   :  { %5692 = vrcp.f32 %v4110_v53 }
0x27f2   :  { %4256 = vrot.lane.b32.xlu0 %v4173_v39, %s5720_s2  ;;  %5694 = vrcp.f32 %v4251_v5 }
0x27fb   :  { %v5693_v4 = vpop.eup %5692 }
0x27fc   :  { %v5695_v9 = vpop.eup %5694 }
0x285c   :  { %v4121_v37 = vpop.permute.xlu1 %4120 }
0x285d   :  { %v4123_v12 = vmul.f32 %v5693_v4, %v4121_v37 }
0x285f   :  { %4125 = vrot.lane.b32.xlu1 %v4123_v12, %s5720_s2 }
0x2860   :  { %v4262_v52 = vpop.permute.xlu0 %4261  ;;  %v4116_v6 = vpop.permute.xlu1 %4115 }
0x2861   :  { %v4264_v50 = vmul.f32 %v5695_v9, %v4262_v52  ;;  %v4118_v13 = vmul.f32 %v5693_v4, %v4116_v6  ;;  %v4149_v52 = vld [vmem:[#allocation3] sm:$0xf] }
0x2863   :  { %4266 = vrot.lane.b32.xlu0 %v4264_v50, %s5720_s2  ;;  %4137 = vperm.xlu1 %5459, %v5937_v47   ;;  %v4290_v50 = vld [vmem:[#allocation5] sm:$0xf] }
0x2864   :  { %v4257_v0 = vpop.permute.xlu0 %4256 }
0x2865   :  { %v4259_v48 = vmul.f32 %v5695_v9, %v4257_v0 }
0x2867   :  { %4278 = vperm.xlu0 %5458, %v5931_v45  }
0x28d1   :  { %v4126_v29 = vpop.permute.xlu1 %4125 }
0x28d2   :  { %v4128_v34 = vadd.f32 %v4126_v29, %v4118_v13 }
0x28d4   :  { %5696 = vtanh.f32 %v4128_v34 }
0x28d5   :  { %v4267_v39 = vpop.permute.xlu0 %4266 }
0x28d6   :  { %v4269_v23 = vadd.f32 %v4267_v39, %v4259_v48 }
0x28d8   :  { %5698 = vtanh.f32 %v4269_v23 }
0x28de   :  { %v5697_v32 = vpop.eup %5696 }
0x28df   :  { %4131 = vrot.lane.b32.xlu1 %v5697_v32, %s5722_s16 }
0x28e2   :  { %v5699_v28 = vpop.eup %5698  ;;  %v6907_v45 = vpop.permute.xlu1 %4137 }
0x28e3   :  { %4272 = vrot.lane.b32.xlu0 %v5699_v28, %s5722_s16  ;;  %4140 = vrot.lane.b32.xlu1 %v6864_v24, %s5723_s19  ;;  %vm4139_vm1 = vcmp.eq.s32.totalorder %v6907_v45, 1 }
0x28e6   :  { %v6909_v47 = vpop.permute.xlu0 %4278 }
0x28e7   :  { %4281 = vrot.lane.b32.xlu0 %v6875_v21, %s5723_s19  ;;  %vm4280_vm8 = vcmp.eq.s32.totalorder %v6909_v47, 1 }
0x2951   :  { %v4132_v53 = vpop.permute.xlu1 %4131 }
0x2952   :  { %v6911_v26 = vmul.f32 %v5693_v4, %v4132_v53 }
0x2955   :  { %v4273_v5 = vpop.permute.xlu0 %4272  ;;  %v4141_v37 = vpop.permute.xlu1 %4140 }
0x2956   :  { %v4143_v12 = vsel %vm4139_vm1, %v6911_v26, %v4141_v37  ;;  %v6918_v24 = vmul.f32 %v5695_v9, %v4273_v5 }
0x2957   :  { %4145 = vrot.lane.b32.xlu1 %v4143_v12, %s5720_s2  ;;  %v4451_v12 = vld [vmem:[%s7258_s1] sm:$0xf] }
0x2958   :  { %v4301_v58 = vsel %vm4280_vm8, %v6918_v24, 0.0 }
0x2959   :  { %v4282_v21 = vpop.permute.xlu0 %4281 }
0x295a   :  { %v4284_v4 = vsel %vm4280_vm8, %v6918_v24, %v4282_v21 }
0x295b   :  { %4286 = vrot.lane.b32.xlu0 %v4284_v4, %s5720_s2  ;;  %4151 = vrot.lane.b32.xlu1 %v4149_v52, %s5720_s2 }
0x295f   :  { %4292 = vrot.lane.b32.xlu0 %v4290_v50, %s5720_s2 }
0x29c9   :  { %v4146_v6 = vpop.permute.xlu1 %4145 }
0x29ca   :  { %4148 = vst.msk [vmem:[#allocation2] sm:$0xf] %vm62_vm0, %v4146_v6 }
0x29cd   :  { %v4287_v9 = vpop.permute.xlu0 %4286  ;;  %v4152_v13 = vpop.permute.xlu1 %4151 }
0x29ce   :  { %4289 = vst.msk [vmem:[#allocation4] sm:$0xf] %vm62_vm0, %v4287_v9  ;;  %v4154_v0 = vsel %vm4139_vm1, %v4128_v34, %v4152_v13  ;;  %v4741_v34 = vld [vmem:[%s7257_s0 + $0x3c] sm:$0xf] }
0x29cf   :  { %4156 = vrot.lane.b32.xlu1 %v4154_v0, %s5723_s19 }
0x29d1   :  { %v4293_v29 = vpop.permute.xlu0 %4292  ;;  %v4313_v48 = vld [vmem:[#allocation2] sm:$0xf] }
0x29d2   :  { %v4295_v39 = vsel %vm4280_vm8, %v4269_v23, %v4293_v29  ;;  %5246 = vmatmul.mubr.msk.f32.vlgmr.msra.gmra.mrb[30].mxu0 %vm82_vm2, %v4313_v48 }
0x29d3   :  { %4297 = vrot.lane.b32.xlu0 %v4295_v39, %s5723_s19 }
0x29d5   :  { %v4452_v32 = vld [vmem:[#allocation4] sm:$0xf] }
0x29d6   :  { %5257 = vmatmul.mubr.msk.f32.vlgmr.msra.gmra.mrb[30].mxu1 %vm82_vm2, %v4452_v32 }
0x2a41   :  { %v4157_v28 = vpop.permute.xlu1 %4156 }
0x2a42   :  { %4159 = vst.msk [vmem:[#allocation3] sm:$0xf] %vm62_vm0, %v4157_v28 }
0x2a45   :  { %v4298_v53 = vpop.permute.xlu0 %4297 }
0x2a46   :  { %4300 = vst.msk [vmem:[#allocation5] sm:$0xf] %vm62_vm0, %v4298_v53 }
0x2a49   :  { %v4314_v9 = vld [vmem:[#allocation3] sm:$0xf] }
0x2a4d   :  { %v4453_v13 = vld [vmem:[#allocation5] sm:$0xf] }
0x2aa5   :  { %v4384_v5 = vpop.f32.mrb[30].mxu0 }
0x2aa6   :  { %v4388_v37 = vadd.f32 %v4741_v34, %v4384_v5  ;;  %v5247_v23 = vpop.f32.mrb[31].mxu0 }
0x2aa8   :  { %5700 = vtanh.f32 %v4388_v37  ;;  %v4743_v0 = vmul.f32 -1.442695, %v4388_v37 }
0x2aa9   :  { %v4523_v21 = vpop.f32.mrb[30].mxu1 }
0x2aaa   :  { %v4527_v4 = vadd.f32 %v4523_v21, %v4451_v12  ;;  %v5258_v52 = vpop.f32.mrb[31].mxu1 }
0x2aac   :  { %5702 = vtanh.f32 %v4527_v4  ;;  %v4746_v29 = vmul.f32 -1.442695, %v4527_v4  ;;  %v4431_v4 = vld [vmem:[#allocation3] sm:$0xf] }
0x2aad   :  { %5704 = vpow2.f32 %v4743_v0  ;;  %v776_v0 = vsel %vm755_vm13, %v6028_v22, 0.0 }
0x2aae   :  { %5706 = vpow2.f32 %v4746_v29 }
0x2ab2   :  { %v5701_v50 = vpop.eup %5700 }
0x2ab3   :  { %4402 = vrot.lane.b32.xlu1 %v5701_v50, %s5722_s16  ;;  %v4570_v50 = vld [vmem:[#allocation5] sm:$0xf] }
0x2ab6   :  { %v5703_v6 = vpop.eup %5702 }
0x2ab7   :  { %4541 = vrot.lane.b32.xlu0 %v5703_v6, %s5722_s16  ;;  %4397 = vrot.lane.b32.xlu1 %v4314_v9, %s5720_s2  ;;  %v5705_v39 = vpop.eup %5704  ;;  %v211_v6 = vsel %vm189_vm5, %v5872_v57, 0.0  ;;  %vm7318_vm5 = vcmp.eq.s32.totalorder %v6265_v15, 1 }
0x2ab8   :  { %v4392_v28 = vadd.f32 1.0, %v5705_v39  ;;  %v5707_v53 = vpop.eup %5706  ;;  %v1763_v33 = vsel %vm7318_vm5, %v6274_v56, 0.0  ;;  %v7322_v56 = vld [vmem:[#allocation7_spill] sm:$0xff]  ;;  %vm7342_vm5 = vcmp.eq.s32.totalorder %v6699_v3, 1 }
0x2ab9   :  { %v4531_v34 = vadd.f32 1.0, %v5707_v53  ;;  %v1058_v53 = vsel %vm1037_vm4, %v6106_v49, 0.0  ;;  %v1481_v49 = vsel %vm1460_vm15, %v6191_v10, 0.0  ;;  %v7319_v10 = vld [vmem:[#allocation6_spill] sm:$0xff]  ;;  %vm7338_vm15 = vcmp.eq.s32.totalorder %v6629_v11, 1 }
0x2aba   :  { %5708 = vrcp.f32 %v4392_v28  ;;  %v917_v28 = vsel %vm896_vm14, %v6035_v20, 0.0  ;;  %vm7330_vm14 = vcmp.eq.s32.totalorder %v6489_v36, 1 }
0x2abb   :  { %4536 = vrot.lane.b32.xlu0 %v4453_v13, %s5720_s2  ;;  %5710 = vrcp.f32 %v4531_v34  ;;  %v1199_v34 = vsel %vm1178_vm7, %v6113_v35, 0.0  ;;  %vm7334_vm7 = vcmp.eq.s32.totalorder %v6559_v40, 1 }
0x2ac4   :  { %v6949_v5 = vpop.eup %5708 }
0x2ac5   :  { %v6953_v21 = vpop.eup %5710 }
0x2b25   :  { %v4403_v23 = vpop.permute.xlu1 %4402 }
0x2b26   :  { %v4405_v12 = vmul.f32 %v6949_v5, %v4403_v23 }
0x2b28   :  { %4407 = vrot.lane.b32.xlu1 %v4405_v12, %s5720_s2  ;;  %v7325_v12 = vld [vmem:[#allocation9_spill] sm:$0xff] }
0x2b29   :  { %v4542_v52 = vpop.permute.xlu0 %4541  ;;  %v4398_v57 = vpop.permute.xlu1 %4397  ;;  %vm7326_vm10 = vcmp.eq.s32.totalorder %v7325_v12, 1 }
0x2b2a   :  { %v4544_v37 = vmul.f32 %v6953_v21, %v4542_v52 }
0x2b2c   :  { %4546 = vrot.lane.b32.xlu0 %v4544_v37, %s5720_s2  ;;  %4419 = vperm.xlu1 %5459, %v5859_v43   ;;  %v494_v43 = vsel %vm473_vm9, %v5950_v2, 0.0  ;;  %vm7323_vm9 = vcmp.eq.s32.totalorder %v7322_v56, 1  ;;  %v7327_v37 = vld [vmem:[#allocation12_spill] sm:$0xff] }
0x2b2d   :  { %v2045_v23 = vsel %vm7323_vm9, %v7321_v42, 0.0 }
0x2b30   :  { %4558 = vperm.xlu0 %5458, %v5853_v41   ;;  %4422 = vrot.lane.b32.xlu1 %v4313_v48, %s5723_s19  ;;  %v353_v41 = vsel %vm332_vm6, %v5879_v61, 0.0  ;;  %v4400_v48 = vmul.f32 %v6949_v5, %v4398_v57  ;;  %vm7320_vm6 = vcmp.eq.s32.totalorder %v7319_v10, 1  ;;  %v2750_v57 = vsel %vm7334_vm7, %v6563_v25, 0.0 }
0x2b31   :  { %v1904_v38 = vsel %vm7320_vm6, %v6345_v1, 0.0  ;;  %v7324_v1 = vld [vmem:[#allocation11_spill] sm:$0xff]  ;;  %v3314_v25 = vsel %vm7342_vm5, %v6703_v51, 0.0  ;;  %vm7343_vm6 = vcmp.eq.s32.totalorder %v6769_v27, 1  ;;  %v3878_v51 = vsel %vm3857_vm3, %v6843_v7, 0.0 }
0x2b32   :  { %v2186_v52 = vsel %vm7326_vm10, %v7324_v1, 0.0  ;;  %v3596_v11 = vsel %vm7343_vm6, %v6773_v16, 0.0  ;;  %v4160_v16 = vsel %vm4139_vm1, %v6911_v26, 0.0 }
0x2b34   :  { %4433 = vrot.lane.b32.xlu0 %v4431_v4, %s5720_s2  ;;  %4561 = vrot.lane.b32.xlu1 %v4452_v32, %s5723_s19  ;;  %v4537_v32 = vpop.permute.xlu0 %4536  ;;  %v7328_v4 = vld [vmem:[#allocation10_spill] sm:$0xff] }
0x2b35   :  { %v4539_v62 = vmul.f32 %v6953_v21, %v4537_v32  ;;  %vm7329_vm13 = vcmp.eq.s32.totalorder %v7328_v4, 1  ;;  %v7336_v32 = vld [vmem:[#allocation15_spill] sm:$0xff] }
0x2b36   :  { %vm7337_vm12 = vcmp.eq.s32.totalorder %v7336_v32, 1 }
0x2b38   :  { %4572 = vrot.lane.b32.xlu0 %v4570_v50, %s5720_s2  ;;  %213 = vrot.lane.b32.xlu1 %v211_v6, %s5720_s2  ;;  %v2327_v50 = vsel %vm7329_vm13, %v7327_v37, 0.0  ;;  %v2468_v6 = vsel %vm7330_vm14, %v6493_v17, 0.0  ;;  %v3032_v17 = vsel %vm7338_vm15, %v6633_v59, 0.0  ;;  %v7344_v59 = vld [vmem:[#allocation20_spill] sm:$0xff]  ;;  %vm7350_vm13 = vcmp.eq.s32.totalorder %v6841_v60, 1 }
0x2b39   :  { %v4019_v27 = vsel %vm7350_vm13, %v6850_v14, 0.0 }
0x2b3c   :  { %355 = vrot.lane.b32.xlu0 %v353_v41, %s5720_s2  ;;  %496 = vrot.lane.b32.xlu1 %v494_v43, %s5720_s2  ;;  %v7331_v41 = vld [vmem:[#allocation14_spill] sm:$0xff]  ;;  %v7332_v43 = vld [vmem:[#allocation13_spill] sm:$0xff] }
0x2b3d   :  { %vm7333_vm4 = vcmp.eq.s32.totalorder %v7332_v43, 1 }
0x2b40   :  { %637 = vrot.lane.b32.xlu0 %v635_v55, %s5720_s2  ;;  %v2609_v55 = vsel %vm7333_vm4, %v7331_v41, 0.0 }
0x2b9a   :  { %v4408_v54 = vpop.permute.xlu1 %4407 }
0x2b9b   :  { %v6980_v61 = vadd.f32 %v4408_v54, %v4400_v48  ;;  %v7335_v48 = vld [vmem:[#allocation16_spill] sm:$0xff]  ;;  %v7339_v54 = vld [vmem:[#allocation18_spill] sm:$0xff] }
0x2b9c   :  { %v2891_v36 = vsel %vm7337_vm12, %v7335_v48, 0.0 }
0x2b9d   :  { %5712 = vtanh.f32 %v6980_v61 }
0x2b9e   :  { %v4547_v2 = vpop.permute.xlu0 %4546 }
0x2b9f   :  { %v4549_v9 = vadd.f32 %v4547_v2, %v4539_v62  ;;  %v7340_v62 = vld [vmem:[#allocation17_spill] sm:$0xff]  ;;  %v7345_v2 = vld [vmem:[#allocation19_spill] sm:$0xff] }
0x2ba0   :  { %vm7341_vm11 = vcmp.eq.s32.totalorder %v7340_v62, 1  ;;  %vm7346_vm9 = vcmp.eq.s32.totalorder %v7345_v2, 1 }
0x2ba1   :  { %5714 = vtanh.f32 %v4549_v9  ;;  %v3173_v40 = vsel %vm7341_vm11, %v7339_v54, 0.0 }
0x2ba7   :  { %v5713_v13 = vpop.eup %5712 }
0x2ba8   :  { %4413 = vrot.lane.b32.xlu1 %v5713_v13, %s5722_s16  ;;  %v7347_v13 = vld [vmem:[#allocation22_spill] sm:$0xff] }
0x2bab   :  { %v5715_v63 = vpop.eup %5714  ;;  %v6985_v8 = vpop.permute.xlu1 %4419 }
0x2bac   :  { %4552 = vrot.lane.b32.xlu0 %v5715_v63, %s5722_s16  ;;  %778 = vrot.lane.b32.xlu1 %v776_v0, %s5720_s2  ;;  %v7348_v63 = vld [vmem:[#allocation21_spill] sm:$0xff]  ;;  %vm4421_vm3 = vcmp.eq.s32.totalorder %v6985_v8, 1 }
0x2bad   :  { %vm7349_vm10 = vcmp.eq.s32.totalorder %v7348_v63, 1 }
0x2bae   :  { %v3737_v3 = vsel %vm7349_vm10, %v7347_v13, 0.0 }
0x2baf   :  { %v6992_v29 = vpop.permute.xlu0 %4558  ;;  %v6994_v39 = vpop.permute.xlu1 %4422 }
0x2bb0   :  { %919 = vrot.lane.b32.xlu0 %v917_v28, %s5720_s2  ;;  %1060 = vrot.lane.b32.xlu1 %v1058_v53, %s5720_s2  ;;  %vm4560_vm2 = vcmp.eq.s32.totalorder %v6992_v29, 1 }
0x2bb3   :  { %v7004_v18 = vpop.permute.xlu0 %4433  ;;  %v7006_v22 = vpop.permute.xlu1 %4561 }
0x2bb4   :  { %1201 = vrot.lane.b32.xlu0 %v1199_v34, %s5720_s2  ;;  %1342 = vrot.lane.b32.xlu1 %v1340_v19, %s5720_s2  ;;  %v4436_v60 = vsel %vm4421_vm3, %v6980_v61, %v7004_v18 }
0x2bb7   :  { %v4573_v20 = vpop.permute.xlu0 %4572  ;;  %v214_v44 = vpop.permute.xlu1 %213 }
0x2bb8   :  { %v7025_v35 = vsel %vm4560_vm2, %v4549_v9, %v4573_v20  ;;  %216 = vst.msk [vmem:[%s7260_s5] sm:$0xf] %vm62_vm0, %v214_v44  ;;  %1483 = vrot.lane.b32.xlu0 %v1481_v49, %s5720_s2  ;;  %1624 = vrot.lane.b32.xlu1 %v1622_v46, %s5720_s2  ;;  %v3455_v9 = vsel %vm7346_vm9, %v7344_v59, 0.0 }
0x2bbb   :  { %v356_v30 = vpop.permute.xlu0 %355  ;;  %v497_v31 = vpop.permute.xlu1 %496 }
0x2bbc   :  { %4628 = vst.msk [vmem:[%s7261_s6 + $0x3c] sm:$0xf] %vm62_vm0, %v356_v30  ;;  %4632 = vst.msk [vmem:[%s7260_s5 + $0x4] sm:$0xf] %vm62_vm0, %v497_v31  ;;  %1765 = vrot.lane.b32.xlu0 %v1763_v33, %s5720_s2  ;;  %1906 = vrot.lane.b32.xlu1 %v1904_v38, %s5720_s2 }
0x2bbf   :  { %v638_v15 = vpop.permute.xlu0 %637 }
0x2bc0   :  { %4636 = vst.msk [vmem:[%s7261_s6 + $0x38] sm:$0xf] %vm62_vm0, %v638_v15  ;;  %2047 = vrot.lane.b32.xlu0 %v2045_v23, %s5720_s2  ;;  %2188 = vrot.lane.b32.xlu1 %v2186_v52, %s5720_s2 }
0x2bc4   :  { %2329 = vrot.lane.b32.xlu0 %v2327_v50, %s5720_s2  ;;  %2470 = vrot.lane.b32.xlu1 %v2468_v6, %s5720_s2 }
0x2bc8   :  { %2611 = vrot.lane.b32.xlu0 %v2609_v55, %s5720_s2  ;;  %2752 = vrot.lane.b32.xlu1 %v2750_v57, %s5720_s2 }
0x2bcc   :  { %2893 = vrot.lane.b32.xlu0 %v2891_v36, %s5720_s2  ;;  %3034 = vrot.lane.b32.xlu1 %v3032_v17, %s5720_s2 }
0x2bd0   :  { %3175 = vrot.lane.b32.xlu0 %v3173_v40, %s5720_s2  ;;  %3316 = vrot.lane.b32.xlu1 %v3314_v25, %s5720_s2 }
0x2bd4   :  { %3457 = vrot.lane.b32.xlu0 %v3455_v9, %s5720_s2  ;;  %3598 = vrot.lane.b32.xlu1 %v3596_v11, %s5720_s2 }
0x2bd8   :  { %3739 = vrot.lane.b32.xlu0 %v3737_v3, %s5720_s2  ;;  %3880 = vrot.lane.b32.xlu1 %v3878_v51, %s5720_s2 }
0x2bdc   :  { %4021 = vrot.lane.b32.xlu0 %v4019_v27, %s5720_s2  ;;  %4162 = vrot.lane.b32.xlu1 %v4160_v16, %s5720_s2 }
0x2be0   :  { %4303 = vrot.lane.b32.xlu0 %v4301_v58, %s5720_s2 }
0x2be4   :  { %4438 = vrot.lane.b32.xlu0 %v4436_v60, %s5723_s19 }
0x2c1a   :  { %v4414_v7 = vpop.permute.xlu1 %4413 }
0x2c1b   :  { %v4416_v14 = vmul.f32 %v6949_v5, %v4414_v7 }
0x2c1d   :  { %v4425_v45 = vsel %vm4421_vm3, %v4416_v14, %v6994_v39  ;;  %v4442_v24 = vsel %vm4421_vm3, %v4416_v14, 0.0 }
0x2c1e   :  { %v4553_v26 = vpop.permute.xlu0 %4552  ;;  %4427 = vrot.lane.b32.xlu1 %v4425_v45, %s5720_s2  ;;  %v779_v0 = vpop.permute.xlu1 %778 }
0x2c1f   :  { %v4555_v47 = vmul.f32 %v6953_v21, %v4553_v26  ;;  %4640 = vst.msk [vmem:[%s7260_s5 + $0x8] sm:$0xf] %vm62_vm0, %v779_v0 }
0x2c21   :  { %v4564_v61 = vsel %vm4560_vm2, %v4555_v47, %v7006_v22  ;;  %v4581_v21 = vsel %vm4560_vm2, %v4555_v47, 0.0 }
0x2c22   :  { %v920_v8 = vpop.permute.xlu0 %919  ;;  %4566 = vrot.lane.b32.xlu0 %v4564_v61, %s5720_s2  ;;  %4444 = vrot.lane.b32.xlu1 %v4442_v24, %s5720_s2  ;;  %v1061_v5 = vpop.permute.xlu1 %1060 }
0x2c23   :  { %4644 = vst.msk [vmem:[%s7261_s6 + $0x34] sm:$0xf] %vm62_vm0, %v920_v8  ;;  %4648 = vst.msk [vmem:[%s7260_s5 + $0xc] sm:$0xf] %vm62_vm0, %v1061_v5 }
0x2c26   :  { %v1202_v39 = vpop.permute.xlu0 %1201  ;;  %4583 = vrot.lane.b32.xlu0 %v4581_v21, %s5720_s2  ;;  %4577 = vrot.lane.b32.xlu1 %v7025_v35, %s5723_s19  ;;  %v1343_v28 = vpop.permute.xlu1 %1342 }
0x2c27   :  { %4652 = vst.msk [vmem:[%s7261_s6 + $0x30] sm:$0xf] %vm62_vm0, %v1202_v39  ;;  %4656 = vst.msk [vmem:[%s7260_s5 + $0x10] sm:$0xf] %vm62_vm0, %v1343_v28 }
0x2c2a   :  { %v1484_v53 = vpop.permute.xlu0 %1483  ;;  %v1625_v29 = vpop.permute.xlu1 %1624 }
0x2c2b   :  { %4660 = vst.msk [vmem:[%s7261_s6 + $0x2c] sm:$0xf] %vm62_vm0, %v1484_v53  ;;  %4664 = vst.msk [vmem:[%s7260_s5 + $0x14] sm:$0xf] %vm62_vm0, %v1625_v29 }
0x2c2e   :  { %v1766_v18 = vpop.permute.xlu0 %1765  ;;  %v1907_v22 = vpop.permute.xlu1 %1906 }
0x2c2f   :  { %4668 = vst.msk [vmem:[%s7261_s6 + $0x28] sm:$0xf] %vm62_vm0, %v1766_v18  ;;  %4672 = vst.msk [vmem:[%s7260_s5 + $0x18] sm:$0xf] %vm62_vm0, %v1907_v22 }
0x2c32   :  { %v2048_v34 = vpop.permute.xlu0 %2047  ;;  %v2189_v19 = vpop.permute.xlu1 %2188 }
0x2c33   :  { %4676 = vst.msk [vmem:[%s7261_s6 + $0x24] sm:$0xf] %vm62_vm0, %v2048_v34  ;;  %4680 = vst.msk [vmem:[%s7260_s5 + $0x1c] sm:$0xf] %vm62_vm0, %v2189_v19 }
0x2c36   :  { %v2330_v20 = vpop.permute.xlu0 %2329  ;;  %v2471_v44 = vpop.permute.xlu1 %2470 }
0x2c37   :  { %4684 = vst.msk [vmem:[%s7261_s6 + $0x20] sm:$0xf] %vm62_vm0, %v2330_v20  ;;  %4688 = vst.msk [vmem:[%s7260_s5 + $0x20] sm:$0xf] %vm62_vm0, %v2471_v44 }
0x2c3a   :  { %v2612_v49 = vpop.permute.xlu0 %2611  ;;  %v2753_v46 = vpop.permute.xlu1 %2752 }
0x2c3b   :  { %4692 = vst.msk [vmem:[%s7261_s6 + $0x1c] sm:$0xf] %vm62_vm0, %v2612_v49  ;;  %4696 = vst.msk [vmem:[%s7260_s5 + $0x24] sm:$0xf] %vm62_vm0, %v2753_v46 }
0x2c3e   :  { %v2894_v35 = vpop.permute.xlu0 %2893  ;;  %v3035_v30 = vpop.permute.xlu1 %3034 }
0x2c3f   :  { %4700 = vst.msk [vmem:[%s7261_s6 + $0x18] sm:$0xf] %vm62_vm0, %v2894_v35  ;;  %4704 = vst.msk [vmem:[%s7260_s5 + $0x28] sm:$0xf] %vm62_vm0, %v3035_v30 }
0x2c42   :  { %v3176_v31 = vpop.permute.xlu0 %3175  ;;  %v3317_v33 = vpop.permute.xlu1 %3316 }
0x2c43   :  { %4708 = vst.msk [vmem:[%s7261_s6 + $0x14] sm:$0xf] %vm62_vm0, %v3176_v31  ;;  %4712 = vst.msk [vmem:[%s7260_s5 + $0x2c] sm:$0xf] %vm62_vm0, %v3317_v33 }
0x2c46   :  { %v3458_v10 = vpop.permute.xlu0 %3457  ;;  %v3599_v38 = vpop.permute.xlu1 %3598 }
0x2c47   :  { %4716 = vst.msk [vmem:[%s7261_s6 + $0x10] sm:$0xf] %vm62_vm0, %v3458_v10  ;;  %4720 = vst.msk [vmem:[%s7260_s5 + $0x30] sm:$0xf] %vm62_vm0, %v3599_v38 }
0x2c4a   :  { %v3740_v15 = vpop.permute.xlu0 %3739  ;;  %v3881_v42 = vpop.permute.xlu1 %3880 }
0x2c4b   :  { %4724 = vst.msk [vmem:[%s7261_s6 + $0xc] sm:$0xf] %vm62_vm0, %v3740_v15  ;;  %4728 = vst.msk [vmem:[%s7260_s5 + $0x34] sm:$0xf] %vm62_vm0, %v3881_v42 }
0x2c4e   :  { %v4022_v56 = vpop.permute.xlu0 %4021  ;;  %v4163_v23 = vpop.permute.xlu1 %4162 }
0x2c4f   :  { %4732 = vst.msk [vmem:[%s7261_s6 + $0x8] sm:$0xf] %vm62_vm0, %v4022_v56  ;;  %4736 = vst.msk [vmem:[%s7260_s5 + $0x38] sm:$0xf] %vm62_vm0, %v4163_v23 }
0x2c52   :  { %v4304_v1 = vpop.permute.xlu0 %4303 }
0x2c53   :  { %4740 = vst.msk [vmem:[%s7261_s6 + $0x4] sm:$0xf] %vm62_vm0, %v4304_v1 }
0x2c56   :  { %v4439_v12 = vpop.permute.xlu0 %4438 }
0x2c57   :  { %4441 = vst.msk [vmem:[#allocation3] sm:$0xf] %vm62_vm0, %v4439_v12 }
0x2c90   :  { %v4428_v52 = vpop.permute.xlu1 %4427 }
0x2c91   :  { %4430 = vst.msk [vmem:[#allocation2] sm:$0xf] %vm62_vm0, %v4428_v52 }
0x2c94   :  { %v4567_v37 = vpop.permute.xlu0 %4566  ;;  %v4445_v4 = vpop.permute.xlu1 %4444 }
0x2c95   :  { %4569 = vst.msk [vmem:[#allocation4] sm:$0xf] %vm62_vm0, %v4567_v37  ;;  %4744 = vst.msk [vmem:[%s7260_s5 + $0x3c] sm:$0xf] %vm62_vm0, %v4445_v4 }
0x2c98   :  { %v4584_v50 = vpop.permute.xlu0 %4583  ;;  %v4578_v6 = vpop.permute.xlu1 %4577 }
0x2c99   :  { %4586 = vst.msk [vmem:[%s7261_s6] sm:$0xf] %vm62_vm0, %v4584_v50  ;;  %4580 = vst.msk [vmem:[#allocation5] sm:$0xf] %vm62_vm0, %v4578_v6 }

</bundles_post_ra>
